<compile_context>
chip_gen: v7x
topology: tpu7x:2x2x1
jax: 0.10.0
libtpu: 0.0.40
codegen_flags: <defaults>
</compile_context>

<pallas_src>
import functools

import jax
import jax.numpy as jnp
from jax.experimental import pallas as pl
from jax.experimental.pallas import tpu as pltpu


# ----------------------------------------------------------------------------
# Configuration
# ----------------------------------------------------------------------------
STEM_CIN = 8          # 3 real RGB channels zero-padded to 8 (folded into the halo pad)
STEM_COUT = 128       # lane-dense channel counts throughout the backbone
EXPAND_CH = 256
FEAT_CH = 128         # out_channels of the last `features` conv (head in_features)
HEAD_DIMS = (9, 2, 7)  # age, gender, race
HEAD_OUT_PAD = 128    # packed lane-dense head output width

# 48 MiB fits v7x's 64 MiB physical VMEM while raising v5e's 16 MiB default.
VMEM_LIMIT_BYTES = 48 * 1024 * 1024

# Set to jnp.bfloat16 on v6e/v7x to hit full MXU rate; accumulation stays f32.
# Keep f32 for bit-clean numerics on all generations (incl. v5e).
MXU_INPUT_DTYPE = jnp.float32


# ----------------------------------------------------------------------------
# Small helpers
# ----------------------------------------------------------------------------
def _apply_activation(y, activation):
    """VPU-only activation math (min/max/mul), fused into kernel epilogues."""
    if activation == "none":
        return y
    if activation == "relu":
        return jnp.maximum(y, 0.0)
    if activation == "hardswish":
        # x * relu6(x + 3) / 6, pure clamp math (no EUP).
        return y * jnp.minimum(jnp.maximum(y + 3.0, 0.0), 6.0) * (1.0 / 6.0)
    raise ValueError(f"unknown activation: {activation}")


def _pick_tile(dim, candidates):
    """Largest candidate tile that divides `dim`, else the full extent."""
    for c in candidates:
        if dim % c == 0:
            return c
    return dim


def _cparams(dim_semantics):
    return pltpu.CompilerParams(
        dimension_semantics=dim_semantics,
        vmem_limit_bytes=VMEM_LIMIT_BYTES,
    )


# ----------------------------------------------------------------------------
# Kernel 1: fused matmul + bias + activation (used for all 1x1 convolutions)
# ----------------------------------------------------------------------------
def _matmul_bias_act_kernel(x_ref, w_ref, b_ref, o_ref, acc_ref, *, activation):
    k = pl.program_id(2)

    @pl.when(k == 0)
    def _init():
        acc_ref[...] = jnp.zeros_like(acc_ref)

    acc_ref[...] += jnp.dot(
        x_ref[...].astype(MXU_INPUT_DTYPE),
        w_ref[...].astype(MXU_INPUT_DTYPE),
        preferred_element_type=jnp.float32,
    )

    @pl.when(k == pl.num_programs(2) - 1)
    def _finalize():
        y = acc_ref[...] + b_ref[...].astype(jnp.float32)
        o_ref[...] = _apply_activation(y, activation).astype(o_ref.dtype)


def matmul_bias_act(x, w, b, activation):
    """y = act(x @ w + b); x: (M, K), w: (K, N), b: (1, N)."""
    M, K = x.shape
    Kw, N = w.shape
    assert K == Kw and b.shape == (1, N)

    tm = _pick_tile(M, (512, 256, 128, 64, 32, 16, 8))
    tn = _pick_tile(N, (256, 128))
    tk = _pick_tile(K, (512, 256, 128))
    grid = (M // tm, N // tn, K // tk)

    kernel = functools.partial(_matmul_bias_act_kernel, activation=activation)
    return pl.pallas_call(
        kernel,
        out_shape=jax.ShapeDtypeStruct((M, N), x.dtype),
        grid=grid,
        in_specs=[
            pl.BlockSpec((tm, tk), lambda i, j, k: (i, k)),
            pl.BlockSpec((tk, tn), lambda i, j, k: (k, j)),
            pl.BlockSpec((1, tn), lambda i, j, k: (0, j)),
        ],
        out_specs=pl.BlockSpec((tm, tn), lambda i, j, k: (i, j)),
        scratch_shapes=[pltpu.VMEM((tm, tn), jnp.float32)],
        compiler_params=_cparams(("parallel", "parallel", "arbitrary")),
    )(x, w, b)


def conv1x1(x_nhwc, w, b, activation):
    B, H, W, Cin = x_nhwc.shape
    Cout = w.shape[1]
    y = matmul_bias_act(x_nhwc.reshape(B * H * W, Cin), w, b, activation)
    return y.reshape(B, H, W, Cout)


# ----------------------------------------------------------------------------
# Kernel 2: 3x3 stem conv (stride 1, pad 1) as 9 shifted 1x1 matmuls
# ----------------------------------------------------------------------------
def _conv3x3_kernel(x_ref, w_ref, b_ref, o_ref, acc_ref, *, H, W, Cin, Cout,
                    activation):
    # x_ref: (H+2, W+2, Cin) halo'd tile in VMEM (one DMA).
    acc_ref[...] = jnp.zeros_like(acc_ref)
    for dy in range(3):
        for dx in range(3):
            tap = x_ref[dy:dy + H, dx:dx + W, :].reshape(H * W, Cin)
            acc_ref[...] += jnp.dot(
                tap.astype(MXU_INPUT_DTYPE),
                w_ref[dy * 3 + dx].astype(MXU_INPUT_DTYPE),
                preferred_element_type=jnp.float32,
            )
    y = acc_ref[...] + b_ref[...].astype(jnp.float32)
    y = _apply_activation(y, activation)
    o_ref[...] = y.reshape(H, W, Cout).astype(o_ref.dtype)


def conv3x3(x_nhwc, w, b, activation):
    """3x3, stride 1, SAME conv.  w: (9, Cin_pad, Cout), b: (1, Cout)."""
    B, H, W, Cin_real = x_nhwc.shape
    Cin, Cout = w.shape[1], w.shape[2]
    assert Cin >= Cin_real
    # Halo pad + channel pad in a single jnp.pad (one pass over the input).
    xp = jnp.pad(x_nhwc, ((0, 0), (1, 1), (1, 1), (0, Cin - Cin_real)))

    kernel = functools.partial(
        _conv3x3_kernel, H=H, W=W, Cin=Cin, Cout=Cout, activation=activation)
    return pl.pallas_call(
        kernel,
        out_shape=jax.ShapeDtypeStruct((B, H, W, Cout), x_nhwc.dtype),
        grid=(B,),
        in_specs=[
            pl.BlockSpec((None, H + 2, W + 2, Cin), lambda bb: (bb, 0, 0, 0)),
            pl.BlockSpec((9, Cin, Cout), lambda bb: (0, 0, 0)),
            pl.BlockSpec((1, Cout), lambda bb: (0, 0)),
        ],
        out_specs=pl.BlockSpec((None, H, W, Cout), lambda bb: (bb, 0, 0, 0)),
        scratch_shapes=[pltpu.VMEM((H * W, Cout), jnp.float32)],
        compiler_params=_cparams(("parallel",)),
    )(xp, w, b)


# ----------------------------------------------------------------------------
# Kernel 3: depthwise 3x3 conv (stride 1, pad 1), halo'd VMEM tile + 9 taps
# ----------------------------------------------------------------------------
def _dwconv3x3_kernel(x_ref, w_ref, b_ref, o_ref, acc_ref, *, H, W, C,
                      activation):
    acc_ref[...] = jnp.zeros_like(acc_ref)
    for dy in range(3):
        for dx in range(3):
            tap = x_ref[dy:dy + H, dx:dx + W, :].astype(jnp.float32)
            wv = w_ref[pl.ds(dy * 3 + dx, 1), :].astype(jnp.float32)
            acc_ref[...] += tap * wv.reshape(1, 1, C)
    y = acc_ref[...] + b_ref[...].astype(jnp.float32).reshape(1, 1, C)
    o_ref[...] = _apply_activation(y, activation).astype(o_ref.dtype)


def dwconv3x3(x_nhwc, w, b, activation):
    """Depthwise 3x3, stride 1, SAME.  w: (9, C), b: (1, C)."""
    B, H, W, C = x_nhwc.shape
    xp = jnp.pad(x_nhwc, ((0, 0), (1, 1), (1, 1), (0, 0)))

    kernel = functools.partial(_dwconv3x3_kernel, H=H, W=W, C=C,
                               activation=activation)
    return pl.pallas_call(
        kernel,
        out_shape=jax.ShapeDtypeStruct((B, H, W, C), x_nhwc.dtype),
        grid=(B,),
        in_specs=[
            pl.BlockSpec((None, H + 2, W + 2, C), lambda bb: (bb, 0, 0, 0)),
            pl.BlockSpec((9, C), lambda bb: (0, 0)),
            pl.BlockSpec((1, C), lambda bb: (0, 0)),
        ],
        out_specs=pl.BlockSpec((None, H, W, C), lambda bb: (bb, 0, 0, 0)),
        scratch_shapes=[pltpu.VMEM((H, W, C), jnp.float32)],
        compiler_params=_cparams(("parallel",)),
    )(xp, w, b)


# ----------------------------------------------------------------------------
# Kernel 4: fused classification heads (pool + 3x (ANN_Blocks->ReLU->Linear))
# ----------------------------------------------------------------------------
def _heads_kernel(f_ref, w1_ref, b1_ref, w2_ref, b2_ref, w3_ref, b3_ref, o_ref):
    # f_ref: (B, H*W, C).  AdaptiveAvgPool2d(1) + Flatten == mean over H*W.
    feat = f_ref[...].astype(jnp.float32)
    pooled = jnp.mean(feat, axis=1)                                   # (B, C)

    # Three heads packed along the output axis (W1) / block-diagonal (W2, W3).
    h1 = jnp.dot(pooled, w1_ref[...], preferred_element_type=jnp.float32)
    h1 = jnp.maximum(h1 + b1_ref[...], 0.0)                           # (B, 192)
    h2 = jnp.dot(h1, w2_ref[...], preferred_element_type=jnp.float32)
    h2 = jnp.maximum(h2 + b2_ref[...], 0.0)                           # (B, 48)
    # nn.Dropout(0.3) is identity in the inference forward pass.
    out = jnp.dot(h2, w3_ref[...], preferred_element_type=jnp.float32)
    o_ref[...] = (out + b3_ref[...]).astype(o_ref.dtype)              # (B, 128)


def heads_forward(features_nhwc, params):
    B, H, W, C = features_nhwc.shape
    f = features_nhwc.reshape(B, H * W, C)

    packed = pl.pallas_call(
        _heads_kernel,
        out_shape=jax.ShapeDtypeStruct((B, HEAD_OUT_PAD), jnp.float32),
        grid=(1,),
        in_specs=[
            pl.BlockSpec((B, H * W, C), lambda i: (0, 0, 0)),
            pl.BlockSpec(params["head_w1"].shape, lambda i: (0, 0)),
            pl.BlockSpec(params["head_b1"].shape, lambda i: (0, 0)),
            pl.BlockSpec(params["head_w2"].shape, lambda i: (0, 0)),
            pl.BlockSpec(params["head_b2"].shape, lambda i: (0, 0)),
            pl.BlockSpec(params["head_w3"].shape, lambda i: (0, 0)),
            pl.BlockSpec(params["head_b3"].shape, lambda i: (0, 0)),
        ],
        out_specs=pl.BlockSpec((B, HEAD_OUT_PAD), lambda i: (0, 0)),
        compiler_params=_cparams(("arbitrary",)),
    )(f, params["head_w1"], params["head_b1"], params["head_w2"],
      params["head_b2"], params["head_w3"], params["head_b3"])

    # Packed lane-dense output: [age(9) | gender(2) | race(7) | zero pad].
    return {
        "age_pred": packed[:, 0:9],
        "gender_pred": packed[:, 9:11],
        "race_pred": packed[:, 11:18],
    }


# ----------------------------------------------------------------------------
# Full forward pass
# ----------------------------------------------------------------------------
def mobilenet_features(x_nhwc, params):
    # TODO(synk): reduced synthetic MobileNetV3-style `features` stack; the real
    #             pretrained torchvision backbone is external to this module.
    x = conv3x3(x_nhwc, params["stem_w"], params["stem_b"], activation="hardswish")
    x = conv1x1(x, params["expand_w"], params["expand_b"], activation="relu")
    x = dwconv3x3(x, params["dw_w"], params["dw_b"], activation="relu")
    x = conv1x1(x, params["project_w"], params["project_b"], activation="none")
    x = conv1x1(x, params["final_w"], params["final_b"], activation="hardswish")
    return x


def fairface_mobilenet_forward(x_nhwc, params):
    """x_nhwc: (B, H, W, 3) image tensor (NHWC).  Returns the prediction dict."""
    feats = mobilenet_features(x_nhwc, params)
    return heads_forward(feats, params)


# ----------------------------------------------------------------------------
# Deterministic parameter construction
# ----------------------------------------------------------------------------
def init_params(key):
    keys = jax.random.split(key, 32)
    ki = iter(keys)

    def dense(shape, fan_in):
        return jax.random.normal(next(ki), shape, dtype=jnp.float32) * (
            1.0 / jnp.sqrt(float(fan_in)))

    p = {}
    # Backbone.
    p["stem_w"] = dense((9, STEM_CIN, STEM_COUT), 9 * STEM_CIN)
    p["stem_b"] = dense((1, STEM_COUT), 100)
    p["expand_w"] = dense((STEM_COUT, EXPAND_CH), STEM_COUT)
    p["expand_b"] = dense((1, EXPAND_CH), 100)
    p["dw_w"] = dense((9, EXPAND_CH), 9)
    p["dw_b"] = dense((1, EXPAND_CH), 100)
    p["project_w"] = dense((EXPAND_CH, FEAT_CH), EXPAND_CH)
    p["project_b"] = dense((1, FEAT_CH), 100)
    p["final_w"] = dense((FEAT_CH, FEAT_CH), FEAT_CH)
    p["final_b"] = dense((1, FEAT_CH), 100)

    # Heads: per-head ANN_Blocks (Linear(C,64)->ReLU->Linear(64,16)) -> ReLU ->
    # Dropout -> Linear(16, K).  Packed so the fused kernel does 3 matmuls.
    w1s, b1s, w2s, b2s, w3s, b3s = [], [], [], [], [], []
    for k_out in HEAD_DIMS:
        w1s.append(dense((FEAT_CH, 64), FEAT_CH))
        b1s.append(dense((64,), 100))
        w2s.append(dense((64, 16), 64))
        b2s.append(dense((16,), 100))
        w3s.append(dense((16, k_out), 16))
        b3s.append(dense((k_out,), 100))

    n_heads = len(HEAD_DIMS)
    p["head_w1"] = jnp.concatenate(w1s, axis=1)                 # (C, 192)
    p["head_b1"] = jnp.concatenate(b1s)[None, :]                # (1, 192)

    w2_bd = jnp.zeros((n_heads * 64, n_heads * 16), jnp.float32)
    b2 = jnp.zeros((n_heads * 16,), jnp.float32)
    for h in range(n_heads):
        w2_bd = w2_bd.at[h * 64:(h + 1) * 64, h * 16:(h + 1) * 16].set(w2s[h])
        b2 = b2.at[h * 16:(h + 1) * 16].set(b2s[h])
    p["head_w2"] = w2_bd                                        # (192, 48)
    p["head_b2"] = b2[None, :]                                  # (1, 48)

    w3_pk = jnp.zeros((n_heads * 16, HEAD_OUT_PAD), jnp.float32)
    b3 = jnp.zeros((HEAD_OUT_PAD,), jnp.float32)
    col = 0
    for h, k_out in enumerate(HEAD_DIMS):
        w3_pk = w3_pk.at[h * 16:(h + 1) * 16, col:col + k_out].set(w3s[h])
        b3 = b3.at[col:col + k_out].set(b3s[h])
        col += k_out
    p["head_w3"] = w3_pk                                        # (48, 128)
    p["head_b3"] = b3[None, :]                                  # (1, 128)
    return p


# ----------------------------------------------------------------------------
# Demo / smoke test
# ----------------------------------------------------------------------------
if __name__ == "__main__":
    key = jax.random.PRNGKey(0)
    k_x, k_p = jax.random.split(key)

    B, H, W, C = 2, 16, 16, 3
    # NHWC entry point (the per-call NCHW->NHWC transpose of the full-resolution
    # image was removed per the perf review; transpose once at data-load time).
    x = jax.random.normal(k_x, (B, H, W, C), dtype=jnp.float32)
    params = init_params(k_p)

    fwd = jax.jit(fairface_mobilenet_forward)
    out = fwd(x, params)
    out = jax.block_until_ready(out)

    assert out["age_pred"].shape == (B, 9)
    assert out["gender_pred"].shape == (B, 2)
    assert out["race_pred"].shape == (B, 7)
    assert all(bool(jnp.all(jnp.isfinite(v))) for v in out.values())

    print("KERNEL_OK")
</pallas_src>

<mosaic_0001>
module attributes {stable_mosaic.version = 11 : i64} {
  func.func @_matmul_bias_act_kernel(%arg0: i32, %arg1: i32, %arg2: i32, %arg3: memref<512x128xf32, #tpu.memory_space<vmem>>, %arg4: memref<128x256xf32, #tpu.memory_space<vmem>>, %arg5: memref<1x256xf32, #tpu.memory_space<vmem>>, %arg6: memref<512x256xf32, #tpu.memory_space<vmem>>, %arg7: memref<512x256xf32, #tpu.memory_space<vmem>>) attributes {dimension_semantics = [#tpu.dimension_semantics<parallel>, #tpu.dimension_semantics<parallel>, #tpu.dimension_semantics<arbitrary>], iteration_bounds = array<i64: 1, 1, 1>, scalar_prefetch = 0 : i64, scratch_operands = 1 : i64, tpu.core_type = #tpu.core_type<tc>, window_params = [{transform_indices = @transform_0, window_bounds = array<i64: 512, 128>}, {transform_indices = @transform_1, window_bounds = array<i64: 128, 256>}, {transform_indices = @transform_2, window_bounds = array<i64: 1, 256>}, {transform_indices = @transform_3, window_bounds = array<i64: 512, 256>}]} {
    %c0_i32 = arith.constant 0 : i32
    %0 = arith.cmpi eq, %arg2, %c0_i32 : i32
    %1 = arith.extui %0 : i1 to i32
    %c0_i32_0 = arith.constant 0 : i32
    %2 = arith.cmpi ne, %1, %c0_i32_0 : i32
    scf.if %2 {
      %cst_10 = arith.constant 0.000000e+00 : f32
      %12 = vector.broadcast %cst_10 : f32 to vector<512x256xf32>
      %c0_11 = arith.constant 0 : index
      %c0_12 = arith.constant 0 : index
      %13 = vector.load %arg7[%c0_11, %c0_12] : memref<512x256xf32, #tpu.memory_space<vmem>>, vector<512x256xf32>
      tpu.vector_store %arg7[%c0_11, %c0_12], %12 {strides = array<i32>} : memref<512x256xf32, #tpu.memory_space<vmem>>, vector<512x256xf32>,
    } else {
    }
    %c0 = arith.constant 0 : index
    %c0_1 = arith.constant 0 : index
    %3 = vector.load %arg7[%c0, %c0_1] : memref<512x256xf32, #tpu.memory_space<vmem>>, vector<512x256xf32>
    %c0_2 = arith.constant 0 : index
    %c0_3 = arith.constant 0 : index
    %4 = vector.load %arg3[%c0_2, %c0_3] : memref<512x128xf32, #tpu.memory_space<vmem>>, vector<512x128xf32>
    %c0_4 = arith.constant 0 : index
    %c0_5 = arith.constant 0 : index
    %5 = vector.load %arg4[%c0_4, %c0_5] : memref<128x256xf32, #tpu.memory_space<vmem>>, vector<128x256xf32>
    %cst = arith.constant dense<0.000000e+00> : vector<512x256xf32>
    %6 = tpu.matmul %4, %5, %cst {dimension_numbers = #tpu.dot_dimension_numbers<[1], [0], [0], [1], [0, 0, 1, 1], [], []>} : vector<512x128xf32>, vector<128x256xf32>, vector<512x256xf32> -> vector<512x256xf32>
    %7 = arith.addf %3, %6 : vector<512x256xf32>
    %c0_6 = arith.constant 0 : index
    %c0_7 = arith.constant 0 : index
    %8 = vector.load %arg7[%c0_6, %c0_7] : memref<512x256xf32, #tpu.memory_space<vmem>>, vector<512x256xf32>
    tpu.vector_store %arg7[%c0_6, %c0_7], %7 {strides = array<i32>} : memref<512x256xf32, #tpu.memory_space<vmem>>, vector<512x256xf32>,
    %c0_i32_8 = arith.constant 0 : i32
    %9 = arith.cmpi eq, %arg2, %c0_i32_8 : i32
    %10 = arith.extui %9 : i1 to i32
    %c0_i32_9 = arith.constant 0 : i32
    %11 = arith.cmpi ne, %10, %c0_i32_9 : i32
    scf.if %11 {
      %c0_10 = arith.constant 0 : index
      %c0_11 = arith.constant 0 : index
      %12 = vector.load %arg7[%c0_10, %c0_11] : memref<512x256xf32, #tpu.memory_space<vmem>>, vector<512x256xf32>
      %c0_12 = arith.constant 0 : index
      %c0_13 = arith.constant 0 : index
      %13 = vector.load %arg5[%c0_12, %c0_13] : memref<1x256xf32, #tpu.memory_space<vmem>>, vector<1x256xf32>
      %14 = vector.broadcast %13 : vector<1x256xf32> to vector<512x256xf32>
      %15 = arith.addf %12, %14 : vector<512x256xf32>
      %cst_14 = arith.constant 0.000000e+00 : f32
      %16 = vector.broadcast %cst_14 : f32 to vector<512x256xf32>
      %17 = arith.maximumf %15, %16 : vector<512x256xf32>
      %c0_15 = arith.constant 0 : index
      %c0_16 = arith.constant 0 : index
      %18 = vector.load %arg6[%c0_15, %c0_16] : memref<512x256xf32, #tpu.memory_space<vmem>>, vector<512x256xf32>
      tpu.vector_store %arg6[%c0_15, %c0_16], %17 {strides = array<i32>} : memref<512x256xf32, #tpu.memory_space<vmem>>, vector<512x256xf32>,
    } else {
    }
    return
  }
  func.func @transform_0(%arg0: i32, %arg1: i32, %arg2: i32) -> (i32, i32) {
    %c0_i32 = arith.constant 0 : i32
    return %arg0, %arg2 : i32, i32
  }
  func.func @transform_1(%arg0: i32, %arg1: i32, %arg2: i32) -> (i32, i32) {
    %c0_i32 = arith.constant 0 : i32
    return %arg2, %arg1 : i32, i32
  }
  func.func @transform_2(%arg0: i32, %arg1: i32, %arg2: i32) -> (i32, i32) {
    %c0_i32 = arith.constant 0 : i32
    %c0_i32_0 = arith.constant 0 : i32
    return %c0_i32, %arg1 : i32, i32
  }
  func.func @transform_3(%arg0: i32, %arg1: i32, %arg2: i32) -> (i32, i32) {
    %c0_i32 = arith.constant 0 : i32
    return %arg0, %arg1 : i32, i32
  }
}

module attributes {stable_mosaic.version = 11 : i64} {
  func.func @_conv3x3_kernel(%arg0: i32, %arg1: memref<1x18x18x8xf32, #tpu.memory_space<vmem>>, %arg2: memref<9x8x128xf32, #tpu.memory_space<vmem>>, %arg3: memref<1x128xf32, #tpu.memory_space<vmem>>, %arg4: memref<1x16x16x128xf32, #tpu.memory_space<vmem>>, %arg5: memref<256x128xf32, #tpu.memory_space<vmem>>) attributes {dimension_semantics = [#tpu.dimension_semantics<parallel>], iteration_bounds = array<i64: 2>, scalar_prefetch = 0 : i64, scratch_operands = 1 : i64, tpu.core_type = #tpu.core_type<tc>, window_params = [{transform_indices = @transform_0, window_bounds = array<i64: 1, 18, 18, 8>}, {pipeline_mode = #tpu.pipeline_mode<synchronous>, transform_indices = @transform_1, window_bounds = array<i64: 9, 8, 128>}, {pipeline_mode = #tpu.pipeline_mode<synchronous>, transform_indices = @transform_2, window_bounds = array<i64: 1, 128>}, {transform_indices = @transform_3, window_bounds = array<i64: 1, 16, 16, 128>}]} {
    %cst = arith.constant 0.000000e+00 : f32
    %0 = vector.broadcast %cst : f32 to vector<256x128xf32>
    %c0 = arith.constant 0 : index
    %c0_0 = arith.constant 0 : index
    %1 = vector.load %arg5[%c0, %c0_0] : memref<256x128xf32, #tpu.memory_space<vmem>>, vector<256x128xf32>
    tpu.vector_store %arg5[%c0, %c0_0], %0 {strides = array<i32>} : memref<256x128xf32, #tpu.memory_space<vmem>>, vector<256x128xf32>,
    %c0_1 = arith.constant 0 : index
    %c0_2 = arith.constant 0 : index
    %c0_3 = arith.constant 0 : index
    %c0_4 = arith.constant 0 : index
    %2 = vector.load %arg1[%c0_1, %c0_2, %c0_3, %c0_4] : memref<1x18x18x8xf32, #tpu.memory_space<vmem>>, vector<1x16x16x8xf32>
    %3 = vector.shape_cast %2 : vector<1x16x16x8xf32> to vector<16x16x8xf32>
    %4 = vector.shape_cast %3 : vector<16x16x8xf32> to vector<256x8xf32>
    %c0_5 = arith.constant 0 : index
    %c0_6 = arith.constant 0 : index
    %5 = vector.load %arg5[%c0_5, %c0_6] : memref<256x128xf32, #tpu.memory_space<vmem>>, vector<256x128xf32>
    %c0_7 = arith.constant 0 : index
    %c0_8 = arith.constant 0 : index
    %c0_9 = arith.constant 0 : index
    %6 = vector.load %arg2[%c0_7, %c0_8, %c0_9] : memref<9x8x128xf32, #tpu.memory_space<vmem>>, vector<1x8x128xf32>
    %7 = vector.shape_cast %6 : vector<1x8x128xf32> to vector<8x128xf32>
    %cst_10 = arith.constant dense<0.000000e+00> : vector<256x128xf32>
    %8 = tpu.matmul %4, %7, %cst_10 {dimension_numbers = #tpu.dot_dimension_numbers<[1], [0], [0], [1], [0, 0, 1, 1], [], []>} : vector<256x8xf32>, vector<8x128xf32>, vector<256x128xf32> -> vector<256x128xf32>
    %9 = arith.addf %5, %8 : vector<256x128xf32>
    %c0_11 = arith.constant 0 : index
    %c0_12 = arith.constant 0 : index
    %10 = vector.load %arg5[%c0_11, %c0_12] : memref<256x128xf32, #tpu.memory_space<vmem>>, vector<256x128xf32>
    tpu.vector_store %arg5[%c0_11, %c0_12], %9 {strides = array<i32>} : memref<256x128xf32, #tpu.memory_space<vmem>>, vector<256x128xf32>,
    %c0_13 = arith.constant 0 : index
    %c0_14 = arith.constant 0 : index
    %c1 = arith.constant 1 : index
    %c0_15 = arith.constant 0 : index
    %11 = vector.load %arg1[%c0_13, %c0_14, %c1, %c0_15] : memref<1x18x18x8xf32, #tpu.memory_space<vmem>>, vector<1x16x16x8xf32>
    %12 = vector.shape_cast %11 : vector<1x16x16x8xf32> to vector<16x16x8xf32>
    %13 = vector.shape_cast %12 : vector<16x16x8xf32> to vector<256x8xf32>
    %c0_16 = arith.constant 0 : index
    %c0_17 = arith.constant 0 : index
    %14 = vector.load %arg5[%c0_16, %c0_17] : memref<256x128xf32, #tpu.memory_space<vmem>>, vector<256x128xf32>
    %c1_18 = arith.constant 1 : index
    %c0_19 = arith.constant 0 : index
    %c0_20 = arith.constant 0 : index
    %15 = vector.load %arg2[%c1_18, %c0_19, %c0_20] : memref<9x8x128xf32, #tpu.memory_space<vmem>>, vector<1x8x128xf32>
    %16 = vector.shape_cast %15 : vector<1x8x128xf32> to vector<8x128xf32>
    %cst_21 = arith.constant dense<0.000000e+00> : vector<256x128xf32>
    %17 = tpu.matmul %13, %16, %cst_21 {dimension_numbers = #tpu.dot_dimension_numbers<[1], [0], [0], [1], [0, 0, 1, 1], [], []>} : vector<256x8xf32>, vector<8x128xf32>, vector<256x128xf32> -> vector<256x128xf32>
    %18 = arith.addf %14, %17 : vector<256x128xf32>
    %c0_22 = arith.constant 0 : index
    %c0_23 = arith.constant 0 : index
    %19 = vector.load %arg5[%c0_22, %c0_23] : memref<256x128xf32, #tpu.memory_space<vmem>>, vector<256x128xf32>
    tpu.vector_store %arg5[%c0_22, %c0_23], %18 {strides = array<i32>} : memref<256x128xf32, #tpu.memory_space<vmem>>, vector<256x128xf32>,
    %c0_24 = arith.constant 0 : index
    %c0_25 = arith.constant 0 : index
    %c2 = arith.constant 2 : index
    %c0_26 = arith.constant 0 : index
    %20 = vector.load %arg1[%c0_24, %c0_25, %c2, %c0_26] : memref<1x18x18x8xf32, #tpu.memory_space<vmem>>, vector<1x16x16x8xf32>
    %21 = vector.shape_cast %20 : vector<1x16x16x8xf32> to vector<16x16x8xf32>
    %22 = vector.shape_cast %21 : vector<16x16x8xf32> to vector<256x8xf32>
    %c0_27 = arith.constant 0 : index
    %c0_28 = arith.constant 0 : index
    %23 = vector.load %arg5[%c0_27, %c0_28] : memref<256x128xf32, #tpu.memory_space<vmem>>, vector<256x128xf32>
    %c2_29 = arith.constant 2 : index
    %c0_30 = arith.constant 0 : index
    %c0_31 = arith.constant 0 : index
    %24 = vector.load %arg2[%c2_29, %c0_30, %c0_31] : memref<9x8x128xf32, #tpu.memory_space<vmem>>, vector<1x8x128xf32>
    %25 = vector.shape_cast %24 : vector<1x8x128xf32> to vector<8x128xf32>
    %cst_32 = arith.constant dense<0.000000e+00> : vector<256x128xf32>
    %26 = tpu.matmul %22, %25, %cst_32 {dimension_numbers = #tpu.dot_dimension_numbers<[1], [0], [0], [1], [0, 0, 1, 1], [], []>} : vector<256x8xf32>, vector<8x128xf32>, vector<256x128xf32> -> vector<256x128xf32>
    %27 = arith.addf %23, %26 : vector<256x128xf32>
    %c0_33 = arith.constant 0 : index
    %c0_34 = arith.constant 0 : index
    %28 = vector.load %arg5[%c0_33, %c0_34] : memref<256x128xf32, #tpu.memory_space<vmem>>, vector<256x128xf32>
    tpu.vector_store %arg5[%c0_33, %c0_34], %27 {strides = array<i32>} : memref<256x128xf32, #tpu.memory_space<vmem>>, vector<256x128xf32>,
    %c0_35 = arith.constant 0 : index
    %c1_36 = arith.constant 1 : index
    %c0_37 = arith.constant 0 : index
    %c0_38 = arith.constant 0 : index
    %29 = vector.load %arg1[%c0_35, %c1_36, %c0_37, %c0_38] : memref<1x18x18x8xf32, #tpu.memory_space<vmem>>, vector<1x16x16x8xf32>
    %30 = vector.shape_cast %29 : vector<1x16x16x8xf32> to vector<16x16x8xf32>
    %31 = vector.shape_cast %30 : vector<16x16x8xf32> to vector<256x8xf32>
    %c0_39 = arith.constant 0 : index
    %c0_40 = arith.constant 0 : index
    %32 = vector.load %arg5[%c0_39, %c0_40] : memref<256x128xf32, #tpu.memory_space<vmem>>, vector<256x128xf32>
    %c3 = arith.constant 3 : index
    %c0_41 = arith.constant 0 : index
    %c0_42 = arith.constant 0 : index
    %33 = vector.load %arg2[%c3, %c0_41, %c0_42] : memref<9x8x128xf32, #tpu.memory_space<vmem>>, vector<1x8x128xf32>
    %34 = vector.shape_cast %33 : vector<1x8x128xf32> to vector<8x128xf32>
    %cst_43 = arith.constant dense<0.000000e+00> : vector<256x128xf32>
    %35 = tpu.matmul %31, %34, %cst_43 {dimension_numbers = #tpu.dot_dimension_numbers<[1], [0], [0], [1], [0, 0, 1, 1], [], []>} : vector<256x8xf32>, vector<8x128xf32>, vector<256x128xf32> -> vector<256x128xf32>
    %36 = arith.addf %32, %35 : vector<256x128xf32>
    %c0_44 = arith.constant 0 : index
    %c0_45 = arith.constant 0 : index
    %37 = vector.load %arg5[%c0_44, %c0_45] : memref<256x128xf32, #tpu.memory_space<vmem>>, vector<256x128xf32>
    tpu.vector_store %arg5[%c0_44, %c0_45], %36 {strides = array<i32>} : memref<256x128xf32, #tpu.memory_space<vmem>>, vector<256x128xf32>,
    %c0_46 = arith.constant 0 : index
    %c1_47 = arith.constant 1 : index
    %c1_48 = arith.constant 1 : index
    %c0_49 = arith.constant 0 : index
    %38 = vector.load %arg1[%c0_46, %c1_47, %c1_48, %c0_49] : memref<1x18x18x8xf32, #tpu.memory_space<vmem>>, vector<1x16x16x8xf32>
    %39 = vector.shape_cast %38 : vector<1x16x16x8xf32> to vector<16x16x8xf32>
    %40 = vector.shape_cast %39 : vector<16x16x8xf32> to vector<256x8xf32>
    %c0_50 = arith.constant 0 : index
    %c0_51 = arith.constant 0 : index
    %41 = vector.load %arg5[%c0_50, %c0_51] : memref<256x128xf32, #tpu.memory_space<vmem>>, vector<256x128xf32>
    %c4 = arith.constant 4 : index
    %c0_52 = arith.constant 0 : index
    %c0_53 = arith.constant 0 : index
    %42 = vector.load %arg2[%c4, %c0_52, %c0_53] : memref<9x8x128xf32, #tpu.memory_space<vmem>>, vector<1x8x128xf32>
    %43 = vector.shape_cast %42 : vector<1x8x128xf32> to vector<8x128xf32>
    %cst_54 = arith.constant dense<0.000000e+00> : vector<256x128xf32>
    %44 = tpu.matmul %40, %43, %cst_54 {dimension_numbers = #tpu.dot_dimension_numbers<[1], [0], [0], [1], [0, 0, 1, 1], [], []>} : vector<256x8xf32>, vector<8x128xf32>, vector<256x128xf32> -> vector<256x128xf32>
    %45 = arith.addf %41, %44 : vector<256x128xf32>
    %c0_55 = arith.constant 0 : index
    %c0_56 = arith.constant 0 : index
    %46 = vector.load %arg5[%c0_55, %c0_56] : memref<256x128xf32, #tpu.memory_space<vmem>>, vector<256x128xf32>
    tpu.vector_store %arg5[%c0_55, %c0_56], %45 {strides = array<i32>} : memref<256x128xf32, #tpu.memory_space<vmem>>, vector<256x128xf32>,
    %c0_57 = arith.constant 0 : index
    %c1_58 = arith.constant 1 : index
    %c2_59 = arith.constant 2 : index
    %c0_60 = arith.constant 0 : index
    %47 = vector.load %arg1[%c0_57, %c1_58, %c2_59, %c0_60] : memref<1x18x18x8xf32, #tpu.memory_space<vmem>>, vector<1x16x16x8xf32>
    %48 = vector.shape_cast %47 : vector<1x16x16x8xf32> to vector<16x16x8xf32>
    %49 = vector.shape_cast %48 : vector<16x16x8xf32> to vector<256x8xf32>
    %c0_61 = arith.constant 0 : index
    %c0_62 = arith.constant 0 : index
    %50 = vector.load %arg5[%c0_61, %c0_62] : memref<256x128xf32, #tpu.memory_space<vmem>>, vector<256x128xf32>
    %c5 = arith.constant 5 : index
    %c0_63 = arith.constant 0 : index
    %c0_64 = arith.constant 0 : index
    %51 = vector.load %arg2[%c5, %c0_63, %c0_64] : memref<9x8x128xf32, #tpu.memory_space<vmem>>, vector<1x8x128xf32>
    %52 = vector.shape_cast %51 : vector<1x8x128xf32> to vector<8x128xf32>
    %cst_65 = arith.constant dense<0.000000e+00> : vector<256x128xf32>
    %53 = tpu.matmul %49, %52, %cst_65 {dimension_numbers = #tpu.dot_dimension_numbers<[1], [0], [0], [1], [0, 0, 1, 1], [], []>} : vector<256x8xf32>, vector<8x128xf32>, vector<256x128xf32> -> vector<256x128xf32>
    %54 = arith.addf %50, %53 : vector<256x128xf32>
    %c0_66 = arith.constant 0 : index
    %c0_67 = arith.constant 0 : index
    %55 = vector.load %arg5[%c0_66, %c0_67] : memref<256x128xf32, #tpu.memory_space<vmem>>, vector<256x128xf32>
    tpu.vector_store %arg5[%c0_66, %c0_67], %54 {strides = array<i32>} : memref<256x128xf32, #tpu.memory_space<vmem>>, vector<256x128xf32>,
    %c0_68 = arith.constant 0 : index
    %c2_69 = arith.constant 2 : index
    %c0_70 = arith.constant 0 : index
    %c0_71 = arith.constant 0 : index
    %56 = vector.load %arg1[%c0_68, %c2_69, %c0_70, %c0_71] : memref<1x18x18x8xf32, #tpu.memory_space<vmem>>, vector<1x16x16x8xf32>
    %57 = vector.shape_cast %56 : vector<1x16x16x8xf32> to vector<16x16x8xf32>
    %58 = vector.shape_cast %57 : vector<16x16x8xf32> to vector<256x8xf32>
    %c0_72 = arith.constant 0 : index
    %c0_73 = arith.constant 0 : index
    %59 = vector.load %arg5[%c0_72, %c0_73] : memref<256x128xf32, #tpu.memory_space<vmem>>, vector<256x128xf32>
    %c6 = arith.constant 6 : index
    %c0_74 = arith.constant 0 : index
    %c0_75 = arith.constant 0 : index
    %60 = vector.load %arg2[%c6, %c0_74, %c0_75] : memref<9x8x128xf32, #tpu.memory_space<vmem>>, vector<1x8x128xf32>
    %61 = vector.shape_cast %60 : vector<1x8x128xf32> to vector<8x128xf32>
    %cst_76 = arith.constant dense<0.000000e+00> : vector<256x128xf32>
    %62 = tpu.matmul %58, %61, %cst_76 {dimension_numbers = #tpu.dot_dimension_numbers<[1], [0], [0], [1], [0, 0, 1, 1], [], []>} : vector<256x8xf32>, vector<8x128xf32>, vector<256x128xf32> -> vector<256x128xf32>
    %63 = arith.addf %59, %62 : vector<256x128xf32>
    %c0_77 = arith.constant 0 : index
    %c0_78 = arith.constant 0 : index
    %64 = vector.load %arg5[%c0_77, %c0_78] : memref<256x128xf32, #tpu.memory_space<vmem>>, vector<256x128xf32>
    tpu.vector_store %arg5[%c0_77, %c0_78], %63 {strides = array<i32>} : memref<256x128xf32, #tpu.memory_space<vmem>>, vector<256x128xf32>,
    %c0_79 = arith.constant 0 : index
    %c2_80 = arith.constant 2 : index
    %c1_81 = arith.constant 1 : index
    %c0_82 = arith.constant 0 : index
    %65 = vector.load %arg1[%c0_79, %c2_80, %c1_81, %c0_82] : memref<1x18x18x8xf32, #tpu.memory_space<vmem>>, vector<1x16x16x8xf32>
    %66 = vector.shape_cast %65 : vector<1x16x16x8xf32> to vector<16x16x8xf32>
    %67 = vector.shape_cast %66 : vector<16x16x8xf32> to vector<256x8xf32>
    %c0_83 = arith.constant 0 : index
    %c0_84 = arith.constant 0 : index
    %68 = vector.load %arg5[%c0_83, %c0_84] : memref<256x128xf32, #tpu.memory_space<vmem>>, vector<256x128xf32>
    %c7 = arith.constant 7 : index
    %c0_85 = arith.constant 0 : index
    %c0_86 = arith.constant 0 : index
    %69 = vector.load %arg2[%c7, %c0_85, %c0_86] : memref<9x8x128xf32, #tpu.memory_space<vmem>>, vector<1x8x128xf32>
    %70 = vector.shape_cast %69 : vector<1x8x128xf32> to vector<8x128xf32>
    %cst_87 = arith.constant dense<0.000000e+00> : vector<256x128xf32>
    %71 = tpu.matmul %67, %70, %cst_87 {dimension_numbers = #tpu.dot_dimension_numbers<[1], [0], [0], [1], [0, 0, 1, 1], [], []>} : vector<256x8xf32>, vector<8x128xf32>, vector<256x128xf32> -> vector<256x128xf32>
    %72 = arith.addf %68, %71 : vector<256x128xf32>
    %c0_88 = arith.constant 0 : index
    %c0_89 = arith.constant 0 : index
    %73 = vector.load %arg5[%c0_88, %c0_89] : memref<256x128xf32, #tpu.memory_space<vmem>>, vector<256x128xf32>
    tpu.vector_store %arg5[%c0_88, %c0_89], %72 {strides = array<i32>} : memref<256x128xf32, #tpu.memory_space<vmem>>, vector<256x128xf32>,
    %c0_90 = arith.constant 0 : index
    %c2_91 = arith.constant 2 : index
    %c2_92 = arith.constant 2 : index
    %c0_93 = arith.constant 0 : index
    %74 = vector.load %arg1[%c0_90, %c2_91, %c2_92, %c0_93] : memref<1x18x18x8xf32, #tpu.memory_space<vmem>>, vector<1x16x16x8xf32>
    %75 = vector.shape_cast %74 : vector<1x16x16x8xf32> to vector<16x16x8xf32>
    %76 = vector.shape_cast %75 : vector<16x16x8xf32> to vector<256x8xf32>
    %c0_94 = arith.constant 0 : index
    %c0_95 = arith.constant 0 : index
    %77 = vector.load %arg5[%c0_94, %c0_95] : memref<256x128xf32, #tpu.memory_space<vmem>>, vector<256x128xf32>
    %c8 = arith.constant 8 : index
    %c0_96 = arith.constant 0 : index
    %c0_97 = arith.constant 0 : index
    %78 = vector.load %arg2[%c8, %c0_96, %c0_97] : memref<9x8x128xf32, #tpu.memory_space<vmem>>, vector<1x8x128xf32>
    %79 = vector.shape_cast %78 : vector<1x8x128xf32> to vector<8x128xf32>
    %cst_98 = arith.constant dense<0.000000e+00> : vector<256x128xf32>
    %80 = tpu.matmul %76, %79, %cst_98 {dimension_numbers = #tpu.dot_dimension_numbers<[1], [0], [0], [1], [0, 0, 1, 1], [], []>} : vector<256x8xf32>, vector<8x128xf32>, vector<256x128xf32> -> vector<256x128xf32>
    %81 = arith.addf %77, %80 : vector<256x128xf32>
    %c0_99 = arith.constant 0 : index
    %c0_100 = arith.constant 0 : index
    %82 = vector.load %arg5[%c0_99, %c0_100] : memref<256x128xf32, #tpu.memory_space<vmem>>, vector<256x128xf32>
    tpu.vector_store %arg5[%c0_99, %c0_100], %81 {strides = array<i32>} : memref<256x128xf32, #tpu.memory_space<vmem>>, vector<256x128xf32>,
    %c0_101 = arith.constant 0 : index
    %c0_102 = arith.constant 0 : index
    %83 = vector.load %arg5[%c0_101, %c0_102] : memref<256x128xf32, #tpu.memory_space<vmem>>, vector<256x128xf32>
    %c0_103 = arith.constant 0 : index
    %c0_104 = arith.constant 0 : index
    %84 = vector.load %arg3[%c0_103, %c0_104] : memref<1x128xf32, #tpu.memory_space<vmem>>, vector<1x128xf32>
    %85 = vector.broadcast %84 : vector<1x128xf32> to vector<256x128xf32>
    %86 = arith.addf %83, %85 : vector<256x128xf32>
    %cst_105 = arith.constant 3.000000e+00 : f32
    %87 = vector.broadcast %cst_105 : f32 to vector<256x128xf32>
    %88 = arith.addf %86, %87 : vector<256x128xf32>
    %cst_106 = arith.constant 0.000000e+00 : f32
    %89 = vector.broadcast %cst_106 : f32 to vector<256x128xf32>
    %90 = arith.maximumf %88, %89 : vector<256x128xf32>
    %cst_107 = arith.constant 6.000000e+00 : f32
    %91 = vector.broadcast %cst_107 : f32 to vector<256x128xf32>
    %92 = arith.minimumf %90, %91 : vector<256x128xf32>
    %93 = arith.mulf %86, %92 : vector<256x128xf32>
    %cst_108 = arith.constant 0.166666672 : f32
    %94 = vector.broadcast %cst_108 : f32 to vector<256x128xf32>
    %95 = arith.mulf %93, %94 : vector<256x128xf32>
    %96 = vector.shape_cast %95 : vector<256x128xf32> to vector<16x16x128xf32>
    %c0_109 = arith.constant 0 : index
    %c0_110 = arith.constant 0 : index
    %c0_111 = arith.constant 0 : index
    %c0_112 = arith.constant 0 : index
    %97 = vector.load %arg4[%c0_109, %c0_110, %c0_111, %c0_112] : memref<1x16x16x128xf32, #tpu.memory_space<vmem>>, vector<1x16x16x128xf32>
    %98 = vector.shape_cast %97 : vector<1x16x16x128xf32> to vector<16x16x128xf32>
    %99 = vector.shape_cast %96 : vector<16x16x128xf32> to vector<1x16x16x128xf32>
    tpu.vector_store %arg4[%c0_109, %c0_110, %c0_111, %c0_112], %99 {strides = array<i32>} : memref<1x16x16x128xf32, #tpu.memory_space<vmem>>, vector<1x16x16x128xf32>,
    return
  }
  func.func @transform_0(%arg0: i32) -> (i32, i32, i32, i32) {
    %c0_i32 = arith.constant 0 : i32
    %c0_i32_0 = arith.constant 0 : i32
    %c0_i32_1 = arith.constant 0 : i32
    %c0_i32_2 = arith.constant 0 : i32
    return %arg0, %c0_i32, %c0_i32_0, %c0_i32_1 : i32, i32, i32, i32
  }
  func.func @transform_1(%arg0: i32) -> (i32, i32, i32) {
    %c0_i32 = arith.constant 0 : i32
    %c0_i32_0 = arith.constant 0 : i32
    %c0_i32_1 = arith.constant 0 : i32
    %c0_i32_2 = arith.constant 0 : i32
    return %c0_i32, %c0_i32_0, %c0_i32_1 : i32, i32, i32
  }
  func.func @transform_2(%arg0: i32) -> (i32, i32) {
    %c0_i32 = arith.constant 0 : i32
    %c0_i32_0 = arith.constant 0 : i32
    %c0_i32_1 = arith.constant 0 : i32
    return %c0_i32, %c0_i32_0 : i32, i32
  }
  func.func @transform_3(%arg0: i32) -> (i32, i32, i32, i32) {
    %c0_i32 = arith.constant 0 : i32
    %c0_i32_0 = arith.constant 0 : i32
    %c0_i32_1 = arith.constant 0 : i32
    %c0_i32_2 = arith.constant 0 : i32
    return %arg0, %c0_i32, %c0_i32_0, %c0_i32_1 : i32, i32, i32, i32
  }
}

module attributes {stable_mosaic.version = 11 : i64} {
  func.func @_dwconv3x3_kernel(%arg0: i32, %arg1: memref<1x18x18x256xf32, #tpu.memory_space<vmem>>, %arg2: memref<9x256xf32, #tpu.memory_space<vmem>>, %arg3: memref<1x256xf32, #tpu.memory_space<vmem>>, %arg4: memref<1x16x16x256xf32, #tpu.memory_space<vmem>>, %arg5: memref<16x16x256xf32, #tpu.memory_space<vmem>>) attributes {dimension_semantics = [#tpu.dimension_semantics<parallel>], iteration_bounds = array<i64: 2>, scalar_prefetch = 0 : i64, scratch_operands = 1 : i64, tpu.core_type = #tpu.core_type<tc>, window_params = [{transform_indices = @transform_0, window_bounds = array<i64: 1, 18, 18, 256>}, {pipeline_mode = #tpu.pipeline_mode<synchronous>, transform_indices = @transform_1, window_bounds = array<i64: 9, 256>}, {pipeline_mode = #tpu.pipeline_mode<synchronous>, transform_indices = @transform_2, window_bounds = array<i64: 1, 256>}, {transform_indices = @transform_3, window_bounds = array<i64: 1, 16, 16, 256>}]} {
    %cst = arith.constant 0.000000e+00 : f32
    %0 = vector.broadcast %cst : f32 to vector<16x16x256xf32>
    %c0 = arith.constant 0 : index
    %c0_0 = arith.constant 0 : index
    %c0_1 = arith.constant 0 : index
    %1 = vector.load %arg5[%c0, %c0_0, %c0_1] : memref<16x16x256xf32, #tpu.memory_space<vmem>>, vector<16x16x256xf32>
    tpu.vector_store %arg5[%c0, %c0_0, %c0_1], %0 {strides = array<i32>} : memref<16x16x256xf32, #tpu.memory_space<vmem>>, vector<16x16x256xf32>,
    %c0_2 = arith.constant 0 : index
    %c0_3 = arith.constant 0 : index
    %c0_4 = arith.constant 0 : index
    %c0_5 = arith.constant 0 : index
    %2 = vector.load %arg1[%c0_2, %c0_3, %c0_4, %c0_5] : memref<1x18x18x256xf32, #tpu.memory_space<vmem>>, vector<1x16x16x256xf32>
    %3 = vector.shape_cast %2 : vector<1x16x16x256xf32> to vector<16x16x256xf32>
    %c0_6 = arith.constant 0 : index
    %c0_7 = arith.constant 0 : index
    %4 = vector.load %arg2[%c0_6, %c0_7] : memref<9x256xf32, #tpu.memory_space<vmem>>, vector<1x256xf32>
    %c0_8 = arith.constant 0 : index
    %c0_9 = arith.constant 0 : index
    %c0_10 = arith.constant 0 : index
    %5 = vector.load %arg5[%c0_8, %c0_9, %c0_10] : memref<16x16x256xf32, #tpu.memory_space<vmem>>, vector<16x16x256xf32>
    %6 = vector.shape_cast %4 : vector<1x256xf32> to vector<1x1x256xf32>
    %7 = vector.broadcast %6 : vector<1x1x256xf32> to vector<16x16x256xf32>
    %8 = arith.mulf %3, %7 : vector<16x16x256xf32>
    %9 = arith.addf %5, %8 : vector<16x16x256xf32>
    %c0_11 = arith.constant 0 : index
    %c0_12 = arith.constant 0 : index
    %c0_13 = arith.constant 0 : index
    %10 = vector.load %arg5[%c0_11, %c0_12, %c0_13] : memref<16x16x256xf32, #tpu.memory_space<vmem>>, vector<16x16x256xf32>
    tpu.vector_store %arg5[%c0_11, %c0_12, %c0_13], %9 {strides = array<i32>} : memref<16x16x256xf32, #tpu.memory_space<vmem>>, vector<16x16x256xf32>,
    %c0_14 = arith.constant 0 : index
    %c0_15 = arith.constant 0 : index
    %c1 = arith.constant 1 : index
    %c0_16 = arith.constant 0 : index
    %11 = vector.load %arg1[%c0_14, %c0_15, %c1, %c0_16] : memref<1x18x18x256xf32, #tpu.memory_space<vmem>>, vector<1x16x16x256xf32>
    %12 = vector.shape_cast %11 : vector<1x16x16x256xf32> to vector<16x16x256xf32>
    %c1_17 = arith.constant 1 : index
    %c0_18 = arith.constant 0 : index
    %13 = vector.load %arg2[%c1_17, %c0_18] : memref<9x256xf32, #tpu.memory_space<vmem>>, vector<1x256xf32>
    %c0_19 = arith.constant 0 : index
    %c0_20 = arith.constant 0 : index
    %c0_21 = arith.constant 0 : index
    %14 = vector.load %arg5[%c0_19, %c0_20, %c0_21] : memref<16x16x256xf32, #tpu.memory_space<vmem>>, vector<16x16x256xf32>
    %15 = vector.shape_cast %13 : vector<1x256xf32> to vector<1x1x256xf32>
    %16 = vector.broadcast %15 : vector<1x1x256xf32> to vector<16x16x256xf32>
    %17 = arith.mulf %12, %16 : vector<16x16x256xf32>
    %18 = arith.addf %14, %17 : vector<16x16x256xf32>
    %c0_22 = arith.constant 0 : index
    %c0_23 = arith.constant 0 : index
    %c0_24 = arith.constant 0 : index
    %19 = vector.load %arg5[%c0_22, %c0_23, %c0_24] : memref<16x16x256xf32, #tpu.memory_space<vmem>>, vector<16x16x256xf32>
    tpu.vector_store %arg5[%c0_22, %c0_23, %c0_24], %18 {strides = array<i32>} : memref<16x16x256xf32, #tpu.memory_space<vmem>>, vector<16x16x256xf32>,
    %c0_25 = arith.constant 0 : index
    %c0_26 = arith.constant 0 : index
    %c2 = arith.constant 2 : index
    %c0_27 = arith.constant 0 : index
    %20 = vector.load %arg1[%c0_25, %c0_26, %c2, %c0_27] : memref<1x18x18x256xf32, #tpu.memory_space<vmem>>, vector<1x16x16x256xf32>
    %21 = vector.shape_cast %20 : vector<1x16x16x256xf32> to vector<16x16x256xf32>
    %c2_28 = arith.constant 2 : index
    %c0_29 = arith.constant 0 : index
    %22 = vector.load %arg2[%c2_28, %c0_29] : memref<9x256xf32, #tpu.memory_space<vmem>>, vector<1x256xf32>
    %c0_30 = arith.constant 0 : index
    %c0_31 = arith.constant 0 : index
    %c0_32 = arith.constant 0 : index
    %23 = vector.load %arg5[%c0_30, %c0_31, %c0_32] : memref<16x16x256xf32, #tpu.memory_space<vmem>>, vector<16x16x256xf32>
    %24 = vector.shape_cast %22 : vector<1x256xf32> to vector<1x1x256xf32>
    %25 = vector.broadcast %24 : vector<1x1x256xf32> to vector<16x16x256xf32>
    %26 = arith.mulf %21, %25 : vector<16x16x256xf32>
    %27 = arith.addf %23, %26 : vector<16x16x256xf32>
    %c0_33 = arith.constant 0 : index
    %c0_34 = arith.constant 0 : index
    %c0_35 = arith.constant 0 : index
    %28 = vector.load %arg5[%c0_33, %c0_34, %c0_35] : memref<16x16x256xf32, #tpu.memory_space<vmem>>, vector<16x16x256xf32>
    tpu.vector_store %arg5[%c0_33, %c0_34, %c0_35], %27 {strides = array<i32>} : memref<16x16x256xf32, #tpu.memory_space<vmem>>, vector<16x16x256xf32>,
    %c0_36 = arith.constant 0 : index
    %c1_37 = arith.constant 1 : index
    %c0_38 = arith.constant 0 : index
    %c0_39 = arith.constant 0 : index
    %29 = vector.load %arg1[%c0_36, %c1_37, %c0_38, %c0_39] : memref<1x18x18x256xf32, #tpu.memory_space<vmem>>, vector<1x16x16x256xf32>
    %30 = vector.shape_cast %29 : vector<1x16x16x256xf32> to vector<16x16x256xf32>
    %c3 = arith.constant 3 : index
    %c0_40 = arith.constant 0 : index
    %31 = vector.load %arg2[%c3, %c0_40] : memref<9x256xf32, #tpu.memory_space<vmem>>, vector<1x256xf32>
    %c0_41 = arith.constant 0 : index
    %c0_42 = arith.constant 0 : index
    %c0_43 = arith.constant 0 : index
    %32 = vector.load %arg5[%c0_41, %c0_42, %c0_43] : memref<16x16x256xf32, #tpu.memory_space<vmem>>, vector<16x16x256xf32>
    %33 = vector.shape_cast %31 : vector<1x256xf32> to vector<1x1x256xf32>
    %34 = vector.broadcast %33 : vector<1x1x256xf32> to vector<16x16x256xf32>
    %35 = arith.mulf %30, %34 : vector<16x16x256xf32>
    %36 = arith.addf %32, %35 : vector<16x16x256xf32>
    %c0_44 = arith.constant 0 : index
    %c0_45 = arith.constant 0 : index
    %c0_46 = arith.constant 0 : index
    %37 = vector.load %arg5[%c0_44, %c0_45, %c0_46] : memref<16x16x256xf32, #tpu.memory_space<vmem>>, vector<16x16x256xf32>
    tpu.vector_store %arg5[%c0_44, %c0_45, %c0_46], %36 {strides = array<i32>} : memref<16x16x256xf32, #tpu.memory_space<vmem>>, vector<16x16x256xf32>,
    %c0_47 = arith.constant 0 : index
    %c1_48 = arith.constant 1 : index
    %c1_49 = arith.constant 1 : index
    %c0_50 = arith.constant 0 : index
    %38 = vector.load %arg1[%c0_47, %c1_48, %c1_49, %c0_50] : memref<1x18x18x256xf32, #tpu.memory_space<vmem>>, vector<1x16x16x256xf32>
    %39 = vector.shape_cast %38 : vector<1x16x16x256xf32> to vector<16x16x256xf32>
    %c4 = arith.constant 4 : index
    %c0_51 = arith.constant 0 : index
    %40 = vector.load %arg2[%c4, %c0_51] : memref<9x256xf32, #tpu.memory_space<vmem>>, vector<1x256xf32>
    %c0_52 = arith.constant 0 : index
    %c0_53 = arith.constant 0 : index
    %c0_54 = arith.constant 0 : index
    %41 = vector.load %arg5[%c0_52, %c0_53, %c0_54] : memref<16x16x256xf32, #tpu.memory_space<vmem>>, vector<16x16x256xf32>
    %42 = vector.shape_cast %40 : vector<1x256xf32> to vector<1x1x256xf32>
    %43 = vector.broadcast %42 : vector<1x1x256xf32> to vector<16x16x256xf32>
    %44 = arith.mulf %39, %43 : vector<16x16x256xf32>
    %45 = arith.addf %41, %44 : vector<16x16x256xf32>
    %c0_55 = arith.constant 0 : index
    %c0_56 = arith.constant 0 : index
    %c0_57 = arith.constant 0 : index
    %46 = vector.load %arg5[%c0_55, %c0_56, %c0_57] : memref<16x16x256xf32, #tpu.memory_space<vmem>>, vector<16x16x256xf32>
    tpu.vector_store %arg5[%c0_55, %c0_56, %c0_57], %45 {strides = array<i32>} : memref<16x16x256xf32, #tpu.memory_space<vmem>>, vector<16x16x256xf32>,
    %c0_58 = arith.constant 0 : index
    %c1_59 = arith.constant 1 : index
    %c2_60 = arith.constant 2 : index
    %c0_61 = arith.constant 0 : index
    %47 = vector.load %arg1[%c0_58, %c1_59, %c2_60, %c0_61] : memref<1x18x18x256xf32, #tpu.memory_space<vmem>>, vector<1x16x16x256xf32>
    %48 = vector.shape_cast %47 : vector<1x16x16x256xf32> to vector<16x16x256xf32>
    %c5 = arith.constant 5 : index
    %c0_62 = arith.constant 0 : index
    %49 = vector.load %arg2[%c5, %c0_62] : memref<9x256xf32, #tpu.memory_space<vmem>>, vector<1x256xf32>
    %c0_63 = arith.constant 0 : index
    %c0_64 = arith.constant 0 : index
    %c0_65 = arith.constant 0 : index
    %50 = vector.load %arg5[%c0_63, %c0_64, %c0_65] : memref<16x16x256xf32, #tpu.memory_space<vmem>>, vector<16x16x256xf32>
    %51 = vector.shape_cast %49 : vector<1x256xf32> to vector<1x1x256xf32>
    %52 = vector.broadcast %51 : vector<1x1x256xf32> to vector<16x16x256xf32>
    %53 = arith.mulf %48, %52 : vector<16x16x256xf32>
    %54 = arith.addf %50, %53 : vector<16x16x256xf32>
    %c0_66 = arith.constant 0 : index
    %c0_67 = arith.constant 0 : index
    %c0_68 = arith.constant 0 : index
    %55 = vector.load %arg5[%c0_66, %c0_67, %c0_68] : memref<16x16x256xf32, #tpu.memory_space<vmem>>, vector<16x16x256xf32>
    tpu.vector_store %arg5[%c0_66, %c0_67, %c0_68], %54 {strides = array<i32>} : memref<16x16x256xf32, #tpu.memory_space<vmem>>, vector<16x16x256xf32>,
    %c0_69 = arith.constant 0 : index
    %c2_70 = arith.constant 2 : index
    %c0_71 = arith.constant 0 : index
    %c0_72 = arith.constant 0 : index
    %56 = vector.load %arg1[%c0_69, %c2_70, %c0_71, %c0_72] : memref<1x18x18x256xf32, #tpu.memory_space<vmem>>, vector<1x16x16x256xf32>
    %57 = vector.shape_cast %56 : vector<1x16x16x256xf32> to vector<16x16x256xf32>
    %c6 = arith.constant 6 : index
    %c0_73 = arith.constant 0 : index
    %58 = vector.load %arg2[%c6, %c0_73] : memref<9x256xf32, #tpu.memory_space<vmem>>, vector<1x256xf32>
    %c0_74 = arith.constant 0 : index
    %c0_75 = arith.constant 0 : index
    %c0_76 = arith.constant 0 : index
    %59 = vector.load %arg5[%c0_74, %c0_75, %c0_76] : memref<16x16x256xf32, #tpu.memory_space<vmem>>, vector<16x16x256xf32>
    %60 = vector.shape_cast %58 : vector<1x256xf32> to vector<1x1x256xf32>
    %61 = vector.broadcast %60 : vector<1x1x256xf32> to vector<16x16x256xf32>
    %62 = arith.mulf %57, %61 : vector<16x16x256xf32>
    %63 = arith.addf %59, %62 : vector<16x16x256xf32>
    %c0_77 = arith.constant 0 : index
    %c0_78 = arith.constant 0 : index
    %c0_79 = arith.constant 0 : index
    %64 = vector.load %arg5[%c0_77, %c0_78, %c0_79] : memref<16x16x256xf32, #tpu.memory_space<vmem>>, vector<16x16x256xf32>
    tpu.vector_store %arg5[%c0_77, %c0_78, %c0_79], %63 {strides = array<i32>} : memref<16x16x256xf32, #tpu.memory_space<vmem>>, vector<16x16x256xf32>,
    %c0_80 = arith.constant 0 : index
    %c2_81 = arith.constant 2 : index
    %c1_82 = arith.constant 1 : index
    %c0_83 = arith.constant 0 : index
    %65 = vector.load %arg1[%c0_80, %c2_81, %c1_82, %c0_83] : memref<1x18x18x256xf32, #tpu.memory_space<vmem>>, vector<1x16x16x256xf32>
    %66 = vector.shape_cast %65 : vector<1x16x16x256xf32> to vector<16x16x256xf32>
    %c7 = arith.constant 7 : index
    %c0_84 = arith.constant 0 : index
    %67 = vector.load %arg2[%c7, %c0_84] : memref<9x256xf32, #tpu.memory_space<vmem>>, vector<1x256xf32>
    %c0_85 = arith.constant 0 : index
    %c0_86 = arith.constant 0 : index
    %c0_87 = arith.constant 0 : index
    %68 = vector.load %arg5[%c0_85, %c0_86, %c0_87] : memref<16x16x256xf32, #tpu.memory_space<vmem>>, vector<16x16x256xf32>
    %69 = vector.shape_cast %67 : vector<1x256xf32> to vector<1x1x256xf32>
    %70 = vector.broadcast %69 : vector<1x1x256xf32> to vector<16x16x256xf32>
    %71 = arith.mulf %66, %70 : vector<16x16x256xf32>
    %72 = arith.addf %68, %71 : vector<16x16x256xf32>
    %c0_88 = arith.constant 0 : index
    %c0_89 = arith.constant 0 : index
    %c0_90 = arith.constant 0 : index
    %73 = vector.load %arg5[%c0_88, %c0_89, %c0_90] : memref<16x16x256xf32, #tpu.memory_space<vmem>>, vector<16x16x256xf32>
    tpu.vector_store %arg5[%c0_88, %c0_89, %c0_90], %72 {strides = array<i32>} : memref<16x16x256xf32, #tpu.memory_space<vmem>>, vector<16x16x256xf32>,
    %c0_91 = arith.constant 0 : index
    %c2_92 = arith.constant 2 : index
    %c2_93 = arith.constant 2 : index
    %c0_94 = arith.constant 0 : index
    %74 = vector.load %arg1[%c0_91, %c2_92, %c2_93, %c0_94] : memref<1x18x18x256xf32, #tpu.memory_space<vmem>>, vector<1x16x16x256xf32>
    %75 = vector.shape_cast %74 : vector<1x16x16x256xf32> to vector<16x16x256xf32>
    %c8 = arith.constant 8 : index
    %c0_95 = arith.constant 0 : index
    %76 = vector.load %arg2[%c8, %c0_95] : memref<9x256xf32, #tpu.memory_space<vmem>>, vector<1x256xf32>
    %c0_96 = arith.constant 0 : index
    %c0_97 = arith.constant 0 : index
    %c0_98 = arith.constant 0 : index
    %77 = vector.load %arg5[%c0_96, %c0_97, %c0_98] : memref<16x16x256xf32, #tpu.memory_space<vmem>>, vector<16x16x256xf32>
    %78 = vector.shape_cast %76 : vector<1x256xf32> to vector<1x1x256xf32>
    %79 = vector.broadcast %78 : vector<1x1x256xf32> to vector<16x16x256xf32>
    %80 = arith.mulf %75, %79 : vector<16x16x256xf32>
    %81 = arith.addf %77, %80 : vector<16x16x256xf32>
    %c0_99 = arith.constant 0 : index
    %c0_100 = arith.constant 0 : index
    %c0_101 = arith.constant 0 : index
    %82 = vector.load %arg5[%c0_99, %c0_100, %c0_101] : memref<16x16x256xf32, #tpu.memory_space<vmem>>, vector<16x16x256xf32>
    tpu.vector_store %arg5[%c0_99, %c0_100, %c0_101], %81 {strides = array<i32>} : memref<16x16x256xf32, #tpu.memory_space<vmem>>, vector<16x16x256xf32>,
    %c0_102 = arith.constant 0 : index
    %c0_103 = arith.constant 0 : index
    %c0_104 = arith.constant 0 : index
    %83 = vector.load %arg5[%c0_102, %c0_103, %c0_104] : memref<16x16x256xf32, #tpu.memory_space<vmem>>, vector<16x16x256xf32>
    %c0_105 = arith.constant 0 : index
    %c0_106 = arith.constant 0 : index
    %84 = vector.load %arg3[%c0_105, %c0_106] : memref<1x256xf32, #tpu.memory_space<vmem>>, vector<1x256xf32>
    %85 = vector.shape_cast %84 : vector<1x256xf32> to vector<1x1x256xf32>
    %86 = vector.broadcast %85 : vector<1x1x256xf32> to vector<16x16x256xf32>
    %87 = arith.addf %83, %86 : vector<16x16x256xf32>
    %cst_107 = arith.constant 0.000000e+00 : f32
    %88 = vector.broadcast %cst_107 : f32 to vector<16x16x256xf32>
    %89 = arith.maximumf %87, %88 : vector<16x16x256xf32>
    %c0_108 = arith.constant 0 : index
    %c0_109 = arith.constant 0 : index
    %c0_110 = arith.constant 0 : index
    %c0_111 = arith.constant 0 : index
    %90 = vector.load %arg4[%c0_108, %c0_109, %c0_110, %c0_111] : memref<1x16x16x256xf32, #tpu.memory_space<vmem>>, vector<1x16x16x256xf32>
    %91 = vector.shape_cast %90 : vector<1x16x16x256xf32> to vector<16x16x256xf32>
    %92 = vector.shape_cast %89 : vector<16x16x256xf32> to vector<1x16x16x256xf32>
    tpu.vector_store %arg4[%c0_108, %c0_109, %c0_110, %c0_111], %92 {strides = array<i32>} : memref<1x16x16x256xf32, #tpu.memory_space<vmem>>, vector<1x16x16x256xf32>,
    return
  }
  func.func @transform_0(%arg0: i32) -> (i32, i32, i32, i32) {
    %c0_i32 = arith.constant 0 : i32
    %c0_i32_0 = arith.constant 0 : i32
    %c0_i32_1 = arith.constant 0 : i32
    %c0_i32_2 = arith.constant 0 : i32
    return %arg0, %c0_i32, %c0_i32_0, %c0_i32_1 : i32, i32, i32, i32
  }
  func.func @transform_1(%arg0: i32) -> (i32, i32) {
    %c0_i32 = arith.constant 0 : i32
    %c0_i32_0 = arith.constant 0 : i32
    %c0_i32_1 = arith.constant 0 : i32
    return %c0_i32, %c0_i32_0 : i32, i32
  }
  func.func @transform_2(%arg0: i32) -> (i32, i32) {
    %c0_i32 = arith.constant 0 : i32
    %c0_i32_0 = arith.constant 0 : i32
    %c0_i32_1 = arith.constant 0 : i32
    return %c0_i32, %c0_i32_0 : i32, i32
  }
  func.func @transform_3(%arg0: i32) -> (i32, i32, i32, i32) {
    %c0_i32 = arith.constant 0 : i32
    %c0_i32_0 = arith.constant 0 : i32
    %c0_i32_1 = arith.constant 0 : i32
    %c0_i32_2 = arith.constant 0 : i32
    return %arg0, %c0_i32, %c0_i32_0, %c0_i32_1 : i32, i32, i32, i32
  }
}

module attributes {stable_mosaic.version = 11 : i64} {
  func.func @_matmul_bias_act_kernel(%arg0: i32, %arg1: i32, %arg2: i32, %arg3: memref<512x256xf32, #tpu.memory_space<vmem>>, %arg4: memref<256x128xf32, #tpu.memory_space<vmem>>, %arg5: memref<1x128xf32, #tpu.memory_space<vmem>>, %arg6: memref<512x128xf32, #tpu.memory_space<vmem>>, %arg7: memref<512x128xf32, #tpu.memory_space<vmem>>) attributes {dimension_semantics = [#tpu.dimension_semantics<parallel>, #tpu.dimension_semantics<parallel>, #tpu.dimension_semantics<arbitrary>], iteration_bounds = array<i64: 1, 1, 1>, scalar_prefetch = 0 : i64, scratch_operands = 1 : i64, tpu.core_type = #tpu.core_type<tc>, window_params = [{transform_indices = @transform_0, window_bounds = array<i64: 512, 256>}, {transform_indices = @transform_1, window_bounds = array<i64: 256, 128>}, {transform_indices = @transform_2, window_bounds = array<i64: 1, 128>}, {transform_indices = @transform_3, window_bounds = array<i64: 512, 128>}]} {
    %c0_i32 = arith.constant 0 : i32
    %0 = arith.cmpi eq, %arg2, %c0_i32 : i32
    %1 = arith.extui %0 : i1 to i32
    %c0_i32_0 = arith.constant 0 : i32
    %2 = arith.cmpi ne, %1, %c0_i32_0 : i32
    scf.if %2 {
      %cst_10 = arith.constant 0.000000e+00 : f32
      %12 = vector.broadcast %cst_10 : f32 to vector<512x128xf32>
      %c0_11 = arith.constant 0 : index
      %c0_12 = arith.constant 0 : index
      %13 = vector.load %arg7[%c0_11, %c0_12] : memref<512x128xf32, #tpu.memory_space<vmem>>, vector<512x128xf32>
      tpu.vector_store %arg7[%c0_11, %c0_12], %12 {strides = array<i32>} : memref<512x128xf32, #tpu.memory_space<vmem>>, vector<512x128xf32>,
    } else {
    }
    %c0 = arith.constant 0 : index
    %c0_1 = arith.constant 0 : index
    %3 = vector.load %arg7[%c0, %c0_1] : memref<512x128xf32, #tpu.memory_space<vmem>>, vector<512x128xf32>
    %c0_2 = arith.constant 0 : index
    %c0_3 = arith.constant 0 : index
    %4 = vector.load %arg3[%c0_2, %c0_3] : memref<512x256xf32, #tpu.memory_space<vmem>>, vector<512x256xf32>
    %c0_4 = arith.constant 0 : index
    %c0_5 = arith.constant 0 : index
    %5 = vector.load %arg4[%c0_4, %c0_5] : memref<256x128xf32, #tpu.memory_space<vmem>>, vector<256x128xf32>
    %cst = arith.constant dense<0.000000e+00> : vector<512x128xf32>
    %6 = tpu.matmul %4, %5, %cst {dimension_numbers = #tpu.dot_dimension_numbers<[1], [0], [0], [1], [0, 0, 1, 1], [], []>} : vector<512x256xf32>, vector<256x128xf32>, vector<512x128xf32> -> vector<512x128xf32>
    %7 = arith.addf %3, %6 : vector<512x128xf32>
    %c0_6 = arith.constant 0 : index
    %c0_7 = arith.constant 0 : index
    %8 = vector.load %arg7[%c0_6, %c0_7] : memref<512x128xf32, #tpu.memory_space<vmem>>, vector<512x128xf32>
    tpu.vector_store %arg7[%c0_6, %c0_7], %7 {strides = array<i32>} : memref<512x128xf32, #tpu.memory_space<vmem>>, vector<512x128xf32>,
    %c0_i32_8 = arith.constant 0 : i32
    %9 = arith.cmpi eq, %arg2, %c0_i32_8 : i32
    %10 = arith.extui %9 : i1 to i32
    %c0_i32_9 = arith.constant 0 : i32
    %11 = arith.cmpi ne, %10, %c0_i32_9 : i32
    scf.if %11 {
      %c0_10 = arith.constant 0 : index
      %c0_11 = arith.constant 0 : index
      %12 = vector.load %arg7[%c0_10, %c0_11] : memref<512x128xf32, #tpu.memory_space<vmem>>, vector<512x128xf32>
      %c0_12 = arith.constant 0 : index
      %c0_13 = arith.constant 0 : index
      %13 = vector.load %arg5[%c0_12, %c0_13] : memref<1x128xf32, #tpu.memory_space<vmem>>, vector<1x128xf32>
      %14 = vector.broadcast %13 : vector<1x128xf32> to vector<512x128xf32>
      %15 = arith.addf %12, %14 : vector<512x128xf32>
      %c0_14 = arith.constant 0 : index
      %c0_15 = arith.constant 0 : index
      %16 = vector.load %arg6[%c0_14, %c0_15] : memref<512x128xf32, #tpu.memory_space<vmem>>, vector<512x128xf32>
      tpu.vector_store %arg6[%c0_14, %c0_15], %15 {strides = array<i32>} : memref<512x128xf32, #tpu.memory_space<vmem>>, vector<512x128xf32>,
    } else {
    }
    return
  }
  func.func @transform_0(%arg0: i32, %arg1: i32, %arg2: i32) -> (i32, i32) {
    %c0_i32 = arith.constant 0 : i32
    return %arg0, %arg2 : i32, i32
  }
  func.func @transform_1(%arg0: i32, %arg1: i32, %arg2: i32) -> (i32, i32) {
    %c0_i32 = arith.constant 0 : i32
    return %arg2, %arg1 : i32, i32
  }
  func.func @transform_2(%arg0: i32, %arg1: i32, %arg2: i32) -> (i32, i32) {
    %c0_i32 = arith.constant 0 : i32
    %c0_i32_0 = arith.constant 0 : i32
    return %c0_i32, %arg1 : i32, i32
  }
  func.func @transform_3(%arg0: i32, %arg1: i32, %arg2: i32) -> (i32, i32) {
    %c0_i32 = arith.constant 0 : i32
    return %arg0, %arg1 : i32, i32
  }
}

module attributes {stable_mosaic.version = 11 : i64} {
  func.func @_matmul_bias_act_kernel(%arg0: i32, %arg1: i32, %arg2: i32, %arg3: memref<512x128xf32, #tpu.memory_space<vmem>>, %arg4: memref<128x128xf32, #tpu.memory_space<vmem>>, %arg5: memref<1x128xf32, #tpu.memory_space<vmem>>, %arg6: memref<512x128xf32, #tpu.memory_space<vmem>>, %arg7: memref<512x128xf32, #tpu.memory_space<vmem>>) attributes {dimension_semantics = [#tpu.dimension_semantics<parallel>, #tpu.dimension_semantics<parallel>, #tpu.dimension_semantics<arbitrary>], iteration_bounds = array<i64: 1, 1, 1>, scalar_prefetch = 0 : i64, scratch_operands = 1 : i64, tpu.core_type = #tpu.core_type<tc>, window_params = [{transform_indices = @transform_0, window_bounds = array<i64: 512, 128>}, {transform_indices = @transform_1, window_bounds = array<i64: 128, 128>}, {transform_indices = @transform_2, window_bounds = array<i64: 1, 128>}, {transform_indices = @transform_3, window_bounds = array<i64: 512, 128>}]} {
    %c0_i32 = arith.constant 0 : i32
    %0 = arith.cmpi eq, %arg2, %c0_i32 : i32
    %1 = arith.extui %0 : i1 to i32
    %c0_i32_0 = arith.constant 0 : i32
    %2 = arith.cmpi ne, %1, %c0_i32_0 : i32
    scf.if %2 {
      %cst_10 = arith.constant 0.000000e+00 : f32
      %12 = vector.broadcast %cst_10 : f32 to vector<512x128xf32>
      %c0_11 = arith.constant 0 : index
      %c0_12 = arith.constant 0 : index
      %13 = vector.load %arg7[%c0_11, %c0_12] : memref<512x128xf32, #tpu.memory_space<vmem>>, vector<512x128xf32>
      tpu.vector_store %arg7[%c0_11, %c0_12], %12 {strides = array<i32>} : memref<512x128xf32, #tpu.memory_space<vmem>>, vector<512x128xf32>,
    } else {
    }
    %c0 = arith.constant 0 : index
    %c0_1 = arith.constant 0 : index
    %3 = vector.load %arg7[%c0, %c0_1] : memref<512x128xf32, #tpu.memory_space<vmem>>, vector<512x128xf32>
    %c0_2 = arith.constant 0 : index
    %c0_3 = arith.constant 0 : index
    %4 = vector.load %arg3[%c0_2, %c0_3] : memref<512x128xf32, #tpu.memory_space<vmem>>, vector<512x128xf32>
    %c0_4 = arith.constant 0 : index
    %c0_5 = arith.constant 0 : index
    %5 = vector.load %arg4[%c0_4, %c0_5] : memref<128x128xf32, #tpu.memory_space<vmem>>, vector<128x128xf32>
    %cst = arith.constant dense<0.000000e+00> : vector<512x128xf32>
    %6 = tpu.matmul %4, %5, %cst {dimension_numbers = #tpu.dot_dimension_numbers<[1], [0], [0], [1], [0, 0, 1, 1], [], []>} : vector<512x128xf32>, vector<128x128xf32>, vector<512x128xf32> -> vector<512x128xf32>
    %7 = arith.addf %3, %6 : vector<512x128xf32>
    %c0_6 = arith.constant 0 : index
    %c0_7 = arith.constant 0 : index
    %8 = vector.load %arg7[%c0_6, %c0_7] : memref<512x128xf32, #tpu.memory_space<vmem>>, vector<512x128xf32>
    tpu.vector_store %arg7[%c0_6, %c0_7], %7 {strides = array<i32>} : memref<512x128xf32, #tpu.memory_space<vmem>>, vector<512x128xf32>,
    %c0_i32_8 = arith.constant 0 : i32
    %9 = arith.cmpi eq, %arg2, %c0_i32_8 : i32
    %10 = arith.extui %9 : i1 to i32
    %c0_i32_9 = arith.constant 0 : i32
    %11 = arith.cmpi ne, %10, %c0_i32_9 : i32
    scf.if %11 {
      %c0_10 = arith.constant 0 : index
      %c0_11 = arith.constant 0 : index
      %12 = vector.load %arg7[%c0_10, %c0_11] : memref<512x128xf32, #tpu.memory_space<vmem>>, vector<512x128xf32>
      %c0_12 = arith.constant 0 : index
      %c0_13 = arith.constant 0 : index
      %13 = vector.load %arg5[%c0_12, %c0_13] : memref<1x128xf32, #tpu.memory_space<vmem>>, vector<1x128xf32>
      %14 = vector.broadcast %13 : vector<1x128xf32> to vector<512x128xf32>
      %15 = arith.addf %12, %14 : vector<512x128xf32>
      %cst_14 = arith.constant 3.000000e+00 : f32
      %16 = vector.broadcast %cst_14 : f32 to vector<512x128xf32>
      %17 = arith.addf %15, %16 : vector<512x128xf32>
      %cst_15 = arith.constant 0.000000e+00 : f32
      %18 = vector.broadcast %cst_15 : f32 to vector<512x128xf32>
      %19 = arith.maximumf %17, %18 : vector<512x128xf32>
      %cst_16 = arith.constant 6.000000e+00 : f32
      %20 = vector.broadcast %cst_16 : f32 to vector<512x128xf32>
      %21 = arith.minimumf %19, %20 : vector<512x128xf32>
      %22 = arith.mulf %15, %21 : vector<512x128xf32>
      %cst_17 = arith.constant 0.166666672 : f32
      %23 = vector.broadcast %cst_17 : f32 to vector<512x128xf32>
      %24 = arith.mulf %22, %23 : vector<512x128xf32>
      %c0_18 = arith.constant 0 : index
      %c0_19 = arith.constant 0 : index
      %25 = vector.load %arg6[%c0_18, %c0_19] : memref<512x128xf32, #tpu.memory_space<vmem>>, vector<512x128xf32>
      tpu.vector_store %arg6[%c0_18, %c0_19], %24 {strides = array<i32>} : memref<512x128xf32, #tpu.memory_space<vmem>>, vector<512x128xf32>,
    } else {
    }
    return
  }
  func.func @transform_0(%arg0: i32, %arg1: i32, %arg2: i32) -> (i32, i32) {
    %c0_i32 = arith.constant 0 : i32
    return %arg0, %arg2 : i32, i32
  }
  func.func @transform_1(%arg0: i32, %arg1: i32, %arg2: i32) -> (i32, i32) {
    %c0_i32 = arith.constant 0 : i32
    return %arg2, %arg1 : i32, i32
  }
  func.func @transform_2(%arg0: i32, %arg1: i32, %arg2: i32) -> (i32, i32) {
    %c0_i32 = arith.constant 0 : i32
    %c0_i32_0 = arith.constant 0 : i32
    return %c0_i32, %arg1 : i32, i32
  }
  func.func @transform_3(%arg0: i32, %arg1: i32, %arg2: i32) -> (i32, i32) {
    %c0_i32 = arith.constant 0 : i32
    return %arg0, %arg1 : i32, i32
  }
}

module attributes {stable_mosaic.version = 11 : i64} {
  func.func @_heads_kernel(%arg0: i32, %arg1: memref<2x256x128xf32, #tpu.memory_space<vmem>>, %arg2: memref<128x192xf32, #tpu.memory_space<vmem>>, %arg3: memref<1x192xf32, #tpu.memory_space<vmem>>, %arg4: memref<192x48xf32, #tpu.memory_space<vmem>>, %arg5: memref<1x48xf32, #tpu.memory_space<vmem>>, %arg6: memref<48x128xf32, #tpu.memory_space<vmem>>, %arg7: memref<1x128xf32, #tpu.memory_space<vmem>>, %arg8: memref<2x128xf32, #tpu.memory_space<vmem>>) attributes {dimension_semantics = [#tpu.dimension_semantics<arbitrary>], iteration_bounds = array<i64: 1>, scalar_prefetch = 0 : i64, scratch_operands = 0 : i64, tpu.core_type = #tpu.core_type<tc>, window_params = [{pipeline_mode = #tpu.pipeline_mode<synchronous>, transform_indices = @transform_0, window_bounds = array<i64: 2, 256, 128>}, {pipeline_mode = #tpu.pipeline_mode<synchronous>, transform_indices = @transform_1, window_bounds = array<i64: 128, 192>}, {pipeline_mode = #tpu.pipeline_mode<synchronous>, transform_indices = @transform_2, window_bounds = array<i64: 1, 192>}, {pipeline_mode = #tpu.pipeline_mode<synchronous>, transform_indices = @transform_3, window_bounds = array<i64: 192, 48>}, {pipeline_mode = #tpu.pipeline_mode<synchronous>, transform_indices = @transform_4, window_bounds = array<i64: 1, 48>}, {pipeline_mode = #tpu.pipeline_mode<synchronous>, transform_indices = @transform_5, window_bounds = array<i64: 48, 128>}, {pipeline_mode = #tpu.pipeline_mode<synchronous>, transform_indices = @transform_6, window_bounds = array<i64: 1, 128>}, {pipeline_mode = #tpu.pipeline_mode<synchronous>, transform_indices = @transform_7, window_bounds = array<i64: 2, 128>}]} {
    %c0 = arith.constant 0 : index
    %c0_0 = arith.constant 0 : index
    %c0_1 = arith.constant 0 : index
    %0 = vector.load %arg1[%c0, %c0_0, %c0_1] : memref<2x256x128xf32, #tpu.memory_space<vmem>>, vector<2x256x128xf32>
    %cst = arith.constant dense<0.000000e+00> : vector<2x128xf32>
    %1 = vector.multi_reduction <add>, %0, %cst [1] : vector<2x256x128xf32> to vector<2x128xf32>
    %cst_2 = arith.constant 2.560000e+02 : f32
    %2 = vector.broadcast %cst_2 : f32 to vector<2x128xf32>
    %3 = arith.divf %1, %2 : vector<2x128xf32>
    %c0_3 = arith.constant 0 : index
    %c0_4 = arith.constant 0 : index
    %4 = vector.load %arg2[%c0_3, %c0_4] : memref<128x192xf32, #tpu.memory_space<vmem>>, vector<128x192xf32>
    %cst_5 = arith.constant dense<0.000000e+00> : vector<2x192xf32>
    %5 = tpu.matmul %3, %4, %cst_5 {dimension_numbers = #tpu.dot_dimension_numbers<[1], [0], [0], [1], [0, 0, 1, 1], [], []>} : vector<2x128xf32>, vector<128x192xf32>, vector<2x192xf32> -> vector<2x192xf32>
    %c0_6 = arith.constant 0 : index
    %c0_7 = arith.constant 0 : index
    %6 = vector.load %arg3[%c0_6, %c0_7] : memref<1x192xf32, #tpu.memory_space<vmem>>, vector<1x192xf32>
    %7 = vector.broadcast %6 : vector<1x192xf32> to vector<2x192xf32>
    %8 = arith.addf %5, %7 : vector<2x192xf32>
    %cst_8 = arith.constant 0.000000e+00 : f32
    %9 = vector.broadcast %cst_8 : f32 to vector<2x192xf32>
    %10 = arith.maximumf %8, %9 : vector<2x192xf32>
    %c0_9 = arith.constant 0 : index
    %c0_10 = arith.constant 0 : index
    %11 = vector.load %arg4[%c0_9, %c0_10] : memref<192x48xf32, #tpu.memory_space<vmem>>, vector<192x48xf32>
    %cst_11 = arith.constant dense<0.000000e+00> : vector<2x48xf32>
    %12 = tpu.matmul %10, %11, %cst_11 {dimension_numbers = #tpu.dot_dimension_numbers<[1], [0], [0], [1], [0, 0, 1, 1], [], []>} : vector<2x192xf32>, vector<192x48xf32>, vector<2x48xf32> -> vector<2x48xf32>
    %c0_12 = arith.constant 0 : index
    %c0_13 = arith.constant 0 : index
    %13 = vector.load %arg5[%c0_12, %c0_13] : memref<1x48xf32, #tpu.memory_space<vmem>>, vector<1x48xf32>
    %14 = vector.broadcast %13 : vector<1x48xf32> to vector<2x48xf32>
    %15 = arith.addf %12, %14 : vector<2x48xf32>
    %cst_14 = arith.constant 0.000000e+00 : f32
    %16 = vector.broadcast %cst_14 : f32 to vector<2x48xf32>
    %17 = arith.maximumf %15, %16 : vector<2x48xf32>
    %c0_15 = arith.constant 0 : index
    %c0_16 = arith.constant 0 : index
    %18 = vector.load %arg6[%c0_15, %c0_16] : memref<48x128xf32, #tpu.memory_space<vmem>>, vector<48x128xf32>
    %cst_17 = arith.constant dense<0.000000e+00> : vector<2x128xf32>
    %19 = tpu.matmul %17, %18, %cst_17 {dimension_numbers = #tpu.dot_dimension_numbers<[1], [0], [0], [1], [0, 0, 1, 1], [], []>} : vector<2x48xf32>, vector<48x128xf32>, vector<2x128xf32> -> vector<2x128xf32>
    %c0_18 = arith.constant 0 : index
    %c0_19 = arith.constant 0 : index
    %20 = vector.load %arg7[%c0_18, %c0_19] : memref<1x128xf32, #tpu.memory_space<vmem>>, vector<1x128xf32>
    %21 = vector.broadcast %20 : vector<1x128xf32> to vector<2x128xf32>
    %22 = arith.addf %19, %21 : vector<2x128xf32>
    %c0_20 = arith.constant 0 : index
    %c0_21 = arith.constant 0 : index
    %23 = vector.load %arg8[%c0_20, %c0_21] : memref<2x128xf32, #tpu.memory_space<vmem>>, vector<2x128xf32>
    tpu.vector_store %arg8[%c0_20, %c0_21], %22 {strides = array<i32>} : memref<2x128xf32, #tpu.memory_space<vmem>>, vector<2x128xf32>,
    return
  }
  func.func @transform_0(%arg0: i32) -> (i32, i32, i32) {
    %c0_i32 = arith.constant 0 : i32
    %c0_i32_0 = arith.constant 0 : i32
    %c0_i32_1 = arith.constant 0 : i32
    %c0_i32_2 = arith.constant 0 : i32
    return %c0_i32, %c0_i32_0, %c0_i32_1 : i32, i32, i32
  }
  func.func @transform_1(%arg0: i32) -> (i32, i32) {
    %c0_i32 = arith.constant 0 : i32
    %c0_i32_0 = arith.constant 0 : i32
    %c0_i32_1 = arith.constant 0 : i32
    return %c0_i32, %c0_i32_0 : i32, i32
  }
  func.func @transform_2(%arg0: i32) -> (i32, i32) {
    %c0_i32 = arith.constant 0 : i32
    %c0_i32_0 = arith.constant 0 : i32
    %c0_i32_1 = arith.constant 0 : i32
    return %c0_i32, %c0_i32_0 : i32, i32
  }
  func.func @transform_3(%arg0: i32) -> (i32, i32) {
    %c0_i32 = arith.constant 0 : i32
    %c0_i32_0 = arith.constant 0 : i32
    %c0_i32_1 = arith.constant 0 : i32
    return %c0_i32, %c0_i32_0 : i32, i32
  }
  func.func @transform_4(%arg0: i32) -> (i32, i32) {
    %c0_i32 = arith.constant 0 : i32
    %c0_i32_0 = arith.constant 0 : i32
    %c0_i32_1 = arith.constant 0 : i32
    return %c0_i32, %c0_i32_0 : i32, i32
  }
  func.func @transform_5(%arg0: i32) -> (i32, i32) {
    %c0_i32 = arith.constant 0 : i32
    %c0_i32_0 = arith.constant 0 : i32
    %c0_i32_1 = arith.constant 0 : i32
    return %c0_i32, %c0_i32_0 : i32, i32
  }
  func.func @transform_6(%arg0: i32) -> (i32, i32) {
    %c0_i32 = arith.constant 0 : i32
    %c0_i32_0 = arith.constant 0 : i32
    %c0_i32_1 = arith.constant 0 : i32
    return %c0_i32, %c0_i32_0 : i32, i32
  }
  func.func @transform_7(%arg0: i32) -> (i32, i32) {
    %c0_i32 = arith.constant 0 : i32
    %c0_i32_0 = arith.constant 0 : i32
    %c0_i32_1 = arith.constant 0 : i32
    return %c0_i32, %c0_i32_0 : i32, i32
  }
}

</mosaic_0001>

<bundles_post_ra>
// kernel: fairface_mobilenet_forward.7
= control target key start
LH: loop header
LB: loop body
LE: loop exit
PB: predicated region body
PF: predicated region fallthrough
CT: control target
= control target key end

     0   :  { %v1655_v3 = vmov 0.0   ;;  %s2547_s1 = inlined_call_operand.vmem [shape: f32[128,256], index: 1, kind: input, shape index: {}]   ;;  %s2548_s0 = inlined_call_operand.vmem [shape: f32[512,128], index: 0, kind: input, shape index: {}]   ;;  %s2549_s2 = inlined_call_operand.vmem [shape: f32[1,256], index: 2, kind: input, shape index: {}]   ;;  %s2550_s3 = inlined_call_operand.vmem [shape: f32[512,256], index: 3, kind: output, shape index: {}]  }
   0x1   :  { %v339_v0 = vld [vmem:[%s2547_s1 + $0x8] sm:$0xff]  ;;  %v341_v1 = vld [vmem:[%s2547_s1 + $0x18] sm:$0xff]  ;;  %v338_v2 = vld [vmem:[%s2547_s1] sm:$0xff]  ;;  %434 = vmatprep.mubr.f32.mxu0 %v1655_v3  ;;  %626 = vmatprep.mubr.f32.mxu1 %v1655_v3 }
   0x2   :  { %v1606_v4 = vpack.c.bf16 %v341_v1, %v339_v0  ;;  %v340_v5 = vld [vmem:[%s2547_s1 + $0x10] sm:$0xff]  ;;  %v343_v6 = vld [vmem:[%s2547_s1 + $0x28] sm:$0xff]  ;;  %v345_v7 = vld [vmem:[%s2547_s1 + $0x38] sm:$0xff] }
   0x3   :  { %v1608_v8 = vpack.c.bf16 %v340_v5, %v338_v2  ;;  %v1610_v9 = vpack.c.bf16 %v345_v7, %v343_v6  ;;  %v342_v10 = vld [vmem:[%s2547_s1 + $0x20] sm:$0xff]  ;;  %v344_v11 = vld [vmem:[%s2547_s1 + $0x30] sm:$0xff]  ;;  %v347_v12 = vld [vmem:[%s2547_s1 + $0x48] sm:$0xff] }
   0x4   :  { %1607 = vmatprep.subr.bf16.mxu0 %v1606_v4  ;;  %1638 = vmatprep.subr.bf16.mxu1 %v1606_v4  ;;  %v349_v13 = vld [vmem:[%s2547_s1 + $0x58] sm:$0xff]  ;;  %v1612_v14 = vpack.c.bf16 %v344_v11, %v342_v10  ;;  %v346_v16 = vld [vmem:[%s2547_s1 + $0x40] sm:$0xff]  ;;  %v348_v17 = vld [vmem:[%s2547_s1 + $0x50] sm:$0xff] }
   0x5   :  { %1609 = vmatpush1.bf16.msra.mxu0 %v1608_v8  ;;  %1646 = vmatpush1.bf16.msra.mxu1 %v1608_v8  ;;  %v1614_v15 = vpack.c.bf16 %v349_v13, %v347_v12  ;;  %v351_v18 = vld [vmem:[%s2547_s1 + $0x68] sm:$0xff]  ;;  %v353_v19 = vld [vmem:[%s2547_s1 + $0x78] sm:$0xff]  ;;  %v1616_v20 = vpack.c.bf16 %v348_v17, %v346_v16  ;;  %v350_v22 = vld [vmem:[%s2547_s1 + $0x60] sm:$0xff] }
   0x6   :  { %1611 = vmatprep.subr.bf16.mxu0 %v1610_v9  ;;  %1639 = vmatprep.subr.bf16.mxu1 %v1610_v9  ;;  %v1618_v21 = vpack.c.bf16 %v353_v19, %v351_v18  ;;  %v352_v23 = vld [vmem:[%s2547_s1 + $0x70] sm:$0xff]  ;;  %v355_v24 = vld [vmem:[%s2547_s1 + $0x88] sm:$0xff]  ;;  %v357_v25 = vld [vmem:[%s2547_s1 + $0x98] sm:$0xff] }
   0x7   :  { %v1620_v26 = vpack.c.bf16 %v352_v23, %v350_v22  ;;  %v1622_v27 = vpack.c.bf16 %v357_v25, %v355_v24  ;;  %v354_v28 = vld [vmem:[%s2547_s1 + $0x80] sm:$0xff]  ;;  %v356_v29 = vld [vmem:[%s2547_s1 + $0x90] sm:$0xff]  ;;  %v359_v30 = vld [vmem:[%s2547_s1 + $0xa8] sm:$0xff] }
   0x8   :  { %v361_v31 = vld [vmem:[%s2547_s1 + $0xb8] sm:$0xff]  ;;  %v1624_v32 = vpack.c.bf16 %v356_v29, %v354_v28  ;;  %v358_v34 = vld [vmem:[%s2547_s1 + $0xa0] sm:$0xff]  ;;  %v360_v35 = vld [vmem:[%s2547_s1 + $0xb0] sm:$0xff] }
   0x9   :  { %1613 = vmatpush1.bf16.msra.mxu0 %v1612_v14  ;;  %1647 = vmatpush1.bf16.msra.mxu1 %v1612_v14  ;;  %v1626_v33 = vpack.c.bf16 %v361_v31, %v359_v30  ;;  %v363_v36 = vld [vmem:[%s2547_s1 + $0xc8] sm:$0xff]  ;;  %v365_v37 = vld [vmem:[%s2547_s1 + $0xd8] sm:$0xff]  ;;  %v1628_v38 = vpack.c.bf16 %v360_v35, %v358_v34  ;;  %v362_v40 = vld [vmem:[%s2547_s1 + $0xc0] sm:$0xff] }
   0xa   :  { %1615 = vmatprep.subr.bf16.mxu0 %v1614_v15  ;;  %1640 = vmatprep.subr.bf16.mxu1 %v1614_v15  ;;  %v1630_v39 = vpack.c.bf16 %v365_v37, %v363_v36  ;;  %v364_v41 = vld [vmem:[%s2547_s1 + $0xd0] sm:$0xff]  ;;  %v367_v42 = vld [vmem:[%s2547_s1 + $0xe8] sm:$0xff]  ;;  %v369_v43 = vld [vmem:[%s2547_s1 + $0xf8] sm:$0xff] }
   0xb   :  { %v1632_v44 = vpack.c.bf16 %v364_v41, %v362_v40  ;;  %v1634_v45 = vpack.c.bf16 %v369_v43, %v367_v42  ;;  %v366_v46 = vld [vmem:[%s2547_s1 + $0xe0] sm:$0xff]  ;;  %v368_v47 = vld [vmem:[%s2547_s1 + $0xf0] sm:$0xff]  ;;  %v275_v51 = vld [vmem:[%s2548_s0 + $0x8] sm:$0xff] }
   0xc   :  { %v1636_v48 = vpack.c.bf16 %v368_v47, %v366_v46  ;;  %v274_v49 = vld [vmem:[%s2548_s0] sm:$0xff]  ;;  %v307_v52 = vld [vmem:[%s2548_s0 + $0x108] sm:$0xff]  ;;  %v276_v53 = vld [vmem:[%s2548_s0 + $0x10] sm:$0xff] }
   0xd   :  { %1617 = vmatpush1.bf16.msra.mxu0 %v1616_v20  ;;  %1648 = vmatpush1.bf16.msra.mxu1 %v1616_v20  ;;  %v306_v50 = vld [vmem:[%s2548_s0 + $0x100] sm:$0xff]  ;;  %v308_v54 = vld [vmem:[%s2548_s0 + $0x110] sm:$0xff]  ;;  %v277_v55 = vld [vmem:[%s2548_s0 + $0x18] sm:$0xff] }
   0xe   :  { %1619 = vmatprep.subr.bf16.mxu0 %v1618_v21  ;;  %1641 = vmatprep.subr.bf16.mxu1 %v1618_v21  ;;  %v309_v56 = vld [vmem:[%s2548_s0 + $0x118] sm:$0xff]  ;;  %v278_v57 = vld [vmem:[%s2548_s0 + $0x20] sm:$0xff]  ;;  %v279_v59 = vld [vmem:[%s2548_s0 + $0x28] sm:$0xff] }
   0xf   :  { %v310_v58 = vld [vmem:[%s2548_s0 + $0x120] sm:$0xff]  ;;  %v311_v60 = vld [vmem:[%s2548_s0 + $0x128] sm:$0xff]  ;;  %v280_v61 = vld [vmem:[%s2548_s0 + $0x30] sm:$0xff] }
  0x10   :  { %v312_v62 = vld [vmem:[%s2548_s0 + $0x130] sm:$0xff]  ;;  %v281_v63 = vld [vmem:[%s2548_s0 + $0x38] sm:$0xff]  ;;  %v282_v1 = vld [vmem:[%s2548_s0 + $0x40] sm:$0xff] }
  0x11   :  { %1621 = vmatpush1.bf16.msra.mxu0 %v1620_v26  ;;  %1649 = vmatpush1.bf16.msra.mxu1 %v1620_v26  ;;  %v313_v0 = vld [vmem:[%s2548_s0 + $0x138] sm:$0xff]  ;;  %v314_v2 = vld [vmem:[%s2548_s0 + $0x140] sm:$0xff]  ;;  %v283_v4 = vld [vmem:[%s2548_s0 + $0x48] sm:$0xff] }
  0x12   :  { %1623 = vmatprep.subr.bf16.mxu0 %v1622_v27  ;;  %1642 = vmatprep.subr.bf16.mxu1 %v1622_v27  ;;  %v315_v5 = vld [vmem:[%s2548_s0 + $0x148] sm:$0xff]  ;;  %v284_v6 = vld [vmem:[%s2548_s0 + $0x50] sm:$0xff]  ;;  %v285_v8 = vld [vmem:[%s2548_s0 + $0x58] sm:$0xff] }
  0x13   :  { %v316_v7 = vld [vmem:[%s2548_s0 + $0x150] sm:$0xff]  ;;  %v317_v9 = vld [vmem:[%s2548_s0 + $0x158] sm:$0xff]  ;;  %v286_v10 = vld [vmem:[%s2548_s0 + $0x60] sm:$0xff] }
  0x14   :  { %v318_v11 = vld [vmem:[%s2548_s0 + $0x160] sm:$0xff]  ;;  %v287_v12 = vld [vmem:[%s2548_s0 + $0x68] sm:$0xff]  ;;  %v288_v14 = vld [vmem:[%s2548_s0 + $0x70] sm:$0xff] }
  0x15   :  { %1625 = vmatpush1.bf16.msra.mxu0 %v1624_v32  ;;  %1650 = vmatpush1.bf16.msra.mxu1 %v1624_v32  ;;  %v319_v13 = vld [vmem:[%s2548_s0 + $0x168] sm:$0xff]  ;;  %v320_v15 = vld [vmem:[%s2548_s0 + $0x170] sm:$0xff]  ;;  %v289_v16 = vld [vmem:[%s2548_s0 + $0x78] sm:$0xff] }
  0x16   :  { %1627 = vmatprep.subr.bf16.mxu0 %v1626_v33  ;;  %1643 = vmatprep.subr.bf16.mxu1 %v1626_v33  ;;  %v321_v17 = vld [vmem:[%s2548_s0 + $0x178] sm:$0xff]  ;;  %v290_v18 = vld [vmem:[%s2548_s0 + $0x80] sm:$0xff]  ;;  %v291_v20 = vld [vmem:[%s2548_s0 + $0x88] sm:$0xff] }
  0x17   :  { %v322_v19 = vld [vmem:[%s2548_s0 + $0x180] sm:$0xff]  ;;  %v323_v21 = vld [vmem:[%s2548_s0 + $0x188] sm:$0xff]  ;;  %v292_v22 = vld [vmem:[%s2548_s0 + $0x90] sm:$0xff] }
  0x18   :  { %v324_v23 = vld [vmem:[%s2548_s0 + $0x190] sm:$0xff]  ;;  %v293_v24 = vld [vmem:[%s2548_s0 + $0x98] sm:$0xff]  ;;  %v294_v26 = vld [vmem:[%s2548_s0 + $0xa0] sm:$0xff] }
  0x19   :  { %1629 = vmatpush1.bf16.msra.mxu0 %v1628_v38  ;;  %1651 = vmatpush1.bf16.msra.mxu1 %v1628_v38  ;;  %v325_v25 = vld [vmem:[%s2548_s0 + $0x198] sm:$0xff]  ;;  %v326_v27 = vld [vmem:[%s2548_s0 + $0x1a0] sm:$0xff]  ;;  %v295_v28 = vld [vmem:[%s2548_s0 + $0xa8] sm:$0xff] }
  0x1a   :  { %1631 = vmatprep.subr.bf16.mxu0 %v1630_v39  ;;  %1644 = vmatprep.subr.bf16.mxu1 %v1630_v39  ;;  %v327_v29 = vld [vmem:[%s2548_s0 + $0x1a8] sm:$0xff]  ;;  %v296_v30 = vld [vmem:[%s2548_s0 + $0xb0] sm:$0xff]  ;;  %v297_v32 = vld [vmem:[%s2548_s0 + $0xb8] sm:$0xff] }
  0x1b   :  { %v328_v31 = vld [vmem:[%s2548_s0 + $0x1b0] sm:$0xff]  ;;  %v329_v33 = vld [vmem:[%s2548_s0 + $0x1b8] sm:$0xff]  ;;  %v298_v34 = vld [vmem:[%s2548_s0 + $0xc0] sm:$0xff] }
  0x1c   :  { %v330_v35 = vld [vmem:[%s2548_s0 + $0x1c0] sm:$0xff]  ;;  %v299_v36 = vld [vmem:[%s2548_s0 + $0xc8] sm:$0xff]  ;;  %v300_v38 = vld [vmem:[%s2548_s0 + $0xd0] sm:$0xff] }
  0x1d   :  { %1633 = vmatpush1.bf16.msra.mxu0 %v1632_v44  ;;  %1652 = vmatpush1.bf16.msra.mxu1 %v1632_v44  ;;  %v331_v37 = vld [vmem:[%s2548_s0 + $0x1c8] sm:$0xff]  ;;  %v332_v39 = vld [vmem:[%s2548_s0 + $0x1d0] sm:$0xff]  ;;  %v301_v40 = vld [vmem:[%s2548_s0 + $0xd8] sm:$0xff] }
  0x1e   :  { %1635 = vmatprep.subr.bf16.mxu0 %v1634_v45  ;;  %1645 = vmatprep.subr.bf16.mxu1 %v1634_v45  ;;  %v333_v41 = vld [vmem:[%s2548_s0 + $0x1d8] sm:$0xff]  ;;  %v302_v42 = vld [vmem:[%s2548_s0 + $0xe0] sm:$0xff]  ;;  %v303_v44 = vld [vmem:[%s2548_s0 + $0xe8] sm:$0xff] }
  0x1f   :  { %v334_v43 = vld [vmem:[%s2548_s0 + $0x1e0] sm:$0xff]  ;;  %v335_v45 = vld [vmem:[%s2548_s0 + $0x1e8] sm:$0xff]  ;;  %v304_v46 = vld [vmem:[%s2548_s0 + $0xf0] sm:$0xff] }
  0x20   :  { %v336_v47 = vld [vmem:[%s2548_s0 + $0x1f0] sm:$0xff] }
  0x21   :  { %1637 = vmatpush1.bf16.msra.mxu0 %v1636_v48  ;;  %1653 = vmatpush1.bf16.msra.mxu1 %v1636_v48  ;;  %v305_v48 = vld [vmem:[%s2548_s0 + $0xf8] sm:$0xff] }
  0x24   :  { %435 = vmatmul.mubr.f32.vlgmr.msra.gmra.mrb[0].mxu0 %v274_v49  ;;  %627 = vmatmul.mubr.f32.vlgmr.msra.gmra.mrb[0].mxu1 %v306_v50  ;;  %v337_v49 = vld [vmem:[%s2548_s0 + $0x1f8] sm:$0xff]  ;;  %v1208_v50 = vlaneseq }
  0x25   :  { %440 = vmatprep.mubr.f32.mxu0 %v1655_v3  ;;  %632 = vmatprep.mubr.f32.mxu1 %v1655_v3 }
  0x28   :  { %441 = vmatmul.mubr.f32.gmra.mrb[2].mxu0 %v275_v51  ;;  %633 = vmatmul.mubr.f32.gmra.mrb[2].mxu1 %v307_v52  ;;  %v1209_v51 = vshrl.u32 %v1208_v50, 7 }
  0x29   :  { %446 = vmatprep.mubr.f32.mxu0 %v1655_v3  ;;  %638 = vmatprep.mubr.f32.mxu1 %v1655_v3 }
  0x2a   :  { %v1210_v52 = vsub.s32 0, %v1209_v51 }
  0x2c   :  { %447 = vmatmul.mubr.f32.gmra.mrb[4].mxu0 %v276_v53  ;;  %639 = vmatmul.mubr.f32.gmra.mrb[4].mxu1 %v308_v54  ;;  %v1206_v53 = vld [vmem:[%s2549_s2] sm:$0x3]  ;;  %v1214_v54 = vsub.s32 1, %v1209_v51 }
  0x2d   :  { %452 = vmatprep.mubr.f32.mxu0 %v1655_v3  ;;  %644 = vmatprep.mubr.f32.mxu1 %v1655_v3 }
  0x30   :  { %453 = vmatmul.mubr.f32.gmra.mrb[6].mxu0 %v277_v55  ;;  %645 = vmatmul.mubr.f32.gmra.mrb[6].mxu1 %v309_v56  ;;  %v2031_v55 = vrot.slane %v1206_v53, %v1210_v52 }
  0x31   :  { %458 = vmatprep.mubr.f32.mxu0 %v1655_v3  ;;  %650 = vmatprep.mubr.f32.mxu1 %v1655_v3 }
  0x34   :  { %459 = vmatmul.mubr.f32.gmra.mrb[8].mxu0 %v278_v57  ;;  %651 = vmatmul.mubr.f32.gmra.mrb[8].mxu1 %v310_v58 }
  0x35   :  { %464 = vmatprep.mubr.f32.mxu0 %v1655_v3  ;;  %656 = vmatprep.mubr.f32.mxu1 %v1655_v3 }
  0x38   :  { %465 = vmatmul.mubr.f32.gmra.mrb[10].mxu0 %v279_v59  ;;  %657 = vmatmul.mubr.f32.gmra.mrb[10].mxu1 %v311_v60 }
  0x39   :  { %470 = vmatprep.mubr.f32.mxu0 %v1655_v3  ;;  %662 = vmatprep.mubr.f32.mxu1 %v1655_v3 }
  0x3c   :  { %471 = vmatmul.mubr.f32.gmra.mrb[12].mxu0 %v280_v61  ;;  %663 = vmatmul.mubr.f32.gmra.mrb[12].mxu1 %v312_v62 }
  0x3d   :  { %476 = vmatprep.mubr.f32.mxu0 %v1655_v3  ;;  %668 = vmatprep.mubr.f32.mxu1 %v1655_v3 }
  0x40   :  { %477 = vmatmul.mubr.f32.gmra.mrb[14].mxu0 %v281_v63  ;;  %669 = vmatmul.mubr.f32.gmra.mrb[14].mxu1 %v313_v0 }
  0x41   :  { %482 = vmatprep.mubr.f32.mxu0 %v1655_v3  ;;  %674 = vmatprep.mubr.f32.mxu1 %v1655_v3 }
  0x44   :  { %483 = vmatmul.mubr.f32.gmra.mrb[16].mxu0 %v282_v1  ;;  %675 = vmatmul.mubr.f32.gmra.mrb[16].mxu1 %v314_v2 }
  0x45   :  { %488 = vmatprep.mubr.f32.mxu0 %v1655_v3  ;;  %680 = vmatprep.mubr.f32.mxu1 %v1655_v3 }
  0x48   :  { %489 = vmatmul.mubr.f32.gmra.mrb[18].mxu0 %v283_v4  ;;  %681 = vmatmul.mubr.f32.gmra.mrb[18].mxu1 %v315_v5 }
  0x49   :  { %494 = vmatprep.mubr.f32.mxu0 %v1655_v3  ;;  %686 = vmatprep.mubr.f32.mxu1 %v1655_v3 }
  0x4c   :  { %495 = vmatmul.mubr.f32.gmra.mrb[20].mxu0 %v284_v6  ;;  %687 = vmatmul.mubr.f32.gmra.mrb[20].mxu1 %v316_v7 }
  0x4d   :  { %500 = vmatprep.mubr.f32.mxu0 %v1655_v3  ;;  %692 = vmatprep.mubr.f32.mxu1 %v1655_v3 }
  0x50   :  { %501 = vmatmul.mubr.f32.gmra.mrb[22].mxu0 %v285_v8  ;;  %693 = vmatmul.mubr.f32.gmra.mrb[22].mxu1 %v317_v9 }
  0x51   :  { %506 = vmatprep.mubr.f32.mxu0 %v1655_v3  ;;  %698 = vmatprep.mubr.f32.mxu1 %v1655_v3 }
  0x54   :  { %507 = vmatmul.mubr.f32.gmra.mrb[24].mxu0 %v286_v10  ;;  %699 = vmatmul.mubr.f32.gmra.mrb[24].mxu1 %v318_v11 }
  0x55   :  { %512 = vmatprep.mubr.f32.mxu0 %v1655_v3  ;;  %704 = vmatprep.mubr.f32.mxu1 %v1655_v3 }
  0x58   :  { %513 = vmatmul.mubr.f32.gmra.mrb[26].mxu0 %v287_v12  ;;  %705 = vmatmul.mubr.f32.gmra.mrb[26].mxu1 %v319_v13 }
  0x59   :  { %518 = vmatprep.mubr.f32.mxu0 %v1655_v3  ;;  %710 = vmatprep.mubr.f32.mxu1 %v1655_v3 }
  0x5c   :  { %519 = vmatmul.mubr.f32.gmra.mrb[28].mxu0 %v288_v14  ;;  %711 = vmatmul.mubr.f32.gmra.mrb[28].mxu1 %v320_v15 }
  0x5d   :  { %524 = vmatprep.mubr.f32.mxu0 %v1655_v3  ;;  %716 = vmatprep.mubr.f32.mxu1 %v1655_v3 }
  0x60   :  { %525 = vmatmul.mubr.f32.gmra.mrb[30].mxu0 %v289_v16  ;;  %717 = vmatmul.mubr.f32.gmra.mrb[30].mxu1 %v321_v17 }
  0x61   :  { %530 = vmatprep.mubr.f32.mxu0 %v1655_v3  ;;  %722 = vmatprep.mubr.f32.mxu1 %v1655_v3 }
  0x64   :  { %531 = vmatmul.mubr.f32.gmra.mrb[32].mxu0 %v290_v18  ;;  %723 = vmatmul.mubr.f32.gmra.mrb[32].mxu1 %v322_v19 }
  0x65   :  { %536 = vmatprep.mubr.f32.mxu0 %v1655_v3  ;;  %728 = vmatprep.mubr.f32.mxu1 %v1655_v3 }
  0x68   :  { %537 = vmatmul.mubr.f32.gmra.mrb[34].mxu0 %v291_v20  ;;  %729 = vmatmul.mubr.f32.gmra.mrb[34].mxu1 %v323_v21 }
  0x69   :  { %542 = vmatprep.mubr.f32.mxu0 %v1655_v3  ;;  %734 = vmatprep.mubr.f32.mxu1 %v1655_v3 }
  0x6c   :  { %543 = vmatmul.mubr.f32.gmra.mrb[36].mxu0 %v292_v22  ;;  %735 = vmatmul.mubr.f32.gmra.mrb[36].mxu1 %v324_v23 }
  0x6d   :  { %548 = vmatprep.mubr.f32.mxu0 %v1655_v3  ;;  %740 = vmatprep.mubr.f32.mxu1 %v1655_v3 }
  0x70   :  { %549 = vmatmul.mubr.f32.gmra.mrb[38].mxu0 %v293_v24  ;;  %741 = vmatmul.mubr.f32.gmra.mrb[38].mxu1 %v325_v25 }
  0x71   :  { %554 = vmatprep.mubr.f32.mxu0 %v1655_v3  ;;  %746 = vmatprep.mubr.f32.mxu1 %v1655_v3 }
  0x74   :  { %555 = vmatmul.mubr.f32.gmra.mrb[40].mxu0 %v294_v26  ;;  %747 = vmatmul.mubr.f32.gmra.mrb[40].mxu1 %v326_v27 }
  0x75   :  { %560 = vmatprep.mubr.f32.mxu0 %v1655_v3  ;;  %752 = vmatprep.mubr.f32.mxu1 %v1655_v3 }
  0x78   :  { %561 = vmatmul.mubr.f32.gmra.mrb[42].mxu0 %v295_v28  ;;  %753 = vmatmul.mubr.f32.gmra.mrb[42].mxu1 %v327_v29 }
  0x79   :  { %566 = vmatprep.mubr.f32.mxu0 %v1655_v3  ;;  %758 = vmatprep.mubr.f32.mxu1 %v1655_v3 }
  0x7c   :  { %567 = vmatmul.mubr.f32.gmra.mrb[44].mxu0 %v296_v30  ;;  %759 = vmatmul.mubr.f32.gmra.mrb[44].mxu1 %v328_v31 }
  0x7d   :  { %572 = vmatprep.mubr.f32.mxu0 %v1655_v3  ;;  %764 = vmatprep.mubr.f32.mxu1 %v1655_v3 }
  0x80   :  { %573 = vmatmul.mubr.f32.gmra.mrb[46].mxu0 %v297_v32  ;;  %765 = vmatmul.mubr.f32.gmra.mrb[46].mxu1 %v329_v33 }
  0x81   :  { %578 = vmatprep.mubr.f32.mxu0 %v1655_v3  ;;  %770 = vmatprep.mubr.f32.mxu1 %v1655_v3 }
  0x84   :  { %579 = vmatmul.mubr.f32.gmra.mrb[48].mxu0 %v298_v34  ;;  %771 = vmatmul.mubr.f32.gmra.mrb[48].mxu1 %v330_v35 }
  0x85   :  { %584 = vmatprep.mubr.f32.mxu0 %v1655_v3  ;;  %776 = vmatprep.mubr.f32.mxu1 %v1655_v3 }
  0x88   :  { %585 = vmatmul.mubr.f32.gmra.mrb[50].mxu0 %v299_v36  ;;  %777 = vmatmul.mubr.f32.gmra.mrb[50].mxu1 %v331_v37 }
  0x89   :  { %590 = vmatprep.mubr.f32.mxu0 %v1655_v3  ;;  %782 = vmatprep.mubr.f32.mxu1 %v1655_v3 }
  0x8c   :  { %591 = vmatmul.mubr.f32.gmra.mrb[52].mxu0 %v300_v38  ;;  %783 = vmatmul.mubr.f32.gmra.mrb[52].mxu1 %v332_v39 }
  0x8d   :  { %596 = vmatprep.mubr.f32.mxu0 %v1655_v3  ;;  %788 = vmatprep.mubr.f32.mxu1 %v1655_v3 }
  0x90   :  { %597 = vmatmul.mubr.f32.gmra.mrb[54].mxu0 %v301_v40  ;;  %789 = vmatmul.mubr.f32.gmra.mrb[54].mxu1 %v333_v41 }
  0x91   :  { %602 = vmatprep.mubr.f32.mxu0 %v1655_v3  ;;  %794 = vmatprep.mubr.f32.mxu1 %v1655_v3 }
  0x94   :  { %603 = vmatmul.mubr.f32.gmra.mrb[56].mxu0 %v302_v42  ;;  %795 = vmatmul.mubr.f32.gmra.mrb[56].mxu1 %v334_v43 }
  0x95   :  { %608 = vmatprep.mubr.f32.mxu0 %v1655_v3  ;;  %800 = vmatprep.mubr.f32.mxu1 %v1655_v3 }
  0x98   :  { %609 = vmatmul.mubr.f32.gmra.mrb[58].mxu0 %v303_v44  ;;  %801 = vmatmul.mubr.f32.gmra.mrb[58].mxu1 %v335_v45 }
  0x99   :  { %614 = vmatprep.mubr.f32.mxu0 %v1655_v3  ;;  %806 = vmatprep.mubr.f32.mxu1 %v1655_v3 }
  0x9c   :  { %615 = vmatmul.mubr.f32.gmra.mrb[60].mxu0 %v304_v46  ;;  %807 = vmatmul.mubr.f32.gmra.mrb[60].mxu1 %v336_v47 }
  0x9d   :  { %620 = vmatprep.mubr.f32.mxu0 %v1655_v3  ;;  %812 = vmatprep.mubr.f32.mxu1 %v1655_v3  ;;  %v2033_v3 = vrot.slane %v1206_v53, %v1214_v54 }
  0xa0   :  { %621 = vmatmul.mubr.f32.gmra.mrb[62].mxu0 %v305_v48  ;;  %813 = vmatmul.mubr.f32.gmra.mrb[62].mxu1 %v337_v49 }
  0xf7   :  { %v436_v56 = vpop.f32.mrb[0].mxu0  ;;  %v628_v57 = vpop.f32.mrb[0].mxu1 }
  0xf8   :  { %v1218_v58 = vadd.f32 %v2031_v55, %v436_v56  ;;  %v1282_v59 = vadd.f32 %v2031_v55, %v628_v57  ;;  %v438_v60 = vpop.f32.mrb[1].mxu0  ;;  %v630_v61 = vpop.f32.mrb[1].mxu1 }
  0xf9   :  { %v1219_v62 = vadd.f32 %v2033_v3, %v438_v60  ;;  %v1283_v63 = vadd.f32 %v2033_v3, %v630_v61 }
  0xfa   :  { %v1346_v0 = vmax.f32 %v1218_v58, 0.0  ;;  %v1410_v1 = vmax.f32 %v1282_v59, 0.0 }
  0xfb   :  { %v1347_v2 = vmax.f32 %v1219_v62, 0.0  ;;  %v1411_v4 = vmax.f32 %v1283_v63, 0.0  ;;  %v442_v5 = vpop.f32.mrb[2].mxu0  ;;  %v634_v6 = vpop.f32.mrb[2].mxu1 }
  0xfc   :  { %1474 = vst [vmem:[%s2550_s3] sm:$0xff] %v1346_v0  ;;  %1538 = vst [vmem:[%s2550_s3 + $0x200] sm:$0xff] %v1410_v1  ;;  %v1220_v7 = vadd.f32 %v2031_v55, %v442_v5  ;;  %v1284_v8 = vadd.f32 %v2031_v55, %v634_v6  ;;  %v444_v9 = vpop.f32.mrb[3].mxu0  ;;  %v636_v10 = vpop.f32.mrb[3].mxu1 }
  0xfd   :  { %1475 = vst [vmem:[%s2550_s3 + $0x8] sm:$0xff] %v1347_v2  ;;  %1539 = vst [vmem:[%s2550_s3 + $0x208] sm:$0xff] %v1411_v4  ;;  %v1221_v11 = vadd.f32 %v2033_v3, %v444_v9  ;;  %v1285_v12 = vadd.f32 %v2033_v3, %v636_v10 }
  0xfe   :  { %v1348_v13 = vmax.f32 %v1220_v7, 0.0  ;;  %v1412_v14 = vmax.f32 %v1284_v8, 0.0 }
  0xff   :  { %v1349_v15 = vmax.f32 %v1221_v11, 0.0  ;;  %v1413_v16 = vmax.f32 %v1285_v12, 0.0  ;;  %v448_v17 = vpop.f32.mrb[4].mxu0  ;;  %v640_v18 = vpop.f32.mrb[4].mxu1 }
 0x100   :  { %1476 = vst [vmem:[%s2550_s3 + $0x10] sm:$0xff] %v1348_v13  ;;  %1540 = vst [vmem:[%s2550_s3 + $0x210] sm:$0xff] %v1412_v14  ;;  %v1222_v19 = vadd.f32 %v2031_v55, %v448_v17  ;;  %v1286_v20 = vadd.f32 %v2031_v55, %v640_v18  ;;  %v450_v21 = vpop.f32.mrb[5].mxu0  ;;  %v642_v22 = vpop.f32.mrb[5].mxu1 }
 0x101   :  { %1477 = vst [vmem:[%s2550_s3 + $0x18] sm:$0xff] %v1349_v15  ;;  %1541 = vst [vmem:[%s2550_s3 + $0x218] sm:$0xff] %v1413_v16  ;;  %v1223_v23 = vadd.f32 %v2033_v3, %v450_v21  ;;  %v1287_v24 = vadd.f32 %v2033_v3, %v642_v22 }
 0x102   :  { %v1350_v25 = vmax.f32 %v1222_v19, 0.0  ;;  %v1414_v26 = vmax.f32 %v1286_v20, 0.0 }
 0x103   :  { %v1351_v27 = vmax.f32 %v1223_v23, 0.0  ;;  %v1415_v28 = vmax.f32 %v1287_v24, 0.0  ;;  %v454_v29 = vpop.f32.mrb[6].mxu0  ;;  %v646_v30 = vpop.f32.mrb[6].mxu1 }
 0x104   :  { %1478 = vst [vmem:[%s2550_s3 + $0x20] sm:$0xff] %v1350_v25  ;;  %1542 = vst [vmem:[%s2550_s3 + $0x220] sm:$0xff] %v1414_v26  ;;  %v1224_v31 = vadd.f32 %v2031_v55, %v454_v29  ;;  %v1288_v32 = vadd.f32 %v2031_v55, %v646_v30  ;;  %v456_v33 = vpop.f32.mrb[7].mxu0  ;;  %v648_v34 = vpop.f32.mrb[7].mxu1 }
 0x105   :  { %1479 = vst [vmem:[%s2550_s3 + $0x28] sm:$0xff] %v1351_v27  ;;  %1543 = vst [vmem:[%s2550_s3 + $0x228] sm:$0xff] %v1415_v28  ;;  %v1225_v35 = vadd.f32 %v2033_v3, %v456_v33  ;;  %v1289_v36 = vadd.f32 %v2033_v3, %v648_v34 }
 0x106   :  { %v1352_v37 = vmax.f32 %v1224_v31, 0.0  ;;  %v1416_v38 = vmax.f32 %v1288_v32, 0.0 }
 0x107   :  { %v1353_v39 = vmax.f32 %v1225_v35, 0.0  ;;  %v1417_v40 = vmax.f32 %v1289_v36, 0.0  ;;  %v460_v41 = vpop.f32.mrb[8].mxu0  ;;  %v652_v42 = vpop.f32.mrb[8].mxu1 }
 0x108   :  { %1480 = vst [vmem:[%s2550_s3 + $0x30] sm:$0xff] %v1352_v37  ;;  %1544 = vst [vmem:[%s2550_s3 + $0x230] sm:$0xff] %v1416_v38  ;;  %v1226_v43 = vadd.f32 %v2031_v55, %v460_v41  ;;  %v1290_v44 = vadd.f32 %v2031_v55, %v652_v42  ;;  %v462_v45 = vpop.f32.mrb[9].mxu0  ;;  %v654_v46 = vpop.f32.mrb[9].mxu1 }
 0x109   :  { %1481 = vst [vmem:[%s2550_s3 + $0x38] sm:$0xff] %v1353_v39  ;;  %1545 = vst [vmem:[%s2550_s3 + $0x238] sm:$0xff] %v1417_v40  ;;  %v1227_v47 = vadd.f32 %v2033_v3, %v462_v45  ;;  %v1291_v48 = vadd.f32 %v2033_v3, %v654_v46 }
 0x10a   :  { %v1354_v49 = vmax.f32 %v1226_v43, 0.0  ;;  %v1418_v50 = vmax.f32 %v1290_v44, 0.0 }
 0x10b   :  { %v1355_v51 = vmax.f32 %v1227_v47, 0.0  ;;  %v1419_v52 = vmax.f32 %v1291_v48, 0.0  ;;  %v466_v53 = vpop.f32.mrb[10].mxu0  ;;  %v658_v54 = vpop.f32.mrb[10].mxu1 }
 0x10c   :  { %1482 = vst [vmem:[%s2550_s3 + $0x40] sm:$0xff] %v1354_v49  ;;  %1546 = vst [vmem:[%s2550_s3 + $0x240] sm:$0xff] %v1418_v50  ;;  %v1228_v56 = vadd.f32 %v2031_v55, %v466_v53  ;;  %v1292_v57 = vadd.f32 %v2031_v55, %v658_v54  ;;  %v468_v58 = vpop.f32.mrb[11].mxu0  ;;  %v660_v59 = vpop.f32.mrb[11].mxu1 }
 0x10d   :  { %1483 = vst [vmem:[%s2550_s3 + $0x48] sm:$0xff] %v1355_v51  ;;  %1547 = vst [vmem:[%s2550_s3 + $0x248] sm:$0xff] %v1419_v52  ;;  %v1229_v60 = vadd.f32 %v2033_v3, %v468_v58  ;;  %v1293_v61 = vadd.f32 %v2033_v3, %v660_v59 }
 0x10e   :  { %v1356_v62 = vmax.f32 %v1228_v56, 0.0  ;;  %v1420_v63 = vmax.f32 %v1292_v57, 0.0 }
 0x10f   :  { %v1357_v0 = vmax.f32 %v1229_v60, 0.0  ;;  %v1421_v1 = vmax.f32 %v1293_v61, 0.0  ;;  %v472_v2 = vpop.f32.mrb[12].mxu0  ;;  %v664_v4 = vpop.f32.mrb[12].mxu1 }
 0x110   :  { %1484 = vst [vmem:[%s2550_s3 + $0x50] sm:$0xff] %v1356_v62  ;;  %1548 = vst [vmem:[%s2550_s3 + $0x250] sm:$0xff] %v1420_v63  ;;  %v1230_v5 = vadd.f32 %v2031_v55, %v472_v2  ;;  %v1294_v6 = vadd.f32 %v2031_v55, %v664_v4  ;;  %v474_v7 = vpop.f32.mrb[13].mxu0  ;;  %v666_v8 = vpop.f32.mrb[13].mxu1 }
 0x111   :  { %1485 = vst [vmem:[%s2550_s3 + $0x58] sm:$0xff] %v1357_v0  ;;  %1549 = vst [vmem:[%s2550_s3 + $0x258] sm:$0xff] %v1421_v1  ;;  %v1231_v9 = vadd.f32 %v2033_v3, %v474_v7  ;;  %v1295_v10 = vadd.f32 %v2033_v3, %v666_v8 }
 0x112   :  { %v1358_v11 = vmax.f32 %v1230_v5, 0.0  ;;  %v1422_v12 = vmax.f32 %v1294_v6, 0.0 }
 0x113   :  { %v1359_v13 = vmax.f32 %v1231_v9, 0.0  ;;  %v1423_v14 = vmax.f32 %v1295_v10, 0.0  ;;  %v478_v15 = vpop.f32.mrb[14].mxu0  ;;  %v670_v16 = vpop.f32.mrb[14].mxu1 }
 0x114   :  { %1486 = vst [vmem:[%s2550_s3 + $0x60] sm:$0xff] %v1358_v11  ;;  %1550 = vst [vmem:[%s2550_s3 + $0x260] sm:$0xff] %v1422_v12  ;;  %v1232_v17 = vadd.f32 %v2031_v55, %v478_v15  ;;  %v1296_v18 = vadd.f32 %v2031_v55, %v670_v16  ;;  %v480_v19 = vpop.f32.mrb[15].mxu0  ;;  %v672_v20 = vpop.f32.mrb[15].mxu1 }
 0x115   :  { %1487 = vst [vmem:[%s2550_s3 + $0x68] sm:$0xff] %v1359_v13  ;;  %1551 = vst [vmem:[%s2550_s3 + $0x268] sm:$0xff] %v1423_v14  ;;  %v1233_v21 = vadd.f32 %v2033_v3, %v480_v19  ;;  %v1297_v22 = vadd.f32 %v2033_v3, %v672_v20 }
 0x116   :  { %v1360_v23 = vmax.f32 %v1232_v17, 0.0  ;;  %v1424_v24 = vmax.f32 %v1296_v18, 0.0 }
 0x117   :  { %v1361_v25 = vmax.f32 %v1233_v21, 0.0  ;;  %v1425_v26 = vmax.f32 %v1297_v22, 0.0  ;;  %v484_v27 = vpop.f32.mrb[16].mxu0  ;;  %v676_v28 = vpop.f32.mrb[16].mxu1 }
 0x118   :  { %1488 = vst [vmem:[%s2550_s3 + $0x70] sm:$0xff] %v1360_v23  ;;  %1552 = vst [vmem:[%s2550_s3 + $0x270] sm:$0xff] %v1424_v24  ;;  %v1234_v29 = vadd.f32 %v2031_v55, %v484_v27  ;;  %v1298_v30 = vadd.f32 %v2031_v55, %v676_v28  ;;  %v486_v31 = vpop.f32.mrb[17].mxu0  ;;  %v678_v32 = vpop.f32.mrb[17].mxu1 }
 0x119   :  { %1489 = vst [vmem:[%s2550_s3 + $0x78] sm:$0xff] %v1361_v25  ;;  %1553 = vst [vmem:[%s2550_s3 + $0x278] sm:$0xff] %v1425_v26  ;;  %v1235_v33 = vadd.f32 %v2033_v3, %v486_v31  ;;  %v1299_v34 = vadd.f32 %v2033_v3, %v678_v32 }
 0x11a   :  { %v1362_v35 = vmax.f32 %v1234_v29, 0.0  ;;  %v1426_v36 = vmax.f32 %v1298_v30, 0.0 }
 0x11b   :  { %v1363_v37 = vmax.f32 %v1235_v33, 0.0  ;;  %v1427_v38 = vmax.f32 %v1299_v34, 0.0  ;;  %v490_v39 = vpop.f32.mrb[18].mxu0  ;;  %v682_v40 = vpop.f32.mrb[18].mxu1 }
 0x11c   :  { %1490 = vst [vmem:[%s2550_s3 + $0x80] sm:$0xff] %v1362_v35  ;;  %1554 = vst [vmem:[%s2550_s3 + $0x280] sm:$0xff] %v1426_v36  ;;  %v1236_v41 = vadd.f32 %v2031_v55, %v490_v39  ;;  %v1300_v42 = vadd.f32 %v2031_v55, %v682_v40  ;;  %v492_v43 = vpop.f32.mrb[19].mxu0  ;;  %v684_v44 = vpop.f32.mrb[19].mxu1 }
 0x11d   :  { %1491 = vst [vmem:[%s2550_s3 + $0x88] sm:$0xff] %v1363_v37  ;;  %1555 = vst [vmem:[%s2550_s3 + $0x288] sm:$0xff] %v1427_v38  ;;  %v1237_v45 = vadd.f32 %v2033_v3, %v492_v43  ;;  %v1301_v46 = vadd.f32 %v2033_v3, %v684_v44 }
 0x11e   :  { %v1364_v47 = vmax.f32 %v1236_v41, 0.0  ;;  %v1428_v48 = vmax.f32 %v1300_v42, 0.0 }
 0x11f   :  { %v1365_v49 = vmax.f32 %v1237_v45, 0.0  ;;  %v1429_v50 = vmax.f32 %v1301_v46, 0.0  ;;  %v496_v51 = vpop.f32.mrb[20].mxu0  ;;  %v688_v52 = vpop.f32.mrb[20].mxu1 }
 0x120   :  { %1492 = vst [vmem:[%s2550_s3 + $0x90] sm:$0xff] %v1364_v47  ;;  %1556 = vst [vmem:[%s2550_s3 + $0x290] sm:$0xff] %v1428_v48  ;;  %v1238_v53 = vadd.f32 %v2031_v55, %v496_v51  ;;  %v1302_v54 = vadd.f32 %v2031_v55, %v688_v52  ;;  %v498_v56 = vpop.f32.mrb[21].mxu0  ;;  %v690_v57 = vpop.f32.mrb[21].mxu1 }
 0x121   :  { %1493 = vst [vmem:[%s2550_s3 + $0x98] sm:$0xff] %v1365_v49  ;;  %1557 = vst [vmem:[%s2550_s3 + $0x298] sm:$0xff] %v1429_v50  ;;  %v1239_v58 = vadd.f32 %v2033_v3, %v498_v56  ;;  %v1303_v59 = vadd.f32 %v2033_v3, %v690_v57 }
 0x122   :  { %v1366_v60 = vmax.f32 %v1238_v53, 0.0  ;;  %v1430_v61 = vmax.f32 %v1302_v54, 0.0 }
 0x123   :  { %v1367_v62 = vmax.f32 %v1239_v58, 0.0  ;;  %v1431_v63 = vmax.f32 %v1303_v59, 0.0  ;;  %v502_v0 = vpop.f32.mrb[22].mxu0  ;;  %v694_v1 = vpop.f32.mrb[22].mxu1 }
 0x124   :  { %1494 = vst [vmem:[%s2550_s3 + $0xa0] sm:$0xff] %v1366_v60  ;;  %1558 = vst [vmem:[%s2550_s3 + $0x2a0] sm:$0xff] %v1430_v61  ;;  %v1240_v2 = vadd.f32 %v2031_v55, %v502_v0  ;;  %v1304_v4 = vadd.f32 %v2031_v55, %v694_v1  ;;  %v504_v5 = vpop.f32.mrb[23].mxu0  ;;  %v696_v6 = vpop.f32.mrb[23].mxu1 }
 0x125   :  { %1495 = vst [vmem:[%s2550_s3 + $0xa8] sm:$0xff] %v1367_v62  ;;  %1559 = vst [vmem:[%s2550_s3 + $0x2a8] sm:$0xff] %v1431_v63  ;;  %v1241_v7 = vadd.f32 %v2033_v3, %v504_v5  ;;  %v1305_v8 = vadd.f32 %v2033_v3, %v696_v6 }
 0x126   :  { %v1368_v9 = vmax.f32 %v1240_v2, 0.0  ;;  %v1432_v10 = vmax.f32 %v1304_v4, 0.0 }
 0x127   :  { %v1369_v11 = vmax.f32 %v1241_v7, 0.0  ;;  %v1433_v12 = vmax.f32 %v1305_v8, 0.0  ;;  %v508_v13 = vpop.f32.mrb[24].mxu0  ;;  %v700_v14 = vpop.f32.mrb[24].mxu1 }
 0x128   :  { %1496 = vst [vmem:[%s2550_s3 + $0xb0] sm:$0xff] %v1368_v9  ;;  %1560 = vst [vmem:[%s2550_s3 + $0x2b0] sm:$0xff] %v1432_v10  ;;  %v1242_v15 = vadd.f32 %v2031_v55, %v508_v13  ;;  %v1306_v16 = vadd.f32 %v2031_v55, %v700_v14  ;;  %v510_v17 = vpop.f32.mrb[25].mxu0  ;;  %v702_v18 = vpop.f32.mrb[25].mxu1 }
 0x129   :  { %1497 = vst [vmem:[%s2550_s3 + $0xb8] sm:$0xff] %v1369_v11  ;;  %1561 = vst [vmem:[%s2550_s3 + $0x2b8] sm:$0xff] %v1433_v12  ;;  %v1243_v19 = vadd.f32 %v2033_v3, %v510_v17  ;;  %v1307_v20 = vadd.f32 %v2033_v3, %v702_v18 }
 0x12a   :  { %v1370_v21 = vmax.f32 %v1242_v15, 0.0  ;;  %v1434_v22 = vmax.f32 %v1306_v16, 0.0 }
 0x12b   :  { %v1371_v23 = vmax.f32 %v1243_v19, 0.0  ;;  %v1435_v24 = vmax.f32 %v1307_v20, 0.0  ;;  %v514_v25 = vpop.f32.mrb[26].mxu0  ;;  %v706_v26 = vpop.f32.mrb[26].mxu1 }
 0x12c   :  { %1498 = vst [vmem:[%s2550_s3 + $0xc0] sm:$0xff] %v1370_v21  ;;  %1562 = vst [vmem:[%s2550_s3 + $0x2c0] sm:$0xff] %v1434_v22  ;;  %v1244_v27 = vadd.f32 %v2031_v55, %v514_v25  ;;  %v1308_v28 = vadd.f32 %v2031_v55, %v706_v26  ;;  %v516_v29 = vpop.f32.mrb[27].mxu0  ;;  %v708_v30 = vpop.f32.mrb[27].mxu1 }
 0x12d   :  { %1499 = vst [vmem:[%s2550_s3 + $0xc8] sm:$0xff] %v1371_v23  ;;  %1563 = vst [vmem:[%s2550_s3 + $0x2c8] sm:$0xff] %v1435_v24  ;;  %v1245_v31 = vadd.f32 %v2033_v3, %v516_v29  ;;  %v1309_v32 = vadd.f32 %v2033_v3, %v708_v30 }
 0x12e   :  { %v1372_v33 = vmax.f32 %v1244_v27, 0.0  ;;  %v1436_v34 = vmax.f32 %v1308_v28, 0.0 }
 0x12f   :  { %v1373_v35 = vmax.f32 %v1245_v31, 0.0  ;;  %v1437_v36 = vmax.f32 %v1309_v32, 0.0  ;;  %v520_v37 = vpop.f32.mrb[28].mxu0  ;;  %v712_v38 = vpop.f32.mrb[28].mxu1 }
 0x130   :  { %1500 = vst [vmem:[%s2550_s3 + $0xd0] sm:$0xff] %v1372_v33  ;;  %1564 = vst [vmem:[%s2550_s3 + $0x2d0] sm:$0xff] %v1436_v34  ;;  %v1246_v39 = vadd.f32 %v2031_v55, %v520_v37  ;;  %v1310_v40 = vadd.f32 %v2031_v55, %v712_v38  ;;  %v522_v41 = vpop.f32.mrb[29].mxu0  ;;  %v714_v42 = vpop.f32.mrb[29].mxu1 }
 0x131   :  { %1501 = vst [vmem:[%s2550_s3 + $0xd8] sm:$0xff] %v1373_v35  ;;  %1565 = vst [vmem:[%s2550_s3 + $0x2d8] sm:$0xff] %v1437_v36  ;;  %v1247_v43 = vadd.f32 %v2033_v3, %v522_v41  ;;  %v1311_v44 = vadd.f32 %v2033_v3, %v714_v42 }
 0x132   :  { %v1374_v45 = vmax.f32 %v1246_v39, 0.0  ;;  %v1438_v46 = vmax.f32 %v1310_v40, 0.0 }
 0x133   :  { %v1375_v47 = vmax.f32 %v1247_v43, 0.0  ;;  %v1439_v48 = vmax.f32 %v1311_v44, 0.0  ;;  %v526_v49 = vpop.f32.mrb[30].mxu0  ;;  %v718_v50 = vpop.f32.mrb[30].mxu1 }
 0x134   :  { %1502 = vst [vmem:[%s2550_s3 + $0xe0] sm:$0xff] %v1374_v45  ;;  %1566 = vst [vmem:[%s2550_s3 + $0x2e0] sm:$0xff] %v1438_v46  ;;  %v1248_v51 = vadd.f32 %v2031_v55, %v526_v49  ;;  %v1312_v52 = vadd.f32 %v2031_v55, %v718_v50  ;;  %v528_v53 = vpop.f32.mrb[31].mxu0  ;;  %v720_v54 = vpop.f32.mrb[31].mxu1 }
 0x135   :  { %1503 = vst [vmem:[%s2550_s3 + $0xe8] sm:$0xff] %v1375_v47  ;;  %1567 = vst [vmem:[%s2550_s3 + $0x2e8] sm:$0xff] %v1439_v48  ;;  %v1249_v56 = vadd.f32 %v2033_v3, %v528_v53  ;;  %v1313_v57 = vadd.f32 %v2033_v3, %v720_v54 }
 0x136   :  { %v1376_v58 = vmax.f32 %v1248_v51, 0.0  ;;  %v1440_v59 = vmax.f32 %v1312_v52, 0.0 }
 0x137   :  { %v1377_v60 = vmax.f32 %v1249_v56, 0.0  ;;  %v1441_v61 = vmax.f32 %v1313_v57, 0.0  ;;  %v532_v62 = vpop.f32.mrb[32].mxu0  ;;  %v724_v63 = vpop.f32.mrb[32].mxu1 }
 0x138   :  { %1504 = vst [vmem:[%s2550_s3 + $0xf0] sm:$0xff] %v1376_v58  ;;  %1568 = vst [vmem:[%s2550_s3 + $0x2f0] sm:$0xff] %v1440_v59  ;;  %v1250_v0 = vadd.f32 %v2031_v55, %v532_v62  ;;  %v1314_v1 = vadd.f32 %v2031_v55, %v724_v63  ;;  %v534_v2 = vpop.f32.mrb[33].mxu0  ;;  %v726_v4 = vpop.f32.mrb[33].mxu1 }
 0x139   :  { %1505 = vst [vmem:[%s2550_s3 + $0xf8] sm:$0xff] %v1377_v60  ;;  %1569 = vst [vmem:[%s2550_s3 + $0x2f8] sm:$0xff] %v1441_v61  ;;  %v1251_v5 = vadd.f32 %v2033_v3, %v534_v2  ;;  %v1315_v6 = vadd.f32 %v2033_v3, %v726_v4 }
 0x13a   :  { %v1378_v7 = vmax.f32 %v1250_v0, 0.0  ;;  %v1442_v8 = vmax.f32 %v1314_v1, 0.0 }
 0x13b   :  { %v1379_v9 = vmax.f32 %v1251_v5, 0.0  ;;  %v1443_v10 = vmax.f32 %v1315_v6, 0.0  ;;  %v538_v11 = vpop.f32.mrb[34].mxu0  ;;  %v730_v12 = vpop.f32.mrb[34].mxu1 }
 0x13c   :  { %1506 = vst [vmem:[%s2550_s3 + $0x100] sm:$0xff] %v1378_v7  ;;  %1570 = vst [vmem:[%s2550_s3 + $0x300] sm:$0xff] %v1442_v8  ;;  %v1252_v13 = vadd.f32 %v2031_v55, %v538_v11  ;;  %v1316_v14 = vadd.f32 %v2031_v55, %v730_v12  ;;  %v540_v15 = vpop.f32.mrb[35].mxu0  ;;  %v732_v16 = vpop.f32.mrb[35].mxu1 }
 0x13d   :  { %1507 = vst [vmem:[%s2550_s3 + $0x108] sm:$0xff] %v1379_v9  ;;  %1571 = vst [vmem:[%s2550_s3 + $0x308] sm:$0xff] %v1443_v10  ;;  %v1253_v17 = vadd.f32 %v2033_v3, %v540_v15  ;;  %v1317_v18 = vadd.f32 %v2033_v3, %v732_v16 }
 0x13e   :  { %v1380_v19 = vmax.f32 %v1252_v13, 0.0  ;;  %v1444_v20 = vmax.f32 %v1316_v14, 0.0 }
 0x13f   :  { %v1381_v21 = vmax.f32 %v1253_v17, 0.0  ;;  %v1445_v22 = vmax.f32 %v1317_v18, 0.0  ;;  %v544_v23 = vpop.f32.mrb[36].mxu0  ;;  %v736_v24 = vpop.f32.mrb[36].mxu1 }
 0x140   :  { %1508 = vst [vmem:[%s2550_s3 + $0x110] sm:$0xff] %v1380_v19  ;;  %1572 = vst [vmem:[%s2550_s3 + $0x310] sm:$0xff] %v1444_v20  ;;  %v1254_v25 = vadd.f32 %v2031_v55, %v544_v23  ;;  %v1318_v26 = vadd.f32 %v2031_v55, %v736_v24  ;;  %v546_v27 = vpop.f32.mrb[37].mxu0  ;;  %v738_v28 = vpop.f32.mrb[37].mxu1 }
 0x141   :  { %1509 = vst [vmem:[%s2550_s3 + $0x118] sm:$0xff] %v1381_v21  ;;  %1573 = vst [vmem:[%s2550_s3 + $0x318] sm:$0xff] %v1445_v22  ;;  %v1255_v29 = vadd.f32 %v2033_v3, %v546_v27  ;;  %v1319_v30 = vadd.f32 %v2033_v3, %v738_v28 }
 0x142   :  { %v1382_v31 = vmax.f32 %v1254_v25, 0.0  ;;  %v1446_v32 = vmax.f32 %v1318_v26, 0.0 }
 0x143   :  { %v1383_v33 = vmax.f32 %v1255_v29, 0.0  ;;  %v1447_v34 = vmax.f32 %v1319_v30, 0.0  ;;  %v550_v35 = vpop.f32.mrb[38].mxu0  ;;  %v742_v36 = vpop.f32.mrb[38].mxu1 }
 0x144   :  { %1510 = vst [vmem:[%s2550_s3 + $0x120] sm:$0xff] %v1382_v31  ;;  %1574 = vst [vmem:[%s2550_s3 + $0x320] sm:$0xff] %v1446_v32  ;;  %v1256_v37 = vadd.f32 %v2031_v55, %v550_v35  ;;  %v1320_v38 = vadd.f32 %v2031_v55, %v742_v36  ;;  %v552_v39 = vpop.f32.mrb[39].mxu0  ;;  %v744_v40 = vpop.f32.mrb[39].mxu1 }
 0x145   :  { %1511 = vst [vmem:[%s2550_s3 + $0x128] sm:$0xff] %v1383_v33  ;;  %1575 = vst [vmem:[%s2550_s3 + $0x328] sm:$0xff] %v1447_v34  ;;  %v1257_v41 = vadd.f32 %v2033_v3, %v552_v39  ;;  %v1321_v42 = vadd.f32 %v2033_v3, %v744_v40 }
 0x146   :  { %v1384_v43 = vmax.f32 %v1256_v37, 0.0  ;;  %v1448_v44 = vmax.f32 %v1320_v38, 0.0 }
 0x147   :  { %v1385_v45 = vmax.f32 %v1257_v41, 0.0  ;;  %v1449_v46 = vmax.f32 %v1321_v42, 0.0  ;;  %v556_v47 = vpop.f32.mrb[40].mxu0  ;;  %v748_v48 = vpop.f32.mrb[40].mxu1 }
 0x148   :  { %1512 = vst [vmem:[%s2550_s3 + $0x130] sm:$0xff] %v1384_v43  ;;  %1576 = vst [vmem:[%s2550_s3 + $0x330] sm:$0xff] %v1448_v44  ;;  %v1258_v49 = vadd.f32 %v2031_v55, %v556_v47  ;;  %v1322_v50 = vadd.f32 %v2031_v55, %v748_v48  ;;  %v558_v51 = vpop.f32.mrb[41].mxu0  ;;  %v750_v52 = vpop.f32.mrb[41].mxu1 }
 0x149   :  { %1513 = vst [vmem:[%s2550_s3 + $0x138] sm:$0xff] %v1385_v45  ;;  %1577 = vst [vmem:[%s2550_s3 + $0x338] sm:$0xff] %v1449_v46  ;;  %v1259_v53 = vadd.f32 %v2033_v3, %v558_v51  ;;  %v1323_v54 = vadd.f32 %v2033_v3, %v750_v52 }
 0x14a   :  { %v1386_v56 = vmax.f32 %v1258_v49, 0.0  ;;  %v1450_v57 = vmax.f32 %v1322_v50, 0.0 }
 0x14b   :  { %v1387_v58 = vmax.f32 %v1259_v53, 0.0  ;;  %v1451_v59 = vmax.f32 %v1323_v54, 0.0  ;;  %v562_v60 = vpop.f32.mrb[42].mxu0  ;;  %v754_v61 = vpop.f32.mrb[42].mxu1 }
 0x14c   :  { %1514 = vst [vmem:[%s2550_s3 + $0x140] sm:$0xff] %v1386_v56  ;;  %1578 = vst [vmem:[%s2550_s3 + $0x340] sm:$0xff] %v1450_v57  ;;  %v1260_v62 = vadd.f32 %v2031_v55, %v562_v60  ;;  %v1324_v63 = vadd.f32 %v2031_v55, %v754_v61  ;;  %v564_v0 = vpop.f32.mrb[43].mxu0  ;;  %v756_v1 = vpop.f32.mrb[43].mxu1 }
 0x14d   :  { %1515 = vst [vmem:[%s2550_s3 + $0x148] sm:$0xff] %v1387_v58  ;;  %1579 = vst [vmem:[%s2550_s3 + $0x348] sm:$0xff] %v1451_v59  ;;  %v1261_v2 = vadd.f32 %v2033_v3, %v564_v0  ;;  %v1325_v4 = vadd.f32 %v2033_v3, %v756_v1 }
 0x14e   :  { %v1388_v5 = vmax.f32 %v1260_v62, 0.0  ;;  %v1452_v6 = vmax.f32 %v1324_v63, 0.0 }
 0x14f   :  { %v1389_v7 = vmax.f32 %v1261_v2, 0.0  ;;  %v1453_v8 = vmax.f32 %v1325_v4, 0.0  ;;  %v568_v9 = vpop.f32.mrb[44].mxu0  ;;  %v760_v10 = vpop.f32.mrb[44].mxu1 }
 0x150   :  { %1516 = vst [vmem:[%s2550_s3 + $0x150] sm:$0xff] %v1388_v5  ;;  %1580 = vst [vmem:[%s2550_s3 + $0x350] sm:$0xff] %v1452_v6  ;;  %v1262_v11 = vadd.f32 %v2031_v55, %v568_v9  ;;  %v1326_v12 = vadd.f32 %v2031_v55, %v760_v10  ;;  %v570_v13 = vpop.f32.mrb[45].mxu0  ;;  %v762_v14 = vpop.f32.mrb[45].mxu1 }
 0x151   :  { %1517 = vst [vmem:[%s2550_s3 + $0x158] sm:$0xff] %v1389_v7  ;;  %1581 = vst [vmem:[%s2550_s3 + $0x358] sm:$0xff] %v1453_v8  ;;  %v1263_v15 = vadd.f32 %v2033_v3, %v570_v13  ;;  %v1327_v16 = vadd.f32 %v2033_v3, %v762_v14 }
 0x152   :  { %v1390_v17 = vmax.f32 %v1262_v11, 0.0  ;;  %v1454_v18 = vmax.f32 %v1326_v12, 0.0 }
 0x153   :  { %v1391_v19 = vmax.f32 %v1263_v15, 0.0  ;;  %v1455_v20 = vmax.f32 %v1327_v16, 0.0  ;;  %v574_v21 = vpop.f32.mrb[46].mxu0  ;;  %v766_v22 = vpop.f32.mrb[46].mxu1 }
 0x154   :  { %1518 = vst [vmem:[%s2550_s3 + $0x160] sm:$0xff] %v1390_v17  ;;  %1582 = vst [vmem:[%s2550_s3 + $0x360] sm:$0xff] %v1454_v18  ;;  %v1264_v23 = vadd.f32 %v2031_v55, %v574_v21  ;;  %v1328_v24 = vadd.f32 %v2031_v55, %v766_v22  ;;  %v576_v25 = vpop.f32.mrb[47].mxu0  ;;  %v768_v26 = vpop.f32.mrb[47].mxu1 }
 0x155   :  { %1519 = vst [vmem:[%s2550_s3 + $0x168] sm:$0xff] %v1391_v19  ;;  %1583 = vst [vmem:[%s2550_s3 + $0x368] sm:$0xff] %v1455_v20  ;;  %v1265_v27 = vadd.f32 %v2033_v3, %v576_v25  ;;  %v1329_v28 = vadd.f32 %v2033_v3, %v768_v26 }
 0x156   :  { %v1392_v29 = vmax.f32 %v1264_v23, 0.0  ;;  %v1456_v30 = vmax.f32 %v1328_v24, 0.0 }
 0x157   :  { %v1393_v31 = vmax.f32 %v1265_v27, 0.0  ;;  %v1457_v32 = vmax.f32 %v1329_v28, 0.0  ;;  %v580_v33 = vpop.f32.mrb[48].mxu0  ;;  %v772_v34 = vpop.f32.mrb[48].mxu1 }
 0x158   :  { %1520 = vst [vmem:[%s2550_s3 + $0x170] sm:$0xff] %v1392_v29  ;;  %1584 = vst [vmem:[%s2550_s3 + $0x370] sm:$0xff] %v1456_v30  ;;  %v1266_v35 = vadd.f32 %v2031_v55, %v580_v33  ;;  %v1330_v36 = vadd.f32 %v2031_v55, %v772_v34  ;;  %v582_v37 = vpop.f32.mrb[49].mxu0  ;;  %v774_v38 = vpop.f32.mrb[49].mxu1 }
 0x159   :  { %1521 = vst [vmem:[%s2550_s3 + $0x178] sm:$0xff] %v1393_v31  ;;  %1585 = vst [vmem:[%s2550_s3 + $0x378] sm:$0xff] %v1457_v32  ;;  %v1267_v39 = vadd.f32 %v2033_v3, %v582_v37  ;;  %v1331_v40 = vadd.f32 %v2033_v3, %v774_v38 }
 0x15a   :  { %v1394_v41 = vmax.f32 %v1266_v35, 0.0  ;;  %v1458_v42 = vmax.f32 %v1330_v36, 0.0 }
 0x15b   :  { %v1395_v43 = vmax.f32 %v1267_v39, 0.0  ;;  %v1459_v44 = vmax.f32 %v1331_v40, 0.0  ;;  %v586_v45 = vpop.f32.mrb[50].mxu0  ;;  %v778_v46 = vpop.f32.mrb[50].mxu1 }
 0x15c   :  { %1522 = vst [vmem:[%s2550_s3 + $0x180] sm:$0xff] %v1394_v41  ;;  %1586 = vst [vmem:[%s2550_s3 + $0x380] sm:$0xff] %v1458_v42  ;;  %v1268_v47 = vadd.f32 %v2031_v55, %v586_v45  ;;  %v1332_v48 = vadd.f32 %v2031_v55, %v778_v46  ;;  %v588_v49 = vpop.f32.mrb[51].mxu0  ;;  %v780_v50 = vpop.f32.mrb[51].mxu1 }
 0x15d   :  { %1523 = vst [vmem:[%s2550_s3 + $0x188] sm:$0xff] %v1395_v43  ;;  %1587 = vst [vmem:[%s2550_s3 + $0x388] sm:$0xff] %v1459_v44  ;;  %v1269_v51 = vadd.f32 %v2033_v3, %v588_v49  ;;  %v1333_v52 = vadd.f32 %v2033_v3, %v780_v50 }
 0x15e   :  { %v1396_v53 = vmax.f32 %v1268_v47, 0.0  ;;  %v1460_v54 = vmax.f32 %v1332_v48, 0.0 }
 0x15f   :  { %v1397_v56 = vmax.f32 %v1269_v51, 0.0  ;;  %v1461_v57 = vmax.f32 %v1333_v52, 0.0  ;;  %v592_v58 = vpop.f32.mrb[52].mxu0  ;;  %v784_v59 = vpop.f32.mrb[52].mxu1 }
 0x160   :  { %1524 = vst [vmem:[%s2550_s3 + $0x190] sm:$0xff] %v1396_v53  ;;  %1588 = vst [vmem:[%s2550_s3 + $0x390] sm:$0xff] %v1460_v54  ;;  %v1270_v60 = vadd.f32 %v2031_v55, %v592_v58  ;;  %v1334_v61 = vadd.f32 %v2031_v55, %v784_v59  ;;  %v594_v62 = vpop.f32.mrb[53].mxu0  ;;  %v786_v63 = vpop.f32.mrb[53].mxu1 }
 0x161   :  { %1525 = vst [vmem:[%s2550_s3 + $0x198] sm:$0xff] %v1397_v56  ;;  %1589 = vst [vmem:[%s2550_s3 + $0x398] sm:$0xff] %v1461_v57  ;;  %v1271_v0 = vadd.f32 %v2033_v3, %v594_v62  ;;  %v1335_v1 = vadd.f32 %v2033_v3, %v786_v63 }
 0x162   :  { %v1398_v2 = vmax.f32 %v1270_v60, 0.0  ;;  %v1462_v4 = vmax.f32 %v1334_v61, 0.0 }
 0x163   :  { %v1399_v5 = vmax.f32 %v1271_v0, 0.0  ;;  %v1463_v6 = vmax.f32 %v1335_v1, 0.0  ;;  %v598_v7 = vpop.f32.mrb[54].mxu0  ;;  %v790_v8 = vpop.f32.mrb[54].mxu1 }
 0x164   :  { %1526 = vst [vmem:[%s2550_s3 + $0x1a0] sm:$0xff] %v1398_v2  ;;  %1590 = vst [vmem:[%s2550_s3 + $0x3a0] sm:$0xff] %v1462_v4  ;;  %v1272_v9 = vadd.f32 %v2031_v55, %v598_v7  ;;  %v1336_v10 = vadd.f32 %v2031_v55, %v790_v8  ;;  %v600_v11 = vpop.f32.mrb[55].mxu0  ;;  %v792_v12 = vpop.f32.mrb[55].mxu1 }
 0x165   :  { %1527 = vst [vmem:[%s2550_s3 + $0x1a8] sm:$0xff] %v1399_v5  ;;  %1591 = vst [vmem:[%s2550_s3 + $0x3a8] sm:$0xff] %v1463_v6  ;;  %v1273_v13 = vadd.f32 %v2033_v3, %v600_v11  ;;  %v1337_v14 = vadd.f32 %v2033_v3, %v792_v12 }
 0x166   :  { %v1400_v15 = vmax.f32 %v1272_v9, 0.0  ;;  %v1464_v16 = vmax.f32 %v1336_v10, 0.0 }
 0x167   :  { %v1401_v17 = vmax.f32 %v1273_v13, 0.0  ;;  %v1465_v18 = vmax.f32 %v1337_v14, 0.0  ;;  %v604_v19 = vpop.f32.mrb[56].mxu0  ;;  %v796_v20 = vpop.f32.mrb[56].mxu1 }
 0x168   :  { %1528 = vst [vmem:[%s2550_s3 + $0x1b0] sm:$0xff] %v1400_v15  ;;  %1592 = vst [vmem:[%s2550_s3 + $0x3b0] sm:$0xff] %v1464_v16  ;;  %v1274_v21 = vadd.f32 %v2031_v55, %v604_v19  ;;  %v1338_v22 = vadd.f32 %v2031_v55, %v796_v20  ;;  %v606_v23 = vpop.f32.mrb[57].mxu0  ;;  %v798_v24 = vpop.f32.mrb[57].mxu1 }
 0x169   :  { %1529 = vst [vmem:[%s2550_s3 + $0x1b8] sm:$0xff] %v1401_v17  ;;  %1593 = vst [vmem:[%s2550_s3 + $0x3b8] sm:$0xff] %v1465_v18  ;;  %v1275_v25 = vadd.f32 %v2033_v3, %v606_v23  ;;  %v1339_v26 = vadd.f32 %v2033_v3, %v798_v24 }
 0x16a   :  { %v1402_v27 = vmax.f32 %v1274_v21, 0.0  ;;  %v1466_v28 = vmax.f32 %v1338_v22, 0.0 }
 0x16b   :  { %v1403_v29 = vmax.f32 %v1275_v25, 0.0  ;;  %v1467_v30 = vmax.f32 %v1339_v26, 0.0  ;;  %v610_v31 = vpop.f32.mrb[58].mxu0  ;;  %v802_v32 = vpop.f32.mrb[58].mxu1 }
 0x16c   :  { %1530 = vst [vmem:[%s2550_s3 + $0x1c0] sm:$0xff] %v1402_v27  ;;  %1594 = vst [vmem:[%s2550_s3 + $0x3c0] sm:$0xff] %v1466_v28  ;;  %v1276_v33 = vadd.f32 %v2031_v55, %v610_v31  ;;  %v1340_v34 = vadd.f32 %v2031_v55, %v802_v32  ;;  %v612_v35 = vpop.f32.mrb[59].mxu0  ;;  %v804_v36 = vpop.f32.mrb[59].mxu1 }
 0x16d   :  { %1531 = vst [vmem:[%s2550_s3 + $0x1c8] sm:$0xff] %v1403_v29  ;;  %1595 = vst [vmem:[%s2550_s3 + $0x3c8] sm:$0xff] %v1467_v30  ;;  %v1277_v37 = vadd.f32 %v2033_v3, %v612_v35  ;;  %v1341_v38 = vadd.f32 %v2033_v3, %v804_v36 }
 0x16e   :  { %v1404_v39 = vmax.f32 %v1276_v33, 0.0  ;;  %v1468_v40 = vmax.f32 %v1340_v34, 0.0 }
 0x16f   :  { %v1405_v41 = vmax.f32 %v1277_v37, 0.0  ;;  %v1469_v42 = vmax.f32 %v1341_v38, 0.0  ;;  %v616_v43 = vpop.f32.mrb[60].mxu0  ;;  %v808_v44 = vpop.f32.mrb[60].mxu1 }
 0x170   :  { %1532 = vst [vmem:[%s2550_s3 + $0x1d0] sm:$0xff] %v1404_v39  ;;  %1596 = vst [vmem:[%s2550_s3 + $0x3d0] sm:$0xff] %v1468_v40  ;;  %v1278_v45 = vadd.f32 %v2031_v55, %v616_v43  ;;  %v1342_v46 = vadd.f32 %v2031_v55, %v808_v44  ;;  %v618_v47 = vpop.f32.mrb[61].mxu0  ;;  %v810_v48 = vpop.f32.mrb[61].mxu1 }
 0x171   :  { %1533 = vst [vmem:[%s2550_s3 + $0x1d8] sm:$0xff] %v1405_v41  ;;  %1597 = vst [vmem:[%s2550_s3 + $0x3d8] sm:$0xff] %v1469_v42  ;;  %v1279_v49 = vadd.f32 %v2033_v3, %v618_v47  ;;  %v1343_v50 = vadd.f32 %v2033_v3, %v810_v48 }
 0x172   :  { %v1406_v51 = vmax.f32 %v1278_v45, 0.0  ;;  %v1470_v52 = vmax.f32 %v1342_v46, 0.0 }
 0x173   :  { %v1407_v53 = vmax.f32 %v1279_v49, 0.0  ;;  %v1471_v54 = vmax.f32 %v1343_v50, 0.0  ;;  %v622_v56 = vpop.f32.mrb[62].mxu0  ;;  %v814_v57 = vpop.f32.mrb[62].mxu1 }
 0x174   :  { %1534 = vst [vmem:[%s2550_s3 + $0x1e0] sm:$0xff] %v1406_v51  ;;  %1598 = vst [vmem:[%s2550_s3 + $0x3e0] sm:$0xff] %v1470_v52  ;;  %v1280_v58 = vadd.f32 %v2031_v55, %v622_v56  ;;  %v1344_v59 = vadd.f32 %v2031_v55, %v814_v57  ;;  %v624_v60 = vpop.f32.mrb[63].mxu0  ;;  %v816_v61 = vpop.f32.mrb[63].mxu1 }
 0x175   :  { %1535 = vst [vmem:[%s2550_s3 + $0x1e8] sm:$0xff] %v1407_v53  ;;  %1599 = vst [vmem:[%s2550_s3 + $0x3e8] sm:$0xff] %v1471_v54  ;;  %v1281_v62 = vadd.f32 %v2033_v3, %v624_v60  ;;  %v1345_v63 = vadd.f32 %v2033_v3, %v816_v61 }
 0x176   :  { %v1408_v0 = vmax.f32 %v1280_v58, 0.0  ;;  %v1472_v1 = vmax.f32 %v1344_v59, 0.0 }
 0x177   :  { %v1409_v2 = vmax.f32 %v1281_v62, 0.0  ;;  %v1473_v4 = vmax.f32 %v1345_v63, 0.0 }
 0x178   :  { %1536 = vst [vmem:[%s2550_s3 + $0x1f0] sm:$0xff] %v1408_v0  ;;  %1600 = vst [vmem:[%s2550_s3 + $0x3f0] sm:$0xff] %v1472_v1 }
 0x179   :  { %1537 = vst [vmem:[%s2550_s3 + $0x1f8] sm:$0xff] %v1409_v2  ;;  %1601 = vst [vmem:[%s2550_s3 + $0x3f8] sm:$0xff] %v1473_v4 }

// kernel: fairface_mobilenet_forward.9
= control target key start
LH: loop header
LB: loop body
LE: loop exit
PB: predicated region body
PF: predicated region fallthrough
CT: control target
= control target key end

     0   :  { %v1107_v0 = vmov 0.0|0.0   ;;  %s1901_s1 = inlined_call_operand.vmem [shape: f32[256,128], index: 1, kind: input, shape index: {}]   ;;  %s1902_s0 = inlined_call_operand.vmem [shape: f32[512,256], index: 0, kind: input, shape index: {}]   ;;  %s1903_s2 = inlined_call_operand.vmem [shape: f32[1,128], index: 2, kind: input, shape index: {}]   ;;  %s1904_s3 = inlined_call_operand.vmem [shape: f32[512,128], index: 3, kind: output, shape index: {}]  }
   0x1   :  { %1026 = vmatprep.subr.bf16.mxu0 %v1107_v0  ;;  %1074 = vmatprep.subr.bf16.mxu1 %v1107_v0  ;;  %v274_v1 = vld [vmem:[%s1901_s1] sm:$0xff]  ;;  %v275_v2 = vld [vmem:[%s1901_s1 + $0x8] sm:$0xff]  ;;  %v276_v3 = vld [vmem:[%s1901_s1 + $0x10] sm:$0xff] }
   0x2   :  { %v1027_v4 = vpack.c.bf16 %v275_v2, %v274_v1  ;;  %v277_v5 = vld [vmem:[%s1901_s1 + $0x18] sm:$0xff]  ;;  %v278_v7 = vld [vmem:[%s1901_s1 + $0x20] sm:$0xff]  ;;  %v279_v8 = vld [vmem:[%s1901_s1 + $0x28] sm:$0xff] }
   0x3   :  { %v1030_v6 = vpack.c.bf16 %v277_v5, %v276_v3  ;;  %v1033_v9 = vpack.c.bf16 %v279_v8, %v278_v7  ;;  %v280_v10 = vld [vmem:[%s1901_s1 + $0x30] sm:$0xff]  ;;  %v281_v11 = vld [vmem:[%s1901_s1 + $0x38] sm:$0xff]  ;;  %v147_v12 = vld [vmem:[%s1902_s0 + $0x8] sm:$0xff] }
   0x4   :  { %1028 = vmatpush1.bf16.msra.mxu0 %v1027_v4  ;;  %1090 = vmatpush1.bf16.msra.mxu1 %v1027_v4  ;;  %v1036_v13 = vpack.c.bf16 %v281_v11, %v280_v10  ;;  %v211_v14 = vld [vmem:[%s1902_s0 + $0x208] sm:$0xff]  ;;  %v282_v15 = vld [vmem:[%s1901_s1 + $0x40] sm:$0xff]  ;;  %v284_v18 = vld [vmem:[%s1901_s1 + $0x50] sm:$0xff] }
   0x5   :  { %1029 = vmatprep.subr.bf16.mxu0 %v1107_v0  ;;  %1075 = vmatprep.subr.bf16.mxu1 %v1107_v0  ;;  %v283_v16 = vld [vmem:[%s1901_s1 + $0x48] sm:$0xff]  ;;  %v285_v19 = vld [vmem:[%s1901_s1 + $0x58] sm:$0xff]  ;;  %v286_v21 = vld [vmem:[%s1901_s1 + $0x60] sm:$0xff] }
   0x6   :  { %370 = vmatprep.mubr.f32.mxu0 %v147_v12  ;;  %530 = vmatprep.mubr.f32.mxu1 %v211_v14  ;;  %v1039_v17 = vpack.c.bf16 %v283_v16, %v282_v15  ;;  %v1042_v20 = vpack.c.bf16 %v285_v19, %v284_v18  ;;  %v287_v22 = vld [vmem:[%s1901_s1 + $0x68] sm:$0xff]  ;;  %v288_v24 = vld [vmem:[%s1901_s1 + $0x70] sm:$0xff]  ;;  %v289_v25 = vld [vmem:[%s1901_s1 + $0x78] sm:$0xff] }
   0x7   :  { %v1045_v23 = vpack.c.bf16 %v287_v22, %v286_v21  ;;  %v1048_v26 = vpack.c.bf16 %v289_v25, %v288_v24  ;;  %v290_v27 = vld [vmem:[%s1901_s1 + $0x80] sm:$0xff]  ;;  %v291_v28 = vld [vmem:[%s1901_s1 + $0x88] sm:$0xff]  ;;  %v292_v30 = vld [vmem:[%s1901_s1 + $0x90] sm:$0xff] }
   0x8   :  { %1031 = vmatpush1.bf16.msra.mxu0 %v1030_v6  ;;  %1091 = vmatpush1.bf16.msra.mxu1 %v1030_v6  ;;  %v1051_v29 = vpack.c.bf16 %v291_v28, %v290_v27  ;;  %v293_v31 = vld [vmem:[%s1901_s1 + $0x98] sm:$0xff]  ;;  %v294_v33 = vld [vmem:[%s1901_s1 + $0xa0] sm:$0xff]  ;;  %v295_v34 = vld [vmem:[%s1901_s1 + $0xa8] sm:$0xff] }
   0x9   :  { %1032 = vmatprep.subr.bf16.mxu0 %v1107_v0  ;;  %1076 = vmatprep.subr.bf16.mxu1 %v1107_v0  ;;  %v1054_v32 = vpack.c.bf16 %v293_v31, %v292_v30  ;;  %v1057_v35 = vpack.c.bf16 %v295_v34, %v294_v33  ;;  %v296_v36 = vld [vmem:[%s1901_s1 + $0xb0] sm:$0xff]  ;;  %v297_v37 = vld [vmem:[%s1901_s1 + $0xb8] sm:$0xff]  ;;  %v298_v39 = vld [vmem:[%s1901_s1 + $0xc0] sm:$0xff] }
   0xa   :  { %v1060_v38 = vpack.c.bf16 %v297_v37, %v296_v36  ;;  %v299_v40 = vld [vmem:[%s1901_s1 + $0xc8] sm:$0xff]  ;;  %v300_v42 = vld [vmem:[%s1901_s1 + $0xd0] sm:$0xff]  ;;  %v301_v43 = vld [vmem:[%s1901_s1 + $0xd8] sm:$0xff] }
   0xb   :  { %v1063_v41 = vpack.c.bf16 %v299_v40, %v298_v39  ;;  %v1066_v44 = vpack.c.bf16 %v301_v43, %v300_v42  ;;  %v302_v45 = vld [vmem:[%s1901_s1 + $0xe0] sm:$0xff]  ;;  %v303_v46 = vld [vmem:[%s1901_s1 + $0xe8] sm:$0xff]  ;;  %v304_v48 = vld [vmem:[%s1901_s1 + $0xf0] sm:$0xff] }
   0xc   :  { %1034 = vmatpush1.bf16.msra.mxu0 %v1033_v9  ;;  %1092 = vmatpush1.bf16.msra.mxu1 %v1033_v9  ;;  %v1069_v47 = vpack.c.bf16 %v303_v46, %v302_v45  ;;  %v305_v49 = vld [vmem:[%s1901_s1 + $0xf8] sm:$0xff]  ;;  %v146_v51 = vld [vmem:[%s1902_s0] sm:$0xff]  ;;  %v148_v55 = vld [vmem:[%s1902_s0 + $0x10] sm:$0xff] }
   0xd   :  { %1035 = vmatprep.subr.bf16.mxu0 %v1107_v0  ;;  %1077 = vmatprep.subr.bf16.mxu1 %v1107_v0  ;;  %v1072_v50 = vpack.c.bf16 %v305_v49, %v304_v48  ;;  %v210_v52 = vld [vmem:[%s1902_s0 + $0x200] sm:$0xff]  ;;  %v149_v53 = vld [vmem:[%s1902_s0 + $0x18] sm:$0xff]  ;;  %v212_v56 = vld [vmem:[%s1902_s0 + $0x210] sm:$0xff] }
   0xe   :  { %v213_v54 = vld [vmem:[%s1902_s0 + $0x218] sm:$0xff]  ;;  %v151_v57 = vld [vmem:[%s1902_s0 + $0x28] sm:$0xff]  ;;  %v150_v59 = vld [vmem:[%s1902_s0 + $0x20] sm:$0xff] }
   0xf   :  { %v215_v58 = vld [vmem:[%s1902_s0 + $0x228] sm:$0xff]  ;;  %v214_v60 = vld [vmem:[%s1902_s0 + $0x220] sm:$0xff]  ;;  %v153_v61 = vld [vmem:[%s1902_s0 + $0x38] sm:$0xff] }
  0x10   :  { %1037 = vmatpush1.bf16.msra.mxu0 %v1036_v13  ;;  %1093 = vmatpush1.bf16.msra.mxu1 %v1036_v13  ;;  %v217_v62 = vld [vmem:[%s1902_s0 + $0x238] sm:$0xff]  ;;  %v152_v63 = vld [vmem:[%s1902_s0 + $0x30] sm:$0xff]  ;;  %v155_v1 = vld [vmem:[%s1902_s0 + $0x48] sm:$0xff] }
  0x11   :  { %1038 = vmatprep.subr.bf16.mxu0 %v1107_v0  ;;  %1078 = vmatprep.subr.bf16.mxu1 %v1107_v0  ;;  %v219_v2 = vld [vmem:[%s1902_s0 + $0x248] sm:$0xff]  ;;  %v154_v3 = vld [vmem:[%s1902_s0 + $0x40] sm:$0xff]  ;;  %v157_v5 = vld [vmem:[%s1902_s0 + $0x58] sm:$0xff] }
  0x12   :  { %v218_v4 = vld [vmem:[%s1902_s0 + $0x240] sm:$0xff]  ;;  %v221_v6 = vld [vmem:[%s1902_s0 + $0x258] sm:$0xff]  ;;  %v156_v7 = vld [vmem:[%s1902_s0 + $0x50] sm:$0xff] }
  0x13   :  { %v220_v8 = vld [vmem:[%s1902_s0 + $0x250] sm:$0xff]  ;;  %v159_v9 = vld [vmem:[%s1902_s0 + $0x68] sm:$0xff]  ;;  %v158_v11 = vld [vmem:[%s1902_s0 + $0x60] sm:$0xff] }
  0x14   :  { %1040 = vmatpush1.bf16.msra.mxu0 %v1039_v17  ;;  %1094 = vmatpush1.bf16.msra.mxu1 %v1039_v17  ;;  %v223_v10 = vld [vmem:[%s1902_s0 + $0x268] sm:$0xff]  ;;  %v222_v12 = vld [vmem:[%s1902_s0 + $0x260] sm:$0xff]  ;;  %v161_v13 = vld [vmem:[%s1902_s0 + $0x78] sm:$0xff] }
  0x15   :  { %1041 = vmatprep.subr.bf16.mxu0 %v1107_v0  ;;  %1079 = vmatprep.subr.bf16.mxu1 %v1107_v0  ;;  %v225_v14 = vld [vmem:[%s1902_s0 + $0x278] sm:$0xff]  ;;  %v160_v15 = vld [vmem:[%s1902_s0 + $0x70] sm:$0xff]  ;;  %v163_v17 = vld [vmem:[%s1902_s0 + $0x88] sm:$0xff] }
  0x16   :  { %v224_v16 = vld [vmem:[%s1902_s0 + $0x270] sm:$0xff]  ;;  %v227_v18 = vld [vmem:[%s1902_s0 + $0x288] sm:$0xff]  ;;  %v162_v19 = vld [vmem:[%s1902_s0 + $0x80] sm:$0xff] }
  0x17   :  { %v165_v21 = vld [vmem:[%s1902_s0 + $0x98] sm:$0xff]  ;;  %v228_v24 = vld [vmem:[%s1902_s0 + $0x290] sm:$0xff]  ;;  %v167_v25 = vld [vmem:[%s1902_s0 + $0xa8] sm:$0xff] }
  0x18   :  { %1043 = vmatpush1.bf16.msra.mxu0 %v1042_v20  ;;  %1095 = vmatpush1.bf16.msra.mxu1 %v1042_v20  ;;  %v226_v20 = vld [vmem:[%s1902_s0 + $0x280] sm:$0xff]  ;;  %v229_v22 = vld [vmem:[%s1902_s0 + $0x298] sm:$0xff]  ;;  %v168_v31 = vld [vmem:[%s1902_s0 + $0xb0] sm:$0xff] }
  0x19   :  { %1044 = vmatprep.subr.bf16.mxu0 %v1107_v0  ;;  %1080 = vmatprep.subr.bf16.mxu1 %v1107_v0  ;;  %v166_v27 = vld [vmem:[%s1902_s0 + $0xa0] sm:$0xff]  ;;  %v233_v30 = vld [vmem:[%s1902_s0 + $0x2b8] sm:$0xff]  ;;  %v171_v33 = vld [vmem:[%s1902_s0 + $0xc8] sm:$0xff] }
  0x1a   :  { %v230_v28 = vld [vmem:[%s1902_s0 + $0x2a0] sm:$0xff]  ;;  %v235_v34 = vld [vmem:[%s1902_s0 + $0x2c8] sm:$0xff]  ;;  %v173_v37 = vld [vmem:[%s1902_s0 + $0xd8] sm:$0xff] }
  0x1b   :  { %v234_v36 = vld [vmem:[%s1902_s0 + $0x2c0] sm:$0xff]  ;;  %v172_v39 = vld [vmem:[%s1902_s0 + $0xd0] sm:$0xff]  ;;  %v239_v42 = vld [vmem:[%s1902_s0 + $0x2e8] sm:$0xff] }
  0x1c   :  { %1046 = vmatpush1.bf16.msra.mxu0 %v1045_v23  ;;  %1096 = vmatpush1.bf16.msra.mxu1 %v1045_v23  ;;  %v164_v23 = vld [vmem:[%s1902_s0 + $0x90] sm:$0xff]  ;;  %v174_v43 = vld [vmem:[%s1902_s0 + $0xe0] sm:$0xff]  ;;  %v177_v45 = vld [vmem:[%s1902_s0 + $0xf8] sm:$0xff] }
  0x1d   :  { %1047 = vmatprep.subr.bf16.mxu0 %v1107_v0  ;;  %1081 = vmatprep.subr.bf16.mxu1 %v1107_v0  ;;  %v236_v40 = vld [vmem:[%s1902_s0 + $0x2d0] sm:$0xff]  ;;  %v241_v46 = vld [vmem:[%s1902_s0 + $0x2f8] sm:$0xff]  ;;  %v179_v49 = vld [vmem:[%s1902_s0 + $0x108] sm:$0xff] }
  0x1e   :  { %v240_v48 = vld [vmem:[%s1902_s0 + $0x2f0] sm:$0xff] }
  0x20   :  { %1049 = vmatpush1.bf16.msra.mxu0 %v1048_v26  ;;  %1097 = vmatpush1.bf16.msra.mxu1 %v1048_v26  ;;  %v231_v26 = vld [vmem:[%s1902_s0 + $0x2a8] sm:$0xff] }
  0x21   :  { %1050 = vmatprep.subr.bf16.mxu0 %v1107_v0  ;;  %1082 = vmatprep.subr.bf16.mxu1 %v1107_v0 }
  0x24   :  { %1052 = vmatpush1.bf16.msra.mxu0 %v1051_v29  ;;  %1098 = vmatpush1.bf16.msra.mxu1 %v1051_v29  ;;  %v169_v29 = vld [vmem:[%s1902_s0 + $0xb8] sm:$0xff] }
  0x25   :  { %1053 = vmatprep.subr.bf16.mxu0 %v1107_v0  ;;  %1083 = vmatprep.subr.bf16.mxu1 %v1107_v0 }
  0x28   :  { %1055 = vmatpush1.bf16.msra.mxu0 %v1054_v32  ;;  %1099 = vmatpush1.bf16.msra.mxu1 %v1054_v32  ;;  %v232_v32 = vld [vmem:[%s1902_s0 + $0x2b0] sm:$0xff] }
  0x29   :  { %1056 = vmatprep.subr.bf16.mxu0 %v1107_v0  ;;  %1084 = vmatprep.subr.bf16.mxu1 %v1107_v0 }
  0x2c   :  { %1058 = vmatpush1.bf16.msra.mxu0 %v1057_v35  ;;  %1100 = vmatpush1.bf16.msra.mxu1 %v1057_v35  ;;  %v170_v35 = vld [vmem:[%s1902_s0 + $0xc0] sm:$0xff] }
  0x2d   :  { %1059 = vmatprep.subr.bf16.mxu0 %v1107_v0  ;;  %1085 = vmatprep.subr.bf16.mxu1 %v1107_v0 }
  0x30   :  { %1061 = vmatpush1.bf16.msra.mxu0 %v1060_v38  ;;  %1101 = vmatpush1.bf16.msra.mxu1 %v1060_v38  ;;  %v237_v38 = vld [vmem:[%s1902_s0 + $0x2d8] sm:$0xff] }
  0x31   :  { %1062 = vmatprep.subr.bf16.mxu0 %v1107_v0  ;;  %1086 = vmatprep.subr.bf16.mxu1 %v1107_v0 }
  0x34   :  { %1064 = vmatpush1.bf16.msra.mxu0 %v1063_v41  ;;  %1102 = vmatpush1.bf16.msra.mxu1 %v1063_v41  ;;  %v175_v41 = vld [vmem:[%s1902_s0 + $0xe8] sm:$0xff] }
  0x35   :  { %1065 = vmatprep.subr.bf16.mxu0 %v1107_v0  ;;  %1087 = vmatprep.subr.bf16.mxu1 %v1107_v0 }
  0x38   :  { %1067 = vmatpush1.bf16.msra.mxu0 %v1066_v44  ;;  %1103 = vmatpush1.bf16.msra.mxu1 %v1066_v44  ;;  %v238_v44 = vld [vmem:[%s1902_s0 + $0x2e0] sm:$0xff] }
  0x39   :  { %1068 = vmatprep.subr.bf16.mxu0 %v1107_v0  ;;  %1088 = vmatprep.subr.bf16.mxu1 %v1107_v0 }
  0x3c   :  { %1070 = vmatpush1.bf16.msra.mxu0 %v1069_v47  ;;  %1104 = vmatpush1.bf16.msra.mxu1 %v1069_v47  ;;  %v176_v47 = vld [vmem:[%s1902_s0 + $0xf0] sm:$0xff] }
  0x3d   :  { %1071 = vmatprep.subr.bf16.mxu0 %v1107_v0  ;;  %1089 = vmatprep.subr.bf16.mxu1 %v1107_v0  ;;  %v216_v0 = vld [vmem:[%s1902_s0 + $0x230] sm:$0xff] }
  0x40   :  { %1073 = vmatpush1.bf16.msra.mxu0 %v1072_v50  ;;  %1105 = vmatpush1.bf16.msra.mxu1 %v1072_v50  ;;  %v243_v50 = vld [vmem:[%s1902_s0 + $0x308] sm:$0xff] }
  0x43   :  { %371 = vmatmul.mubr.f32.vlgmr.msra.gmra.mrb[0].mxu0 %v146_v51  ;;  %531 = vmatmul.mubr.f32.vlgmr.msra.gmra.mrb[0].mxu1 %v210_v52  ;;  %v178_v51 = vld [vmem:[%s1902_s0 + $0x100] sm:$0xff] }
  0x44   :  { %375 = vmatprep.mubr.f32.mxu0 %v149_v53  ;;  %535 = vmatprep.mubr.f32.mxu1 %v213_v54  ;;  %v242_v52 = vld [vmem:[%s1902_s0 + $0x300] sm:$0xff]  ;;  %v181_v53 = vld [vmem:[%s1902_s0 + $0x118] sm:$0xff] }
  0x45   :  { %v245_v54 = vld [vmem:[%s1902_s0 + $0x318] sm:$0xff] }
  0x47   :  { %376 = vmatmul.mubr.f32.gmra.mrb[2].mxu0 %v148_v55  ;;  %536 = vmatmul.mubr.f32.gmra.mrb[2].mxu1 %v212_v56  ;;  %v180_v55 = vld [vmem:[%s1902_s0 + $0x110] sm:$0xff] }
  0x48   :  { %380 = vmatprep.mubr.f32.mxu0 %v151_v57  ;;  %540 = vmatprep.mubr.f32.mxu1 %v215_v58  ;;  %v244_v56 = vld [vmem:[%s1902_s0 + $0x310] sm:$0xff]  ;;  %v183_v57 = vld [vmem:[%s1902_s0 + $0x128] sm:$0xff] }
  0x49   :  { %v247_v58 = vld [vmem:[%s1902_s0 + $0x328] sm:$0xff] }
  0x4b   :  { %381 = vmatmul.mubr.f32.gmra.mrb[4].mxu0 %v150_v59  ;;  %541 = vmatmul.mubr.f32.gmra.mrb[4].mxu1 %v214_v60  ;;  %v182_v59 = vld [vmem:[%s1902_s0 + $0x120] sm:$0xff] }
  0x4c   :  { %385 = vmatprep.mubr.f32.mxu0 %v153_v61  ;;  %545 = vmatprep.mubr.f32.mxu1 %v217_v62  ;;  %v246_v60 = vld [vmem:[%s1902_s0 + $0x320] sm:$0xff]  ;;  %v185_v61 = vld [vmem:[%s1902_s0 + $0x138] sm:$0xff] }
  0x4d   :  { %v249_v62 = vld [vmem:[%s1902_s0 + $0x338] sm:$0xff] }
  0x4f   :  { %386 = vmatmul.mubr.f32.gmra.mrb[6].mxu0 %v152_v63  ;;  %546 = vmatmul.mubr.f32.gmra.mrb[6].mxu1 %v216_v0  ;;  %v184_v63 = vld [vmem:[%s1902_s0 + $0x130] sm:$0xff] }
  0x50   :  { %390 = vmatprep.mubr.f32.mxu0 %v155_v1  ;;  %550 = vmatprep.mubr.f32.mxu1 %v219_v2  ;;  %v248_v0 = vld [vmem:[%s1902_s0 + $0x330] sm:$0xff]  ;;  %v187_v1 = vld [vmem:[%s1902_s0 + $0x148] sm:$0xff] }
  0x51   :  { %v251_v2 = vld [vmem:[%s1902_s0 + $0x348] sm:$0xff] }
  0x53   :  { %391 = vmatmul.mubr.f32.gmra.mrb[8].mxu0 %v154_v3  ;;  %551 = vmatmul.mubr.f32.gmra.mrb[8].mxu1 %v218_v4  ;;  %v186_v3 = vld [vmem:[%s1902_s0 + $0x140] sm:$0xff] }
  0x54   :  { %395 = vmatprep.mubr.f32.mxu0 %v157_v5  ;;  %555 = vmatprep.mubr.f32.mxu1 %v221_v6  ;;  %v250_v4 = vld [vmem:[%s1902_s0 + $0x340] sm:$0xff]  ;;  %v189_v5 = vld [vmem:[%s1902_s0 + $0x158] sm:$0xff] }
  0x55   :  { %v253_v6 = vld [vmem:[%s1902_s0 + $0x358] sm:$0xff] }
  0x57   :  { %396 = vmatmul.mubr.f32.gmra.mrb[10].mxu0 %v156_v7  ;;  %556 = vmatmul.mubr.f32.gmra.mrb[10].mxu1 %v220_v8  ;;  %v188_v7 = vld [vmem:[%s1902_s0 + $0x150] sm:$0xff] }
  0x58   :  { %400 = vmatprep.mubr.f32.mxu0 %v159_v9  ;;  %560 = vmatprep.mubr.f32.mxu1 %v223_v10  ;;  %v252_v8 = vld [vmem:[%s1902_s0 + $0x350] sm:$0xff]  ;;  %v191_v9 = vld [vmem:[%s1902_s0 + $0x168] sm:$0xff] }
  0x59   :  { %v255_v10 = vld [vmem:[%s1902_s0 + $0x368] sm:$0xff] }
  0x5b   :  { %401 = vmatmul.mubr.f32.gmra.mrb[12].mxu0 %v158_v11  ;;  %561 = vmatmul.mubr.f32.gmra.mrb[12].mxu1 %v222_v12  ;;  %v190_v11 = vld [vmem:[%s1902_s0 + $0x160] sm:$0xff] }
  0x5c   :  { %405 = vmatprep.mubr.f32.mxu0 %v161_v13  ;;  %565 = vmatprep.mubr.f32.mxu1 %v225_v14  ;;  %v254_v12 = vld [vmem:[%s1902_s0 + $0x360] sm:$0xff]  ;;  %v193_v13 = vld [vmem:[%s1902_s0 + $0x178] sm:$0xff] }
  0x5d   :  { %v257_v14 = vld [vmem:[%s1902_s0 + $0x378] sm:$0xff] }
  0x5f   :  { %406 = vmatmul.mubr.f32.gmra.mrb[14].mxu0 %v160_v15  ;;  %566 = vmatmul.mubr.f32.gmra.mrb[14].mxu1 %v224_v16  ;;  %v192_v15 = vld [vmem:[%s1902_s0 + $0x170] sm:$0xff] }
  0x60   :  { %410 = vmatprep.mubr.f32.mxu0 %v163_v17  ;;  %570 = vmatprep.mubr.f32.mxu1 %v227_v18  ;;  %v256_v16 = vld [vmem:[%s1902_s0 + $0x370] sm:$0xff]  ;;  %v195_v17 = vld [vmem:[%s1902_s0 + $0x188] sm:$0xff] }
  0x61   :  { %v259_v18 = vld [vmem:[%s1902_s0 + $0x388] sm:$0xff] }
  0x63   :  { %411 = vmatmul.mubr.f32.gmra.mrb[16].mxu0 %v162_v19  ;;  %571 = vmatmul.mubr.f32.gmra.mrb[16].mxu1 %v226_v20  ;;  %v194_v19 = vld [vmem:[%s1902_s0 + $0x180] sm:$0xff] }
  0x64   :  { %415 = vmatprep.mubr.f32.mxu0 %v165_v21  ;;  %575 = vmatprep.mubr.f32.mxu1 %v229_v22  ;;  %v258_v20 = vld [vmem:[%s1902_s0 + $0x380] sm:$0xff]  ;;  %v197_v21 = vld [vmem:[%s1902_s0 + $0x198] sm:$0xff] }
  0x65   :  { %v261_v22 = vld [vmem:[%s1902_s0 + $0x398] sm:$0xff] }
  0x67   :  { %416 = vmatmul.mubr.f32.gmra.mrb[18].mxu0 %v164_v23  ;;  %576 = vmatmul.mubr.f32.gmra.mrb[18].mxu1 %v228_v24  ;;  %v196_v23 = vld [vmem:[%s1902_s0 + $0x190] sm:$0xff] }
  0x68   :  { %420 = vmatprep.mubr.f32.mxu0 %v167_v25  ;;  %580 = vmatprep.mubr.f32.mxu1 %v231_v26  ;;  %v260_v24 = vld [vmem:[%s1902_s0 + $0x390] sm:$0xff]  ;;  %v199_v25 = vld [vmem:[%s1902_s0 + $0x1a8] sm:$0xff] }
  0x69   :  { %v263_v26 = vld [vmem:[%s1902_s0 + $0x3a8] sm:$0xff] }
  0x6b   :  { %421 = vmatmul.mubr.f32.gmra.mrb[20].mxu0 %v166_v27  ;;  %581 = vmatmul.mubr.f32.gmra.mrb[20].mxu1 %v230_v28  ;;  %v198_v27 = vld [vmem:[%s1902_s0 + $0x1a0] sm:$0xff] }
  0x6c   :  { %425 = vmatprep.mubr.f32.mxu0 %v169_v29  ;;  %585 = vmatprep.mubr.f32.mxu1 %v233_v30  ;;  %v262_v28 = vld [vmem:[%s1902_s0 + $0x3a0] sm:$0xff]  ;;  %v201_v29 = vld [vmem:[%s1902_s0 + $0x1b8] sm:$0xff] }
  0x6d   :  { %v265_v30 = vld [vmem:[%s1902_s0 + $0x3b8] sm:$0xff] }
  0x6f   :  { %426 = vmatmul.mubr.f32.gmra.mrb[22].mxu0 %v168_v31  ;;  %586 = vmatmul.mubr.f32.gmra.mrb[22].mxu1 %v232_v32  ;;  %v200_v31 = vld [vmem:[%s1902_s0 + $0x1b0] sm:$0xff] }
  0x70   :  { %430 = vmatprep.mubr.f32.mxu0 %v171_v33  ;;  %590 = vmatprep.mubr.f32.mxu1 %v235_v34  ;;  %v264_v32 = vld [vmem:[%s1902_s0 + $0x3b0] sm:$0xff]  ;;  %v203_v33 = vld [vmem:[%s1902_s0 + $0x1c8] sm:$0xff] }
  0x71   :  { %v267_v34 = vld [vmem:[%s1902_s0 + $0x3c8] sm:$0xff] }
  0x73   :  { %431 = vmatmul.mubr.f32.gmra.mrb[24].mxu0 %v170_v35  ;;  %591 = vmatmul.mubr.f32.gmra.mrb[24].mxu1 %v234_v36  ;;  %v202_v35 = vld [vmem:[%s1902_s0 + $0x1c0] sm:$0xff] }
  0x74   :  { %435 = vmatprep.mubr.f32.mxu0 %v173_v37  ;;  %595 = vmatprep.mubr.f32.mxu1 %v237_v38  ;;  %v266_v36 = vld [vmem:[%s1902_s0 + $0x3c0] sm:$0xff]  ;;  %v205_v37 = vld [vmem:[%s1902_s0 + $0x1d8] sm:$0xff] }
  0x75   :  { %v269_v38 = vld [vmem:[%s1902_s0 + $0x3d8] sm:$0xff] }
  0x77   :  { %436 = vmatmul.mubr.f32.gmra.mrb[26].mxu0 %v172_v39  ;;  %596 = vmatmul.mubr.f32.gmra.mrb[26].mxu1 %v236_v40  ;;  %v204_v39 = vld [vmem:[%s1902_s0 + $0x1d0] sm:$0xff] }
  0x78   :  { %440 = vmatprep.mubr.f32.mxu0 %v175_v41  ;;  %600 = vmatprep.mubr.f32.mxu1 %v239_v42  ;;  %v268_v40 = vld [vmem:[%s1902_s0 + $0x3d0] sm:$0xff]  ;;  %v207_v41 = vld [vmem:[%s1902_s0 + $0x1e8] sm:$0xff] }
  0x79   :  { %v271_v42 = vld [vmem:[%s1902_s0 + $0x3e8] sm:$0xff] }
  0x7b   :  { %441 = vmatmul.mubr.f32.gmra.mrb[28].mxu0 %v174_v43  ;;  %601 = vmatmul.mubr.f32.gmra.mrb[28].mxu1 %v238_v44  ;;  %v206_v43 = vld [vmem:[%s1902_s0 + $0x1e0] sm:$0xff] }
  0x7c   :  { %445 = vmatprep.mubr.f32.mxu0 %v177_v45  ;;  %605 = vmatprep.mubr.f32.mxu1 %v241_v46  ;;  %v270_v44 = vld [vmem:[%s1902_s0 + $0x3e0] sm:$0xff]  ;;  %v209_v45 = vld [vmem:[%s1902_s0 + $0x1f8] sm:$0xff] }
  0x7d   :  { %v273_v46 = vld [vmem:[%s1902_s0 + $0x3f8] sm:$0xff] }
  0x7f   :  { %446 = vmatmul.mubr.f32.gmra.mrb[30].mxu0 %v176_v47  ;;  %606 = vmatmul.mubr.f32.gmra.mrb[30].mxu1 %v240_v48  ;;  %v208_v47 = vld [vmem:[%s1902_s0 + $0x1f0] sm:$0xff] }
  0x80   :  { %450 = vmatprep.mubr.f32.mxu0 %v179_v49  ;;  %610 = vmatprep.mubr.f32.mxu1 %v243_v50  ;;  %v272_v48 = vld [vmem:[%s1902_s0 + $0x3f0] sm:$0xff]  ;;  %v1643_v49 = vld [vmem:[%s1903_s2] ss:$0 sm:$0xff] }
  0x83   :  { %451 = vmatmul.mubr.f32.gmra.mrb[32].mxu0 %v178_v51  ;;  %611 = vmatmul.mubr.f32.gmra.mrb[32].mxu1 %v242_v52 }
  0x84   :  { %455 = vmatprep.mubr.f32.mxu0 %v181_v53  ;;  %615 = vmatprep.mubr.f32.mxu1 %v245_v54 }
  0x87   :  { %456 = vmatmul.mubr.f32.gmra.mrb[34].mxu0 %v180_v55  ;;  %616 = vmatmul.mubr.f32.gmra.mrb[34].mxu1 %v244_v56 }
  0x88   :  { %460 = vmatprep.mubr.f32.mxu0 %v183_v57  ;;  %620 = vmatprep.mubr.f32.mxu1 %v247_v58 }
  0x8b   :  { %461 = vmatmul.mubr.f32.gmra.mrb[36].mxu0 %v182_v59  ;;  %621 = vmatmul.mubr.f32.gmra.mrb[36].mxu1 %v246_v60 }
  0x8c   :  { %465 = vmatprep.mubr.f32.mxu0 %v185_v61  ;;  %625 = vmatprep.mubr.f32.mxu1 %v249_v62 }
  0x8f   :  { %466 = vmatmul.mubr.f32.gmra.mrb[38].mxu0 %v184_v63  ;;  %626 = vmatmul.mubr.f32.gmra.mrb[38].mxu1 %v248_v0 }
  0x90   :  { %470 = vmatprep.mubr.f32.mxu0 %v187_v1  ;;  %630 = vmatprep.mubr.f32.mxu1 %v251_v2 }
  0x93   :  { %471 = vmatmul.mubr.f32.gmra.mrb[40].mxu0 %v186_v3  ;;  %631 = vmatmul.mubr.f32.gmra.mrb[40].mxu1 %v250_v4 }
  0x94   :  { %475 = vmatprep.mubr.f32.mxu0 %v189_v5  ;;  %635 = vmatprep.mubr.f32.mxu1 %v253_v6 }
  0x97   :  { %476 = vmatmul.mubr.f32.gmra.mrb[42].mxu0 %v188_v7  ;;  %636 = vmatmul.mubr.f32.gmra.mrb[42].mxu1 %v252_v8 }
  0x98   :  { %480 = vmatprep.mubr.f32.mxu0 %v191_v9  ;;  %640 = vmatprep.mubr.f32.mxu1 %v255_v10 }
  0x9b   :  { %481 = vmatmul.mubr.f32.gmra.mrb[44].mxu0 %v190_v11  ;;  %641 = vmatmul.mubr.f32.gmra.mrb[44].mxu1 %v254_v12 }
  0x9c   :  { %485 = vmatprep.mubr.f32.mxu0 %v193_v13  ;;  %645 = vmatprep.mubr.f32.mxu1 %v257_v14 }
  0x9f   :  { %486 = vmatmul.mubr.f32.gmra.mrb[46].mxu0 %v192_v15  ;;  %646 = vmatmul.mubr.f32.gmra.mrb[46].mxu1 %v256_v16 }
  0xa0   :  { %490 = vmatprep.mubr.f32.mxu0 %v195_v17  ;;  %650 = vmatprep.mubr.f32.mxu1 %v259_v18 }
  0xa3   :  { %491 = vmatmul.mubr.f32.gmra.mrb[48].mxu0 %v194_v19  ;;  %651 = vmatmul.mubr.f32.gmra.mrb[48].mxu1 %v258_v20 }
  0xa4   :  { %495 = vmatprep.mubr.f32.mxu0 %v197_v21  ;;  %655 = vmatprep.mubr.f32.mxu1 %v261_v22 }
  0xa7   :  { %496 = vmatmul.mubr.f32.gmra.mrb[50].mxu0 %v196_v23  ;;  %656 = vmatmul.mubr.f32.gmra.mrb[50].mxu1 %v260_v24 }
  0xa8   :  { %500 = vmatprep.mubr.f32.mxu0 %v199_v25  ;;  %660 = vmatprep.mubr.f32.mxu1 %v263_v26 }
  0xab   :  { %501 = vmatmul.mubr.f32.gmra.mrb[52].mxu0 %v198_v27  ;;  %661 = vmatmul.mubr.f32.gmra.mrb[52].mxu1 %v262_v28 }
  0xac   :  { %505 = vmatprep.mubr.f32.mxu0 %v201_v29  ;;  %665 = vmatprep.mubr.f32.mxu1 %v265_v30 }
  0xaf   :  { %506 = vmatmul.mubr.f32.gmra.mrb[54].mxu0 %v200_v31  ;;  %666 = vmatmul.mubr.f32.gmra.mrb[54].mxu1 %v264_v32 }
  0xb0   :  { %510 = vmatprep.mubr.f32.mxu0 %v203_v33  ;;  %670 = vmatprep.mubr.f32.mxu1 %v267_v34 }
  0xb3   :  { %511 = vmatmul.mubr.f32.gmra.mrb[56].mxu0 %v202_v35  ;;  %671 = vmatmul.mubr.f32.gmra.mrb[56].mxu1 %v266_v36 }
  0xb4   :  { %515 = vmatprep.mubr.f32.mxu0 %v205_v37  ;;  %675 = vmatprep.mubr.f32.mxu1 %v269_v38 }
  0xb7   :  { %516 = vmatmul.mubr.f32.gmra.mrb[58].mxu0 %v204_v39  ;;  %676 = vmatmul.mubr.f32.gmra.mrb[58].mxu1 %v268_v40 }
  0xb8   :  { %520 = vmatprep.mubr.f32.mxu0 %v207_v41  ;;  %680 = vmatprep.mubr.f32.mxu1 %v271_v42 }
  0xbb   :  { %521 = vmatmul.mubr.f32.gmra.mrb[60].mxu0 %v206_v43  ;;  %681 = vmatmul.mubr.f32.gmra.mrb[60].mxu1 %v270_v44 }
  0xbc   :  { %525 = vmatprep.mubr.f32.mxu0 %v209_v45  ;;  %685 = vmatprep.mubr.f32.mxu1 %v273_v46 }
  0xbf   :  { %526 = vmatmul.mubr.f32.gmra.mrb[62].mxu0 %v208_v47  ;;  %686 = vmatmul.mubr.f32.gmra.mrb[62].mxu1 %v272_v48 }
 0x116   :  { %v372_v50 = vpop.f32.mrb[0].mxu0  ;;  %v532_v51 = vpop.f32.mrb[0].mxu1 }
 0x117   :  { %v893_v52 = vadd.f32 %v1643_v49, %v372_v50  ;;  %v925_v53 = vadd.f32 %v1643_v49, %v532_v51  ;;  %v374_v54 = vpop.f32.mrb[1].mxu0  ;;  %v534_v55 = vpop.f32.mrb[1].mxu1 }
 0x119   :  { %957 = vst [vmem:[%s1904_s3] sm:$0xff] %v893_v52  ;;  %989 = vst [vmem:[%s1904_s3 + $0x100] sm:$0xff] %v925_v53 }
 0x11a   :  { %v377_v56 = vpop.f32.mrb[2].mxu0  ;;  %v537_v57 = vpop.f32.mrb[2].mxu1 }
 0x11b   :  { %v894_v58 = vadd.f32 %v1643_v49, %v377_v56  ;;  %v926_v59 = vadd.f32 %v1643_v49, %v537_v57  ;;  %v379_v60 = vpop.f32.mrb[3].mxu0  ;;  %v539_v61 = vpop.f32.mrb[3].mxu1 }
 0x11d   :  { %958 = vst [vmem:[%s1904_s3 + $0x8] sm:$0xff] %v894_v58  ;;  %990 = vst [vmem:[%s1904_s3 + $0x108] sm:$0xff] %v926_v59 }
 0x11e   :  { %v382_v62 = vpop.f32.mrb[4].mxu0  ;;  %v542_v63 = vpop.f32.mrb[4].mxu1 }
 0x11f   :  { %v895_v0 = vadd.f32 %v1643_v49, %v382_v62  ;;  %v927_v1 = vadd.f32 %v1643_v49, %v542_v63  ;;  %v384_v2 = vpop.f32.mrb[5].mxu0  ;;  %v544_v3 = vpop.f32.mrb[5].mxu1 }
 0x121   :  { %959 = vst [vmem:[%s1904_s3 + $0x10] sm:$0xff] %v895_v0  ;;  %991 = vst [vmem:[%s1904_s3 + $0x110] sm:$0xff] %v927_v1 }
 0x122   :  { %v387_v4 = vpop.f32.mrb[6].mxu0  ;;  %v547_v5 = vpop.f32.mrb[6].mxu1 }
 0x123   :  { %v896_v6 = vadd.f32 %v1643_v49, %v387_v4  ;;  %v928_v7 = vadd.f32 %v1643_v49, %v547_v5  ;;  %v389_v8 = vpop.f32.mrb[7].mxu0  ;;  %v549_v9 = vpop.f32.mrb[7].mxu1 }
 0x125   :  { %960 = vst [vmem:[%s1904_s3 + $0x18] sm:$0xff] %v896_v6  ;;  %992 = vst [vmem:[%s1904_s3 + $0x118] sm:$0xff] %v928_v7 }
 0x126   :  { %v392_v10 = vpop.f32.mrb[8].mxu0  ;;  %v552_v11 = vpop.f32.mrb[8].mxu1 }
 0x127   :  { %v897_v12 = vadd.f32 %v1643_v49, %v392_v10  ;;  %v929_v13 = vadd.f32 %v1643_v49, %v552_v11  ;;  %v394_v14 = vpop.f32.mrb[9].mxu0  ;;  %v554_v15 = vpop.f32.mrb[9].mxu1 }
 0x129   :  { %961 = vst [vmem:[%s1904_s3 + $0x20] sm:$0xff] %v897_v12  ;;  %993 = vst [vmem:[%s1904_s3 + $0x120] sm:$0xff] %v929_v13 }
 0x12a   :  { %v397_v16 = vpop.f32.mrb[10].mxu0  ;;  %v557_v17 = vpop.f32.mrb[10].mxu1 }
 0x12b   :  { %v898_v18 = vadd.f32 %v1643_v49, %v397_v16  ;;  %v930_v19 = vadd.f32 %v1643_v49, %v557_v17  ;;  %v399_v20 = vpop.f32.mrb[11].mxu0  ;;  %v559_v21 = vpop.f32.mrb[11].mxu1 }
 0x12d   :  { %962 = vst [vmem:[%s1904_s3 + $0x28] sm:$0xff] %v898_v18  ;;  %994 = vst [vmem:[%s1904_s3 + $0x128] sm:$0xff] %v930_v19 }
 0x12e   :  { %v402_v22 = vpop.f32.mrb[12].mxu0  ;;  %v562_v23 = vpop.f32.mrb[12].mxu1 }
 0x12f   :  { %v899_v24 = vadd.f32 %v1643_v49, %v402_v22  ;;  %v931_v25 = vadd.f32 %v1643_v49, %v562_v23  ;;  %v404_v26 = vpop.f32.mrb[13].mxu0  ;;  %v564_v27 = vpop.f32.mrb[13].mxu1 }
 0x131   :  { %963 = vst [vmem:[%s1904_s3 + $0x30] sm:$0xff] %v899_v24  ;;  %995 = vst [vmem:[%s1904_s3 + $0x130] sm:$0xff] %v931_v25 }
 0x132   :  { %v407_v28 = vpop.f32.mrb[14].mxu0  ;;  %v567_v29 = vpop.f32.mrb[14].mxu1 }
 0x133   :  { %v900_v30 = vadd.f32 %v1643_v49, %v407_v28  ;;  %v932_v31 = vadd.f32 %v1643_v49, %v567_v29  ;;  %v409_v32 = vpop.f32.mrb[15].mxu0  ;;  %v569_v33 = vpop.f32.mrb[15].mxu1 }
 0x135   :  { %964 = vst [vmem:[%s1904_s3 + $0x38] sm:$0xff] %v900_v30  ;;  %996 = vst [vmem:[%s1904_s3 + $0x138] sm:$0xff] %v932_v31 }
 0x136   :  { %v412_v34 = vpop.f32.mrb[16].mxu0  ;;  %v572_v35 = vpop.f32.mrb[16].mxu1 }
 0x137   :  { %v901_v36 = vadd.f32 %v1643_v49, %v412_v34  ;;  %v933_v37 = vadd.f32 %v1643_v49, %v572_v35  ;;  %v414_v38 = vpop.f32.mrb[17].mxu0  ;;  %v574_v39 = vpop.f32.mrb[17].mxu1 }
 0x139   :  { %965 = vst [vmem:[%s1904_s3 + $0x40] sm:$0xff] %v901_v36  ;;  %997 = vst [vmem:[%s1904_s3 + $0x140] sm:$0xff] %v933_v37 }
 0x13a   :  { %v417_v40 = vpop.f32.mrb[18].mxu0  ;;  %v577_v41 = vpop.f32.mrb[18].mxu1 }
 0x13b   :  { %v902_v42 = vadd.f32 %v1643_v49, %v417_v40  ;;  %v934_v43 = vadd.f32 %v1643_v49, %v577_v41  ;;  %v419_v44 = vpop.f32.mrb[19].mxu0  ;;  %v579_v45 = vpop.f32.mrb[19].mxu1 }
 0x13d   :  { %966 = vst [vmem:[%s1904_s3 + $0x48] sm:$0xff] %v902_v42  ;;  %998 = vst [vmem:[%s1904_s3 + $0x148] sm:$0xff] %v934_v43 }
 0x13e   :  { %v422_v46 = vpop.f32.mrb[20].mxu0  ;;  %v582_v47 = vpop.f32.mrb[20].mxu1 }
 0x13f   :  { %v903_v48 = vadd.f32 %v1643_v49, %v422_v46  ;;  %v935_v50 = vadd.f32 %v1643_v49, %v582_v47  ;;  %v424_v51 = vpop.f32.mrb[21].mxu0  ;;  %v584_v52 = vpop.f32.mrb[21].mxu1 }
 0x141   :  { %967 = vst [vmem:[%s1904_s3 + $0x50] sm:$0xff] %v903_v48  ;;  %999 = vst [vmem:[%s1904_s3 + $0x150] sm:$0xff] %v935_v50 }
 0x142   :  { %v427_v53 = vpop.f32.mrb[22].mxu0  ;;  %v587_v54 = vpop.f32.mrb[22].mxu1 }
 0x143   :  { %v904_v55 = vadd.f32 %v1643_v49, %v427_v53  ;;  %v936_v56 = vadd.f32 %v1643_v49, %v587_v54  ;;  %v429_v57 = vpop.f32.mrb[23].mxu0  ;;  %v589_v58 = vpop.f32.mrb[23].mxu1 }
 0x145   :  { %968 = vst [vmem:[%s1904_s3 + $0x58] sm:$0xff] %v904_v55  ;;  %1000 = vst [vmem:[%s1904_s3 + $0x158] sm:$0xff] %v936_v56 }
 0x146   :  { %v432_v59 = vpop.f32.mrb[24].mxu0  ;;  %v592_v60 = vpop.f32.mrb[24].mxu1 }
 0x147   :  { %v905_v61 = vadd.f32 %v1643_v49, %v432_v59  ;;  %v937_v62 = vadd.f32 %v1643_v49, %v592_v60  ;;  %v434_v63 = vpop.f32.mrb[25].mxu0  ;;  %v594_v0 = vpop.f32.mrb[25].mxu1 }
 0x149   :  { %969 = vst [vmem:[%s1904_s3 + $0x60] sm:$0xff] %v905_v61  ;;  %1001 = vst [vmem:[%s1904_s3 + $0x160] sm:$0xff] %v937_v62 }
 0x14a   :  { %v437_v1 = vpop.f32.mrb[26].mxu0  ;;  %v597_v2 = vpop.f32.mrb[26].mxu1 }
 0x14b   :  { %v906_v3 = vadd.f32 %v1643_v49, %v437_v1  ;;  %v938_v4 = vadd.f32 %v1643_v49, %v597_v2  ;;  %v439_v5 = vpop.f32.mrb[27].mxu0  ;;  %v599_v6 = vpop.f32.mrb[27].mxu1 }
 0x14d   :  { %970 = vst [vmem:[%s1904_s3 + $0x68] sm:$0xff] %v906_v3  ;;  %1002 = vst [vmem:[%s1904_s3 + $0x168] sm:$0xff] %v938_v4 }
 0x14e   :  { %v442_v7 = vpop.f32.mrb[28].mxu0  ;;  %v602_v8 = vpop.f32.mrb[28].mxu1 }
 0x14f   :  { %v907_v9 = vadd.f32 %v1643_v49, %v442_v7  ;;  %v939_v10 = vadd.f32 %v1643_v49, %v602_v8  ;;  %v444_v11 = vpop.f32.mrb[29].mxu0  ;;  %v604_v12 = vpop.f32.mrb[29].mxu1 }
 0x151   :  { %971 = vst [vmem:[%s1904_s3 + $0x70] sm:$0xff] %v907_v9  ;;  %1003 = vst [vmem:[%s1904_s3 + $0x170] sm:$0xff] %v939_v10 }
 0x152   :  { %v447_v13 = vpop.f32.mrb[30].mxu0  ;;  %v607_v14 = vpop.f32.mrb[30].mxu1 }
 0x153   :  { %v908_v15 = vadd.f32 %v1643_v49, %v447_v13  ;;  %v940_v16 = vadd.f32 %v1643_v49, %v607_v14  ;;  %v449_v17 = vpop.f32.mrb[31].mxu0  ;;  %v609_v18 = vpop.f32.mrb[31].mxu1 }
 0x155   :  { %972 = vst [vmem:[%s1904_s3 + $0x78] sm:$0xff] %v908_v15  ;;  %1004 = vst [vmem:[%s1904_s3 + $0x178] sm:$0xff] %v940_v16 }
 0x156   :  { %v452_v19 = vpop.f32.mrb[32].mxu0  ;;  %v612_v20 = vpop.f32.mrb[32].mxu1 }
 0x157   :  { %v909_v21 = vadd.f32 %v1643_v49, %v452_v19  ;;  %v941_v22 = vadd.f32 %v1643_v49, %v612_v20  ;;  %v454_v23 = vpop.f32.mrb[33].mxu0  ;;  %v614_v24 = vpop.f32.mrb[33].mxu1 }
 0x159   :  { %973 = vst [vmem:[%s1904_s3 + $0x80] sm:$0xff] %v909_v21  ;;  %1005 = vst [vmem:[%s1904_s3 + $0x180] sm:$0xff] %v941_v22 }
 0x15a   :  { %v457_v25 = vpop.f32.mrb[34].mxu0  ;;  %v617_v26 = vpop.f32.mrb[34].mxu1 }
 0x15b   :  { %v910_v27 = vadd.f32 %v1643_v49, %v457_v25  ;;  %v942_v28 = vadd.f32 %v1643_v49, %v617_v26  ;;  %v459_v29 = vpop.f32.mrb[35].mxu0  ;;  %v619_v30 = vpop.f32.mrb[35].mxu1 }
 0x15d   :  { %974 = vst [vmem:[%s1904_s3 + $0x88] sm:$0xff] %v910_v27  ;;  %1006 = vst [vmem:[%s1904_s3 + $0x188] sm:$0xff] %v942_v28 }
 0x15e   :  { %v462_v31 = vpop.f32.mrb[36].mxu0  ;;  %v622_v32 = vpop.f32.mrb[36].mxu1 }
 0x15f   :  { %v911_v33 = vadd.f32 %v1643_v49, %v462_v31  ;;  %v943_v34 = vadd.f32 %v1643_v49, %v622_v32  ;;  %v464_v35 = vpop.f32.mrb[37].mxu0  ;;  %v624_v36 = vpop.f32.mrb[37].mxu1 }
 0x161   :  { %975 = vst [vmem:[%s1904_s3 + $0x90] sm:$0xff] %v911_v33  ;;  %1007 = vst [vmem:[%s1904_s3 + $0x190] sm:$0xff] %v943_v34 }
 0x162   :  { %v467_v37 = vpop.f32.mrb[38].mxu0  ;;  %v627_v38 = vpop.f32.mrb[38].mxu1 }
 0x163   :  { %v912_v39 = vadd.f32 %v1643_v49, %v467_v37  ;;  %v944_v40 = vadd.f32 %v1643_v49, %v627_v38  ;;  %v469_v41 = vpop.f32.mrb[39].mxu0  ;;  %v629_v42 = vpop.f32.mrb[39].mxu1 }
 0x165   :  { %976 = vst [vmem:[%s1904_s3 + $0x98] sm:$0xff] %v912_v39  ;;  %1008 = vst [vmem:[%s1904_s3 + $0x198] sm:$0xff] %v944_v40 }
 0x166   :  { %v472_v43 = vpop.f32.mrb[40].mxu0  ;;  %v632_v44 = vpop.f32.mrb[40].mxu1 }
 0x167   :  { %v913_v45 = vadd.f32 %v1643_v49, %v472_v43  ;;  %v945_v46 = vadd.f32 %v1643_v49, %v632_v44  ;;  %v474_v47 = vpop.f32.mrb[41].mxu0  ;;  %v634_v48 = vpop.f32.mrb[41].mxu1 }
 0x169   :  { %977 = vst [vmem:[%s1904_s3 + $0xa0] sm:$0xff] %v913_v45  ;;  %1009 = vst [vmem:[%s1904_s3 + $0x1a0] sm:$0xff] %v945_v46 }
 0x16a   :  { %v477_v50 = vpop.f32.mrb[42].mxu0  ;;  %v637_v51 = vpop.f32.mrb[42].mxu1 }
 0x16b   :  { %v914_v52 = vadd.f32 %v1643_v49, %v477_v50  ;;  %v946_v53 = vadd.f32 %v1643_v49, %v637_v51  ;;  %v479_v54 = vpop.f32.mrb[43].mxu0  ;;  %v639_v55 = vpop.f32.mrb[43].mxu1 }
 0x16d   :  { %978 = vst [vmem:[%s1904_s3 + $0xa8] sm:$0xff] %v914_v52  ;;  %1010 = vst [vmem:[%s1904_s3 + $0x1a8] sm:$0xff] %v946_v53 }
 0x16e   :  { %v482_v56 = vpop.f32.mrb[44].mxu0  ;;  %v642_v57 = vpop.f32.mrb[44].mxu1 }
 0x16f   :  { %v915_v58 = vadd.f32 %v1643_v49, %v482_v56  ;;  %v947_v59 = vadd.f32 %v1643_v49, %v642_v57  ;;  %v484_v60 = vpop.f32.mrb[45].mxu0  ;;  %v644_v61 = vpop.f32.mrb[45].mxu1 }
 0x171   :  { %979 = vst [vmem:[%s1904_s3 + $0xb0] sm:$0xff] %v915_v58  ;;  %1011 = vst [vmem:[%s1904_s3 + $0x1b0] sm:$0xff] %v947_v59 }
 0x172   :  { %v487_v62 = vpop.f32.mrb[46].mxu0  ;;  %v647_v63 = vpop.f32.mrb[46].mxu1 }
 0x173   :  { %v916_v0 = vadd.f32 %v1643_v49, %v487_v62  ;;  %v948_v1 = vadd.f32 %v1643_v49, %v647_v63  ;;  %v489_v2 = vpop.f32.mrb[47].mxu0  ;;  %v649_v3 = vpop.f32.mrb[47].mxu1 }
 0x175   :  { %980 = vst [vmem:[%s1904_s3 + $0xb8] sm:$0xff] %v916_v0  ;;  %1012 = vst [vmem:[%s1904_s3 + $0x1b8] sm:$0xff] %v948_v1 }
 0x176   :  { %v492_v4 = vpop.f32.mrb[48].mxu0  ;;  %v652_v5 = vpop.f32.mrb[48].mxu1 }
 0x177   :  { %v917_v6 = vadd.f32 %v1643_v49, %v492_v4  ;;  %v949_v7 = vadd.f32 %v1643_v49, %v652_v5  ;;  %v494_v8 = vpop.f32.mrb[49].mxu0  ;;  %v654_v9 = vpop.f32.mrb[49].mxu1 }
 0x179   :  { %981 = vst [vmem:[%s1904_s3 + $0xc0] sm:$0xff] %v917_v6  ;;  %1013 = vst [vmem:[%s1904_s3 + $0x1c0] sm:$0xff] %v949_v7 }
 0x17a   :  { %v497_v10 = vpop.f32.mrb[50].mxu0  ;;  %v657_v11 = vpop.f32.mrb[50].mxu1 }
 0x17b   :  { %v918_v12 = vadd.f32 %v1643_v49, %v497_v10  ;;  %v950_v13 = vadd.f32 %v1643_v49, %v657_v11  ;;  %v499_v14 = vpop.f32.mrb[51].mxu0  ;;  %v659_v15 = vpop.f32.mrb[51].mxu1 }
 0x17d   :  { %982 = vst [vmem:[%s1904_s3 + $0xc8] sm:$0xff] %v918_v12  ;;  %1014 = vst [vmem:[%s1904_s3 + $0x1c8] sm:$0xff] %v950_v13 }
 0x17e   :  { %v502_v16 = vpop.f32.mrb[52].mxu0  ;;  %v662_v17 = vpop.f32.mrb[52].mxu1 }
 0x17f   :  { %v919_v18 = vadd.f32 %v1643_v49, %v502_v16  ;;  %v951_v19 = vadd.f32 %v1643_v49, %v662_v17  ;;  %v504_v20 = vpop.f32.mrb[53].mxu0  ;;  %v664_v21 = vpop.f32.mrb[53].mxu1 }
 0x181   :  { %983 = vst [vmem:[%s1904_s3 + $0xd0] sm:$0xff] %v919_v18  ;;  %1015 = vst [vmem:[%s1904_s3 + $0x1d0] sm:$0xff] %v951_v19 }
 0x182   :  { %v507_v22 = vpop.f32.mrb[54].mxu0  ;;  %v667_v23 = vpop.f32.mrb[54].mxu1 }
 0x183   :  { %v920_v24 = vadd.f32 %v1643_v49, %v507_v22  ;;  %v952_v25 = vadd.f32 %v1643_v49, %v667_v23  ;;  %v509_v26 = vpop.f32.mrb[55].mxu0  ;;  %v669_v27 = vpop.f32.mrb[55].mxu1 }
 0x185   :  { %984 = vst [vmem:[%s1904_s3 + $0xd8] sm:$0xff] %v920_v24  ;;  %1016 = vst [vmem:[%s1904_s3 + $0x1d8] sm:$0xff] %v952_v25 }
 0x186   :  { %v512_v28 = vpop.f32.mrb[56].mxu0  ;;  %v672_v29 = vpop.f32.mrb[56].mxu1 }
 0x187   :  { %v921_v30 = vadd.f32 %v1643_v49, %v512_v28  ;;  %v953_v31 = vadd.f32 %v1643_v49, %v672_v29  ;;  %v514_v32 = vpop.f32.mrb[57].mxu0  ;;  %v674_v33 = vpop.f32.mrb[57].mxu1 }
 0x189   :  { %985 = vst [vmem:[%s1904_s3 + $0xe0] sm:$0xff] %v921_v30  ;;  %1017 = vst [vmem:[%s1904_s3 + $0x1e0] sm:$0xff] %v953_v31 }
 0x18a   :  { %v517_v34 = vpop.f32.mrb[58].mxu0  ;;  %v677_v35 = vpop.f32.mrb[58].mxu1 }
 0x18b   :  { %v922_v36 = vadd.f32 %v1643_v49, %v517_v34  ;;  %v954_v37 = vadd.f32 %v1643_v49, %v677_v35  ;;  %v519_v38 = vpop.f32.mrb[59].mxu0  ;;  %v679_v39 = vpop.f32.mrb[59].mxu1 }
 0x18d   :  { %986 = vst [vmem:[%s1904_s3 + $0xe8] sm:$0xff] %v922_v36  ;;  %1018 = vst [vmem:[%s1904_s3 + $0x1e8] sm:$0xff] %v954_v37 }
 0x18e   :  { %v522_v40 = vpop.f32.mrb[60].mxu0  ;;  %v682_v41 = vpop.f32.mrb[60].mxu1 }
 0x18f   :  { %v923_v42 = vadd.f32 %v1643_v49, %v522_v40  ;;  %v955_v43 = vadd.f32 %v1643_v49, %v682_v41  ;;  %v524_v44 = vpop.f32.mrb[61].mxu0  ;;  %v684_v45 = vpop.f32.mrb[61].mxu1 }
 0x191   :  { %987 = vst [vmem:[%s1904_s3 + $0xf0] sm:$0xff] %v923_v42  ;;  %1019 = vst [vmem:[%s1904_s3 + $0x1f0] sm:$0xff] %v955_v43 }
 0x192   :  { %v527_v46 = vpop.f32.mrb[62].mxu0  ;;  %v687_v47 = vpop.f32.mrb[62].mxu1 }
 0x193   :  { %v924_v48 = vadd.f32 %v1643_v49, %v527_v46  ;;  %v956_v50 = vadd.f32 %v1643_v49, %v687_v47  ;;  %v529_v51 = vpop.f32.mrb[63].mxu0  ;;  %v689_v52 = vpop.f32.mrb[63].mxu1 }
 0x195   :  { %988 = vst [vmem:[%s1904_s3 + $0xf8] sm:$0xff] %v924_v48  ;;  %1020 = vst [vmem:[%s1904_s3 + $0x1f8] sm:$0xff] %v956_v50 }

// kernel: fairface_mobilenet_forward.6
= control target key start
LH: loop header
LB: loop body
LE: loop exit
PB: predicated region body
PF: predicated region fallthrough
CT: control target
= control target key end

     0   :  { %s6124_s12 = smov 0   ;;  %s7159_s0 = inlined_call_operand.vmem [shape: f32[2,18,18,8], index: 0, kind: input, shape index: {}]   ;;  %s7160_s1 = inlined_call_operand.vmem [shape: f32[9,8,128], index: 1, kind: input, shape index: {}]   ;;  %s7161_s2 = inlined_call_operand.vmem [shape: f32[1,128], index: 2, kind: input, shape index: {}]   ;;  %s7162_s3 = inlined_call_operand.vmem [shape: f32[2,16,16,128], index: 3, kind: output, shape index: {}]  }
   0x1 LB: > { %s4582_s13 = sadd.s32 4294967295, %s6102_s12   ;;  %p4586_p0 = scmp.ge.s32.totalorder %s6102_s12, 1  ;;  %s6102_s12 = sphi %s6124_s12, %s13_s12  }
   0x2   : > { %p137_p1 = scmp.lt.s32.totalorder %s6102_s12, 3 }
   0x4   : > { %p138_p2 = pnand %p4586_p0, %p137_p1 }
   0x6   : > { %141 = sbr.rel (%p138_p2) target bundleno = 534 (0x216), region = 32 }
   0xd   : > { %v267_v0 = vld [vmem:[%s7160_s1] sm:$0xff]  ;;  %p161_p3 = scmp.lt.s32.totalorder %s4582_s13, 1  ;;  %v4622_v2 = vld [vmem:[%s7160_s1 + $0x8] sm:$0xff]  ;;  %vm268_vm0 = vcmask 64512   ;;  %v6179_v10 = vld [vmem:[%s7160_s1 + $0x30] sm:$0xff] }
   0xe   : > { %v6138_v1 = vld [vmem:[%s7160_s1 + $0x20] sm:$0xff]  ;;  %5379 = vmatprep.subr.mxu1 %v267_v0  ;;  %v4850_v3 = vld [vmem:[%s7160_s1 + $0x28] sm:$0xff]  ;;  %v6184_v11 = vld [vmem:[%s7160_s1 + $0x10] sm:$0xff] }
   0xf   : > { %5579 = vmatprep.subr.mxu0 %v6138_v1  ;;  %5380 = vmatpush3.msra.mxu1 %v267_v0  ;;  %s7284_s13 = smov (!%p161_p3, %s4582_s13), 1  ;;  %v6347_v44 = vld [vmem:[%s7160_s1 + $0x38] sm:$0xff] }
  0x10   : > { %5580 = vmatpush3.msra.mxu0 %v6138_v1  ;;  %5429 = vmatprep.subr.mxu1 %v4622_v2  ;;  %s6087_s22 = smul.u32 432, %s7284_s13  ;;  %s5081_s11 = sshll.u32 %s7284_s13, 8 }
  0x11   : > { %5629 = vmatprep.subr.mxu0 %v4850_v3  ;;  %s7087_s16 = scalar_lea.vmem %s7162_s3, %s5081_s11 }
  0x12   : > { %s6154_s25 = scalar_lea.vmem %s7159_s0, %s6087_s22 }
  0x13   : > { %v203_v4 = vld [vmem:[%s6154_s25] sm:$0xff]  ;;  %v204_v6 = vld [vmem:[%s6154_s25 + $0x8] sm:$0xff]  ;;  %v6168_v8 = vld [vmem:[%s6154_s25 + $0x18] sm:$0xff] }
  0x14   : > { %v6158_v5 = vld [vmem:[%s6154_s25 + $0x19] sm:$0xff]  ;;  %5381 = vmatprep.mubr.msk.f32.mxu1 %vm268_vm0, %v203_v4  ;;  %v6165_v7 = vld [vmem:[%s6154_s25 + $0x21] sm:$0xff]  ;;  %7213 = vst [vmem:[#allocation3_spill] sm:$0xff] %v6168_v8  ;;  %v6171_v9 = vld [vmem:[%s6154_s25 + $0x31] sm:$0xff] }
  0x15   : > { %5581 = vmatprep.mubr.msk.f32.mxu0 %vm268_vm0, %v6158_v5  ;;  %5382 = vmatmul.mubr.msk.f32.vlgmr.msra.gmra.mrb[0].mxu1 %vm268_vm0, %v204_v6  ;;  %v6187_v12 = vld [vmem:[%s6154_s25 + $0x20] sm:$0xff]  ;;  %v6197_v14 = vld [vmem:[%s6154_s25 + $0x30] sm:$0xff]  ;;  %v6213_v16 = vld [vmem:[%s6154_s25 + $0x38] sm:$0xff] }
  0x16   : > { %5582 = vmatmul.mubr.msk.f32.vlgmr.msra.gmra.mrb[0].mxu0 %vm268_vm0, %v6165_v7  ;;  %5430 = vmatpush3.msra.mxu1 %v4622_v2  ;;  %7214 = vst [vmem:[#allocation4_spill] sm:$0xff] %v6187_v12  ;;  %v6190_v13 = vld [vmem:[%s6154_s25 + $0x39] sm:$0xff]  ;;  %7215 = vst [vmem:[#allocation5_spill] sm:$0xff] %v6197_v14  ;;  %v6200_v15 = vld [vmem:[%s6154_s25 + $0x49] sm:$0xff] }
  0x17   : > { %5630 = vmatpush3.msra.mxu0 %v4850_v3  ;;  %5384 = vmatprep.mubr.msk.f32.mxu1 %vm268_vm0, %v6168_v8  ;;  %v6216_v17 = vld [vmem:[%s6154_s25 + $0x51] sm:$0xff]  ;;  %v6219_v18 = vld [vmem:[%s6154_s25 + $0x48] sm:$0xff]  ;;  %v6239_v22 = vld [vmem:[%s6154_s25 + $0x60] sm:$0xff] }
  0x18   : > { %5584 = vmatprep.mubr.msk.f32.mxu0 %vm268_vm0, %v6171_v9  ;;  %5679 = vmatprep.subr.mxu0 %v6179_v10  ;;  %7216 = vst [vmem:[#allocation6_spill] sm:$0xff] %v6219_v18  ;;  %v6222_v19 = vld [vmem:[%s6154_s25 + $0x61] sm:$0xff]  ;;  %v6233_v20 = vld [vmem:[%s6154_s25 + $0x50] sm:$0xff]  ;;  %7218 = vst [vmem:[#allocation8_spill] sm:$0xff] %v6239_v22 }
  0x19   : > { %5479 = vmatprep.subr.mxu1 %v6184_v11  ;;  %5385 = vmatmul.mubr.msk.f32.gmra.mrb[2].mxu1 %vm268_vm0, %v6187_v12  ;;  %7217 = vst [vmem:[#allocation7_spill] sm:$0xff] %v6233_v20  ;;  %v6236_v21 = vld [vmem:[%s6154_s25 + $0x69] sm:$0xff]  ;;  %v6242_v23 = vld [vmem:[%s6154_s25 + $0x79] sm:$0xff]  ;;  %v6256_v25 = vld [vmem:[%s6154_s25 + $0x81] sm:$0xff] }
  0x1a   : > { %5585 = vmatmul.mubr.msk.f32.gmra.mrb[2].mxu0 %vm268_vm0, %v6190_v13  ;;  %5387 = vmatprep.mubr.msk.f32.mxu1 %vm268_vm0, %v6197_v14  ;;  %v6253_v24 = vld [vmem:[%s6154_s25 + $0x68] sm:$0xff]  ;;  %v6259_v26 = vld [vmem:[%s6154_s25 + $0x78] sm:$0xff]  ;;  %v6273_v28 = vld [vmem:[%s6154_s25 + $0x80] sm:$0xff] }
  0x1b   : > { %5587 = vmatprep.mubr.msk.f32.mxu0 %vm268_vm0, %v6200_v15  ;;  %7219 = vst [vmem:[#allocation9_spill] sm:$0xff] %v6253_v24  ;;  %7220 = vst [vmem:[#allocation10_spill] sm:$0xff] %v6259_v26  ;;  %v6262_v27 = vld [vmem:[%s6154_s25 + $0x91] sm:$0xff]  ;;  %v6276_v29 = vld [vmem:[%s6154_s25 + $0x99] sm:$0xff] }
  0x1c   : > { %7221 = vst [vmem:[#allocation11_spill] sm:$0xff] %v6273_v28  ;;  %v6279_v30 = vld [vmem:[%s6154_s25 + $0x90] sm:$0xff]  ;;  %v6293_v32 = vld [vmem:[%s6154_s25 + $0x98] sm:$0xff]  ;;  %v6299_v34 = vld [vmem:[%s6154_s25 + $0xa8] sm:$0xff] }
  0x1d   : > { %5388 = vmatmul.mubr.msk.f32.gmra.mrb[4].mxu1 %vm268_vm0, %v6213_v16  ;;  %7222 = vst [vmem:[#allocation12_spill] sm:$0xff] %v6279_v30  ;;  %v6282_v31 = vld [vmem:[%s6154_s25 + $0xa9] sm:$0xff]  ;;  %7223 = vst [vmem:[#allocation13_spill] sm:$0xff] %v6293_v32  ;;  %v6296_v33 = vld [vmem:[%s6154_s25 + $0xb1] sm:$0xff] }
  0x1e   : > { %5588 = vmatmul.mubr.msk.f32.gmra.mrb[4].mxu0 %vm268_vm0, %v6216_v17  ;;  %5390 = vmatprep.mubr.msk.f32.mxu1 %vm268_vm0, %v6219_v18  ;;  %7224 = vst [vmem:[#allocation14_spill] sm:$0xff] %v6299_v34  ;;  %v6302_v35 = vld [vmem:[%s6154_s25 + $0xc1] sm:$0xff]  ;;  %v6313_v36 = vld [vmem:[%s6154_s25 + $0xb0] sm:$0xff]  ;;  %v6339_v42 = vld [vmem:[%s6154_s25 + $0xd8] sm:$0xff] }
  0x1f   : > { %5590 = vmatprep.mubr.msk.f32.mxu0 %vm268_vm0, %v6222_v19  ;;  %7225 = vst [vmem:[#allocation15_spill] sm:$0xff] %v6313_v36  ;;  %v6316_v37 = vld [vmem:[%s6154_s25 + $0xc9] sm:$0xff]  ;;  %v6319_v38 = vld [vmem:[%s6154_s25 + $0xc0] sm:$0xff]  ;;  %v6342_v43 = vld [vmem:[%s6154_s25 + $0x32] sm:$0xff] }
  0x20   : > { %v6322_v39 = vld [vmem:[%s6154_s25 + $0x1a] sm:$0xff]  ;;  %v6333_v40 = vld [vmem:[%s6154_s25 + $0xc8] sm:$0xff]  ;;  %v6365_v47 = vld [vmem:[%s6154_s25 + $0xf0] sm:$0xff] }
  0x21   : > { %5391 = vmatmul.mubr.msk.f32.gmra.mrb[6].mxu1 %vm268_vm0, %v6233_v20  ;;  %7226 = vst [vmem:[#allocation16_spill] sm:$0xff] %v6333_v40  ;;  %v6336_v41 = vld [vmem:[%s6154_s25 + $0x22] sm:$0xff]  ;;  %v6360_v46 = vld [vmem:[%s6154_s25 + $0x3a] sm:$0xff]  ;;  %v6368_v48 = vld [vmem:[%s6154_s25 + $0x4a] sm:$0xff] }
  0x22   : > { %5591 = vmatmul.mubr.msk.f32.gmra.mrb[6].mxu0 %vm268_vm0, %v6236_v21  ;;  %5393 = vmatprep.mubr.msk.f32.mxu1 %vm268_vm0, %v6239_v22  ;;  %v6357_v45 = vld [vmem:[%s6154_s25 + $0xe0] sm:$0xff]  ;;  %v6380_v49 = vld [vmem:[%s6154_s25 + $0xf8] sm:$0xff]  ;;  %v6386_v51 = vld [vmem:[%s6154_s25 + $0x108] sm:$0xff] }
  0x23   : > { %5593 = vmatprep.mubr.msk.f32.mxu0 %vm268_vm0, %v6242_v23  ;;  %v6383_v50 = vld [vmem:[%s6154_s25 + $0x52] sm:$0xff]  ;;  %v6389_v52 = vld [vmem:[%s6154_s25 + $0x62] sm:$0xff]  ;;  %v6403_v54 = vld [vmem:[%s6154_s25 + $0x6a] sm:$0xff] }
  0x24   : > { %v6400_v53 = vld [vmem:[%s6154_s25 + $0x110] sm:$0xff]  ;;  %v6406_v55 = vld [vmem:[%s6154_s25 + $0x120] sm:$0xff]  ;;  %v6420_v57 = vld [vmem:[%s6154_s25 + $0x128] sm:$0xff] }
  0x25   : > { %5394 = vmatmul.mubr.msk.f32.gmra.mrb[8].mxu1 %vm268_vm0, %v6253_v24  ;;  %v6409_v56 = vld [vmem:[%s6154_s25 + $0x7a] sm:$0xff]  ;;  %v6423_v58 = vld [vmem:[%s6154_s25 + $0x82] sm:$0xff]  ;;  %v6429_v60 = vld [vmem:[%s6154_s25 + $0x92] sm:$0xff] }
  0x26   : > { %5594 = vmatmul.mubr.msk.f32.gmra.mrb[8].mxu0 %vm268_vm0, %v6256_v25  ;;  %5396 = vmatprep.mubr.msk.f32.mxu1 %vm268_vm0, %v6259_v26  ;;  %v6426_v59 = vld [vmem:[%s6154_s25 + $0x138] sm:$0xff]  ;;  %7227 = vst [vmem:[#allocation17_spill] sm:$0xff] %v6429_v60  ;;  %v6440_v61 = vld [vmem:[%s6154_s25 + $0x140] sm:$0xff]  ;;  %v6446_v63 = vld [vmem:[%s6154_s25 + $0x150] sm:$0xff] }
  0x27   : > { %5596 = vmatprep.mubr.msk.f32.mxu0 %vm268_vm0, %v6262_v27  ;;  %v6443_v62 = vld [vmem:[%s6154_s25 + $0x9a] sm:$0xff]  ;;  %v6449_v0 = vld [vmem:[%s6154_s25 + $0xaa] sm:$0xff]  ;;  %v6463_v3 = vld [vmem:[%s6154_s25 + $0xb2] sm:$0xff] }
  0x28   : > { %7228 = vst [vmem:[#allocation18_spill] sm:$0xff] %v6443_v62  ;;  %7229 = vst [vmem:[#allocation19_spill] sm:$0xff] %v6449_v0  ;;  %v6460_v2 = vld [vmem:[%s6154_s25 + $0x158] sm:$0xff]  ;;  %v6466_v4 = vld [vmem:[%s6154_s25 + $0x168] sm:$0xff] }
  0x29   : > { %5397 = vmatmul.mubr.msk.f32.gmra.mrb[10].mxu1 %vm268_vm0, %v6273_v28  ;;  %7230 = vst [vmem:[#allocation20_spill] sm:$0xff] %v6460_v2  ;;  %7231 = vst [vmem:[#allocation21_spill] sm:$0xff] %v6463_v3  ;;  %v6469_v6 = vld [vmem:[%s6154_s25 + $0xc2] sm:$0xff]  ;;  %v6483_v12 = vld [vmem:[%s6154_s25 + $0xca] sm:$0xff] }
  0x2a   : > { %5597 = vmatmul.mubr.msk.f32.gmra.mrb[10].mxu0 %vm268_vm0, %v6276_v29  ;;  %5399 = vmatprep.mubr.msk.f32.mxu1 %vm268_vm0, %v6279_v30  ;;  %7232 = vst [vmem:[#allocation22_spill] sm:$0xff] %v6466_v4  ;;  %7233 = vst [vmem:[#allocation23_spill] sm:$0xff] %v6469_v6  ;;  %v654_v8 = vld [vmem:[%s6154_s25 + $0x1] sm:$0xff] }
  0x2b   : > { %5599 = vmatprep.mubr.msk.f32.mxu0 %vm268_vm0, %v6282_v31 }
  0x2d   : > { %5400 = vmatmul.mubr.msk.f32.gmra.mrb[12].mxu1 %vm268_vm0, %v6293_v32 }
  0x2e   : > { %5600 = vmatmul.mubr.msk.f32.gmra.mrb[12].mxu0 %vm268_vm0, %v6296_v33  ;;  %5402 = vmatprep.mubr.msk.f32.mxu1 %vm268_vm0, %v6299_v34 }
  0x2f   : > { %5602 = vmatprep.mubr.msk.f32.mxu0 %vm268_vm0, %v6302_v35 }
  0x31   : > { %5403 = vmatmul.mubr.msk.f32.gmra.mrb[14].mxu1 %vm268_vm0, %v6313_v36 }
  0x32   : > { %5603 = vmatmul.mubr.msk.f32.gmra.mrb[14].mxu0 %vm268_vm0, %v6316_v37  ;;  %5405 = vmatprep.mubr.msk.f32.mxu1 %vm268_vm0, %v6319_v38 }
  0x33   : > { %5631 = vmatprep.mubr.msk.f32.mxu0 %vm268_vm0, %v6322_v39 }
  0x35   : > { %5406 = vmatmul.mubr.msk.f32.gmra.mrb[16].mxu1 %vm268_vm0, %v6333_v40 }
  0x36   : > { %5632 = vmatmul.mubr.msk.f32.vlgmr.msra.gmra.mrb[0].mxu0 %vm268_vm0, %v6336_v41  ;;  %5408 = vmatprep.mubr.msk.f32.mxu1 %vm268_vm0, %v6339_v42 }
  0x37   : > { %5680 = vmatpush3.msra.mxu0 %v6179_v10  ;;  %5634 = vmatprep.mubr.msk.f32.mxu0 %vm268_vm0, %v6342_v43  ;;  %v6480_v10 = vld [vmem:[%s6154_s25 + $0x170] sm:$0xff] }
  0x38   : > { %5729 = vmatprep.subr.mxu0 %v6347_v44  ;;  %7234 = vst [vmem:[#allocation24_spill] sm:$0xff] %v6480_v10 }
  0x39   : > { %5409 = vmatmul.mubr.msk.f32.gmra.mrb[18].mxu1 %vm268_vm0, %v6357_v45 }
  0x3a   : > { %5635 = vmatmul.mubr.msk.f32.gmra.mrb[2].mxu0 %vm268_vm0, %v6360_v46  ;;  %5411 = vmatprep.mubr.msk.f32.mxu1 %vm268_vm0, %v6365_v47 }
  0x3b   : > { %5637 = vmatprep.mubr.msk.f32.mxu0 %vm268_vm0, %v6368_v48 }
  0x3d   : > { %5412 = vmatmul.mubr.msk.f32.gmra.mrb[20].mxu1 %vm268_vm0, %v6380_v49 }
  0x3e   : > { %5638 = vmatmul.mubr.msk.f32.gmra.mrb[4].mxu0 %vm268_vm0, %v6383_v50  ;;  %5414 = vmatprep.mubr.msk.f32.mxu1 %vm268_vm0, %v6386_v51 }
  0x3f   : > { %5640 = vmatprep.mubr.msk.f32.mxu0 %vm268_vm0, %v6389_v52 }
  0x41   : > { %5415 = vmatmul.mubr.msk.f32.gmra.mrb[22].mxu1 %vm268_vm0, %v6400_v53 }
  0x42   : > { %5641 = vmatmul.mubr.msk.f32.gmra.mrb[6].mxu0 %vm268_vm0, %v6403_v54  ;;  %5417 = vmatprep.mubr.msk.f32.mxu1 %vm268_vm0, %v6406_v55 }
  0x43   : > { %5643 = vmatprep.mubr.msk.f32.mxu0 %vm268_vm0, %v6409_v56 }
  0x45   : > { %5418 = vmatmul.mubr.msk.f32.gmra.mrb[24].mxu1 %vm268_vm0, %v6420_v57 }
  0x46   : > { %5644 = vmatmul.mubr.msk.f32.gmra.mrb[8].mxu0 %vm268_vm0, %v6423_v58  ;;  %5420 = vmatprep.mubr.msk.f32.mxu1 %vm268_vm0, %v6426_v59 }
  0x47   : > { %5646 = vmatprep.mubr.msk.f32.mxu0 %vm268_vm0, %v6429_v60  ;;  %v6506_v60 = vld [vmem:[%s7160_s1 + $0x18] sm:$0xff] }
  0x49   : > { %5421 = vmatmul.mubr.msk.f32.gmra.mrb[26].mxu1 %vm268_vm0, %v6440_v61 }
  0x4a   : > { %5647 = vmatmul.mubr.msk.f32.gmra.mrb[10].mxu0 %vm268_vm0, %v6443_v62  ;;  %5423 = vmatprep.mubr.msk.f32.mxu1 %vm268_vm0, %v6446_v63  ;;  %v6501_v62 = vld [vmem:[%s6154_s25 + $0xf2] sm:$0xff] }
  0x4b   : > { %5649 = vmatprep.mubr.msk.f32.mxu0 %vm268_vm0, %v6449_v0  ;;  %v6487_v0 = vld [vmem:[%s6154_s25 + $0xda] sm:$0xff] }
  0x4c   : > { %7235 = vst [vmem:[#allocation25_spill] sm:$0xff] %v6487_v0 }
  0x4d   : > { %5424 = vmatmul.mubr.msk.f32.gmra.mrb[28].mxu1 %vm268_vm0, %v6460_v2 }
  0x4e   : > { %5650 = vmatmul.mubr.msk.f32.gmra.mrb[12].mxu0 %vm268_vm0, %v6463_v3  ;;  %5426 = vmatprep.mubr.msk.f32.mxu1 %vm268_vm0, %v6466_v4  ;;  %v6498_v3 = vld [vmem:[%s6154_s25 + $0xe2] sm:$0xff] }
  0x4f   : > { %5652 = vmatprep.mubr.msk.f32.mxu0 %vm268_vm0, %v6469_v6  ;;  %v655_v6 = vld [vmem:[%s6154_s25 + $0x9] sm:$0xff] }
  0x51   : > { %5427 = vmatmul.mubr.msk.f32.gmra.mrb[30].mxu1 %vm268_vm0, %v6480_v10 }
  0x52   : > { %5653 = vmatmul.mubr.msk.f32.gmra.mrb[14].mxu0 %vm268_vm0, %v6483_v12  ;;  %5431 = vmatprep.mubr.msk.f32.mxu1 %vm268_vm0, %v654_v8  ;;  %v6515_v8 = vld [vmem:[%s6154_s25 + $0xfa] sm:$0xff] }
  0x53   : > { %5655 = vmatprep.mubr.msk.f32.mxu0 %vm268_vm0, %v6487_v0  ;;  %v6520_v0 = vld [vmem:[%s6154_s25 + $0x10a] sm:$0xff] }
  0x55   : > { %5432 = vmatmul.mubr.msk.f32.vlgmr.msra.gmra.mrb[0].mxu1 %vm268_vm0, %v655_v6  ;;  %v6549_v6 = vld [vmem:[%s6154_s25 + $0x13a] sm:$0xff] }
  0x56   : > { %5656 = vmatmul.mubr.msk.f32.gmra.mrb[16].mxu0 %vm268_vm0, %v6498_v3  ;;  %5480 = vmatpush3.msra.mxu1 %v6184_v11  ;;  %v6535_v11 = vld [vmem:[%s6154_s25 + $0x122] sm:$0xff]  ;;  %7239 = vst [vmem:[#allocation29_spill] sm:$0xff] %v6549_v6 }
  0x57   : > { %5434 = vmatprep.mubr.msk.f32.mxu1 %vm268_vm0, %v6158_v5  ;;  %5658 = vmatprep.mubr.msk.f32.mxu0 %vm268_vm0, %v6501_v62  ;;  %v6532_v5 = vld [vmem:[%s6154_s25 + $0x112] sm:$0xff]  ;;  %7237 = vst [vmem:[#allocation27_spill] sm:$0xff] %v6535_v11 }
  0x58   : > { %5529 = vmatprep.subr.mxu1 %v6506_v60  ;;  %7236 = vst [vmem:[#allocation26_spill] sm:$0xff] %v6532_v5 }
  0x59   : > { %5435 = vmatmul.mubr.msk.f32.gmra.mrb[2].mxu1 %vm268_vm0, %v6165_v7  ;;  %v6546_v7 = vld [vmem:[%s6154_s25 + $0x12a] sm:$0xff] }
  0x5a   : > { %5659 = vmatmul.mubr.msk.f32.gmra.mrb[18].mxu0 %vm268_vm0, %v6515_v8  ;;  %5437 = vmatprep.mubr.msk.f32.mxu1 %vm268_vm0, %v6171_v9  ;;  %7238 = vst [vmem:[#allocation28_spill] sm:$0xff] %v6546_v7 }
  0x5b   : > { %5661 = vmatprep.mubr.msk.f32.mxu0 %vm268_vm0, %v6520_v0 }
  0x5d   : > { %5438 = vmatmul.mubr.msk.f32.gmra.mrb[4].mxu1 %vm268_vm0, %v6190_v13 }
  0x5e   : > { %5662 = vmatmul.mubr.msk.f32.gmra.mrb[20].mxu0 %vm268_vm0, %v6532_v5  ;;  %5440 = vmatprep.mubr.msk.f32.mxu1 %vm268_vm0, %v6200_v15  ;;  %v6560_v5 = vld [vmem:[%s6154_s25 + $0x142] sm:$0xff] }
  0x5f   : > { %5664 = vmatprep.mubr.msk.f32.mxu0 %vm268_vm0, %v6535_v11  ;;  %7240 = vst [vmem:[#allocation30_spill] sm:$0xff] %v6560_v5  ;;  %v6563_v11 = vld [vmem:[%s6154_s25 + $0x152] sm:$0xff] }
  0x60   : > { %7241 = vst [vmem:[#allocation31_spill] sm:$0xff] %v6563_v11 }
  0x61   : > { %5441 = vmatmul.mubr.msk.f32.gmra.mrb[6].mxu1 %vm268_vm0, %v6216_v17 }
  0x62   : > { %5665 = vmatmul.mubr.msk.f32.gmra.mrb[22].mxu0 %vm268_vm0, %v6546_v7  ;;  %5443 = vmatprep.mubr.msk.f32.mxu1 %vm268_vm0, %v6222_v19  ;;  %v6574_v7 = vld [vmem:[%s6154_s25 + $0x15a] sm:$0xff] }
  0x63   : > { %5667 = vmatprep.mubr.msk.f32.mxu0 %vm268_vm0, %v6549_v6  ;;  %7242 = vst [vmem:[#allocation32_spill] sm:$0xff] %v6574_v7  ;;  %v6577_v6 = vld [vmem:[%s6154_s25 + $0x16a] sm:$0xff] }
  0x65   : > { %5444 = vmatmul.mubr.msk.f32.gmra.mrb[8].mxu1 %vm268_vm0, %v6236_v21 }
  0x66   : > { %5668 = vmatmul.mubr.msk.f32.gmra.mrb[24].mxu0 %vm268_vm0, %v6560_v5  ;;  %5446 = vmatprep.mubr.msk.f32.mxu1 %vm268_vm0, %v6242_v23  ;;  %v6588_v5 = vld [vmem:[%s6154_s25 + $0x172] sm:$0xff] }
  0x67   : > { %5670 = vmatprep.mubr.msk.f32.mxu0 %vm268_vm0, %v6563_v11  ;;  %7243 = vst [vmem:[#allocation33_spill] sm:$0xff] %v6588_v5  ;;  %v6591_v11 = vld [vmem:[%s6154_s25 + $0x182] sm:$0xff] }
  0x68   : > { %7244 = vst [vmem:[#allocation34_spill] sm:$0xff] %v6591_v11 }
  0x69   : > { %5447 = vmatmul.mubr.msk.f32.gmra.mrb[10].mxu1 %vm268_vm0, %v6256_v25 }
  0x6a   : > { %5671 = vmatmul.mubr.msk.f32.gmra.mrb[26].mxu0 %vm268_vm0, %v6574_v7  ;;  %5449 = vmatprep.mubr.msk.f32.mxu1 %vm268_vm0, %v6262_v27  ;;  %v6602_v7 = vld [vmem:[%s6154_s25 + $0x18a] sm:$0xff] }
  0x6b   : > { %5673 = vmatprep.mubr.msk.f32.mxu0 %vm268_vm0, %v6577_v6  ;;  %7245 = vst [vmem:[#allocation35_spill] sm:$0xff] %v6602_v7 }
  0x6d   : > { %5450 = vmatmul.mubr.msk.f32.gmra.mrb[12].mxu1 %vm268_vm0, %v6276_v29 }
  0x6e   : > { %5674 = vmatmul.mubr.msk.f32.gmra.mrb[28].mxu0 %vm268_vm0, %v6588_v5  ;;  %5452 = vmatprep.mubr.msk.f32.mxu1 %vm268_vm0, %v6282_v31  ;;  %v6613_v5 = vld [vmem:[%s6154_s25 + $0xd9] sm:$0xff] }
  0x6f   : > { %5676 = vmatprep.mubr.msk.f32.mxu0 %vm268_vm0, %v6591_v11  ;;  %v6618_v11 = vld [vmem:[%s7160_s1 + $0x40] sm:$0xff] }
  0x71   : > { %5453 = vmatmul.mubr.msk.f32.gmra.mrb[14].mxu1 %vm268_vm0, %v6296_v33 }
  0x72   : > { %5677 = vmatmul.mubr.msk.f32.gmra.mrb[30].mxu0 %vm268_vm0, %v6602_v7  ;;  %5455 = vmatprep.mubr.msk.f32.mxu1 %vm268_vm0, %v6302_v35  ;;  %v6628_v7 = vld [vmem:[%s6154_s25 + $0xe1] sm:$0xff] }
  0x73   : > { %5681 = vmatprep.mubr.msk.f32.mxu0 %vm268_vm0, %v6197_v14  ;;  %v6633_v14 = vld [vmem:[%s6154_s25 + $0xf1] sm:$0xff] }
  0x75   : > { %5456 = vmatmul.mubr.msk.f32.gmra.mrb[16].mxu1 %vm268_vm0, %v6316_v37 }
  0x76   : > { %5682 = vmatmul.mubr.msk.f32.vlgmr.msra.gmra.mrb[0].mxu0 %vm268_vm0, %v6213_v16  ;;  %5458 = vmatprep.mubr.msk.f32.mxu1 %vm268_vm0, %v6613_v5 }
  0x77   : > { %5730 = vmatpush3.msra.mxu0 %v6347_v44  ;;  %5684 = vmatprep.mubr.msk.f32.mxu0 %vm268_vm0, %v6219_v18  ;;  %v6645_v44 = vld [vmem:[%s6154_s25 + $0xf9] sm:$0xff]  ;;  %v6648_v18 = vld [vmem:[%s6154_s25 + $0x109] sm:$0xff] }
  0x78   : > { %5779 = vmatprep.subr.mxu0 %v6618_v11 }
  0x79   : > { %5459 = vmatmul.mubr.msk.f32.gmra.mrb[18].mxu1 %vm268_vm0, %v6628_v7 }
  0x7a   : > { %5685 = vmatmul.mubr.msk.f32.gmra.mrb[2].mxu0 %vm268_vm0, %v6233_v20  ;;  %5461 = vmatprep.mubr.msk.f32.mxu1 %vm268_vm0, %v6633_v14  ;;  %v6659_v20 = vld [vmem:[%s6154_s25 + $0x111] sm:$0xff] }
  0x7b   : > { %5687 = vmatprep.mubr.msk.f32.mxu0 %vm268_vm0, %v6239_v22  ;;  %v6662_v22 = vld [vmem:[%s6154_s25 + $0x121] sm:$0xff] }
  0x7d   : > { %5462 = vmatmul.mubr.msk.f32.gmra.mrb[20].mxu1 %vm268_vm0, %v6645_v44 }
  0x7e   : > { %5688 = vmatmul.mubr.msk.f32.gmra.mrb[4].mxu0 %vm268_vm0, %v6253_v24  ;;  %5464 = vmatprep.mubr.msk.f32.mxu1 %vm268_vm0, %v6648_v18  ;;  %v6673_v24 = vld [vmem:[%s6154_s25 + $0x129] sm:$0xff] }
  0x7f   : > { %5690 = vmatprep.mubr.msk.f32.mxu0 %vm268_vm0, %v6259_v26  ;;  %v6676_v26 = vld [vmem:[%s6154_s25 + $0x139] sm:$0xff] }
  0x81   : > { %5465 = vmatmul.mubr.msk.f32.gmra.mrb[22].mxu1 %vm268_vm0, %v6659_v20 }
  0x82   : > { %5691 = vmatmul.mubr.msk.f32.gmra.mrb[6].mxu0 %vm268_vm0, %v6273_v28  ;;  %5467 = vmatprep.mubr.msk.f32.mxu1 %vm268_vm0, %v6662_v22  ;;  %v6687_v28 = vld [vmem:[%s6154_s25 + $0x141] sm:$0xff] }
  0x83   : > { %5693 = vmatprep.mubr.msk.f32.mxu0 %vm268_vm0, %v6279_v30  ;;  %v6690_v30 = vld [vmem:[%s6154_s25 + $0x151] sm:$0xff] }
  0x84   : > { %7246 = vst [vmem:[#allocation36_spill] sm:$0xff] %v6690_v30 }
  0x85   : > { %5468 = vmatmul.mubr.msk.f32.gmra.mrb[24].mxu1 %vm268_vm0, %v6673_v24 }
  0x86   : > { %5694 = vmatmul.mubr.msk.f32.gmra.mrb[8].mxu0 %vm268_vm0, %v6293_v32  ;;  %5470 = vmatprep.mubr.msk.f32.mxu1 %vm268_vm0, %v6676_v26  ;;  %v6701_v32 = vld [vmem:[%s6154_s25 + $0x159] sm:$0xff] }
  0x87   : > { %5696 = vmatprep.mubr.msk.f32.mxu0 %vm268_vm0, %v6299_v34  ;;  %v6704_v34 = vld [vmem:[%s6154_s25 + $0x169] sm:$0xff] }
  0x89   : > { %5471 = vmatmul.mubr.msk.f32.gmra.mrb[26].mxu1 %vm268_vm0, %v6687_v28 }
  0x8a   : > { %5697 = vmatmul.mubr.msk.f32.gmra.mrb[10].mxu0 %vm268_vm0, %v6313_v36  ;;  %5473 = vmatprep.mubr.msk.f32.mxu1 %vm268_vm0, %v6690_v30  ;;  %v6715_v36 = vld [vmem:[%s6154_s25 + $0x171] sm:$0xff]  ;;  %v1105_v30 = vld [vmem:[%s6154_s25 + $0x2] sm:$0xff] }
  0x8b   : > { %5699 = vmatprep.mubr.msk.f32.mxu0 %vm268_vm0, %v6319_v38 }
  0x8d   : > { %5474 = vmatmul.mubr.msk.f32.gmra.mrb[28].mxu1 %vm268_vm0, %v6701_v32 }
  0x8e   : > { %5700 = vmatmul.mubr.msk.f32.gmra.mrb[12].mxu0 %vm268_vm0, %v6333_v40  ;;  %5476 = vmatprep.mubr.msk.f32.mxu1 %vm268_vm0, %v6704_v34  ;;  %v1106_v40 = vld [vmem:[%s6154_s25 + $0xa] sm:$0xff] }
  0x8f   : > { %5702 = vmatprep.mubr.msk.f32.mxu0 %vm268_vm0, %v6339_v42 }
  0x91   : > { %5477 = vmatmul.mubr.msk.f32.gmra.mrb[30].mxu1 %vm268_vm0, %v6715_v36 }
  0x92   : > { %5703 = vmatmul.mubr.msk.f32.gmra.mrb[14].mxu0 %vm268_vm0, %v6357_v45  ;;  %5481 = vmatprep.mubr.msk.f32.mxu1 %vm268_vm0, %v1105_v30  ;;  %v6768_v30 = vld [vmem:[%s6154_s25 + $0x180] sm:$0xff] }
  0x93   : > { %5705 = vmatprep.mubr.msk.f32.mxu0 %vm268_vm0, %v6365_v47  ;;  %7247 = vst [vmem:[#allocation37_spill] sm:$0xff] %v6768_v30 }
  0x95   : > { %5482 = vmatmul.mubr.msk.f32.vlgmr.msra.gmra.mrb[0].mxu1 %vm268_vm0, %v1106_v40  ;;  %v6779_v40 = vld [vmem:[%s6154_s25 + $0x188] sm:$0xff] }
  0x96   : > { %5706 = vmatmul.mubr.msk.f32.gmra.mrb[16].mxu0 %vm268_vm0, %v6380_v49  ;;  %5530 = vmatpush3.msra.mxu1 %v6506_v60  ;;  %v7249_v60 = vld [vmem:[#allocation18_spill] sm:$0xff] }
  0x97   : > { %5484 = vmatprep.mubr.msk.f32.mxu1 %vm268_vm0, %v6322_v39  ;;  %5708 = vmatprep.mubr.msk.f32.mxu0 %vm268_vm0, %v6386_v51  ;;  %v7248_v39 = vld [vmem:[#allocation17_spill] sm:$0xff] }
  0x98   : > { %5829 = vmatprep.subr.mxu1 %v6138_v1 }
  0x99   : > { %5485 = vmatmul.mubr.msk.f32.gmra.mrb[2].mxu1 %vm268_vm0, %v6336_v41  ;;  %v4913_v41 = vld [vmem:[%s6154_s25 + $0x198] sm:$0xff] }
  0x9a   : > { %5709 = vmatmul.mubr.msk.f32.gmra.mrb[18].mxu0 %vm268_vm0, %v6400_v53  ;;  %5487 = vmatprep.mubr.msk.f32.mxu1 %vm268_vm0, %v6342_v43 }
  0x9b   : > { %5711 = vmatprep.mubr.msk.f32.mxu0 %vm268_vm0, %v6406_v55 }
  0x9d   : > { %5488 = vmatmul.mubr.msk.f32.gmra.mrb[4].mxu1 %vm268_vm0, %v6360_v46 }
  0x9e   : > { %5712 = vmatmul.mubr.msk.f32.gmra.mrb[20].mxu0 %vm268_vm0, %v6420_v57  ;;  %5490 = vmatprep.mubr.msk.f32.mxu1 %vm268_vm0, %v6368_v48 }
  0x9f   : > { %5714 = vmatprep.mubr.msk.f32.mxu0 %vm268_vm0, %v6426_v59 }
  0xa1   : > { %5491 = vmatmul.mubr.msk.f32.gmra.mrb[6].mxu1 %vm268_vm0, %v6383_v50 }
  0xa2   : > { %5715 = vmatmul.mubr.msk.f32.gmra.mrb[22].mxu0 %vm268_vm0, %v6440_v61  ;;  %5493 = vmatprep.mubr.msk.f32.mxu1 %vm268_vm0, %v6389_v52 }
  0xa3   : > { %5717 = vmatprep.mubr.msk.f32.mxu0 %vm268_vm0, %v6446_v63 }
  0xa5   : > { %5494 = vmatmul.mubr.msk.f32.gmra.mrb[8].mxu1 %vm268_vm0, %v6403_v54 }
  0xa6   : > { %5718 = vmatmul.mubr.msk.f32.gmra.mrb[24].mxu0 %vm268_vm0, %v6460_v2  ;;  %5496 = vmatprep.mubr.msk.f32.mxu1 %vm268_vm0, %v6409_v56  ;;  %v7251_v2 = vld [vmem:[#allocation21_spill] sm:$0xff] }
  0xa7   : > { %5720 = vmatprep.mubr.msk.f32.mxu0 %vm268_vm0, %v6466_v4  ;;  %v7250_v4 = vld [vmem:[#allocation19_spill] sm:$0xff] }
  0xa9   : > { %5497 = vmatmul.mubr.msk.f32.gmra.mrb[10].mxu1 %vm268_vm0, %v6423_v58 }
  0xaa   : > { %5721 = vmatmul.mubr.msk.f32.gmra.mrb[26].mxu0 %vm268_vm0, %v6480_v10  ;;  %5499 = vmatprep.mubr.msk.f32.mxu1 %vm268_vm0, %v7248_v39  ;;  %v4914_v10 = vld [vmem:[%s6154_s25 + $0x1a0] sm:$0xff] }
  0xab   : > { %5723 = vmatprep.mubr.msk.f32.mxu0 %vm268_vm0, %v6768_v30  ;;  %v7252_v30 = vld [vmem:[#allocation23_spill] sm:$0xff] }
  0xad   : > { %5500 = vmatmul.mubr.msk.f32.gmra.mrb[12].mxu1 %vm268_vm0, %v7249_v60 }
  0xae   : > { %5724 = vmatmul.mubr.msk.f32.gmra.mrb[28].mxu0 %vm268_vm0, %v6779_v40  ;;  %5502 = vmatprep.mubr.msk.f32.mxu1 %vm268_vm0, %v7250_v4 }
  0xaf   : > { %5726 = vmatprep.mubr.msk.f32.mxu0 %vm268_vm0, %v4913_v41  ;;  %v7253_v41 = vld [vmem:[#allocation25_spill] sm:$0xff] }
  0xb1   : > { %5503 = vmatmul.mubr.msk.f32.gmra.mrb[14].mxu1 %vm268_vm0, %v7251_v2 }
  0xb2   : > { %5727 = vmatmul.mubr.msk.f32.gmra.mrb[30].mxu0 %vm268_vm0, %v4914_v10  ;;  %5505 = vmatprep.mubr.msk.f32.mxu1 %vm268_vm0, %v7252_v30  ;;  %v7270_v10 = vld [vmem:[#allocation36_spill] sm:$0xff] }
  0xb3   : > { %5731 = vmatprep.mubr.msk.f32.mxu0 %vm268_vm0, %v6171_v9  ;;  %v7254_v9 = vld [vmem:[#allocation26_spill] sm:$0xff] }
  0xb5   : > { %5506 = vmatmul.mubr.msk.f32.gmra.mrb[16].mxu1 %vm268_vm0, %v6483_v12 }
  0xb6   : > { %5732 = vmatmul.mubr.msk.f32.vlgmr.msra.gmra.mrb[0].mxu0 %vm268_vm0, %v6190_v13  ;;  %5508 = vmatprep.mubr.msk.f32.mxu1 %vm268_vm0, %v7253_v41  ;;  %v7255_v13 = vld [vmem:[#allocation27_spill] sm:$0xff] }
  0xb7   : > { %5780 = vmatpush3.msra.mxu0 %v6618_v11  ;;  %5734 = vmatprep.mubr.msk.f32.mxu0 %vm268_vm0, %v6200_v15  ;;  %v7256_v15 = vld [vmem:[#allocation28_spill] sm:$0xff]  ;;  %v7271_v11 = vld [vmem:[#allocation11_spill] sm:$0xff] }
  0xb9   : > { %5509 = vmatmul.mubr.msk.f32.gmra.mrb[18].mxu1 %vm268_vm0, %v6498_v3 }
  0xba   : > { %5735 = vmatmul.mubr.msk.f32.gmra.mrb[2].mxu0 %vm268_vm0, %v6216_v17  ;;  %5511 = vmatprep.mubr.msk.f32.mxu1 %vm268_vm0, %v6501_v62  ;;  %v7257_v17 = vld [vmem:[#allocation29_spill] sm:$0xff] }
  0xbb   : > { %5737 = vmatprep.mubr.msk.f32.mxu0 %vm268_vm0, %v6222_v19  ;;  %v7258_v19 = vld [vmem:[#allocation30_spill] sm:$0xff] }
  0xbd   : > { %5512 = vmatmul.mubr.msk.f32.gmra.mrb[20].mxu1 %vm268_vm0, %v6515_v8 }
  0xbe   : > { %5738 = vmatmul.mubr.msk.f32.gmra.mrb[4].mxu0 %vm268_vm0, %v6236_v21  ;;  %5514 = vmatprep.mubr.msk.f32.mxu1 %vm268_vm0, %v6520_v0  ;;  %v7259_v21 = vld [vmem:[#allocation31_spill] sm:$0xff] }
  0xbf   : > { %5740 = vmatprep.mubr.msk.f32.mxu0 %vm268_vm0, %v6242_v23  ;;  %v7260_v23 = vld [vmem:[#allocation32_spill] sm:$0xff] }
  0xc1   : > { %5515 = vmatmul.mubr.msk.f32.gmra.mrb[22].mxu1 %vm268_vm0, %v7254_v9 }
  0xc2   : > { %5741 = vmatmul.mubr.msk.f32.gmra.mrb[6].mxu0 %vm268_vm0, %v6256_v25  ;;  %5517 = vmatprep.mubr.msk.f32.mxu1 %vm268_vm0, %v7255_v13  ;;  %v7261_v25 = vld [vmem:[#allocation33_spill] sm:$0xff] }
  0xc3   : > { %5743 = vmatprep.mubr.msk.f32.mxu0 %vm268_vm0, %v6262_v27  ;;  %v7262_v27 = vld [vmem:[#allocation3_spill] sm:$0xff] }
  0xc5   : > { %5518 = vmatmul.mubr.msk.f32.gmra.mrb[24].mxu1 %vm268_vm0, %v7256_v15 }
  0xc6   : > { %5744 = vmatmul.mubr.msk.f32.gmra.mrb[8].mxu0 %vm268_vm0, %v6276_v29  ;;  %5520 = vmatprep.mubr.msk.f32.mxu1 %vm268_vm0, %v7257_v17  ;;  %v7263_v29 = vld [vmem:[#allocation4_spill] sm:$0xff] }
  0xc7   : > { %5746 = vmatprep.mubr.msk.f32.mxu0 %vm268_vm0, %v6282_v31  ;;  %v7264_v31 = vld [vmem:[#allocation5_spill] sm:$0xff] }
  0xc9   : > { %5521 = vmatmul.mubr.msk.f32.gmra.mrb[26].mxu1 %vm268_vm0, %v7258_v19 }
  0xca   : > { %5747 = vmatmul.mubr.msk.f32.gmra.mrb[10].mxu0 %vm268_vm0, %v6296_v33  ;;  %5523 = vmatprep.mubr.msk.f32.mxu1 %vm268_vm0, %v7259_v21  ;;  %v7265_v33 = vld [vmem:[#allocation6_spill] sm:$0xff] }
  0xcb   : > { %5749 = vmatprep.mubr.msk.f32.mxu0 %vm268_vm0, %v6302_v35  ;;  %v7267_v35 = vld [vmem:[#allocation8_spill] sm:$0xff] }
  0xcd   : > { %5524 = vmatmul.mubr.msk.f32.gmra.mrb[28].mxu1 %vm268_vm0, %v7260_v23 }
  0xce   : > { %5750 = vmatmul.mubr.msk.f32.gmra.mrb[12].mxu0 %vm268_vm0, %v6316_v37  ;;  %5526 = vmatprep.mubr.msk.f32.mxu1 %vm268_vm0, %v6577_v6  ;;  %v7269_v37 = vld [vmem:[#allocation10_spill] sm:$0xff] }
  0xcf   : > { %5752 = vmatprep.mubr.msk.f32.mxu0 %vm268_vm0, %v6613_v5 }
  0xd1   : > { %5527 = vmatmul.mubr.msk.f32.gmra.mrb[30].mxu1 %vm268_vm0, %v7261_v25 }
  0xd2   : > { %5753 = vmatmul.mubr.msk.f32.gmra.mrb[14].mxu0 %vm268_vm0, %v6628_v7  ;;  %5531 = vmatprep.mubr.msk.f32.mxu1 %vm268_vm0, %v7262_v27  ;;  %v7272_v27 = vld [vmem:[#allocation12_spill] sm:$0xff] }
  0xd3   : > { %5755 = vmatprep.mubr.msk.f32.mxu0 %vm268_vm0, %v6633_v14 }
  0xd5   : > { %5532 = vmatmul.mubr.msk.f32.vlgmr.msra.gmra.mrb[0].mxu1 %vm268_vm0, %v7263_v29  ;;  %v6904_v29 = vld [vmem:[%s6154_s25 + $0x181] sm:$0xff] }
  0xd6   : > { %5756 = vmatmul.mubr.msk.f32.gmra.mrb[16].mxu0 %vm268_vm0, %v6645_v44  ;;  %5830 = vmatpush3.msra.mxu1 %v6138_v1  ;;  %v7266_v1 = vld [vmem:[#allocation7_spill] sm:$0xff] }
  0xd7   : > { %5534 = vmatprep.mubr.msk.f32.mxu1 %vm268_vm0, %v7264_v31  ;;  %5758 = vmatprep.mubr.msk.f32.mxu0 %vm268_vm0, %v6648_v18  ;;  %v7273_v31 = vld [vmem:[#allocation13_spill] sm:$0xff] }
  0xd9   : > { %5535 = vmatmul.mubr.msk.f32.gmra.mrb[2].mxu1 %vm268_vm0, %v6213_v16  ;;  %v7268_v16 = vld [vmem:[#allocation9_spill] sm:$0xff] }
  0xda   : > { %5759 = vmatmul.mubr.msk.f32.gmra.mrb[18].mxu0 %vm268_vm0, %v6659_v20  ;;  %5537 = vmatprep.mubr.msk.f32.mxu1 %vm268_vm0, %v7265_v33  ;;  %v7274_v33 = vld [vmem:[#allocation14_spill] sm:$0xff] }
  0xdb   : > { %5761 = vmatprep.mubr.msk.f32.mxu0 %vm268_vm0, %v6662_v22 }
  0xdd   : > { %5538 = vmatmul.mubr.msk.f32.gmra.mrb[4].mxu1 %vm268_vm0, %v7266_v1  ;;  %v6915_v1 = vld [vmem:[%s6154_s25 + $0x189] sm:$0xff] }
  0xde   : > { %5762 = vmatmul.mubr.msk.f32.gmra.mrb[20].mxu0 %vm268_vm0, %v6673_v24  ;;  %5540 = vmatprep.mubr.msk.f32.mxu1 %vm268_vm0, %v7267_v35  ;;  %v4978_v35 = vld [vmem:[%s6154_s25 + $0x199] sm:$0xff] }
  0xdf   : > { %5764 = vmatprep.mubr.msk.f32.mxu0 %vm268_vm0, %v6676_v26 }
  0xe1   : > { %5541 = vmatmul.mubr.msk.f32.gmra.mrb[6].mxu1 %vm268_vm0, %v7268_v16  ;;  %v7275_v16 = vld [vmem:[#allocation15_spill] sm:$0xff] }
  0xe2   : > { %5765 = vmatmul.mubr.msk.f32.gmra.mrb[22].mxu0 %vm268_vm0, %v6687_v28  ;;  %5543 = vmatprep.mubr.msk.f32.mxu1 %vm268_vm0, %v7269_v37  ;;  %v4979_v37 = vld [vmem:[%s6154_s25 + $0x1a1] sm:$0xff] }
  0xe3   : > { %5767 = vmatprep.mubr.msk.f32.mxu0 %vm268_vm0, %v7270_v10 }
  0xe5   : > { %5544 = vmatmul.mubr.msk.f32.gmra.mrb[8].mxu1 %vm268_vm0, %v7271_v11  ;;  %v7276_v11 = vld [vmem:[#allocation16_spill] sm:$0xff] }
  0xe6   : > { %5768 = vmatmul.mubr.msk.f32.gmra.mrb[24].mxu0 %vm268_vm0, %v6701_v32  ;;  %5546 = vmatprep.mubr.msk.f32.mxu1 %vm268_vm0, %v7272_v27 }
  0xe7   : > { %5770 = vmatprep.mubr.msk.f32.mxu0 %vm268_vm0, %v6704_v34 }
  0xe9   : > { %5547 = vmatmul.mubr.msk.f32.gmra.mrb[10].mxu1 %vm268_vm0, %v7273_v31 }
  0xea   : > { %5771 = vmatmul.mubr.msk.f32.gmra.mrb[26].mxu0 %vm268_vm0, %v6715_v36  ;;  %5549 = vmatprep.mubr.msk.f32.mxu1 %vm268_vm0, %v7274_v33 }
  0xeb   : > { %5773 = vmatprep.mubr.msk.f32.mxu0 %vm268_vm0, %v6904_v29 }
  0xed   : > { %5550 = vmatmul.mubr.msk.f32.gmra.mrb[12].mxu1 %vm268_vm0, %v7275_v16 }
  0xee   : > { %5774 = vmatmul.mubr.msk.f32.gmra.mrb[28].mxu0 %vm268_vm0, %v6915_v1  ;;  %5552 = vmatprep.mubr.msk.f32.mxu1 %vm268_vm0, %v6319_v38  ;;  %v7277_v38 = vld [vmem:[#allocation20_spill] sm:$0xff] }
  0xef   : > { %5776 = vmatprep.mubr.msk.f32.mxu0 %vm268_vm0, %v4978_v35 }
  0xf1   : > { %5553 = vmatmul.mubr.msk.f32.gmra.mrb[14].mxu1 %vm268_vm0, %v7276_v11 }
  0xf2   : > { %5777 = vmatmul.mubr.msk.f32.gmra.mrb[30].mxu0 %vm268_vm0, %v4979_v37  ;;  %5555 = vmatprep.mubr.msk.f32.mxu1 %vm268_vm0, %v6339_v42  ;;  %v7278_v42 = vld [vmem:[#allocation22_spill] sm:$0xff] }
  0xf3   : > { %5781 = vmatprep.mubr.msk.f32.mxu0 %vm268_vm0, %v6342_v43  ;;  %v7279_v43 = vld [vmem:[#allocation24_spill] sm:$0xff] }
  0xf5   : > { %5556 = vmatmul.mubr.msk.f32.gmra.mrb[16].mxu1 %vm268_vm0, %v6357_v45  ;;  %v7280_v45 = vld [vmem:[#allocation37_spill] sm:$0xff] }
  0xf6   : > { %5782 = vmatmul.mubr.msk.f32.vlgmr.msra.gmra.mrb[0].mxu0 %vm268_vm0, %v6360_v46  ;;  %5558 = vmatprep.mubr.msk.f32.mxu1 %vm268_vm0, %v6365_v47 }
  0xf7   : > { %5784 = vmatprep.mubr.msk.f32.mxu0 %vm268_vm0, %v6368_v48 }
  0xf9   : > { %5559 = vmatmul.mubr.msk.f32.gmra.mrb[18].mxu1 %vm268_vm0, %v6380_v49 }
  0xfa   : > { %5785 = vmatmul.mubr.msk.f32.gmra.mrb[2].mxu0 %vm268_vm0, %v6383_v50  ;;  %5561 = vmatprep.mubr.msk.f32.mxu1 %vm268_vm0, %v6386_v51 }
  0xfb   : > { %5787 = vmatprep.mubr.msk.f32.mxu0 %vm268_vm0, %v6389_v52 }
  0xfd   : > { %5562 = vmatmul.mubr.msk.f32.gmra.mrb[20].mxu1 %vm268_vm0, %v6400_v53 }
  0xfe   : > { %5788 = vmatmul.mubr.msk.f32.gmra.mrb[4].mxu0 %vm268_vm0, %v6403_v54  ;;  %5564 = vmatprep.mubr.msk.f32.mxu1 %vm268_vm0, %v6406_v55 }
  0xff   : > { %5790 = vmatprep.mubr.msk.f32.mxu0 %vm268_vm0, %v6409_v56  ;;  %v7076_v56 = vld [vmem:[%s7161_s2] ss:$0 sm:$0xff] }
 0x101   : > { %5565 = vmatmul.mubr.msk.f32.gmra.mrb[22].mxu1 %vm268_vm0, %v6420_v57 }
 0x102   : > { %5791 = vmatmul.mubr.msk.f32.gmra.mrb[6].mxu0 %vm268_vm0, %v6423_v58  ;;  %5567 = vmatprep.mubr.msk.f32.mxu1 %vm268_vm0, %v6426_v59 }
 0x103   : > { %5793 = vmatprep.mubr.msk.f32.mxu0 %vm268_vm0, %v7248_v39 }
 0x105   : > { %5568 = vmatmul.mubr.msk.f32.gmra.mrb[24].mxu1 %vm268_vm0, %v6440_v61 }
 0x106   : > { %5794 = vmatmul.mubr.msk.f32.gmra.mrb[8].mxu0 %vm268_vm0, %v7249_v60  ;;  %5570 = vmatprep.mubr.msk.f32.mxu1 %vm268_vm0, %v6446_v63 }
 0x107   : > { %5796 = vmatprep.mubr.msk.f32.mxu0 %vm268_vm0, %v7250_v4 }
 0x109   : > { %5571 = vmatmul.mubr.msk.f32.gmra.mrb[26].mxu1 %vm268_vm0, %v7277_v38 }
 0x10a   : > { %5797 = vmatmul.mubr.msk.f32.gmra.mrb[10].mxu0 %vm268_vm0, %v7251_v2  ;;  %5573 = vmatprep.mubr.msk.f32.mxu1 %vm268_vm0, %v7278_v42 }
 0x10b   : > { %5799 = vmatprep.mubr.msk.f32.mxu0 %vm268_vm0, %v7252_v30 }
 0x10d   : > { %5574 = vmatmul.mubr.msk.f32.gmra.mrb[28].mxu1 %vm268_vm0, %v7279_v43 }
 0x10e   : > { %5800 = vmatmul.mubr.msk.f32.gmra.mrb[12].mxu0 %vm268_vm0, %v6483_v12  ;;  %5576 = vmatprep.mubr.msk.f32.mxu1 %vm268_vm0, %v7280_v45  ;;  %v7281_v12 = vld [vmem:[#allocation34_spill] sm:$0xff] }
 0x10f   : > { %5802 = vmatprep.mubr.msk.f32.mxu0 %vm268_vm0, %v7253_v41 }
 0x111   : > { %5577 = vmatmul.mubr.msk.f32.gmra.mrb[30].mxu1 %vm268_vm0, %v6779_v40 }
 0x112   : > { %5803 = vmatmul.mubr.msk.f32.gmra.mrb[14].mxu0 %vm268_vm0, %v6498_v3  ;;  %5605 = vmatprep.mubr.msk.f32.mxu1 %vm268_vm0, %v6613_v5 }
 0x113   : > { %5805 = vmatprep.mubr.msk.f32.mxu0 %vm268_vm0, %v6501_v62 }
 0x115   : > { %5606 = vmatmul.mubr.msk.f32.vlgmr.msra.gmra.mrb[16].mxu1 %vm268_vm0, %v6628_v7 }
 0x116   : > { %5806 = vmatmul.mubr.msk.f32.gmra.mrb[16].mxu0 %vm268_vm0, %v6515_v8  ;;  %5608 = vmatprep.mubr.msk.f32.mxu1 %vm268_vm0, %v6633_v14  ;;  %v5043_v14 = vld [vmem:[%s6154_s25 + $0x19a] sm:$0xff] }
 0x117   : > { %5808 = vmatprep.mubr.msk.f32.mxu0 %vm268_vm0, %v6520_v0 }
 0x119   : > { %5609 = vmatmul.mubr.msk.f32.gmra.mrb[18].mxu1 %vm268_vm0, %v6645_v44 }
 0x11a   : > { %5809 = vmatmul.mubr.msk.f32.gmra.mrb[18].mxu0 %vm268_vm0, %v7254_v9  ;;  %5611 = vmatprep.mubr.msk.f32.mxu1 %vm268_vm0, %v6648_v18  ;;  %v7282_v18 = vld [vmem:[#allocation35_spill] sm:$0xff] }
 0x11b   : > { %5811 = vmatprep.mubr.msk.f32.mxu0 %vm268_vm0, %v7255_v13 }
 0x11d   : > { %5612 = vmatmul.mubr.msk.f32.gmra.mrb[20].mxu1 %vm268_vm0, %v6659_v20  ;;  %v5044_v20 = vld [vmem:[%s6154_s25 + $0x1a2] sm:$0xff] }
 0x11e   : > { %5812 = vmatmul.mubr.msk.f32.gmra.mrb[20].mxu0 %vm268_vm0, %v7256_v15  ;;  %5614 = vmatprep.mubr.msk.f32.mxu1 %vm268_vm0, %v6662_v22 }
 0x11f   : > { %5814 = vmatprep.mubr.msk.f32.mxu0 %vm268_vm0, %v7257_v17 }
 0x121   : > { %5615 = vmatmul.mubr.msk.f32.gmra.mrb[22].mxu1 %vm268_vm0, %v6673_v24 }
 0x122   : > { %5815 = vmatmul.mubr.msk.f32.gmra.mrb[22].mxu0 %vm268_vm0, %v7258_v19  ;;  %5617 = vmatprep.mubr.msk.f32.mxu1 %vm268_vm0, %v6676_v26 }
 0x123   : > { %5817 = vmatprep.mubr.msk.f32.mxu0 %vm268_vm0, %v7259_v21 }
 0x125   : > { %5618 = vmatmul.mubr.msk.f32.gmra.mrb[24].mxu1 %vm268_vm0, %v6687_v28 }
 0x126   : > { %5818 = vmatmul.mubr.msk.f32.gmra.mrb[24].mxu0 %vm268_vm0, %v7260_v23  ;;  %5620 = vmatprep.mubr.msk.f32.mxu1 %vm268_vm0, %v7270_v10 }
 0x127   : > { %5820 = vmatprep.mubr.msk.f32.mxu0 %vm268_vm0, %v6577_v6 }
 0x129   : > { %5621 = vmatmul.mubr.msk.f32.gmra.mrb[26].mxu1 %vm268_vm0, %v6701_v32 }
 0x12a   : > { %5821 = vmatmul.mubr.msk.f32.gmra.mrb[26].mxu0 %vm268_vm0, %v7261_v25  ;;  %5623 = vmatprep.mubr.msk.f32.mxu1 %vm268_vm0, %v6704_v34 }
 0x12b   : > { %5823 = vmatprep.mubr.msk.f32.mxu0 %vm268_vm0, %v7281_v12 }
 0x12d   : > { %5624 = vmatmul.mubr.msk.f32.gmra.mrb[28].mxu1 %vm268_vm0, %v6715_v36 }
 0x12e   : > { %5824 = vmatmul.mubr.msk.f32.gmra.mrb[28].mxu0 %vm268_vm0, %v7282_v18  ;;  %5626 = vmatprep.mubr.msk.f32.mxu1 %vm268_vm0, %v6904_v29 }
 0x12f   : > { %5826 = vmatprep.mubr.msk.f32.mxu0 %vm268_vm0, %v5043_v14 }
 0x131   : > { %5627 = vmatmul.mubr.msk.f32.gmra.mrb[30].mxu1 %vm268_vm0, %v6915_v1 }
 0x132   : > { %5827 = vmatmul.mubr.msk.f32.gmra.mrb[30].mxu0 %vm268_vm0, %v5044_v20 }
 0x1a8   : > { %v5533_v22 = vpop.f32.mrb[0].mxu1 }
 0x1a9   : > { %v1785_v24 = vpop.f32.mrb[1].mxu1 }
 0x1ac   : > { %v5536_v26 = vpop.f32.mrb[2].mxu1 }
 0x1ad   : > { %v1795_v28 = vpop.f32.mrb[3].mxu1 }
 0x1b0   : > { %v5539_v32 = vpop.f32.mrb[4].mxu1 }
 0x1b1   : > { %v1805_v34 = vpop.f32.mrb[5].mxu1 }
 0x1b4   : > { %v5542_v36 = vpop.f32.mrb[6].mxu1 }
 0x1b5   : > { %v1815_v46 = vpop.f32.mrb[7].mxu1 }
 0x1b8   : > { %v7057_v47 = vpop.f32.mrb[8].mxu1 }
 0x1b9   : > { %v7059_v48 = vpop.f32.mrb[9].mxu1 }
 0x1bc   : > { %v7061_v49 = vpop.f32.mrb[10].mxu1 }
 0x1bd   : > { %v7063_v50 = vpop.f32.mrb[11].mxu1 }
 0x1c0   : > { %v7065_v51 = vpop.f32.mrb[12].mxu1 }
 0x1c1   : > { %v7067_v52 = vpop.f32.mrb[13].mxu1 }
 0x1c4   : > { %v7069_v53 = vpop.f32.mrb[14].mxu1 }
 0x1c5   : > { %v7071_v54 = vpop.f32.mrb[15].mxu1 }
 0x1c9   : > { %v5783_v55 = vpop.f32.mrb[0].mxu0 }
 0x1ca   : > { %v5831_v57 = vadd.f32 %v5783_v55, %v5533_v22  ;;  %v4041_v58 = vpop.f32.mrb[1].mxu0 }
 0x1cb   : > { %v5832_v59 = vadd.f32 %v4041_v58, %v1785_v24 }
 0x1cc   : > { %v4304_v61 = vadd.f32 %v5831_v57, %v7076_v56 }
 0x1cd   : > { %v4303_v62 = vadd.f32 %v5832_v59, %v7076_v56  ;;  %v5786_v63 = vpop.f32.mrb[2].mxu0 }
 0x1ce   : > { %v4336_v0 = vadd.f32 3.0, %v4304_v61  ;;  %v5833_v2 = vadd.f32 %v5786_v63, %v5536_v26  ;;  %v4051_v3 = vpop.f32.mrb[3].mxu0 }
 0x1cf   : > { %v4335_v4 = vadd.f32 3.0, %v4303_v62  ;;  %v5834_v8 = vadd.f32 %v4051_v3, %v1795_v28 }
 0x1d0   : > { %v4368_v5 = vmax.f32 %v4336_v0, 0.0  ;;  %v4306_v7 = vadd.f32 %v5833_v2, %v7076_v56 }
 0x1d1   : > { %v4367_v6 = vmax.f32 %v4335_v4, 0.0  ;;  %v4305_v44 = vadd.f32 %v5834_v8, %v7076_v56  ;;  %v5789_v30 = vpop.f32.mrb[4].mxu0 }
 0x1d2   : > { %v4400_v39 = vmin.f32 %v4368_v5, 6.0  ;;  %v4338_v40 = vadd.f32 3.0, %v4306_v7  ;;  %v5835_v60 = vadd.f32 %v5789_v30, %v5539_v32  ;;  %v4061_v41 = vpop.f32.mrb[5].mxu0 }
 0x1d3   : > { %v4399_v9 = vmin.f32 %v4367_v6, 6.0  ;;  %v4337_v13 = vadd.f32 3.0, %v4305_v44  ;;  %v5836_v15 = vadd.f32 %v4061_v41, %v1805_v34 }
 0x1d4   : > { %v4432_v17 = vmul.f32 %v4400_v39, %v4304_v61  ;;  %v4370_v19 = vmax.f32 %v4338_v40, 0.0  ;;  %v4308_v21 = vadd.f32 %v5835_v60, %v7076_v56 }
 0x1d5   : > { %v4431_v23 = vmul.f32 %v4399_v9, %v4303_v62  ;;  %v4369_v25 = vmax.f32 %v4337_v13, 0.0  ;;  %v4307_v10 = vadd.f32 %v5836_v15, %v7076_v56  ;;  %v5792_v27 = vpop.f32.mrb[6].mxu0 }
 0x1d6   : > { %v4464_v29 = vmul.f32 0.16666667, %v4432_v17  ;;  %v4402_v31 = vmin.f32 %v4370_v19, 6.0  ;;  %v4340_v33 = vadd.f32 3.0, %v4308_v21  ;;  %v5837_v1 = vadd.f32 %v5792_v27, %v5542_v36  ;;  %v4071_v35 = vpop.f32.mrb[7].mxu0 }
 0x1d7   : > { %v4463_v16 = vmul.f32 0.16666667, %v4431_v23  ;;  %v4401_v37 = vmin.f32 %v4369_v25, 6.0  ;;  %v4339_v11 = vadd.f32 3.0, %v4307_v10  ;;  %v5838_v38 = vadd.f32 %v4071_v35, %v1815_v46 }
 0x1d8   : > { %4496 = vst [vmem:[%s7087_s16 + $0x8] sm:$0xff] %v4464_v29  ;;  %v4434_v42 = vmul.f32 %v4402_v31, %v4306_v7  ;;  %v4372_v43 = vmax.f32 %v4340_v33, 0.0  ;;  %v4310_v45 = vadd.f32 %v5837_v1, %v7076_v56 }
 0x1d9   : > { %4495 = vst [vmem:[%s7087_s16] sm:$0xff] %v4463_v16  ;;  %v4433_v12 = vmul.f32 %v4401_v37, %v4305_v44  ;;  %v4371_v14 = vmax.f32 %v4339_v11, 0.0  ;;  %v4309_v18 = vadd.f32 %v5838_v38, %v7076_v56  ;;  %v5795_v20 = vpop.f32.mrb[8].mxu0 }
 0x1da   : > { %v4466_v22 = vmul.f32 0.16666667, %v4434_v42  ;;  %v4404_v24 = vmin.f32 %v4372_v43, 6.0  ;;  %v4342_v26 = vadd.f32 3.0, %v4310_v45  ;;  %v5839_v28 = vadd.f32 %v5795_v20, %v7057_v47  ;;  %v4081_v32 = vpop.f32.mrb[9].mxu0 }
 0x1db   : > { %v4465_v34 = vmul.f32 0.16666667, %v4433_v12  ;;  %v4403_v36 = vmin.f32 %v4371_v14, 6.0  ;;  %v4341_v46 = vadd.f32 3.0, %v4309_v18  ;;  %v5840_v55 = vadd.f32 %v4081_v32, %v7059_v48 }
 0x1dc   : > { %4498 = vst [vmem:[%s7087_s16 + $0x18] sm:$0xff] %v4466_v22  ;;  %v4436_v57 = vmul.f32 %v4404_v24, %v4308_v21  ;;  %v4374_v58 = vmax.f32 %v4342_v26, 0.0  ;;  %v4312_v59 = vadd.f32 %v5839_v28, %v7076_v56 }
 0x1dd   : > { %4497 = vst [vmem:[%s7087_s16 + $0x10] sm:$0xff] %v4465_v34  ;;  %v4435_v61 = vmul.f32 %v4403_v36, %v4307_v10  ;;  %v4373_v62 = vmax.f32 %v4341_v46, 0.0  ;;  %v4311_v63 = vadd.f32 %v5840_v55, %v7076_v56  ;;  %v5798_v0 = vpop.f32.mrb[10].mxu0 }
 0x1de   : > { %v4468_v47 = vmul.f32 0.16666667, %v4436_v57  ;;  %v4406_v2 = vmin.f32 %v4374_v58, 6.0  ;;  %v4344_v3 = vadd.f32 3.0, %v4312_v59  ;;  %v5841_v4 = vadd.f32 %v5798_v0, %v7061_v49  ;;  %v4091_v8 = vpop.f32.mrb[11].mxu0 }
 0x1df   : > { %v4467_v48 = vmul.f32 0.16666667, %v4435_v61  ;;  %v4405_v5 = vmin.f32 %v4373_v62, 6.0  ;;  %v4343_v7 = vadd.f32 3.0, %v4311_v63  ;;  %v5842_v6 = vadd.f32 %v4091_v8, %v7063_v50 }
 0x1e0   : > { %4500 = vst [vmem:[%s7087_s16 + $0x28] sm:$0xff] %v4468_v47  ;;  %v4438_v44 = vmul.f32 %v4406_v2, %v4310_v45  ;;  %v4376_v30 = vmax.f32 %v4344_v3, 0.0  ;;  %v4314_v39 = vadd.f32 %v5841_v4, %v7076_v56 }
 0x1e1   : > { %4499 = vst [vmem:[%s7087_s16 + $0x20] sm:$0xff] %v4467_v48  ;;  %v4437_v40 = vmul.f32 %v4405_v5, %v4309_v18  ;;  %v4375_v60 = vmax.f32 %v4343_v7, 0.0  ;;  %v4313_v41 = vadd.f32 %v5842_v6, %v7076_v56  ;;  %v5801_v9 = vpop.f32.mrb[12].mxu0 }
 0x1e2   : > { %v4470_v49 = vmul.f32 0.16666667, %v4438_v44  ;;  %v4408_v13 = vmin.f32 %v4376_v30, 6.0  ;;  %v4346_v15 = vadd.f32 3.0, %v4314_v39  ;;  %v5843_v17 = vadd.f32 %v5801_v9, %v7065_v51  ;;  %v4101_v19 = vpop.f32.mrb[13].mxu0 }
 0x1e3   : > { %v4469_v50 = vmul.f32 0.16666667, %v4437_v40  ;;  %v4407_v21 = vmin.f32 %v4375_v60, 6.0  ;;  %v4345_v23 = vadd.f32 3.0, %v4313_v41  ;;  %v5844_v25 = vadd.f32 %v4101_v19, %v7067_v52 }
 0x1e4   : > { %4502 = vst [vmem:[%s7087_s16 + $0x38] sm:$0xff] %v4470_v49  ;;  %v4440_v10 = vmul.f32 %v4408_v13, %v4312_v59  ;;  %v4378_v27 = vmax.f32 %v4346_v15, 0.0  ;;  %v4316_v29 = vadd.f32 %v5843_v17, %v7076_v56 }
 0x1e5   : > { %4501 = vst [vmem:[%s7087_s16 + $0x30] sm:$0xff] %v4469_v50  ;;  %v4439_v31 = vmul.f32 %v4407_v21, %v4311_v63  ;;  %v4377_v33 = vmax.f32 %v4345_v23, 0.0  ;;  %v4315_v1 = vadd.f32 %v5844_v25, %v7076_v56  ;;  %v5804_v35 = vpop.f32.mrb[14].mxu0 }
 0x1e6   : > { %v4472_v51 = vmul.f32 0.16666667, %v4440_v10  ;;  %v4410_v16 = vmin.f32 %v4378_v27, 6.0  ;;  %v4348_v37 = vadd.f32 3.0, %v4316_v29  ;;  %v5845_v11 = vadd.f32 %v5804_v35, %v7069_v53  ;;  %v4111_v38 = vpop.f32.mrb[15].mxu0 }
 0x1e7   : > { %v4471_v52 = vmul.f32 0.16666667, %v4439_v31  ;;  %v4409_v42 = vmin.f32 %v4377_v33, 6.0  ;;  %v4347_v43 = vadd.f32 3.0, %v4315_v1  ;;  %v5846_v45 = vadd.f32 %v4111_v38, %v7071_v54 }
 0x1e8   : > { %4504 = vst [vmem:[%s7087_s16 + $0x48] sm:$0xff] %v4472_v51  ;;  %v4442_v12 = vmul.f32 %v4410_v16, %v4314_v39  ;;  %v4380_v14 = vmax.f32 %v4348_v37, 0.0  ;;  %v4318_v18 = vadd.f32 %v5845_v11, %v7076_v56  ;;  %v5607_v26 = vpop.f32.mrb[16].mxu1 }
 0x1e9   : > { %4503 = vst [vmem:[%s7087_s16 + $0x40] sm:$0xff] %v4471_v52  ;;  %v4441_v20 = vmul.f32 %v4409_v42, %v4313_v41  ;;  %v4379_v22 = vmax.f32 %v4347_v43, 0.0  ;;  %v4317_v24 = vadd.f32 %v5846_v45, %v7076_v56  ;;  %v5807_v53 = vpop.f32.mrb[16].mxu0  ;;  %v2316_v46 = vpop.f32.mrb[17].mxu1 }
 0x1ea   : > { %v4474_v28 = vmul.f32 0.16666667, %v4442_v12  ;;  %v4412_v32 = vmin.f32 %v4380_v14, 6.0  ;;  %v4350_v34 = vadd.f32 3.0, %v4318_v18  ;;  %v5847_v36 = vadd.f32 %v5807_v53, %v5607_v26  ;;  %v4121_v54 = vpop.f32.mrb[17].mxu0 }
 0x1eb   : > { %v4473_v55 = vmul.f32 0.16666667, %v4441_v20  ;;  %v4411_v57 = vmin.f32 %v4379_v22, 6.0  ;;  %v4349_v58 = vadd.f32 3.0, %v4317_v24  ;;  %v5848_v59 = vadd.f32 %v4121_v54, %v2316_v46 }
 0x1ec   : > { %4506 = vst [vmem:[%s7087_s16 + $0x58] sm:$0xff] %v4474_v28  ;;  %v4444_v61 = vmul.f32 %v4412_v32, %v4316_v29  ;;  %v4382_v62 = vmax.f32 %v4350_v34, 0.0  ;;  %v4320_v63 = vadd.f32 %v5847_v36, %v7076_v56  ;;  %v5610_v3 = vpop.f32.mrb[18].mxu1 }
 0x1ed   : > { %4505 = vst [vmem:[%s7087_s16 + $0x50] sm:$0xff] %v4473_v55  ;;  %v4443_v0 = vmul.f32 %v4411_v57, %v4315_v1  ;;  %v4381_v47 = vmax.f32 %v4349_v58, 0.0  ;;  %v4319_v2 = vadd.f32 %v5848_v59, %v7076_v56  ;;  %v5810_v4 = vpop.f32.mrb[18].mxu0  ;;  %v2326_v6 = vpop.f32.mrb[19].mxu1 }
 0x1ee   : > { %v4476_v8 = vmul.f32 0.16666667, %v4444_v61  ;;  %v4414_v48 = vmin.f32 %v4382_v62, 6.0  ;;  %v4352_v5 = vadd.f32 3.0, %v4320_v63  ;;  %v5849_v7 = vadd.f32 %v5810_v4, %v5610_v3  ;;  %v4131_v44 = vpop.f32.mrb[19].mxu0 }
 0x1ef   : > { %v4475_v30 = vmul.f32 0.16666667, %v4443_v0  ;;  %v4413_v39 = vmin.f32 %v4381_v47, 6.0  ;;  %v4351_v40 = vadd.f32 3.0, %v4319_v2  ;;  %v5850_v60 = vadd.f32 %v4131_v44, %v2326_v6 }
 0x1f0   : > { %4508 = vst [vmem:[%s7087_s16 + $0x68] sm:$0xff] %v4476_v8  ;;  %v4446_v41 = vmul.f32 %v4414_v48, %v4318_v18  ;;  %v4384_v9 = vmax.f32 %v4352_v5, 0.0  ;;  %v4322_v49 = vadd.f32 %v5849_v7, %v7076_v56  ;;  %v5613_v19 = vpop.f32.mrb[20].mxu1 }
 0x1f1   : > { %4507 = vst [vmem:[%s7087_s16 + $0x60] sm:$0xff] %v4475_v30  ;;  %v4445_v13 = vmul.f32 %v4413_v39, %v4317_v24  ;;  %v4383_v15 = vmax.f32 %v4351_v40, 0.0  ;;  %v4321_v17 = vadd.f32 %v5850_v60, %v7076_v56  ;;  %v5813_v50 = vpop.f32.mrb[20].mxu0  ;;  %v2336_v27 = vpop.f32.mrb[21].mxu1 }
 0x1f2   : > { %v4478_v21 = vmul.f32 0.16666667, %v4446_v41  ;;  %v4416_v23 = vmin.f32 %v4384_v9, 6.0  ;;  %v4354_v25 = vadd.f32 3.0, %v4322_v49  ;;  %v5851_v10 = vadd.f32 %v5813_v50, %v5613_v19  ;;  %v4141_v29 = vpop.f32.mrb[21].mxu0 }
 0x1f3   : > { %v4477_v31 = vmul.f32 0.16666667, %v4445_v13  ;;  %v4415_v33 = vmin.f32 %v4383_v15, 6.0  ;;  %v4353_v1 = vadd.f32 3.0, %v4321_v17  ;;  %v5852_v35 = vadd.f32 %v4141_v29, %v2336_v27 }
 0x1f4   : > { %4510 = vst [vmem:[%s7087_s16 + $0x78] sm:$0xff] %v4478_v21  ;;  %v4448_v51 = vmul.f32 %v4416_v23, %v4320_v63  ;;  %v4386_v16 = vmax.f32 %v4354_v25, 0.0  ;;  %v4324_v37 = vadd.f32 %v5851_v10, %v7076_v56  ;;  %v5616_v42 = vpop.f32.mrb[22].mxu1 }
 0x1f5   : > { %4509 = vst [vmem:[%s7087_s16 + $0x70] sm:$0xff] %v4477_v31  ;;  %v4447_v11 = vmul.f32 %v4415_v33, %v4319_v2  ;;  %v4385_v38 = vmax.f32 %v4353_v1, 0.0  ;;  %v4323_v52 = vadd.f32 %v5852_v35, %v7076_v56  ;;  %v5816_v43 = vpop.f32.mrb[22].mxu0  ;;  %v2346_v20 = vpop.f32.mrb[23].mxu1 }
 0x1f6   : > { %v4480_v45 = vmul.f32 0.16666667, %v4448_v51  ;;  %v4418_v12 = vmin.f32 %v4386_v16, 6.0  ;;  %v4356_v14 = vadd.f32 3.0, %v4324_v37  ;;  %v5853_v18 = vadd.f32 %v5816_v43, %v5616_v42  ;;  %v4151_v22 = vpop.f32.mrb[23].mxu0 }
 0x1f7   : > { %v4479_v24 = vmul.f32 0.16666667, %v4447_v11  ;;  %v4417_v26 = vmin.f32 %v4385_v38, 6.0  ;;  %v4355_v53 = vadd.f32 3.0, %v4323_v52  ;;  %v5854_v28 = vadd.f32 %v4151_v22, %v2346_v20 }
 0x1f8   : > { %4512 = vst [vmem:[%s7087_s16 + $0x88] sm:$0xff] %v4480_v45  ;;  %v4450_v32 = vmul.f32 %v4418_v12, %v4322_v49  ;;  %v4388_v34 = vmax.f32 %v4356_v14, 0.0  ;;  %v4326_v36 = vadd.f32 %v5853_v18, %v7076_v56  ;;  %v5619_v57 = vpop.f32.mrb[24].mxu1 }
 0x1f9   : > { %4511 = vst [vmem:[%s7087_s16 + $0x80] sm:$0xff] %v4479_v24  ;;  %v4449_v46 = vmul.f32 %v4417_v26, %v4321_v17  ;;  %v4387_v54 = vmax.f32 %v4355_v53, 0.0  ;;  %v4325_v55 = vadd.f32 %v5854_v28, %v7076_v56  ;;  %v5819_v58 = vpop.f32.mrb[24].mxu0  ;;  %v2356_v0 = vpop.f32.mrb[25].mxu1 }
 0x1fa   : > { %v4482_v59 = vmul.f32 0.16666667, %v4450_v32  ;;  %v4420_v61 = vmin.f32 %v4388_v34, 6.0  ;;  %v4358_v62 = vadd.f32 3.0, %v4326_v36  ;;  %v5855_v63 = vadd.f32 %v5819_v58, %v5619_v57  ;;  %v4161_v47 = vpop.f32.mrb[25].mxu0 }
 0x1fb   : > { %v4481_v2 = vmul.f32 0.16666667, %v4449_v46  ;;  %v4419_v3 = vmin.f32 %v4387_v54, 6.0  ;;  %v4357_v4 = vadd.f32 3.0, %v4325_v55  ;;  %v5856_v8 = vadd.f32 %v4161_v47, %v2356_v0 }
 0x1fc   : > { %4514 = vst [vmem:[%s7087_s16 + $0x98] sm:$0xff] %v4482_v59  ;;  %v4452_v48 = vmul.f32 %v4420_v61, %v4324_v37  ;;  %v4390_v5 = vmax.f32 %v4358_v62, 0.0  ;;  %v4328_v7 = vadd.f32 %v5855_v63, %v7076_v56  ;;  %v5622_v39 = vpop.f32.mrb[26].mxu1 }
 0x1fd   : > { %4513 = vst [vmem:[%s7087_s16 + $0x90] sm:$0xff] %v4481_v2  ;;  %v4451_v6 = vmul.f32 %v4419_v3, %v4323_v52  ;;  %v4389_v44 = vmax.f32 %v4357_v4, 0.0  ;;  %v4327_v30 = vadd.f32 %v5856_v8, %v7076_v56  ;;  %v5822_v40 = vpop.f32.mrb[26].mxu0  ;;  %v2366_v13 = vpop.f32.mrb[27].mxu1 }
 0x1fe   : > { %v4484_v60 = vmul.f32 0.16666667, %v4452_v48  ;;  %v4422_v41 = vmin.f32 %v4390_v5, 6.0  ;;  %v4360_v9 = vadd.f32 3.0, %v4328_v7  ;;  %v5857_v49 = vadd.f32 %v5822_v40, %v5622_v39  ;;  %v4171_v15 = vpop.f32.mrb[27].mxu0 }
 0x1ff   : > { %v4483_v17 = vmul.f32 0.16666667, %v4451_v6  ;;  %v4421_v19 = vmin.f32 %v4389_v44, 6.0  ;;  %v4359_v50 = vadd.f32 3.0, %v4327_v30  ;;  %v5858_v21 = vadd.f32 %v4171_v15, %v2366_v13 }
 0x200   : > { %4516 = vst [vmem:[%s7087_s16 + $0xa8] sm:$0xff] %v4484_v60  ;;  %v4454_v23 = vmul.f32 %v4422_v41, %v4326_v36  ;;  %v4392_v25 = vmax.f32 %v4360_v9, 0.0  ;;  %v4330_v10 = vadd.f32 %v5857_v49, %v7076_v56  ;;  %v5625_v33 = vpop.f32.mrb[28].mxu1 }
 0x201   : > { %4515 = vst [vmem:[%s7087_s16 + $0xa0] sm:$0xff] %v4483_v17  ;;  %v4453_v27 = vmul.f32 %v4421_v19, %v4325_v55  ;;  %v4391_v29 = vmax.f32 %v4359_v50, 0.0  ;;  %v4329_v31 = vadd.f32 %v5858_v21, %v7076_v56  ;;  %v5825_v1 = vpop.f32.mrb[28].mxu0  ;;  %v2376_v11 = vpop.f32.mrb[29].mxu1 }
 0x202   : > { %v4486_v35 = vmul.f32 0.16666667, %v4454_v23  ;;  %v4424_v51 = vmin.f32 %v4392_v25, 6.0  ;;  %v4362_v16 = vadd.f32 3.0, %v4330_v10  ;;  %v5859_v37 = vadd.f32 %v5825_v1, %v5625_v33  ;;  %v4181_v38 = vpop.f32.mrb[29].mxu0 }
 0x203   : > { %v4485_v52 = vmul.f32 0.16666667, %v4453_v27  ;;  %v4423_v42 = vmin.f32 %v4391_v29, 6.0  ;;  %v4361_v43 = vadd.f32 3.0, %v4329_v31  ;;  %v5860_v45 = vadd.f32 %v4181_v38, %v2376_v11 }
 0x204   : > { %4518 = vst [vmem:[%s7087_s16 + $0xb8] sm:$0xff] %v4486_v35  ;;  %v4456_v12 = vmul.f32 %v4424_v51, %v4328_v7  ;;  %v4394_v14 = vmax.f32 %v4362_v16, 0.0  ;;  %v4332_v18 = vadd.f32 %v5859_v37, %v7076_v56  ;;  %v5628_v26 = vpop.f32.mrb[30].mxu1 }
 0x205   : > { %4517 = vst [vmem:[%s7087_s16 + $0xb0] sm:$0xff] %v4485_v52  ;;  %v4455_v20 = vmul.f32 %v4423_v42, %v4327_v30  ;;  %v4393_v22 = vmax.f32 %v4361_v43, 0.0  ;;  %v4331_v24 = vadd.f32 %v5860_v45, %v7076_v56  ;;  %v5828_v53 = vpop.f32.mrb[30].mxu0  ;;  %v2386_v46 = vpop.f32.mrb[31].mxu1 }
 0x206   : > { %v4488_v28 = vmul.f32 0.16666667, %v4456_v12  ;;  %v4426_v32 = vmin.f32 %v4394_v14, 6.0  ;;  %v4364_v34 = vadd.f32 3.0, %v4332_v18  ;;  %v5861_v36 = vadd.f32 %v5828_v53, %v5628_v26  ;;  %v4191_v54 = vpop.f32.mrb[31].mxu0 }
 0x207   : > { %v4487_v55 = vmul.f32 0.16666667, %v4455_v20  ;;  %v4425_v57 = vmin.f32 %v4393_v22, 6.0  ;;  %v4363_v58 = vadd.f32 3.0, %v4331_v24  ;;  %v5862_v59 = vadd.f32 %v4191_v54, %v2386_v46 }
 0x208   : > { %4520 = vst [vmem:[%s7087_s16 + $0xc8] sm:$0xff] %v4488_v28  ;;  %v4458_v61 = vmul.f32 %v4426_v32, %v4330_v10  ;;  %v4396_v62 = vmax.f32 %v4364_v34, 0.0  ;;  %v4334_v63 = vadd.f32 %v5861_v36, %v7076_v56 }
 0x209   : > { %4519 = vst [vmem:[%s7087_s16 + $0xc0] sm:$0xff] %v4487_v55  ;;  %v4457_v0 = vmul.f32 %v4425_v57, %v4329_v31  ;;  %v4395_v47 = vmax.f32 %v4363_v58, 0.0  ;;  %v4333_v2 = vadd.f32 %v5862_v59, %v7076_v56 }
 0x20a   : > { %v4490_v3 = vmul.f32 0.16666667, %v4458_v61  ;;  %v4428_v4 = vmin.f32 %v4396_v62, 6.0  ;;  %v4366_v8 = vadd.f32 3.0, %v4334_v63 }
 0x20b   : > { %v4489_v48 = vmul.f32 0.16666667, %v4457_v0  ;;  %v4427_v5 = vmin.f32 %v4395_v47, 6.0  ;;  %v4365_v7 = vadd.f32 3.0, %v4333_v2 }
 0x20c   : > { %4522 = vst [vmem:[%s7087_s16 + $0xd8] sm:$0xff] %v4490_v3  ;;  %v4460_v6 = vmul.f32 %v4428_v4, %v4332_v18  ;;  %v4398_v44 = vmax.f32 %v4366_v8, 0.0 }
 0x20d   : > { %4521 = vst [vmem:[%s7087_s16 + $0xd0] sm:$0xff] %v4489_v48  ;;  %v4459_v30 = vmul.f32 %v4427_v5, %v4331_v24  ;;  %v4397_v39 = vmax.f32 %v4365_v7, 0.0 }
 0x20e   : > { %v4492_v40 = vmul.f32 0.16666667, %v4460_v6  ;;  %v4430_v60 = vmin.f32 %v4398_v44, 6.0 }
 0x20f   : > { %v4491_v41 = vmul.f32 0.16666667, %v4459_v30  ;;  %v4429_v56 = vmin.f32 %v4397_v39, 6.0 }
 0x210   : > { %4524 = vst [vmem:[%s7087_s16 + $0xe8] sm:$0xff] %v4492_v40  ;;  %v4462_v9 = vmul.f32 %v4430_v60, %v4334_v63 }
 0x211   : > { %4523 = vst [vmem:[%s7087_s16 + $0xe0] sm:$0xff] %v4491_v41  ;;  %v4461_v49 = vmul.f32 %v4429_v56, %v4333_v2 }
 0x212   : > { %v4494_v13 = vmul.f32 0.16666667, %v4462_v9 }
 0x213   : > { %v4493_v15 = vmul.f32 0.16666667, %v4461_v49 }
 0x214   : > { %4526 = vst [vmem:[%s7087_s16 + $0xf8] sm:$0xff] %v4494_v13 }
 0x215   : > { %4525 = vst [vmem:[%s7087_s16 + $0xf0] sm:$0xff] %v4493_v15 }
 0x216 PF: > { %s13_s12 = sadd.s32 1, %s6102_s12  }
 0x217   : > { %p10_p4 = scmp.ge.s32.totalorder %s13_s12, 4  }
 0x219   :  { %12 = sbr.rel (!%p10_p4) target bundleno = 1 (0x1), region = 72 }

// kernel: fairface_mobilenet_forward.10
= control target key start
LH: loop header
LB: loop body
LE: loop exit
PB: predicated region body
PF: predicated region fallthrough
CT: control target
= control target key end

     0   :  { %s2163_s1 = inlined_call_operand.vmem [shape: f32[128,128], index: 1, kind: input, shape index: {}]   ;;  %s2164_s0 = inlined_call_operand.vmem [shape: f32[512,128], index: 0, kind: input, shape index: {}]   ;;  %s2165_s2 = inlined_call_operand.vmem [shape: f32[1,128], index: 2, kind: input, shape index: {}]   ;;  %s2166_s3 = inlined_call_operand.vmem [shape: f32[512,128], index: 3, kind: output, shape index: {}]  }
   0x1   :  { %v210_v0 = vld [vmem:[%s2163_s1] sm:$0xff]  ;;  %v211_v1 = vld [vmem:[%s2163_s1 + $0x8] sm:$0xff]  ;;  %v212_v2 = vld [vmem:[%s2163_s1 + $0x10] sm:$0xff] }
   0x2   :  { %v1474_v3 = vpack.c.bf16 %v211_v1, %v210_v0  ;;  %v213_v4 = vld [vmem:[%s2163_s1 + $0x18] sm:$0xff]  ;;  %v214_v6 = vld [vmem:[%s2163_s1 + $0x20] sm:$0xff]  ;;  %v215_v7 = vld [vmem:[%s2163_s1 + $0x28] sm:$0xff] }
   0x3   :  { %v1478_v5 = vpack.c.bf16 %v213_v4, %v212_v2  ;;  %v1482_v8 = vpack.c.bf16 %v215_v7, %v214_v6  ;;  %v146_v9 = vld [vmem:[%s2164_s0] sm:$0xff]  ;;  %v216_v11 = vld [vmem:[%s2163_s1 + $0x30] sm:$0xff]  ;;  %v217_v12 = vld [vmem:[%s2163_s1 + $0x38] sm:$0xff] }
   0x4   :  { %1475 = vmatprep.subr.bf16.mxu0 %v1474_v3  ;;  %1506 = vmatprep.subr.bf16.mxu1 %v1474_v3  ;;  %v178_v10 = vld [vmem:[%s2164_s0 + $0x100] sm:$0xff]  ;;  %v1486_v13 = vpack.c.bf16 %v217_v12, %v216_v11  ;;  %v219_v15 = vld [vmem:[%s2163_s1 + $0x48] sm:$0xff]  ;;  %v220_v17 = vld [vmem:[%s2163_s1 + $0x50] sm:$0xff] }
   0x5   :  { %1477 = vmatpush3.bf16.msra.mxu0 %v1474_v3  ;;  %1514 = vmatpush3.bf16.msra.mxu1 %v1474_v3  ;;  %v218_v14 = vld [vmem:[%s2163_s1 + $0x40] sm:$0xff]  ;;  %v221_v18 = vld [vmem:[%s2163_s1 + $0x58] sm:$0xff]  ;;  %v223_v21 = vld [vmem:[%s2163_s1 + $0x68] sm:$0xff] }
   0x6   :  { %1479 = vmatprep.subr.bf16.mxu0 %v1478_v5  ;;  %1507 = vmatprep.subr.bf16.mxu1 %v1478_v5  ;;  %v1490_v16 = vpack.c.bf16 %v219_v15, %v218_v14  ;;  %v1494_v19 = vpack.c.bf16 %v221_v18, %v220_v17  ;;  %v222_v20 = vld [vmem:[%s2163_s1 + $0x60] sm:$0xff]  ;;  %v224_v23 = vld [vmem:[%s2163_s1 + $0x70] sm:$0xff]  ;;  %v225_v24 = vld [vmem:[%s2163_s1 + $0x78] sm:$0xff] }
   0x7   :  { %1378 = vmatprep.mubr.f32.mxu0 %v146_v9  ;;  %1426 = vmatprep.mubr.f32.mxu1 %v178_v10  ;;  %v1498_v22 = vpack.c.bf16 %v223_v21, %v222_v20  ;;  %v1502_v25 = vpack.c.bf16 %v225_v24, %v224_v23  ;;  %v147_v26 = vld [vmem:[%s2164_s0 + $0x8] sm:$0xff]  ;;  %v148_v28 = vld [vmem:[%s2164_s0 + $0x10] sm:$0xff]  ;;  %v149_v30 = vld [vmem:[%s2164_s0 + $0x18] sm:$0xff] }
   0x8   :  { %v179_v27 = vld [vmem:[%s2164_s0 + $0x108] sm:$0xff]  ;;  %v180_v29 = vld [vmem:[%s2164_s0 + $0x110] sm:$0xff]  ;;  %v181_v31 = vld [vmem:[%s2164_s0 + $0x118] sm:$0xff] }
   0x9   :  { %1481 = vmatpush3.bf16.msra.mxu0 %v1478_v5  ;;  %1515 = vmatpush3.bf16.msra.mxu1 %v1478_v5  ;;  %v150_v32 = vld [vmem:[%s2164_s0 + $0x20] sm:$0xff]  ;;  %v151_v34 = vld [vmem:[%s2164_s0 + $0x28] sm:$0xff]  ;;  %v152_v36 = vld [vmem:[%s2164_s0 + $0x30] sm:$0xff] }
   0xa   :  { %1483 = vmatprep.subr.bf16.mxu0 %v1482_v8  ;;  %1508 = vmatprep.subr.bf16.mxu1 %v1482_v8  ;;  %v182_v33 = vld [vmem:[%s2164_s0 + $0x120] sm:$0xff]  ;;  %v183_v35 = vld [vmem:[%s2164_s0 + $0x128] sm:$0xff]  ;;  %v184_v37 = vld [vmem:[%s2164_s0 + $0x130] sm:$0xff] }
   0xb   :  { %v153_v38 = vld [vmem:[%s2164_s0 + $0x38] sm:$0xff]  ;;  %v154_v40 = vld [vmem:[%s2164_s0 + $0x40] sm:$0xff]  ;;  %v155_v42 = vld [vmem:[%s2164_s0 + $0x48] sm:$0xff] }
   0xc   :  { %v185_v39 = vld [vmem:[%s2164_s0 + $0x138] sm:$0xff]  ;;  %v186_v41 = vld [vmem:[%s2164_s0 + $0x140] sm:$0xff]  ;;  %v187_v43 = vld [vmem:[%s2164_s0 + $0x148] sm:$0xff] }
   0xd   :  { %1485 = vmatpush3.bf16.msra.mxu0 %v1482_v8  ;;  %1516 = vmatpush3.bf16.msra.mxu1 %v1482_v8  ;;  %v156_v44 = vld [vmem:[%s2164_s0 + $0x50] sm:$0xff]  ;;  %v157_v46 = vld [vmem:[%s2164_s0 + $0x58] sm:$0xff]  ;;  %v158_v48 = vld [vmem:[%s2164_s0 + $0x60] sm:$0xff] }
   0xe   :  { %1487 = vmatprep.subr.bf16.mxu0 %v1486_v13  ;;  %1509 = vmatprep.subr.bf16.mxu1 %v1486_v13  ;;  %v188_v45 = vld [vmem:[%s2164_s0 + $0x150] sm:$0xff]  ;;  %v189_v47 = vld [vmem:[%s2164_s0 + $0x158] sm:$0xff]  ;;  %v190_v49 = vld [vmem:[%s2164_s0 + $0x160] sm:$0xff] }
   0xf   :  { %v159_v50 = vld [vmem:[%s2164_s0 + $0x68] sm:$0xff]  ;;  %v160_v52 = vld [vmem:[%s2164_s0 + $0x70] sm:$0xff]  ;;  %v161_v54 = vld [vmem:[%s2164_s0 + $0x78] sm:$0xff] }
  0x10   :  { %v191_v51 = vld [vmem:[%s2164_s0 + $0x168] sm:$0xff]  ;;  %v192_v53 = vld [vmem:[%s2164_s0 + $0x170] sm:$0xff]  ;;  %v193_v55 = vld [vmem:[%s2164_s0 + $0x178] sm:$0xff] }
  0x11   :  { %1489 = vmatpush3.bf16.msra.mxu0 %v1486_v13  ;;  %1517 = vmatpush3.bf16.msra.mxu1 %v1486_v13  ;;  %v162_v56 = vld [vmem:[%s2164_s0 + $0x80] sm:$0xff]  ;;  %v163_v58 = vld [vmem:[%s2164_s0 + $0x88] sm:$0xff]  ;;  %v164_v60 = vld [vmem:[%s2164_s0 + $0x90] sm:$0xff] }
  0x12   :  { %1491 = vmatprep.subr.bf16.mxu0 %v1490_v16  ;;  %1510 = vmatprep.subr.bf16.mxu1 %v1490_v16  ;;  %v194_v57 = vld [vmem:[%s2164_s0 + $0x180] sm:$0xff]  ;;  %v195_v59 = vld [vmem:[%s2164_s0 + $0x188] sm:$0xff]  ;;  %v196_v61 = vld [vmem:[%s2164_s0 + $0x190] sm:$0xff] }
  0x13   :  { %v165_v62 = vld [vmem:[%s2164_s0 + $0x98] sm:$0xff]  ;;  %v166_v0 = vld [vmem:[%s2164_s0 + $0xa0] sm:$0xff]  ;;  %v167_v2 = vld [vmem:[%s2164_s0 + $0xa8] sm:$0xff] }
  0x14   :  { %v197_v63 = vld [vmem:[%s2164_s0 + $0x198] sm:$0xff]  ;;  %v198_v1 = vld [vmem:[%s2164_s0 + $0x1a0] sm:$0xff]  ;;  %v199_v3 = vld [vmem:[%s2164_s0 + $0x1a8] sm:$0xff] }
  0x15   :  { %1493 = vmatpush3.bf16.msra.mxu0 %v1490_v16  ;;  %1518 = vmatpush3.bf16.msra.mxu1 %v1490_v16  ;;  %v168_v4 = vld [vmem:[%s2164_s0 + $0xb0] sm:$0xff]  ;;  %v169_v6 = vld [vmem:[%s2164_s0 + $0xb8] sm:$0xff]  ;;  %v170_v8 = vld [vmem:[%s2164_s0 + $0xc0] sm:$0xff] }
  0x16   :  { %1495 = vmatprep.subr.bf16.mxu0 %v1494_v19  ;;  %1511 = vmatprep.subr.bf16.mxu1 %v1494_v19  ;;  %v200_v5 = vld [vmem:[%s2164_s0 + $0x1b0] sm:$0xff]  ;;  %v201_v7 = vld [vmem:[%s2164_s0 + $0x1b8] sm:$0xff]  ;;  %v202_v9 = vld [vmem:[%s2164_s0 + $0x1c0] sm:$0xff] }
  0x17   :  { %v171_v10 = vld [vmem:[%s2164_s0 + $0xc8] sm:$0xff]  ;;  %v172_v12 = vld [vmem:[%s2164_s0 + $0xd0] sm:$0xff]  ;;  %v173_v14 = vld [vmem:[%s2164_s0 + $0xd8] sm:$0xff] }
  0x18   :  { %v203_v11 = vld [vmem:[%s2164_s0 + $0x1c8] sm:$0xff]  ;;  %v204_v13 = vld [vmem:[%s2164_s0 + $0x1d0] sm:$0xff]  ;;  %v205_v15 = vld [vmem:[%s2164_s0 + $0x1d8] sm:$0xff] }
  0x19   :  { %1497 = vmatpush3.bf16.msra.mxu0 %v1494_v19  ;;  %1519 = vmatpush3.bf16.msra.mxu1 %v1494_v19  ;;  %v174_v16 = vld [vmem:[%s2164_s0 + $0xe0] sm:$0xff]  ;;  %v175_v18 = vld [vmem:[%s2164_s0 + $0xe8] sm:$0xff]  ;;  %v176_v20 = vld [vmem:[%s2164_s0 + $0xf0] sm:$0xff] }
  0x1a   :  { %1499 = vmatprep.subr.bf16.mxu0 %v1498_v22  ;;  %1512 = vmatprep.subr.bf16.mxu1 %v1498_v22  ;;  %v206_v17 = vld [vmem:[%s2164_s0 + $0x1e0] sm:$0xff]  ;;  %v207_v19 = vld [vmem:[%s2164_s0 + $0x1e8] sm:$0xff]  ;;  %v208_v21 = vld [vmem:[%s2164_s0 + $0x1f0] sm:$0xff] }
  0x1b   :  { %v209_v23 = vld [vmem:[%s2164_s0 + $0x1f8] sm:$0xff]  ;;  %v1785_v24 = vld [vmem:[%s2165_s2] ss:$0 sm:$0xff] }
  0x1d   :  { %1501 = vmatpush3.bf16.msra.mxu0 %v1498_v22  ;;  %1520 = vmatpush3.bf16.msra.mxu1 %v1498_v22  ;;  %v177_v22 = vld [vmem:[%s2164_s0 + $0xf8] sm:$0xff] }
  0x1e   :  { %1503 = vmatprep.subr.bf16.mxu0 %v1502_v25  ;;  %1513 = vmatprep.subr.bf16.mxu1 %v1502_v25 }
  0x21   :  { %1505 = vmatpush3.bf16.msra.mxu0 %v1502_v25  ;;  %1521 = vmatpush3.bf16.msra.mxu1 %v1502_v25 }
  0x24   :  { %1379 = vmatmul.mubr.f32.vlgmr.msra.gmra.mrb[0].mxu0 %v147_v26  ;;  %1427 = vmatmul.mubr.f32.vlgmr.msra.gmra.mrb[0].mxu1 %v179_v27 }
  0x25   :  { %1381 = vmatprep.mubr.f32.mxu0 %v148_v28  ;;  %1429 = vmatprep.mubr.f32.mxu1 %v180_v29 }
  0x28   :  { %1382 = vmatmul.mubr.f32.gmra.mrb[2].mxu0 %v149_v30  ;;  %1430 = vmatmul.mubr.f32.gmra.mrb[2].mxu1 %v181_v31 }
  0x29   :  { %1384 = vmatprep.mubr.f32.mxu0 %v150_v32  ;;  %1432 = vmatprep.mubr.f32.mxu1 %v182_v33 }
  0x2c   :  { %1385 = vmatmul.mubr.f32.gmra.mrb[4].mxu0 %v151_v34  ;;  %1433 = vmatmul.mubr.f32.gmra.mrb[4].mxu1 %v183_v35 }
  0x2d   :  { %1387 = vmatprep.mubr.f32.mxu0 %v152_v36  ;;  %1435 = vmatprep.mubr.f32.mxu1 %v184_v37 }
  0x30   :  { %1388 = vmatmul.mubr.f32.gmra.mrb[6].mxu0 %v153_v38  ;;  %1436 = vmatmul.mubr.f32.gmra.mrb[6].mxu1 %v185_v39 }
  0x31   :  { %1390 = vmatprep.mubr.f32.mxu0 %v154_v40  ;;  %1438 = vmatprep.mubr.f32.mxu1 %v186_v41 }
  0x34   :  { %1391 = vmatmul.mubr.f32.gmra.mrb[8].mxu0 %v155_v42  ;;  %1439 = vmatmul.mubr.f32.gmra.mrb[8].mxu1 %v187_v43 }
  0x35   :  { %1393 = vmatprep.mubr.f32.mxu0 %v156_v44  ;;  %1441 = vmatprep.mubr.f32.mxu1 %v188_v45 }
  0x38   :  { %1394 = vmatmul.mubr.f32.gmra.mrb[10].mxu0 %v157_v46  ;;  %1442 = vmatmul.mubr.f32.gmra.mrb[10].mxu1 %v189_v47 }
  0x39   :  { %1396 = vmatprep.mubr.f32.mxu0 %v158_v48  ;;  %1444 = vmatprep.mubr.f32.mxu1 %v190_v49 }
  0x3c   :  { %1397 = vmatmul.mubr.f32.gmra.mrb[12].mxu0 %v159_v50  ;;  %1445 = vmatmul.mubr.f32.gmra.mrb[12].mxu1 %v191_v51 }
  0x3d   :  { %1399 = vmatprep.mubr.f32.mxu0 %v160_v52  ;;  %1447 = vmatprep.mubr.f32.mxu1 %v192_v53 }
  0x40   :  { %1400 = vmatmul.mubr.f32.gmra.mrb[14].mxu0 %v161_v54  ;;  %1448 = vmatmul.mubr.f32.gmra.mrb[14].mxu1 %v193_v55 }
  0x41   :  { %1402 = vmatprep.mubr.f32.mxu0 %v162_v56  ;;  %1450 = vmatprep.mubr.f32.mxu1 %v194_v57 }
  0x44   :  { %1403 = vmatmul.mubr.f32.gmra.mrb[16].mxu0 %v163_v58  ;;  %1451 = vmatmul.mubr.f32.gmra.mrb[16].mxu1 %v195_v59 }
  0x45   :  { %1405 = vmatprep.mubr.f32.mxu0 %v164_v60  ;;  %1453 = vmatprep.mubr.f32.mxu1 %v196_v61 }
  0x48   :  { %1406 = vmatmul.mubr.f32.gmra.mrb[18].mxu0 %v165_v62  ;;  %1454 = vmatmul.mubr.f32.gmra.mrb[18].mxu1 %v197_v63 }
  0x49   :  { %1408 = vmatprep.mubr.f32.mxu0 %v166_v0  ;;  %1456 = vmatprep.mubr.f32.mxu1 %v198_v1 }
  0x4c   :  { %1409 = vmatmul.mubr.f32.gmra.mrb[20].mxu0 %v167_v2  ;;  %1457 = vmatmul.mubr.f32.gmra.mrb[20].mxu1 %v199_v3 }
  0x4d   :  { %1411 = vmatprep.mubr.f32.mxu0 %v168_v4  ;;  %1459 = vmatprep.mubr.f32.mxu1 %v200_v5 }
  0x50   :  { %1412 = vmatmul.mubr.f32.gmra.mrb[22].mxu0 %v169_v6  ;;  %1460 = vmatmul.mubr.f32.gmra.mrb[22].mxu1 %v201_v7 }
  0x51   :  { %1414 = vmatprep.mubr.f32.mxu0 %v170_v8  ;;  %1462 = vmatprep.mubr.f32.mxu1 %v202_v9 }
  0x54   :  { %1415 = vmatmul.mubr.f32.gmra.mrb[24].mxu0 %v171_v10  ;;  %1463 = vmatmul.mubr.f32.gmra.mrb[24].mxu1 %v203_v11 }
  0x55   :  { %1417 = vmatprep.mubr.f32.mxu0 %v172_v12  ;;  %1465 = vmatprep.mubr.f32.mxu1 %v204_v13 }
  0x58   :  { %1418 = vmatmul.mubr.f32.gmra.mrb[26].mxu0 %v173_v14  ;;  %1466 = vmatmul.mubr.f32.gmra.mrb[26].mxu1 %v205_v15 }
  0x59   :  { %1420 = vmatprep.mubr.f32.mxu0 %v174_v16  ;;  %1468 = vmatprep.mubr.f32.mxu1 %v206_v17 }
  0x5c   :  { %1421 = vmatmul.mubr.f32.gmra.mrb[28].mxu0 %v175_v18  ;;  %1469 = vmatmul.mubr.f32.gmra.mrb[28].mxu1 %v207_v19 }
  0x5d   :  { %1423 = vmatprep.mubr.f32.mxu0 %v176_v20  ;;  %1471 = vmatprep.mubr.f32.mxu1 %v208_v21 }
  0x60   :  { %1424 = vmatmul.mubr.f32.gmra.mrb[30].mxu0 %v177_v22  ;;  %1472 = vmatmul.mubr.f32.gmra.mrb[30].mxu1 %v209_v23 }
  0xf7   :  { %v1380_v25 = vpop.f32.mrb[0].mxu0  ;;  %v1428_v26 = vpop.f32.mrb[0].mxu1 }
  0xf8   :  { %v814_v27 = vadd.f32 %v1380_v25, %v1785_v24  ;;  %v846_v28 = vadd.f32 %v1428_v26, %v1785_v24  ;;  %v292_v29 = vpop.f32.mrb[1].mxu0  ;;  %v452_v30 = vpop.f32.mrb[1].mxu1 }
  0xf9   :  { %v813_v31 = vadd.f32 %v1785_v24, %v292_v29  ;;  %v845_v32 = vadd.f32 %v1785_v24, %v452_v30 }
  0xfa   :  { %v878_v33 = vadd.f32 3.0, %v814_v27  ;;  %v910_v34 = vadd.f32 3.0, %v846_v28 }
  0xfb   :  { %v877_v35 = vadd.f32 3.0, %v813_v31  ;;  %v909_v36 = vadd.f32 3.0, %v845_v32  ;;  %v1383_v37 = vpop.f32.mrb[2].mxu0  ;;  %v1431_v38 = vpop.f32.mrb[2].mxu1 }
  0xfc   :  { %v942_v39 = vmax.f32 %v878_v33, 0.0  ;;  %v974_v40 = vmax.f32 %v910_v34, 0.0  ;;  %v816_v41 = vadd.f32 %v1383_v37, %v1785_v24  ;;  %v848_v42 = vadd.f32 %v1431_v38, %v1785_v24  ;;  %v302_v43 = vpop.f32.mrb[3].mxu0  ;;  %v462_v44 = vpop.f32.mrb[3].mxu1 }
  0xfd   :  { %v941_v45 = vmax.f32 %v877_v35, 0.0  ;;  %v973_v46 = vmax.f32 %v909_v36, 0.0  ;;  %v815_v47 = vadd.f32 %v1785_v24, %v302_v43  ;;  %v847_v48 = vadd.f32 %v1785_v24, %v462_v44 }
  0xfe   :  { %v1006_v49 = vmin.f32 %v942_v39, 6.0  ;;  %v1038_v50 = vmin.f32 %v974_v40, 6.0  ;;  %v880_v51 = vadd.f32 3.0, %v816_v41  ;;  %v912_v52 = vadd.f32 3.0, %v848_v42 }
  0xff   :  { %v1005_v53 = vmin.f32 %v941_v45, 6.0  ;;  %v1037_v54 = vmin.f32 %v973_v46, 6.0  ;;  %v879_v55 = vadd.f32 3.0, %v815_v47  ;;  %v911_v56 = vadd.f32 3.0, %v847_v48  ;;  %v1386_v57 = vpop.f32.mrb[4].mxu0  ;;  %v1434_v58 = vpop.f32.mrb[4].mxu1 }
 0x100   :  { %v1070_v59 = vmul.f32 %v1006_v49, %v814_v27  ;;  %v1102_v60 = vmul.f32 %v1038_v50, %v846_v28  ;;  %v944_v61 = vmax.f32 %v880_v51, 0.0  ;;  %v976_v62 = vmax.f32 %v912_v52, 0.0  ;;  %v312_v63 = vpop.f32.mrb[5].mxu0  ;;  %v472_v0 = vpop.f32.mrb[5].mxu1 }
 0x101   :  { %v1069_v1 = vmul.f32 %v1005_v53, %v813_v31  ;;  %v1101_v2 = vmul.f32 %v1037_v54, %v845_v32  ;;  %v943_v3 = vmax.f32 %v879_v55, 0.0  ;;  %v975_v4 = vmax.f32 %v911_v56, 0.0 }
 0x102   :  { %v1134_v5 = vmul.f32 0.16666667, %v1070_v59  ;;  %v1166_v6 = vmul.f32 0.16666667, %v1102_v60  ;;  %v1008_v7 = vmin.f32 %v944_v61, 6.0  ;;  %v1040_v8 = vmin.f32 %v976_v62, 6.0 }
 0x103   :  { %v1133_v9 = vmul.f32 0.16666667, %v1069_v1  ;;  %v1165_v10 = vmul.f32 0.16666667, %v1101_v2  ;;  %v1007_v11 = vmin.f32 %v943_v3, 6.0  ;;  %v1039_v12 = vmin.f32 %v975_v4, 6.0 }
 0x104   :  { %1198 = vst [vmem:[%s2166_s3 + $0x8] sm:$0xff] %v1134_v5  ;;  %1230 = vst [vmem:[%s2166_s3 + $0x108] sm:$0xff] %v1166_v6  ;;  %v1072_v13 = vmul.f32 %v1008_v7, %v816_v41  ;;  %v1104_v14 = vmul.f32 %v1040_v8, %v848_v42  ;;  %v818_v15 = vadd.f32 %v1386_v57, %v1785_v24  ;;  %v1389_v17 = vpop.f32.mrb[6].mxu0  ;;  %v1437_v18 = vpop.f32.mrb[6].mxu1 }
 0x105   :  { %v850_v16 = vadd.f32 %v1434_v58, %v1785_v24  ;;  %1197 = vst [vmem:[%s2166_s3] sm:$0xff] %v1133_v9  ;;  %1229 = vst [vmem:[%s2166_s3 + $0x100] sm:$0xff] %v1165_v10  ;;  %v1071_v19 = vmul.f32 %v1007_v11, %v815_v47  ;;  %v1103_v20 = vmul.f32 %v1039_v12, %v847_v48  ;;  %v322_v23 = vpop.f32.mrb[7].mxu0  ;;  %v482_v25 = vpop.f32.mrb[7].mxu1 }
 0x106   :  { %v817_v21 = vadd.f32 %v1785_v24, %v312_v63  ;;  %v849_v22 = vadd.f32 %v1785_v24, %v472_v0  ;;  %v1136_v26 = vmul.f32 0.16666667, %v1072_v13  ;;  %v1168_v27 = vmul.f32 0.16666667, %v1104_v14 }
 0x107   :  { %v882_v28 = vadd.f32 3.0, %v818_v15  ;;  %v914_v29 = vadd.f32 3.0, %v850_v16  ;;  %v1135_v30 = vmul.f32 0.16666667, %v1071_v19  ;;  %v1167_v31 = vmul.f32 0.16666667, %v1103_v20 }
 0x108   :  { %v881_v32 = vadd.f32 3.0, %v817_v21  ;;  %v913_v33 = vadd.f32 3.0, %v849_v22  ;;  %1200 = vst [vmem:[%s2166_s3 + $0x18] sm:$0xff] %v1136_v26  ;;  %1232 = vst [vmem:[%s2166_s3 + $0x118] sm:$0xff] %v1168_v27  ;;  %v820_v36 = vadd.f32 %v1389_v17, %v1785_v24  ;;  %v852_v37 = vadd.f32 %v1437_v18, %v1785_v24  ;;  %v1392_v38 = vpop.f32.mrb[8].mxu0  ;;  %v1440_v39 = vpop.f32.mrb[8].mxu1 }
 0x109   :  { %v946_v34 = vmax.f32 %v882_v28, 0.0  ;;  %v978_v35 = vmax.f32 %v914_v29, 0.0  ;;  %1199 = vst [vmem:[%s2166_s3 + $0x10] sm:$0xff] %v1135_v30  ;;  %1231 = vst [vmem:[%s2166_s3 + $0x110] sm:$0xff] %v1167_v31  ;;  %v819_v42 = vadd.f32 %v1785_v24, %v322_v23  ;;  %v851_v43 = vadd.f32 %v1785_v24, %v482_v25  ;;  %v332_v44 = vpop.f32.mrb[9].mxu0  ;;  %v492_v45 = vpop.f32.mrb[9].mxu1 }
 0x10a   :  { %v945_v40 = vmax.f32 %v881_v32, 0.0  ;;  %v977_v41 = vmax.f32 %v913_v33, 0.0  ;;  %v884_v48 = vadd.f32 3.0, %v820_v36  ;;  %v916_v49 = vadd.f32 3.0, %v852_v37 }
 0x10b   :  { %v1010_v46 = vmin.f32 %v946_v34, 6.0  ;;  %v1042_v47 = vmin.f32 %v978_v35, 6.0  ;;  %v883_v52 = vadd.f32 3.0, %v819_v42  ;;  %v915_v53 = vadd.f32 3.0, %v851_v43  ;;  %v1395_v54 = vpop.f32.mrb[10].mxu0  ;;  %v1443_v55 = vpop.f32.mrb[10].mxu1 }
 0x10c   :  { %v1009_v50 = vmin.f32 %v945_v40, 6.0  ;;  %v1041_v51 = vmin.f32 %v977_v41, 6.0  ;;  %v948_v58 = vmax.f32 %v884_v48, 0.0  ;;  %v980_v59 = vmax.f32 %v916_v49, 0.0  ;;  %v342_v60 = vpop.f32.mrb[11].mxu0  ;;  %v502_v61 = vpop.f32.mrb[11].mxu1 }
 0x10d   :  { %v1074_v56 = vmul.f32 %v1010_v46, %v818_v15  ;;  %v1106_v57 = vmul.f32 %v1042_v47, %v850_v16  ;;  %v947_v0 = vmax.f32 %v883_v52, 0.0  ;;  %v979_v1 = vmax.f32 %v915_v53, 0.0 }
 0x10e   :  { %v1073_v62 = vmul.f32 %v1009_v50, %v817_v21  ;;  %v1105_v63 = vmul.f32 %v1041_v51, %v849_v22  ;;  %v1012_v4 = vmin.f32 %v948_v58, 6.0  ;;  %v1044_v5 = vmin.f32 %v980_v59, 6.0 }
 0x10f   :  { %v1138_v2 = vmul.f32 0.16666667, %v1074_v56  ;;  %v1170_v3 = vmul.f32 0.16666667, %v1106_v57  ;;  %v1011_v8 = vmin.f32 %v947_v0, 6.0  ;;  %v1043_v9 = vmin.f32 %v979_v1, 6.0 }
 0x110   :  { %v1137_v6 = vmul.f32 0.16666667, %v1073_v62  ;;  %v1169_v7 = vmul.f32 0.16666667, %v1105_v63  ;;  %v1076_v10 = vmul.f32 %v1012_v4, %v820_v36  ;;  %v1108_v11 = vmul.f32 %v1044_v5, %v852_v37  ;;  %v1835_v14 = vpop.f32.mrb[12].mxu0  ;;  %v1837_v15 = vpop.f32.mrb[12].mxu1 }
 0x111   :  { %1202 = vst [vmem:[%s2166_s3 + $0x28] sm:$0xff] %v1138_v2  ;;  %1234 = vst [vmem:[%s2166_s3 + $0x128] sm:$0xff] %v1170_v3  ;;  %v822_v12 = vadd.f32 %v1392_v38, %v1785_v24  ;;  %v854_v13 = vadd.f32 %v1440_v39, %v1785_v24  ;;  %v1075_v16 = vmul.f32 %v1011_v8, %v819_v42  ;;  %v1847_v20 = vpop.f32.mrb[13].mxu0  ;;  %v1849_v21 = vpop.f32.mrb[13].mxu1 }
 0x112   :  { %1201 = vst [vmem:[%s2166_s3 + $0x20] sm:$0xff] %v1137_v6  ;;  %1233 = vst [vmem:[%s2166_s3 + $0x120] sm:$0xff] %v1169_v7  ;;  %v1107_v17 = vmul.f32 %v1043_v9, %v851_v43  ;;  %v821_v18 = vadd.f32 %v1785_v24, %v332_v44  ;;  %v853_v19 = vadd.f32 %v1785_v24, %v492_v45  ;;  %v1140_v22 = vmul.f32 0.16666667, %v1076_v10 }
 0x113   :  { %v1172_v23 = vmul.f32 0.16666667, %v1108_v11  ;;  %v886_v25 = vadd.f32 3.0, %v822_v12  ;;  %v918_v26 = vadd.f32 3.0, %v854_v13  ;;  %v1139_v27 = vmul.f32 0.16666667, %v1075_v16 }
 0x114   :  { %v1171_v28 = vmul.f32 0.16666667, %v1107_v17  ;;  %v885_v29 = vadd.f32 3.0, %v821_v18  ;;  %v917_v30 = vadd.f32 3.0, %v853_v19  ;;  %1204 = vst [vmem:[%s2166_s3 + $0x38] sm:$0xff] %v1140_v22  ;;  %v824_v33 = vadd.f32 %v1395_v54, %v1785_v24  ;;  %v1859_v35 = vpop.f32.mrb[14].mxu0 }
 0x115   :  { %1236 = vst [vmem:[%s2166_s3 + $0x138] sm:$0xff] %v1172_v23  ;;  %v950_v31 = vmax.f32 %v886_v25, 0.0  ;;  %v982_v32 = vmax.f32 %v918_v26, 0.0  ;;  %v856_v34 = vadd.f32 %v1443_v55, %v1785_v24  ;;  %v1861_v36 = vpop.f32.mrb[14].mxu1  ;;  %1203 = vst [vmem:[%s2166_s3 + $0x30] sm:$0xff] %v1139_v27  ;;  %v823_v39 = vadd.f32 %v1785_v24, %v342_v60  ;;  %v1871_v41 = vpop.f32.mrb[15].mxu0 }
 0x116   :  { %1235 = vst [vmem:[%s2166_s3 + $0x130] sm:$0xff] %v1171_v28  ;;  %v949_v37 = vmax.f32 %v885_v29, 0.0  ;;  %v981_v38 = vmax.f32 %v917_v30, 0.0  ;;  %v855_v40 = vadd.f32 %v1785_v24, %v502_v61  ;;  %v1873_v42 = vpop.f32.mrb[15].mxu1  ;;  %v888_v45 = vadd.f32 3.0, %v824_v33 }
 0x117   :  { %v1014_v43 = vmin.f32 %v950_v31, 6.0  ;;  %v1046_v44 = vmin.f32 %v982_v32, 6.0  ;;  %v920_v46 = vadd.f32 3.0, %v856_v34  ;;  %v887_v49 = vadd.f32 3.0, %v823_v39  ;;  %v1875_v51 = vpop.f32.mrb[16].mxu0  ;;  %v1877_v52 = vpop.f32.mrb[16].mxu1 }
 0x118   :  { %v1013_v47 = vmin.f32 %v949_v37, 6.0  ;;  %v1045_v48 = vmin.f32 %v981_v38, 6.0  ;;  %v919_v50 = vadd.f32 3.0, %v855_v40  ;;  %v952_v55 = vmax.f32 %v888_v45, 0.0  ;;  %v1879_v57 = vpop.f32.mrb[17].mxu0  ;;  %v1881_v58 = vpop.f32.mrb[17].mxu1 }
 0x119   :  { %v1078_v53 = vmul.f32 %v1014_v43, %v822_v12  ;;  %v1110_v54 = vmul.f32 %v1046_v44, %v854_v13  ;;  %v984_v56 = vmax.f32 %v920_v46, 0.0  ;;  %v951_v61 = vmax.f32 %v887_v49, 0.0 }
 0x11a   :  { %v1077_v59 = vmul.f32 %v1013_v47, %v821_v18  ;;  %v1109_v60 = vmul.f32 %v1045_v48, %v853_v19  ;;  %v983_v62 = vmax.f32 %v919_v50, 0.0  ;;  %v1016_v1 = vmin.f32 %v952_v55, 6.0 }
 0x11b   :  { %v1142_v63 = vmul.f32 0.16666667, %v1078_v53  ;;  %v1174_v0 = vmul.f32 0.16666667, %v1110_v54  ;;  %v1048_v2 = vmin.f32 %v984_v56, 6.0  ;;  %v1015_v5 = vmin.f32 %v951_v61, 6.0 }
 0x11c   :  { %v1141_v3 = vmul.f32 0.16666667, %v1077_v59  ;;  %v1173_v4 = vmul.f32 0.16666667, %v1109_v60  ;;  %v1047_v6 = vmin.f32 %v983_v62, 6.0  ;;  %v1080_v7 = vmul.f32 %v1016_v1, %v824_v33  ;;  %v1893_v11 = vpop.f32.mrb[18].mxu0 }
 0x11d   :  { %1206 = vst [vmem:[%s2166_s3 + $0x48] sm:$0xff] %v1142_v63  ;;  %1238 = vst [vmem:[%s2166_s3 + $0x148] sm:$0xff] %v1174_v0  ;;  %v1112_v8 = vmul.f32 %v1048_v2, %v856_v34  ;;  %v826_v9 = vadd.f32 %v1835_v14, %v1785_v24  ;;  %v858_v10 = vadd.f32 %v1837_v15, %v1785_v24  ;;  %v1895_v12 = vpop.f32.mrb[18].mxu1  ;;  %v1907_v17 = vpop.f32.mrb[19].mxu0 }
 0x11e   :  { %1205 = vst [vmem:[%s2166_s3 + $0x40] sm:$0xff] %v1141_v3  ;;  %1237 = vst [vmem:[%s2166_s3 + $0x140] sm:$0xff] %v1173_v4  ;;  %v1079_v13 = vmul.f32 %v1015_v5, %v823_v39  ;;  %v1111_v16 = vmul.f32 %v1047_v6, %v855_v40  ;;  %v825_v14 = vadd.f32 %v1785_v24, %v1847_v20  ;;  %v1909_v18 = vpop.f32.mrb[19].mxu1  ;;  %v1144_v19 = vmul.f32 0.16666667, %v1080_v7 }
 0x11f   :  { %v857_v15 = vadd.f32 %v1785_v24, %v1849_v21  ;;  %v1176_v22 = vmul.f32 0.16666667, %v1112_v8  ;;  %v890_v23 = vadd.f32 3.0, %v826_v9  ;;  %v922_v25 = vadd.f32 3.0, %v858_v10  ;;  %v1921_v32 = vpop.f32.mrb[20].mxu0  ;;  %v1923_v33 = vpop.f32.mrb[20].mxu1 }
 0x120   :  { %v1143_v26 = vmul.f32 0.16666667, %v1079_v13  ;;  %v1175_v27 = vmul.f32 0.16666667, %v1111_v16  ;;  %v889_v28 = vadd.f32 3.0, %v825_v14  ;;  %1208 = vst [vmem:[%s2166_s3 + $0x58] sm:$0xff] %v1144_v19  ;;  %v828_v30 = vadd.f32 %v1859_v35, %v1785_v24 }
 0x121   :  { %v921_v29 = vadd.f32 3.0, %v857_v15  ;;  %1240 = vst [vmem:[%s2166_s3 + $0x158] sm:$0xff] %v1176_v22  ;;  %v954_v20 = vmax.f32 %v890_v23, 0.0  ;;  %v986_v21 = vmax.f32 %v922_v25, 0.0  ;;  %v860_v31 = vadd.f32 %v1861_v36, %v1785_v24  ;;  %v1935_v38 = vpop.f32.mrb[21].mxu0  ;;  %v1937_v39 = vpop.f32.mrb[21].mxu1 }
 0x122   :  { %1207 = vst [vmem:[%s2166_s3 + $0x50] sm:$0xff] %v1143_v26  ;;  %1239 = vst [vmem:[%s2166_s3 + $0x150] sm:$0xff] %v1175_v27  ;;  %v953_v34 = vmax.f32 %v889_v28, 0.0  ;;  %v827_v35 = vadd.f32 %v1785_v24, %v1871_v41  ;;  %v859_v36 = vadd.f32 %v1785_v24, %v1873_v42  ;;  %v892_v44 = vadd.f32 3.0, %v828_v30 }
 0x123   :  { %v985_v37 = vmax.f32 %v921_v29, 0.0  ;;  %v1018_v40 = vmin.f32 %v954_v20, 6.0  ;;  %v1050_v43 = vmin.f32 %v986_v21, 6.0  ;;  %v924_v45 = vadd.f32 3.0, %v860_v31  ;;  %v1939_v50 = vpop.f32.mrb[22].mxu0  ;;  %v1941_v53 = vpop.f32.mrb[22].mxu1 }
 0x124   :  { %v1017_v46 = vmin.f32 %v953_v34, 6.0  ;;  %v891_v48 = vadd.f32 3.0, %v827_v35  ;;  %v923_v49 = vadd.f32 3.0, %v859_v36  ;;  %v956_v55 = vmax.f32 %v892_v44, 0.0  ;;  %v1943_v56 = vpop.f32.mrb[23].mxu0  ;;  %v1945_v59 = vpop.f32.mrb[23].mxu1 }
 0x125   :  { %v1049_v47 = vmin.f32 %v985_v37, 6.0  ;;  %v1082_v41 = vmul.f32 %v1018_v40, %v826_v9  ;;  %v1114_v54 = vmul.f32 %v1050_v43, %v858_v10  ;;  %v988_v42 = vmax.f32 %v924_v45, 0.0 }
 0x126   :  { %v1081_v60 = vmul.f32 %v1017_v46, %v825_v14  ;;  %v955_v62 = vmax.f32 %v891_v48, 0.0  ;;  %v987_v63 = vmax.f32 %v923_v49, 0.0  ;;  %v1020_v2 = vmin.f32 %v956_v55, 6.0 }
 0x127   :  { %v1113_v61 = vmul.f32 %v1049_v47, %v857_v15  ;;  %v1146_v0 = vmul.f32 0.16666667, %v1082_v41  ;;  %v1178_v1 = vmul.f32 0.16666667, %v1114_v54  ;;  %v1052_v3 = vmin.f32 %v988_v42, 6.0  ;;  %v1957_v16 = vpop.f32.mrb[24].mxu0 }
 0x128   :  { %v1145_v4 = vmul.f32 0.16666667, %v1081_v60  ;;  %v1019_v6 = vmin.f32 %v955_v62, 6.0  ;;  %v1051_v7 = vmin.f32 %v987_v63, 6.0  ;;  %v1084_v8 = vmul.f32 %v1020_v2, %v828_v30  ;;  %v1959_v14 = vpop.f32.mrb[24].mxu1  ;;  %v1971_v22 = vpop.f32.mrb[25].mxu0 }
 0x129   :  { %v1177_v5 = vmul.f32 0.16666667, %v1113_v61  ;;  %1210 = vst [vmem:[%s2166_s3 + $0x68] sm:$0xff] %v1146_v0  ;;  %1242 = vst [vmem:[%s2166_s3 + $0x168] sm:$0xff] %v1178_v1  ;;  %v1116_v9 = vmul.f32 %v1052_v3, %v860_v31  ;;  %v830_v10 = vadd.f32 %v1875_v51, %v1785_v24  ;;  %v862_v13 = vadd.f32 %v1877_v52, %v1785_v24  ;;  %v1973_v23 = vpop.f32.mrb[25].mxu1 }
 0x12a   :  { %1209 = vst [vmem:[%s2166_s3 + $0x60] sm:$0xff] %v1145_v4  ;;  %v1083_v15 = vmul.f32 %v1019_v6, %v827_v35  ;;  %v1115_v19 = vmul.f32 %v1051_v7, %v859_v36  ;;  %v829_v51 = vadd.f32 %v1785_v24, %v1879_v57  ;;  %v861_v52 = vadd.f32 %v1785_v24, %v1881_v58 }
 0x12b   :  { %1241 = vst [vmem:[%s2166_s3 + $0x160] sm:$0xff] %v1177_v5  ;;  %v1148_v25 = vmul.f32 0.16666667, %v1084_v8  ;;  %v1180_v26 = vmul.f32 0.16666667, %v1116_v9  ;;  %v894_v27 = vadd.f32 3.0, %v830_v10  ;;  %v832_v31 = vadd.f32 %v1893_v11, %v1785_v24 }
 0x12c   :  { %v926_v28 = vadd.f32 3.0, %v862_v13  ;;  %v1147_v29 = vmul.f32 0.16666667, %v1083_v15  ;;  %v1179_v20 = vmul.f32 0.16666667, %v1115_v19  ;;  %v893_v21 = vadd.f32 3.0, %v829_v51 }
 0x12d   :  { %v925_v30 = vadd.f32 3.0, %v861_v52  ;;  %1212 = vst [vmem:[%s2166_s3 + $0x78] sm:$0xff] %v1148_v25  ;;  %1244 = vst [vmem:[%s2166_s3 + $0x178] sm:$0xff] %v1180_v26  ;;  %v958_v57 = vmax.f32 %v894_v27, 0.0  ;;  %v864_v34 = vadd.f32 %v1895_v12, %v1785_v24  ;;  %v1985_v37 = vpop.f32.mrb[26].mxu0  ;;  %v1987_v35 = vpop.f32.mrb[26].mxu1  ;;  %v831_v11 = vadd.f32 %v1785_v24, %v1907_v17 }
 0x12e   :  { %v990_v58 = vmax.f32 %v926_v28, 0.0  ;;  %1211 = vst [vmem:[%s2166_s3 + $0x70] sm:$0xff] %v1147_v29  ;;  %1243 = vst [vmem:[%s2166_s3 + $0x170] sm:$0xff] %v1179_v20  ;;  %v957_v36 = vmax.f32 %v893_v21, 0.0  ;;  %v863_v12 = vadd.f32 %v1785_v24, %v1909_v18  ;;  %v1999_v43 = vpop.f32.mrb[27].mxu0  ;;  %v2001_v44 = vpop.f32.mrb[27].mxu1 }
 0x12f   :  { %v989_v40 = vmax.f32 %v925_v30, 0.0  ;;  %v1022_v45 = vmin.f32 %v958_v57, 6.0  ;;  %v896_v47 = vadd.f32 3.0, %v832_v31  ;;  %v928_v48 = vadd.f32 3.0, %v864_v34  ;;  %v2003_v42 = vpop.f32.mrb[28].mxu0  ;;  %v2005_v60 = vpop.f32.mrb[28].mxu1 }
 0x130   :  { %v1054_v46 = vmin.f32 %v990_v58, 6.0  ;;  %v1021_v49 = vmin.f32 %v957_v36, 6.0  ;;  %v895_v54 = vadd.f32 3.0, %v831_v11  ;;  %v927_v55 = vadd.f32 3.0, %v863_v12  ;;  %v2007_v63 = vpop.f32.mrb[29].mxu0  ;;  %v2009_v0 = vpop.f32.mrb[29].mxu1 }
 0x131   :  { %v1053_v41 = vmin.f32 %v989_v40, 6.0  ;;  %v1086_v17 = vmul.f32 %v1022_v45, %v830_v10  ;;  %v960_v62 = vmax.f32 %v896_v47, 0.0  ;;  %v992_v18 = vmax.f32 %v928_v48, 0.0 }
 0x132   :  { %v1118_v61 = vmul.f32 %v1054_v46, %v862_v13  ;;  %v1085_v1 = vmul.f32 %v1021_v49, %v829_v51  ;;  %v959_v3 = vmax.f32 %v895_v54, 0.0  ;;  %v991_v4 = vmax.f32 %v927_v55, 0.0 }
 0x133   :  { %v1117_v2 = vmul.f32 %v1053_v41, %v861_v52  ;;  %v1150_v5 = vmul.f32 0.16666667, %v1086_v17  ;;  %v1024_v7 = vmin.f32 %v960_v62, 6.0  ;;  %v1056_v8 = vmin.f32 %v992_v18, 6.0  ;;  %v2021_v26 = vpop.f32.mrb[30].mxu0  ;;  %v2023_v27 = vpop.f32.mrb[30].mxu1 }
 0x134   :  { %v1182_v6 = vmul.f32 0.16666667, %v1118_v61  ;;  %v1149_v9 = vmul.f32 0.16666667, %v1085_v1  ;;  %v1023_v19 = vmin.f32 %v959_v3, 6.0  ;;  %v1055_v25 = vmin.f32 %v991_v4, 6.0 }
 0x135   :  { %v1181_v15 = vmul.f32 0.16666667, %v1117_v2  ;;  %1214 = vst [vmem:[%s2166_s3 + $0x88] sm:$0xff] %v1150_v5  ;;  %v1088_v10 = vmul.f32 %v1024_v7, %v832_v31  ;;  %v1120_v13 = vmul.f32 %v1056_v8, %v864_v34  ;;  %v834_v51 = vadd.f32 %v1921_v32, %v1785_v24  ;;  %v2035_v20 = vpop.f32.mrb[31].mxu0  ;;  %v2037_v21 = vpop.f32.mrb[31].mxu1 }
 0x136   :  { %1246 = vst [vmem:[%s2166_s3 + $0x188] sm:$0xff] %v1182_v6  ;;  %v866_v52 = vadd.f32 %v1923_v33, %v1785_v24  ;;  %1213 = vst [vmem:[%s2166_s3 + $0x80] sm:$0xff] %v1149_v9  ;;  %v1087_v28 = vmul.f32 %v1023_v19, %v831_v11  ;;  %v1119_v29 = vmul.f32 %v1055_v25, %v863_v12 }
 0x137   :  { %1245 = vst [vmem:[%s2166_s3 + $0x180] sm:$0xff] %v1181_v15  ;;  %v833_v32 = vadd.f32 %v1785_v24, %v1935_v38  ;;  %v865_v33 = vadd.f32 %v1785_v24, %v1937_v39  ;;  %v1152_v30 = vmul.f32 0.16666667, %v1088_v10  ;;  %v1184_v57 = vmul.f32 0.16666667, %v1120_v13 }
 0x138   :  { %v898_v58 = vadd.f32 3.0, %v834_v51  ;;  %v930_v31 = vadd.f32 3.0, %v866_v52  ;;  %v1151_v34 = vmul.f32 0.16666667, %v1087_v28  ;;  %v1183_v36 = vmul.f32 0.16666667, %v1119_v29 }
 0x139   :  { %v897_v40 = vadd.f32 3.0, %v833_v32  ;;  %v929_v45 = vadd.f32 3.0, %v865_v33  ;;  %1216 = vst [vmem:[%s2166_s3 + $0x98] sm:$0xff] %v1152_v30  ;;  %1248 = vst [vmem:[%s2166_s3 + $0x198] sm:$0xff] %v1184_v57  ;;  %v836_v11 = vadd.f32 %v1939_v50, %v1785_v24  ;;  %v868_v12 = vadd.f32 %v1941_v53, %v1785_v24 }
 0x13a   :  { %v962_v38 = vmax.f32 %v898_v58, 0.0  ;;  %v994_v39 = vmax.f32 %v930_v31, 0.0  ;;  %1215 = vst [vmem:[%s2166_s3 + $0x90] sm:$0xff] %v1151_v34  ;;  %1247 = vst [vmem:[%s2166_s3 + $0x190] sm:$0xff] %v1183_v36  ;;  %v835_v48 = vadd.f32 %v1785_v24, %v1943_v56  ;;  %v867_v49 = vadd.f32 %v1785_v24, %v1945_v59 }
 0x13b   :  { %v961_v46 = vmax.f32 %v897_v40, 0.0  ;;  %v993_v47 = vmax.f32 %v929_v45, 0.0  ;;  %v900_v54 = vadd.f32 3.0, %v836_v11  ;;  %v932_v53 = vadd.f32 3.0, %v868_v12 }
 0x13c   :  { %v1026_v50 = vmin.f32 %v962_v38, 6.0  ;;  %v1058_v41 = vmin.f32 %v994_v39, 6.0  ;;  %v899_v61 = vadd.f32 3.0, %v835_v48  ;;  %v931_v62 = vadd.f32 3.0, %v867_v49 }
 0x13d   :  { %v1025_v55 = vmin.f32 %v961_v46, 6.0  ;;  %v1057_v17 = vmin.f32 %v993_v47, 6.0  ;;  %v964_v2 = vmax.f32 %v900_v54, 0.0  ;;  %v996_v3 = vmax.f32 %v932_v53, 0.0 }
 0x13e   :  { %v1090_v18 = vmul.f32 %v1026_v50, %v834_v51  ;;  %v1122_v1 = vmul.f32 %v1058_v41, %v866_v52  ;;  %v963_v6 = vmax.f32 %v899_v61, 0.0  ;;  %v995_v7 = vmax.f32 %v931_v62, 0.0 }
 0x13f   :  { %v1089_v4 = vmul.f32 %v1025_v55, %v833_v32  ;;  %v1121_v5 = vmul.f32 %v1057_v17, %v865_v33  ;;  %v1028_v9 = vmin.f32 %v964_v2, 6.0  ;;  %v1060_v59 = vmin.f32 %v996_v3, 6.0 }
 0x140   :  { %v1154_v56 = vmul.f32 0.16666667, %v1090_v18  ;;  %v1186_v8 = vmul.f32 0.16666667, %v1122_v1  ;;  %v1027_v25 = vmin.f32 %v963_v6, 6.0  ;;  %v1059_v10 = vmin.f32 %v995_v7, 6.0 }
 0x141   :  { %v1153_v15 = vmul.f32 0.16666667, %v1089_v4  ;;  %v1185_v19 = vmul.f32 0.16666667, %v1121_v5  ;;  %v1092_v13 = vmul.f32 %v1028_v9, %v836_v11  ;;  %v1124_v51 = vmul.f32 %v1060_v59, %v868_v12 }
 0x142   :  { %1218 = vst [vmem:[%s2166_s3 + $0xa8] sm:$0xff] %v1154_v56  ;;  %1250 = vst [vmem:[%s2166_s3 + $0x1a8] sm:$0xff] %v1186_v8  ;;  %v838_v52 = vadd.f32 %v1957_v16, %v1785_v24  ;;  %v870_v28 = vadd.f32 %v1959_v14, %v1785_v24  ;;  %v1091_v29 = vmul.f32 %v1027_v25, %v835_v48 }
 0x143   :  { %1217 = vst [vmem:[%s2166_s3 + $0xa0] sm:$0xff] %v1153_v15  ;;  %1249 = vst [vmem:[%s2166_s3 + $0x1a0] sm:$0xff] %v1185_v19  ;;  %v1123_v32 = vmul.f32 %v1059_v10, %v867_v49  ;;  %v837_v33 = vadd.f32 %v1785_v24, %v1971_v22  ;;  %v869_v30 = vadd.f32 %v1785_v24, %v1973_v23  ;;  %v1156_v16 = vmul.f32 0.16666667, %v1092_v13 }
 0x144   :  { %v1188_v57 = vmul.f32 0.16666667, %v1124_v51  ;;  %v902_v58 = vadd.f32 3.0, %v838_v52  ;;  %v934_v14 = vadd.f32 3.0, %v870_v28  ;;  %v1155_v31 = vmul.f32 0.16666667, %v1091_v29 }
 0x145   :  { %v1187_v34 = vmul.f32 0.16666667, %v1123_v32  ;;  %v901_v36 = vadd.f32 3.0, %v837_v33  ;;  %v933_v40 = vadd.f32 3.0, %v869_v30  ;;  %1220 = vst [vmem:[%s2166_s3 + $0xb8] sm:$0xff] %v1156_v16  ;;  %v840_v23 = vadd.f32 %v1985_v37, %v1785_v24 }
 0x146   :  { %1252 = vst [vmem:[%s2166_s3 + $0x1b8] sm:$0xff] %v1188_v57  ;;  %v966_v22 = vmax.f32 %v902_v58, 0.0  ;;  %v998_v45 = vmax.f32 %v934_v14, 0.0  ;;  %v872_v38 = vadd.f32 %v1987_v35, %v1785_v24  ;;  %1219 = vst [vmem:[%s2166_s3 + $0xb0] sm:$0xff] %v1155_v31  ;;  %v839_v12 = vadd.f32 %v1785_v24, %v1999_v43 }
 0x147   :  { %1251 = vst [vmem:[%s2166_s3 + $0x1b0] sm:$0xff] %v1187_v34  ;;  %v965_v39 = vmax.f32 %v901_v36, 0.0  ;;  %v997_v11 = vmax.f32 %v933_v40, 0.0  ;;  %v871_v46 = vadd.f32 %v1785_v24, %v2001_v44  ;;  %v904_v48 = vadd.f32 3.0, %v840_v23 }
 0x148   :  { %v1030_v37 = vmin.f32 %v966_v22, 6.0  ;;  %v1062_v47 = vmin.f32 %v998_v45, 6.0  ;;  %v936_v35 = vadd.f32 3.0, %v872_v38  ;;  %v903_v41 = vadd.f32 3.0, %v839_v12 }
 0x149   :  { %v1029_v49 = vmin.f32 %v965_v39, 6.0  ;;  %v1061_v50 = vmin.f32 %v997_v11, 6.0  ;;  %v935_v54 = vadd.f32 3.0, %v871_v46  ;;  %v968_v17 = vmax.f32 %v904_v48, 0.0 }
 0x14a   :  { %v1094_v53 = vmul.f32 %v1030_v37, %v838_v52  ;;  %v1126_v55 = vmul.f32 %v1062_v47, %v870_v28  ;;  %v1000_v61 = vmax.f32 %v936_v35, 0.0  ;;  %v967_v1 = vmax.f32 %v903_v41, 0.0 }
 0x14b   :  { %v1093_v62 = vmul.f32 %v1029_v49, %v837_v33  ;;  %v1125_v18 = vmul.f32 %v1061_v50, %v869_v30  ;;  %v999_v2 = vmax.f32 %v935_v54, 0.0  ;;  %v1032_v4 = vmin.f32 %v968_v17, 6.0 }
 0x14c   :  { %v1158_v43 = vmul.f32 0.16666667, %v1094_v53  ;;  %v1190_v3 = vmul.f32 0.16666667, %v1126_v55  ;;  %v1064_v44 = vmin.f32 %v1000_v61, 6.0  ;;  %v1031_v7 = vmin.f32 %v967_v1, 6.0 }
 0x14d   :  { %v1157_v5 = vmul.f32 0.16666667, %v1093_v62  ;;  %v1189_v6 = vmul.f32 0.16666667, %v1125_v18  ;;  %v1063_v56 = vmin.f32 %v999_v2, 6.0  ;;  %v1096_v8 = vmul.f32 %v1032_v4, %v840_v23 }
 0x14e   :  { %1222 = vst [vmem:[%s2166_s3 + $0xc8] sm:$0xff] %v1158_v43  ;;  %1254 = vst [vmem:[%s2166_s3 + $0x1c8] sm:$0xff] %v1190_v3  ;;  %v1128_v9 = vmul.f32 %v1064_v44, %v872_v38  ;;  %v842_v59 = vadd.f32 %v2003_v42, %v1785_v24  ;;  %v874_v15 = vadd.f32 %v2005_v60, %v1785_v24 }
 0x14f   :  { %1221 = vst [vmem:[%s2166_s3 + $0xc0] sm:$0xff] %v1157_v5  ;;  %1253 = vst [vmem:[%s2166_s3 + $0x1c0] sm:$0xff] %v1189_v6  ;;  %v1095_v19 = vmul.f32 %v1031_v7, %v839_v12  ;;  %v1127_v25 = vmul.f32 %v1063_v56, %v871_v46  ;;  %v841_v10 = vadd.f32 %v1785_v24, %v2007_v63  ;;  %v1160_v42 = vmul.f32 0.16666667, %v1096_v8 }
 0x150   :  { %v873_v13 = vadd.f32 %v1785_v24, %v2009_v0  ;;  %v1192_v51 = vmul.f32 0.16666667, %v1128_v9  ;;  %v906_v52 = vadd.f32 3.0, %v842_v59  ;;  %v938_v60 = vadd.f32 3.0, %v874_v15 }
 0x151   :  { %v1159_v28 = vmul.f32 0.16666667, %v1095_v19  ;;  %v1191_v29 = vmul.f32 0.16666667, %v1127_v25  ;;  %v905_v32 = vadd.f32 3.0, %v841_v10  ;;  %1224 = vst [vmem:[%s2166_s3 + $0xd8] sm:$0xff] %v1160_v42  ;;  %v844_v0 = vadd.f32 %v2021_v26, %v1785_v24 }
 0x152   :  { %v937_v33 = vadd.f32 3.0, %v873_v13  ;;  %1256 = vst [vmem:[%s2166_s3 + $0x1d8] sm:$0xff] %v1192_v51  ;;  %v970_v63 = vmax.f32 %v906_v52, 0.0  ;;  %v1002_v30 = vmax.f32 %v938_v60, 0.0  ;;  %v876_v16 = vadd.f32 %v2023_v27, %v1785_v24 }
 0x153   :  { %1223 = vst [vmem:[%s2166_s3 + $0xd0] sm:$0xff] %v1159_v28  ;;  %1255 = vst [vmem:[%s2166_s3 + $0x1d0] sm:$0xff] %v1191_v29  ;;  %v969_v57 = vmax.f32 %v905_v32, 0.0  ;;  %v843_v14 = vadd.f32 %v1785_v24, %v2035_v20  ;;  %v875_v31 = vadd.f32 %v1785_v24, %v2037_v21  ;;  %v908_v36 = vadd.f32 3.0, %v844_v0 }
 0x154   :  { %v1001_v58 = vmax.f32 %v937_v33, 0.0  ;;  %v1034_v26 = vmin.f32 %v970_v63, 6.0  ;;  %v1066_v34 = vmin.f32 %v1002_v30, 6.0  ;;  %v940_v27 = vadd.f32 3.0, %v876_v16 }
 0x155   :  { %v1033_v40 = vmin.f32 %v969_v57, 6.0  ;;  %v907_v45 = vadd.f32 3.0, %v843_v14  ;;  %v939_v23 = vadd.f32 3.0, %v875_v31  ;;  %v972_v11 = vmax.f32 %v908_v36, 0.0 }
 0x156   :  { %v1065_v22 = vmin.f32 %v1001_v58, 6.0  ;;  %v1098_v38 = vmul.f32 %v1034_v26, %v842_v59  ;;  %v1130_v39 = vmul.f32 %v1066_v34, %v874_v15  ;;  %v1004_v12 = vmax.f32 %v940_v27, 0.0 }
 0x157   :  { %v1097_v46 = vmul.f32 %v1033_v40, %v841_v10  ;;  %v971_v47 = vmax.f32 %v907_v45, 0.0  ;;  %v1003_v48 = vmax.f32 %v939_v23, 0.0  ;;  %v1036_v49 = vmin.f32 %v972_v11, 6.0 }
 0x158   :  { %v1129_v37 = vmul.f32 %v1065_v22, %v873_v13  ;;  %v1162_v20 = vmul.f32 0.16666667, %v1098_v38  ;;  %v1194_v35 = vmul.f32 0.16666667, %v1130_v39  ;;  %v1068_v24 = vmin.f32 %v1004_v12, 6.0 }
 0x159   :  { %v1161_v21 = vmul.f32 0.16666667, %v1097_v46  ;;  %v1035_v41 = vmin.f32 %v971_v47, 6.0  ;;  %v1067_v54 = vmin.f32 %v1003_v48, 6.0  ;;  %v1100_v53 = vmul.f32 %v1036_v49, %v844_v0 }
 0x15a   :  { %v1193_v50 = vmul.f32 0.16666667, %v1129_v37  ;;  %1226 = vst [vmem:[%s2166_s3 + $0xe8] sm:$0xff] %v1162_v20  ;;  %1258 = vst [vmem:[%s2166_s3 + $0x1e8] sm:$0xff] %v1194_v35  ;;  %v1132_v55 = vmul.f32 %v1068_v24, %v876_v16 }
 0x15b   :  { %1225 = vst [vmem:[%s2166_s3 + $0xe0] sm:$0xff] %v1161_v21  ;;  %v1099_v17 = vmul.f32 %v1035_v41, %v843_v14  ;;  %v1131_v61 = vmul.f32 %v1067_v54, %v875_v31  ;;  %v1164_v62 = vmul.f32 0.16666667, %v1100_v53 }
 0x15c   :  { %1257 = vst [vmem:[%s2166_s3 + $0x1e0] sm:$0xff] %v1193_v50  ;;  %v1196_v18 = vmul.f32 0.16666667, %v1132_v55 }
 0x15d   :  { %v1163_v1 = vmul.f32 0.16666667, %v1099_v17  ;;  %v1195_v2 = vmul.f32 0.16666667, %v1131_v61  ;;  %1228 = vst [vmem:[%s2166_s3 + $0xf8] sm:$0xff] %v1164_v62 }
 0x15e   :  { %1260 = vst [vmem:[%s2166_s3 + $0x1f8] sm:$0xff] %v1196_v18 }
 0x15f   :  { %1227 = vst [vmem:[%s2166_s3 + $0xf0] sm:$0xff] %v1163_v1  ;;  %1259 = vst [vmem:[%s2166_s3 + $0x1f0] sm:$0xff] %v1195_v2 }

// kernel: fairface_mobilenet_forward.11
= control target key start
LH: loop header
LB: loop body
LE: loop exit
PB: predicated region body
PF: predicated region fallthrough
CT: control target
= control target key end

     0   :  { %v593_v3 = vmov 0.0   ;;  %v594_v4 = vmov 0.0|0.0   ;;  %vm213_vm0 = vcmask 1041409   ;;  %vm320_vm1 = vcmask 523264   ;;  %s1043_s1 = inlined_call_operand.vmem [shape: f32[128,192], index: 1, kind: input, shape index: {}]   ;;  %s1044_s0 = inlined_call_operand.vmem [shape: f32[2,256,128], index: 0, kind: input, shape index: {}]   ;;  %s1045_s3 = inlined_call_operand.vmem [shape: f32[192,48], index: 3, kind: input, shape index: {}]   ;;  %s1046_s5 = inlined_call_operand.vmem [shape: f32[48,128], index: 5, kind: input, shape index: {}]   ;;  %s1047_s2 = inlined_call_operand.vmem [shape: f32[1,192], index: 2, kind: input, shape index: {}]   ;;  %s1048_s4 = inlined_call_operand.vmem [shape: f32[1,48], index: 4, kind: input, shape index: {}]   ;;  %s1049_s6 = inlined_call_operand.vmem [shape: f32[1,128], index: 6, kind: input, shape index: {}]   ;;  %s1050_s7 = inlined_call_operand.vmem [shape: f32[2,128], index: 7, kind: output, shape index: {}]  }
   0x1   :  { %v168_v0 = vld [vmem:[%s1043_s1 + $0x8] sm:$0xff]  ;;  %v170_v1 = vld [vmem:[%s1043_s1 + $0x18] sm:$0xff]  ;;  %v167_v2 = vld [vmem:[%s1043_s1] sm:$0xff]  ;;  %280 = vmatprep.mubr.f32.mxu0 %v593_v3  ;;  %545 = vmatprep.subr.bf16.mxu1 %v594_v4  ;;  %vm595_vm2 = vmmov 0   ;;  %vm408_vm3 = vcmask 392192  }
   0x2   :  { %v513_v5 = vpack.c.bf16 %v170_v1, %v168_v0  ;;  %v169_v6 = vld [vmem:[%s1043_s1 + $0x10] sm:$0xff]  ;;  %v172_v7 = vld [vmem:[%s1043_s1 + $0x28] sm:$0xff]  ;;  %v174_v8 = vld [vmem:[%s1043_s1 + $0x38] sm:$0xff] }
   0x3   :  { %v515_v9 = vpack.c.bf16 %v169_v6, %v167_v2  ;;  %v517_v10 = vpack.c.bf16 %v174_v8, %v172_v7  ;;  %v171_v11 = vld [vmem:[%s1043_s1 + $0x20] sm:$0xff]  ;;  %v173_v12 = vld [vmem:[%s1043_s1 + $0x30] sm:$0xff]  ;;  %v176_v13 = vld [vmem:[%s1043_s1 + $0x48] sm:$0xff] }
   0x4   :  { %514 = vmatprep.subr.bf16.mxu0 %v513_v5  ;;  %v178_v14 = vld [vmem:[%s1043_s1 + $0x58] sm:$0xff]  ;;  %v519_v15 = vpack.c.bf16 %v173_v12, %v171_v11  ;;  %v175_v17 = vld [vmem:[%s1043_s1 + $0x40] sm:$0xff]  ;;  %v177_v18 = vld [vmem:[%s1043_s1 + $0x50] sm:$0xff] }
   0x5   :  { %516 = vmatpush1.bf16.msra.mxu0 %v515_v9  ;;  %v521_v16 = vpack.c.bf16 %v178_v14, %v176_v13  ;;  %v180_v19 = vld [vmem:[%s1043_s1 + $0x68] sm:$0xff]  ;;  %v182_v20 = vld [vmem:[%s1043_s1 + $0x78] sm:$0xff]  ;;  %v523_v21 = vpack.c.bf16 %v177_v18, %v175_v17  ;;  %v179_v23 = vld [vmem:[%s1043_s1 + $0x60] sm:$0xff] }
   0x6   :  { %518 = vmatprep.subr.bf16.mxu0 %v517_v10  ;;  %v525_v22 = vpack.c.bf16 %v182_v20, %v180_v19  ;;  %v181_v24 = vld [vmem:[%s1043_s1 + $0x70] sm:$0xff]  ;;  %v184_v25 = vld [vmem:[%s1043_s1 + $0x88] sm:$0xff]  ;;  %v186_v26 = vld [vmem:[%s1043_s1 + $0x98] sm:$0xff] }
   0x7   :  { %v26_v27 = vld [vmem:[%s1044_s0] sm:$0xff]  ;;  %v27_v28 = vld [vmem:[%s1044_s0 + $0x8] sm:$0xff]  ;;  %v28_v29 = vld [vmem:[%s1044_s0 + $0x10] sm:$0xff]  ;;  %v527_v30 = vpack.c.bf16 %v181_v24, %v179_v23  ;;  %v529_v32 = vpack.c.bf16 %v186_v26, %v184_v25 }
   0x8   :  { %v90_v31 = vadd.f32 %v27_v28, %v26_v27  ;;  %v183_v33 = vld [vmem:[%s1043_s1 + $0x80] sm:$0xff]  ;;  %v185_v34 = vld [vmem:[%s1043_s1 + $0x90] sm:$0xff]  ;;  %v29_v35 = vld [vmem:[%s1044_s0 + $0x18] sm:$0xff] }
   0x9   :  { %520 = vmatpush1.bf16.msra.mxu0 %v519_v15  ;;  %v188_v36 = vld [vmem:[%s1043_s1 + $0xa8] sm:$0xff]  ;;  %v190_v37 = vld [vmem:[%s1043_s1 + $0xb8] sm:$0xff]  ;;  %v30_v39 = vld [vmem:[%s1044_s0 + $0x20] sm:$0xff]  ;;  %v531_v40 = vpack.c.bf16 %v185_v34, %v183_v33 }
   0xa   :  { %522 = vmatprep.subr.bf16.mxu0 %v521_v16  ;;  %v91_v38 = vadd.f32 %v90_v31, %v28_v29  ;;  %v533_v42 = vpack.c.bf16 %v190_v37, %v188_v36  ;;  %v187_v43 = vld [vmem:[%s1043_s1 + $0xa0] sm:$0xff]  ;;  %v189_v44 = vld [vmem:[%s1043_s1 + $0xb0] sm:$0xff]  ;;  %v31_v45 = vld [vmem:[%s1044_s0 + $0x28] sm:$0xff] }
   0xb   :  { %v192_v46 = vld [vmem:[%s1043_s1 + $0xc8] sm:$0xff]  ;;  %v194_v47 = vld [vmem:[%s1043_s1 + $0xd8] sm:$0xff]  ;;  %v32_v49 = vld [vmem:[%s1044_s0 + $0x30] sm:$0xff]  ;;  %v535_v50 = vpack.c.bf16 %v189_v44, %v187_v43 }
   0xc   :  { %v92_v41 = vadd.f32 %v91_v38, %v29_v35  ;;  %v191_v51 = vld [vmem:[%s1043_s1 + $0xc0] sm:$0xff]  ;;  %v193_v52 = vld [vmem:[%s1043_s1 + $0xd0] sm:$0xff]  ;;  %v537_v54 = vpack.c.bf16 %v194_v47, %v192_v46  ;;  %v33_v55 = vld [vmem:[%s1044_s0 + $0x38] sm:$0xff] }
   0xd   :  { %524 = vmatpush1.bf16.msra.mxu0 %v523_v21  ;;  %v58_v56 = vld [vmem:[%s1044_s0 + $0x100] sm:$0xff]  ;;  %v59_v57 = vld [vmem:[%s1044_s0 + $0x108] sm:$0xff]  ;;  %v198_v59 = vld [vmem:[%s1043_s1 + $0xf8] sm:$0xff]  ;;  %v539_v1 = vpack.c.bf16 %v193_v52, %v191_v51 }
   0xe   :  { %526 = vmatprep.subr.bf16.mxu0 %v525_v22  ;;  %v93_v48 = vadd.f32 %v92_v41, %v30_v39  ;;  %v196_v58 = vld [vmem:[%s1043_s1 + $0xe8] sm:$0xff]  ;;  %v60_v60 = vld [vmem:[%s1044_s0 + $0x110] sm:$0xff]  ;;  %v127_v62 = vadd.f32 %v59_v57, %v58_v56  ;;  %v34_v63 = vld [vmem:[%s1044_s0 + $0x40] sm:$0xff] }
   0xf   :  { %v61_v0 = vld [vmem:[%s1044_s0 + $0x118] sm:$0xff]  ;;  %v195_v2 = vld [vmem:[%s1043_s1 + $0xe0] sm:$0xff]  ;;  %v541_v7 = vpack.c.bf16 %v198_v59, %v196_v58  ;;  %v197_v8 = vld [vmem:[%s1043_s1 + $0xf0] sm:$0xff] }
  0x10   :  { %v94_v53 = vadd.f32 %v93_v48, %v31_v45  ;;  %v128_v6 = vadd.f32 %v127_v62, %v60_v60  ;;  %v35_v9 = vld [vmem:[%s1044_s0 + $0x48] sm:$0xff]  ;;  %v62_v10 = vld [vmem:[%s1044_s0 + $0x120] sm:$0xff]  ;;  %v36_v13 = vld [vmem:[%s1044_s0 + $0x50] sm:$0xff]  ;;  %v543_v15 = vpack.c.bf16 %v197_v8, %v195_v2 }
  0x11   :  { %528 = vmatpush1.bf16.msra.mxu0 %v527_v30  ;;  %v63_v14 = vld [vmem:[%s1044_s0 + $0x128] sm:$0xff]  ;;  %v37_v18 = vld [vmem:[%s1044_s0 + $0x58] sm:$0xff]  ;;  %v64_v19 = vld [vmem:[%s1044_s0 + $0x130] sm:$0xff] }
  0x12   :  { %530 = vmatprep.subr.bf16.mxu0 %v529_v32  ;;  %v95_v61 = vadd.f32 %v94_v53, %v32_v49  ;;  %v129_v12 = vadd.f32 %v128_v6, %v61_v0  ;;  %v38_v22 = vld [vmem:[%s1044_s0 + $0x60] sm:$0xff]  ;;  %v65_v23 = vld [vmem:[%s1044_s0 + $0x138] sm:$0xff]  ;;  %v290_v27 = vld [vmem:[%s1045_s3 + $0x8] sm:$0xff] }
  0x13   :  { %v289_v26 = vld [vmem:[%s1045_s3] sm:$0xff]  ;;  %v291_v28 = vld [vmem:[%s1045_s3 + $0x10] sm:$0xff]  ;;  %v39_v29 = vld [vmem:[%s1044_s0 + $0x68] sm:$0xff] }
  0x14   :  { %v96_v5 = vadd.f32 %v95_v61, %v33_v55  ;;  %v130_v17 = vadd.f32 %v129_v12, %v62_v10  ;;  %v66_v30 = vld [vmem:[%s1044_s0 + $0x140] sm:$0xff]  ;;  %v546_v31 = vpack.c.bf16 %v290_v27, %v289_v26  ;;  %v292_v32 = vld [vmem:[%s1045_s3 + $0x18] sm:$0xff]  ;;  %v40_v35 = vld [vmem:[%s1044_s0 + $0x70] sm:$0xff] }
  0x15   :  { %532 = vmatpush1.bf16.msra.mxu0 %v531_v40  ;;  %v67_v36 = vld [vmem:[%s1044_s0 + $0x148] sm:$0xff]  ;;  %v549_v37 = vpack.c.bf16 %v292_v32, %v291_v28  ;;  %v293_v40 = vld [vmem:[%s1045_s3 + $0x20] sm:$0xff]  ;;  %v68_v43 = vld [vmem:[%s1044_s0 + $0x150] sm:$0xff] }
  0x16   :  { %534 = vmatprep.subr.bf16.mxu0 %v533_v42  ;;  %v97_v11 = vadd.f32 %v96_v5, %v34_v63  ;;  %v131_v21 = vadd.f32 %v130_v17, %v63_v14  ;;  %547 = vmatpush1.bf16.msra.mxu1 %v546_v31  ;;  %v294_v41 = vld [vmem:[%s1045_s3 + $0x28] sm:$0xff]  ;;  %v41_v42 = vld [vmem:[%s1044_s0 + $0x78] sm:$0xff]  ;;  %v42_v46 = vld [vmem:[%s1044_s0 + $0x80] sm:$0xff] }
  0x17   :  { %548 = vmatprep.subr.bf16.mxu1 %v594_v4  ;;  %v69_v47 = vld [vmem:[%s1044_s0 + $0x158] sm:$0xff]  ;;  %v552_v48 = vpack.c.bf16 %v294_v41, %v293_v40  ;;  %v295_v51 = vld [vmem:[%s1045_s3 + $0x30] sm:$0xff]  ;;  %v43_v53 = vld [vmem:[%s1044_s0 + $0x88] sm:$0xff] }
  0x18   :  { %v98_v16 = vadd.f32 %v97_v11, %v35_v9  ;;  %v132_v25 = vadd.f32 %v131_v21, %v64_v19  ;;  %v296_v52 = vld [vmem:[%s1045_s3 + $0x38] sm:$0xff]  ;;  %v44_v57 = vld [vmem:[%s1044_s0 + $0x90] sm:$0xff]  ;;  %v71_v58 = vld [vmem:[%s1044_s0 + $0x168] sm:$0xff] }
  0x19   :  { %536 = vmatpush1.bf16.msra.mxu0 %v535_v50  ;;  %v555_v59 = vpack.c.bf16 %v296_v52, %v295_v51  ;;  %v297_v62 = vld [vmem:[%s1045_s3 + $0x40] sm:$0xff]  ;;  %v298_v63 = vld [vmem:[%s1045_s3 + $0x48] sm:$0xff]  ;;  %v45_v0 = vld [vmem:[%s1044_s0 + $0x98] sm:$0xff] }
  0x1a   :  { %538 = vmatprep.subr.bf16.mxu0 %v537_v54  ;;  %v99_v20 = vadd.f32 %v98_v16, %v36_v13  ;;  %v133_v34 = vadd.f32 %v132_v25, %v65_v23  ;;  %550 = vmatpush1.bf16.msra.mxu1 %v549_v37  ;;  %v70_v54 = vld [vmem:[%s1044_s0 + $0x160] sm:$0xff]  ;;  %v558_v8 = vpack.c.bf16 %v298_v63, %v297_v62  ;;  %v299_v11 = vld [vmem:[%s1045_s3 + $0x50] sm:$0xff]  ;;  %v300_v12 = vld [vmem:[%s1045_s3 + $0x58] sm:$0xff] }
  0x1b   :  { %551 = vmatprep.subr.bf16.mxu1 %v594_v4  ;;  %v46_v6 = vld [vmem:[%s1044_s0 + $0xa0] sm:$0xff]  ;;  %v47_v13 = vld [vmem:[%s1044_s0 + $0xa8] sm:$0xff]  ;;  %v48_v17 = vld [vmem:[%s1044_s0 + $0xb0] sm:$0xff]  ;;  %v561_v19 = vpack.c.bf16 %v300_v12, %v299_v11 }
  0x1c   :  { %v100_v24 = vadd.f32 %v99_v20, %v37_v18  ;;  %v134_v39 = vadd.f32 %v133_v34, %v66_v30  ;;  %v74_v14 = vld [vmem:[%s1044_s0 + $0x180] sm:$0xff]  ;;  %v75_v18 = vld [vmem:[%s1044_s0 + $0x188] sm:$0xff]  ;;  %v76_v25 = vld [vmem:[%s1044_s0 + $0x190] sm:$0xff] }
  0x1d   :  { %540 = vmatpush1.bf16.msra.mxu0 %v539_v1  ;;  %v72_v1 = vld [vmem:[%s1044_s0 + $0x170] sm:$0xff]  ;;  %v302_v23 = vld [vmem:[%s1045_s3 + $0x68] sm:$0xff]  ;;  %v50_v28 = vld [vmem:[%s1044_s0 + $0xc0] sm:$0xff] }
  0x1e   :  { %542 = vmatprep.subr.bf16.mxu0 %v541_v7  ;;  %v101_v33 = vadd.f32 %v100_v24, %v38_v22  ;;  %v135_v45 = vadd.f32 %v134_v39, %v67_v36  ;;  %553 = vmatpush1.bf16.msra.mxu1 %v552_v48  ;;  %v73_v7 = vld [vmem:[%s1044_s0 + $0x178] sm:$0xff]  ;;  %v301_v22 = vld [vmem:[%s1045_s3 + $0x60] sm:$0xff]  ;;  %v52_v39 = vld [vmem:[%s1044_s0 + $0xd0] sm:$0xff] }
  0x1f   :  { %554 = vmatprep.subr.bf16.mxu1 %v594_v4  ;;  %v49_v24 = vld [vmem:[%s1044_s0 + $0xb8] sm:$0xff]  ;;  %v564_v30 = vpack.c.bf16 %v302_v23, %v301_v22  ;;  %v78_v36 = vld [vmem:[%s1044_s0 + $0x1a0] sm:$0xff]  ;;  %v79_v40 = vld [vmem:[%s1044_s0 + $0x1a8] sm:$0xff] }
  0x20   :  { %v102_v38 = vadd.f32 %v101_v33, %v39_v29  ;;  %v136_v50 = vadd.f32 %v135_v45, %v68_v43  ;;  %v77_v29 = vld [vmem:[%s1044_s0 + $0x198] sm:$0xff]  ;;  %v303_v33 = vld [vmem:[%s1045_s3 + $0x70] sm:$0xff]  ;;  %v306_v45 = vld [vmem:[%s1045_s3 + $0x88] sm:$0xff] }
  0x21   :  { %544 = vmatpush1.bf16.msra.mxu0 %v543_v15  ;;  %v304_v34 = vld [vmem:[%s1045_s3 + $0x78] sm:$0xff]  ;;  %v83_v62 = vld [vmem:[%s1044_s0 + $0x1c8] sm:$0xff]  ;;  %v86_v11 = vld [vmem:[%s1044_s0 + $0x1e0] sm:$0xff] }
  0x22   :  { %581 = vmatprep.subr.bf16.mxu0 %v594_v4  ;;  %v103_v44 = vadd.f32 %v102_v38, %v40_v35  ;;  %v137_v56 = vadd.f32 %v136_v50, %v69_v47  ;;  %556 = vmatpush1.bf16.msra.mxu1 %v555_v59  ;;  %v51_v35 = vld [vmem:[%s1044_s0 + $0xc8] sm:$0xff]  ;;  %v567_v41 = vpack.c.bf16 %v304_v34, %v303_v33  ;;  %v80_v47 = vld [vmem:[%s1044_s0 + $0x1b0] sm:$0xff]  ;;  %v54_v50 = vld [vmem:[%s1044_s0 + $0xe0] sm:$0xff] }
  0x23   :  { %557 = vmatprep.subr.bf16.mxu1 %v594_v4  ;;  %v81_v51 = vld [vmem:[%s1044_s0 + $0x1b8] sm:$0xff] }
  0x24   :  { %v104_v49 = vadd.f32 %v103_v44, %v41_v42  ;;  %v138_v61 = vadd.f32 %v137_v56, %v70_v54  ;;  %v305_v44 = vld [vmem:[%s1045_s3 + $0x80] sm:$0xff]  ;;  %v308_v56 = vld [vmem:[%s1045_s3 + $0x98] sm:$0xff] }
  0x25   :  { %v570_v52 = vpack.c.bf16 %v306_v45, %v305_v44  ;;  %v398_v45 = vld [vmem:[%s1046_s5 + $0x18] sm:$0xff] }
  0x26   :  { %v105_v55 = vadd.f32 %v104_v49, %v42_v46  ;;  %v139_v5 = vadd.f32 %v138_v61, %v71_v58  ;;  %559 = vmatpush1.bf16.msra.mxu1 %v558_v8  ;;  %v53_v46 = vld [vmem:[%s1044_s0 + $0xd8] sm:$0xff]  ;;  %v82_v58 = vld [vmem:[%s1044_s0 + $0x1c0] sm:$0xff]  ;;  %v56_v61 = vld [vmem:[%s1044_s0 + $0xf0] sm:$0xff] }
  0x27   :  { %560 = vmatprep.subr.bf16.mxu1 %v594_v4  ;;  %v85_v8 = vld [vmem:[%s1044_s0 + $0x1d8] sm:$0xff] }
  0x28   :  { %v106_v60 = vadd.f32 %v105_v55, %v43_v53  ;;  %v140_v10 = vadd.f32 %v139_v5, %v72_v1  ;;  %v307_v55 = vld [vmem:[%s1045_s3 + $0x90] sm:$0xff] }
  0x29   :  { %v573_v63 = vpack.c.bf16 %v308_v56, %v307_v55  ;;  %v84_v5 = vld [vmem:[%s1044_s0 + $0x1d0] sm:$0xff] }
  0x2a   :  { %v107_v2 = vadd.f32 %v106_v60, %v44_v57  ;;  %v141_v16 = vadd.f32 %v140_v10, %v73_v7  ;;  %562 = vmatpush1.bf16.msra.mxu1 %v561_v19  ;;  %v55_v57 = vld [vmem:[%s1044_s0 + $0xe8] sm:$0xff] }
  0x2b   :  { %563 = vmatprep.subr.bf16.mxu1 %v594_v4 }
  0x2c   :  { %v108_v9 = vadd.f32 %v107_v2, %v45_v0  ;;  %v142_v21 = vadd.f32 %v141_v16, %v74_v14  ;;  %v57_v2 = vld [vmem:[%s1044_s0 + $0xf8] sm:$0xff]  ;;  %v87_v14 = vld [vmem:[%s1044_s0 + $0x1e8] sm:$0xff] }
  0x2e   :  { %v109_v15 = vadd.f32 %v108_v9, %v46_v6  ;;  %v143_v27 = vadd.f32 %v142_v21, %v75_v18  ;;  %565 = vmatpush1.bf16.msra.mxu1 %v564_v30 }
  0x2f   :  { %566 = vmatprep.subr.bf16.mxu1 %v594_v4 }
  0x30   :  { %v110_v20 = vadd.f32 %v109_v15, %v47_v13  ;;  %v144_v32 = vadd.f32 %v143_v27, %v76_v25 }
  0x32   :  { %v111_v26 = vadd.f32 %v110_v20, %v48_v17  ;;  %v145_v38 = vadd.f32 %v144_v32, %v77_v29  ;;  %568 = vmatpush1.bf16.msra.mxu1 %v567_v41  ;;  %v88_v17 = vld [vmem:[%s1044_s0 + $0x1f0] sm:$0xff]  ;;  %v89_v20 = vld [vmem:[%s1044_s0 + $0x1f8] sm:$0xff]  ;;  %v395_v41 = vld [vmem:[%s1046_s5] sm:$0xff] }
  0x33   :  { %569 = vmatprep.subr.bf16.mxu1 %v594_v4 }
  0x34   :  { %v112_v31 = vadd.f32 %v111_v26, %v49_v24  ;;  %v146_v43 = vadd.f32 %v145_v38, %v78_v36  ;;  %v310_v36 = vld [vmem:[%s1045_s3 + $0xa8] sm:$0xff]  ;;  %v311_v38 = vld [vmem:[%s1045_s3 + $0xb0] sm:$0xff] }
  0x36   :  { %v113_v37 = vadd.f32 %v112_v31, %v50_v28  ;;  %v147_v49 = vadd.f32 %v146_v43, %v79_v40  ;;  %571 = vmatpush1.bf16.msra.mxu1 %v570_v52  ;;  %v397_v43 = vld [vmem:[%s1046_s5 + $0x10] sm:$0xff] }
  0x37   :  { %572 = vmatprep.subr.bf16.mxu1 %v594_v4 }
  0x38   :  { %v114_v42 = vadd.f32 %v113_v37, %v51_v35  ;;  %v148_v54 = vadd.f32 %v147_v49, %v80_v47  ;;  %v309_v35 = vld [vmem:[%s1045_s3 + $0xa0] sm:$0xff]  ;;  %v201_v47 = vlaneseq }
  0x39   :  { %v576_v37 = vpack.c.bf16 %v310_v36, %v309_v35 }
  0x3a   :  { %v115_v48 = vadd.f32 %v114_v42, %v52_v39  ;;  %v149_v60 = vadd.f32 %v148_v54, %v81_v51  ;;  %574 = vmatpush1.bf16.msra.mxu1 %v573_v63  ;;  %v312_v39 = vld [vmem:[%s1045_s3 + $0xb8] sm:$0xff]  ;;  %v396_v42 = vld [vmem:[%s1046_s5 + $0x8] sm:$0xff] }
  0x3b   :  { %575 = vmatprep.subr.bf16.mxu1 %v594_v4  ;;  %v579_v40 = vpack.c.bf16 %v312_v39, %v311_v38  ;;  %v582_v44 = vpack.c.bf16 %v396_v42, %v395_v41 }
  0x3c   :  { %v116_v53 = vadd.f32 %v115_v48, %v53_v46  ;;  %v150_v1 = vadd.f32 %v149_v60, %v82_v58  ;;  %v585_v46 = vpack.c.bf16 %v398_v45, %v397_v43  ;;  %v202_v48 = vshrl.u32 %v201_v47, 7  ;;  %v400_v60 = vld [vmem:[%s1046_s5 + $0x28] sm:$0xff] }
  0x3e   :  { %v117_v59 = vadd.f32 %v116_v53, %v54_v50  ;;  %v151_v7 = vadd.f32 %v150_v1, %v83_v62  ;;  %577 = vmatpush1.bf16.msra.mxu1 %v576_v37  ;;  %v203_v49 = vsub.s32 0, %v202_v48  ;;  %v199_v50 = vld [vmem:[%s1047_s2] sm:$0x3]  ;;  %v207_v51 = vsub.s32 1, %v202_v48 }
  0x3f   :  { %578 = vmatprep.subr.bf16.mxu1 %v594_v4  ;;  %v487_v62 = vld [vmem:[%s1048_s4] ss:$0 sm:$0xff] }
  0x40   :  { %v118_v0 = vadd.f32 %v117_v59, %v55_v57  ;;  %v152_v10 = vadd.f32 %v151_v7, %v84_v5  ;;  %v204_v52 = vrot.slane %v199_v50, %v203_v49  ;;  %v208_v53 = vrot.slane %v199_v50, %v207_v51  ;;  %v489_v5 = vld [vmem:[%s1049_s6] ss:$0 sm:$0xff] }
  0x42   :  { %v119_v6 = vadd.f32 %v118_v0, %v56_v61  ;;  %v153_v13 = vadd.f32 %v152_v10, %v85_v8  ;;  %580 = vmatpush1.bf16.msra.mxu1 %v579_v40 }
  0x44   :  { %v120_v9 = vadd.f32 %v119_v6, %v57_v2  ;;  %v154_v16 = vadd.f32 %v153_v13, %v86_v11 }
  0x46   :  { %v121_v12 = vrot.slane %v120_v9, 4  ;;  %v155_v19 = vadd.f32 %v154_v16, %v87_v14 }
  0x48   :  { %v122_v15 = vadd.f32 %v121_v12, %v120_v9  ;;  %v156_v21 = vadd.f32 %v155_v19, %v88_v17 }
  0x4a   :  { %v123_v18 = vrot.slane %v122_v15, 2  ;;  %v157_v23 = vadd.f32 %v156_v21, %v89_v20 }
  0x4c   :  { %v124_v22 = vadd.f32 %v123_v18, %v122_v15  ;;  %v158_v24 = vrot.slane %v157_v23, 4 }
  0x4e   :  { %v125_v25 = vrot.slane %v124_v22, 1  ;;  %v159_v26 = vadd.f32 %v158_v24, %v157_v23 }
  0x50   :  { %v160_v27 = vrot.slane %v159_v26, 2  ;;  %v126_v28 = vadd.f32 %v125_v25, %v124_v22 }
  0x52   :  { %v161_v29 = vadd.f32 %v160_v27, %v159_v26  ;;  %v165_v32 = vmul.f32 0.00390625, %v126_v28 }
  0x54   :  { %v162_v30 = vrot.slane %v161_v29, 1 }
  0x56   :  { %v163_v31 = vadd.f32 %v162_v30, %v161_v29 }
  0x58   :  { %v166_v33 = vmul.f32 0.00390625, %v163_v31 }
  0x5a   :  { %v214_v34 = vsel %vm213_vm0, %v166_v33, %v165_v32 }
  0x5b   :  { %281 = vmatmul.mubr.f32.vlgmr.msra.gmra.mrb[0].mxu0 %v214_v34 }
  0x5c   :  { %583 = vmatpush3.bf16.msra.mxu0 %v582_v44  ;;  %510 = vmatprep.mubr.msk.f32.mxu0 %vm595_vm2, %v593_v3 }
  0x5d   :  { %584 = vmatprep.subr.bf16.mxu0 %v594_v4 }
  0x60   :  { %586 = vmatpush3.bf16.msra.mxu0 %v585_v46 }
  0x61   :  { %587 = vmatprep.subr.bf16.mxu0 %v594_v4  ;;  %v399_v4 = vld [vmem:[%s1046_s5 + $0x20] sm:$0xff] }
  0x62   :  { %v588_v61 = vpack.c.bf16 %v400_v60, %v399_v4 }
  0x64   :  { %589 = vmatpush3.bf16.msra.mxu0 %v588_v61 }
 0x12e   :  { %v282_v54 = vpop.f32.mrb[0].mxu0 }
 0x12f   :  { %v283_v55 = vadd.f32 %v282_v54, %v204_v52  ;;  %v284_v56 = vpop.f32.mrb[1].mxu0 }
 0x130   :  { %v285_v57 = vadd.f32 %v284_v56, %v208_v53 }
 0x131   :  { %v287_v59 = vmax.f32 %v283_v55, 0.0 }
 0x132   :  { %v288_v58 = vmax.f32 %v285_v57, 0.0 }
 0x134   :  { %488 = vmatprep.mubr.msk.f32.mxu1 %vm320_vm1, %v288_v58 }
 0x135   :  { %389 = vmatmul.mubr.f32.vlgmr.msra.gmra.mrb[0].mxu1 %v287_v59 }
 0x208   :  { %v390_v63 = vpop.f32.mrb[0].mxu1 }
 0x209   :  { %v391_v0 = vadd.f32 %v487_v62, %v390_v63  ;;  %v392_v1 = vpop.f32.mrb[1].mxu1 }
 0x20b   :  { %v394_v2 = vmax.f32 %v391_v0, 0.0 }
 0x20d   :  { %511 = vmatmul.mubr.msk.f32.vlgmr.msra.gmra.mrb[2].mxu0 %vm408_vm3, %v394_v2 }
 0x2e0   :  { %v478_v6 = vpop.f32.mrb[2].mxu0 }
 0x2e1   :  { %v479_v7 = vadd.f32 %v489_v5, %v478_v6  ;;  %v512_v8 = vpop.f32.mrb[3].mxu0 }
 0x2e3   :  { %482 = vst [vmem:[%s1050_s7] sm:$0x3] %v479_v7 }

// kernel: fairface_mobilenet_forward.8
= control target key start
LH: loop header
LB: loop body
LE: loop exit
PB: predicated region body
PF: predicated region fallthrough
CT: control target
= control target key end

     0   :  { %s6430_s12 = smov 0   ;;  %s10178_s0 = inlined_call_operand.vmem [shape: f32[2,18,18,256], index: 0, kind: input, shape index: {}]   ;;  %s10179_s1 = inlined_call_operand.vmem [shape: f32[9,256], index: 1, kind: input, shape index: {}]   ;;  %s10180_s2 = inlined_call_operand.vmem [shape: f32[1,256], index: 2, kind: input, shape index: {}]   ;;  %s10181_s3 = inlined_call_operand.vmem [shape: f32[2,16,16,256], index: 3, kind: output, shape index: {}]  }
   0x1 LB: > { %s5862_s13 = sadd.s32 4294967295, %s6408_s12   ;;  %p5866_p0 = scmp.ge.s32.totalorder %s6408_s12, 1  ;;  %s6408_s12 = sphi %s6430_s12, %s13_s12  }
   0x2   : > { %p137_p1 = scmp.lt.s32.totalorder %s6408_s12, 3 }
   0x4   : > { %p138_p2 = pnand %p5866_p0, %p137_p1 }
   0x6   : > { %141 = sbr.rel (%p138_p2) target bundleno = 676 (0x2a4), region = 32 }
   0xd   : > { %p161_p3 = scmp.lt.s32.totalorder %s5862_s13, 1  ;;  %v365_v0 = vlaneseq  ;;  %v6441_v1 = vld [vmem:[%s10179_s1] ss:$8 sm:$0x3]  ;;  %vm932_vm0 = vcmask 1046528   ;;  %vm1650_vm1 = vcmask 1045504  }
   0xe   : > { %v6446_v2 = vld [vmem:[%s10179_s1 + $0x1] ss:$8 sm:$0x3]  ;;  %v6451_v3 = vld [vmem:[%s10179_s1 + $0x2] ss:$8 sm:$0x3] }
   0xf   : > { %s10656_s13 = smov (!%p161_p3, %s5862_s13), 1  ;;  %v6455_v4 = vshrl.u32 %v365_v0, 7  ;;  %v6460_v5 = vld [vmem:[%s10179_s1 + $0x3] ss:$8 sm:$0x3] }
  0x10   : > { %v6465_v6 = vld [vmem:[%s10179_s1 + $0x4] ss:$8 sm:$0x3]  ;;  %v6470_v7 = vld [vmem:[%s10179_s1 + $0x5] ss:$8 sm:$0x3] }
  0x11   : > { %s6393_s26 = smul.u32 864, %s10656_s13  ;;  %v367_v8 = vsub.s32 0, %v6455_v4  ;;  %v6477_v9 = vld [vmem:[%s10179_s1 + $0x6] ss:$8 sm:$0x3]  ;;  %s6392_s11 = sshll.u32 %s10656_s13, 9 }
  0x12   : > { %v6482_v10 = vld [vmem:[%s10179_s1 + $0x7] ss:$8 sm:$0x3]  ;;  %v6501_v14 = vld [vmem:[%s10179_s1 + $0x10] ss:$8 sm:$0x3]  ;;  %s6726_s15 = scalar_lea.vmem %s10181_s3, %s6392_s11 }
  0x13   : > { %s6487_s6 = scalar_lea.vmem %s10178_s0, %s6393_s26  ;;  %v6490_v11 = vrot.slane %v6441_v1, %v367_v8  ;;  %v6493_v12 = vrot.slane %v6446_v2, %v367_v8  ;;  %v6496_v13 = vrot.slane %v6451_v3, %v367_v8  ;;  %v6507_v18 = vrot.slane %v6460_v5, %v367_v8  ;;  %v6576_v55 = vld [vmem:[%s10180_s2] sm:$0x3] }
  0x14   : > { %v235_v15 = vld [vmem:[%s6487_s6] sm:$0xff]  ;;  %v569_v17 = vld [vmem:[%s6487_s6 + $0x10] sm:$0xff]  ;;  %v6510_v19 = vrot.slane %v6465_v6, %v367_v8  ;;  %v6513_v20 = vrot.slane %v6470_v7, %v367_v8  ;;  %v6516_v21 = vrot.slane %v6477_v9, %v367_v8  ;;  %v6528_v27 = vrot.slane %v6482_v10, %v367_v8 }
  0x15   : > { %v567_v16 = vld [vmem:[%s6487_s6] sm:$0xfe]  ;;  %v6520_v23 = vmul.f32 %v6493_v12, %v569_v17  ;;  %v6524_v25 = vmul.f32 %v6496_v13, %v569_v17  ;;  %v5937_v26 = vld [vmem:[%s6487_s6 + $0x30] sm:$0xfe]  ;;  %v375_v28 = vmul.f32 %v6490_v11, %v235_v15  ;;  %v6538_v33 = vrot.slane %v6501_v14, %v367_v8  ;;  %v571_v0 = vld [vmem:[%s6487_s6 + $0x20] sm:$0x1] }
  0x16   : > { %v740_v22 = vmul.f32 %v6493_v12, %v567_v16  ;;  %v1285_v24 = vld [vmem:[%s6487_s6] sm:$0xfc]  ;;  %10396 = vst [vmem:[#allocation3_spill] sm:$0xff] %v6528_v27  ;;  %v2510_v31 = vmul.f32 %v5937_v26, %v6510_v19  ;;  %v6034_v32 = vld [vmem:[%s6487_s6 + $0x30] sm:$0xfc]  ;;  %v6602_v26 = vsub.s32 1, %v6455_v4 }
  0x17   : > { %v1458_v29 = vmul.f32 %v6496_v13, %v1285_v24  ;;  %v6533_v30 = vld [vmem:[%s6487_s6 + $0x40] sm:$0xff]  ;;  %v934_v35 = vrot.slane %v6520_v23, 1  ;;  %v10190_v36 = vrot.slane %v6524_v25, 2  ;;  %v6548_v40 = vld [vmem:[%s6487_s6 + $0x30] sm:$0xff]  ;;  %v3227_v42 = vmul.f32 %v6034_v32, %v6513_v20  ;;  %v236_v24 = vld [vmem:[%s6487_s6 + $0x8] sm:$0xff] }
  0x18   : > { %v933_v34 = vrot.slane %v740_v22, 1  ;;  %v6544_v37 = vmul.f32 %v6533_v30, %v6510_v19  ;;  %v6196_v38 = vld [vmem:[%s6487_s6 + $0x60] sm:$0xfe]  ;;  %v2702_v41 = vrot.slane %v2510_v31, 1  ;;  %v6553_v43 = vmul.f32 %v6533_v30, %v6513_v20  ;;  %v6571_v54 = vld [vmem:[%s6487_s6 + $0x70] sm:$0xff]  ;;  %v6607_v32 = vld [vmem:[%s6487_s6 + $0x18] sm:$0xff] }
  0x19   : > { %v1651_v39 = vrot.slane %v1458_v29, 2  ;;  %v6293_v44 = vld [vmem:[%s6487_s6 + $0x60] sm:$0xfc]  ;;  %v2145_v46 = vmul.f32 %v6548_v40, %v6507_v18  ;;  %v4278_v48 = vmul.f32 %v6196_v38, %v6528_v27  ;;  %v3419_v51 = vrot.slane %v3227_v42, 2  ;;  %v568_v31 = vld [vmem:[%s6487_s6 + $0x8] sm:$0xfe] }
  0x1a   : > { %v935_v45 = vsel %vm932_vm0, %v933_v34, %v934_v35  ;;  %v10188_v47 = vrot.slane %v6544_v37, 1  ;;  %v10187_v52 = vrot.slane %v6553_v43, 2  ;;  %v6568_v53 = vld [vmem:[%s6487_s6 + $0x60] sm:$0xff]  ;;  %v6582_v57 = vmul.f32 %v6571_v54, %v6528_v27  ;;  %v1286_v34 = vld [vmem:[%s6487_s6 + $0x8] sm:$0xfc] }
  0x1b   : > { %v1157_v49 = vadd.f32 %v935_v45, %v375_v28  ;;  %v1653_v50 = vsel %vm1650_vm1, %v1651_v39, %v10190_v36  ;;  %v3913_v56 = vmul.f32 %v6568_v53, %v6516_v21  ;;  %v4470_v58 = vrot.slane %v4278_v48, 1  ;;  %v5938_v42 = vld [vmem:[%s6487_s6 + $0x38] sm:$0xfe] }
  0x1c   : > { %v4995_v59 = vmul.f32 %v6293_v44, %v6538_v33  ;;  %v2704_v61 = vsel %vm932_vm0, %v2702_v41, %v10188_v47  ;;  %v3421_v62 = vsel %vm1650_vm1, %v3419_v51, %v10187_v52  ;;  %v6593_v63 = vmul.f32 %v6571_v54, %v6538_v33 }
  0x1d   : > { %v1875_v60 = vadd.f32 %v1653_v50, %v1157_v49  ;;  %v10184_v15 = vrot.slane %v6582_v57, 1  ;;  %v6598_v22 = vrot.slane %v6576_v55, %v367_v8  ;;  %v6611_v38 = vmul.f32 %v569_v17, %v6490_v11  ;;  %v6651_v50 = vld [vmem:[%s6487_s6 + $0x38] sm:$0xff] }
  0x1e   : > { %v5187_v16 = vrot.slane %v4995_v59, 2  ;;  %v10182_v29 = vrot.slane %v6593_v63, 2  ;;  %v6614_v39 = vmul.f32 %v6493_v12, %v571_v0  ;;  %v6621_v4 = vrot.slane %v6441_v1, %v6602_v26 }
  0x1f   : > { %v2209_v28 = vadd.f32 %v2145_v46, %v1875_v60  ;;  %v4472_v8 = vsel %vm932_vm0, %v4470_v58, %v10184_v15  ;;  %v6625_v41 = vrot.slane %v6446_v2, %v6602_v26  ;;  %v6629_v17 = vrot.slane %v6451_v3, %v6602_v26  ;;  %v6660_v58 = vld [vmem:[%s6487_s6 + $0x48] sm:$0xff]  ;;  %v6700_v15 = vld [vmem:[%s6487_s6 + $0x78] sm:$0xff] }
  0x20   : > { %v5189_v45 = vsel %vm1650_vm1, %v5187_v16, %v10182_v29  ;;  %v6637_v46 = vrot.slane %v6460_v5, %v6602_v26  ;;  %v6641_v1 = vrot.slane %v6465_v6, %v6602_v26  ;;  %v376_v2 = vmul.f32 %v6621_v4, %v236_v24 }
  0x21   : > { %v2926_v44 = vadd.f32 %v2704_v61, %v2209_v28  ;;  %v741_v3 = vmul.f32 %v6625_v41, %v568_v31  ;;  %v6647_v48 = vmul.f32 %v6625_v41, %v6607_v32  ;;  %v1459_v49 = vmul.f32 %v6629_v17, %v1286_v34 }
  0x22   : > { %v6655_v51 = vmul.f32 %v6629_v17, %v6607_v32  ;;  %v2146_v6 = vmul.f32 %v6651_v50, %v6637_v46  ;;  %v2511_v59 = vmul.f32 %v5938_v42, %v6641_v1  ;;  %v6666_v16 = vmul.f32 %v6660_v58, %v6641_v1  ;;  %v6197_v42 = vld [vmem:[%s6487_s6 + $0x68] sm:$0xfe] }
  0x23   : > { %v3643_v5 = vadd.f32 %v3421_v62, %v2926_v44  ;;  %v936_v60 = vrot.slane %v741_v3, 1  ;;  %v10183_v61 = vrot.slane %v6647_v48, 1  ;;  %v1654_v0 = vrot.slane %v1459_v49, 2  ;;  %v6035_v62 = vld [vmem:[%s6487_s6 + $0x38] sm:$0xfc] }
  0x24   : > { %v10186_v28 = vrot.slane %v6655_v51, 2  ;;  %v2705_v31 = vrot.slane %v2511_v59, 1  ;;  %v6672_v34 = vrot.slane %v6470_v7, %v6602_v26  ;;  %v1289_v44 = vld [vmem:[%s6487_s6 + $0x20] sm:$0x3]  ;;  %v10185_v49 = vrot.slane %v6666_v16, 1 }
  0x25   : > { %v3977_v24 = vadd.f32 %v3913_v56, %v3643_v5  ;;  %v938_v3 = vsel %vm932_vm0, %v936_v60, %v10183_v61  ;;  %v6682_v56 = vrot.slane %v6477_v9, %v6602_v26  ;;  %v6686_v5 = vrot.slane %v6482_v10, %v6602_v26 }
  0x26   : > { %v1158_v59 = vadd.f32 %v938_v3, %v376_v2  ;;  %v1656_v29 = vsel %vm1650_vm1, %v1654_v0, %v10186_v28  ;;  %v3228_v60 = vmul.f32 %v6035_v62, %v6672_v34  ;;  %v2707_v61 = vsel %vm932_vm0, %v2705_v31, %v10185_v49  ;;  %v6706_v3 = vld [vmem:[%s6487_s6 + $0x68] sm:$0xff] }
  0x27   : > { %v4694_v7 = vadd.f32 %v4472_v8, %v3977_v24  ;;  %v6697_v9 = vmul.f32 %v6660_v58, %v6672_v34  ;;  %v4279_v10 = vmul.f32 %v6197_v42, %v6686_v5  ;;  %v1462_v8 = vmul.f32 %v6496_v13, %v1289_v44  ;;  %10397 = vst [vmem:[#allocation4_spill] sm:$0xff] %v6706_v3  ;;  %v6294_v31 = vld [vmem:[%s6487_s6 + $0x68] sm:$0xfc] }
  0x28   : > { %v1876_v24 = vadd.f32 %v1656_v29, %v1158_v59  ;;  %v3422_v0 = vrot.slane %v3228_v60, 2  ;;  %v6710_v62 = vmul.f32 %v6700_v15, %v6686_v5  ;;  %v3914_v42 = vmul.f32 %v6706_v3, %v6682_v56 }
  0x29   : > { %v5411_v2 = vadd.f32 %v5189_v45, %v4694_v7  ;;  %v10189_v49 = vrot.slane %v6697_v9, 2  ;;  %v4473_v28 = vrot.slane %v4279_v10, 1  ;;  %v6718_v45 = vrot.slane %v6501_v14, %v6602_v26 }
  0x2a   : > { %v2210_v44 = vadd.f32 %v2146_v6, %v1876_v24  ;;  %v939_v59 = vrot.slane %v6614_v39, 1  ;;  %v1657_v10 = vrot.slane %v1462_v8, 2  ;;  %v6038_v39 = vld [vmem:[%s6487_s6 + $0x50] sm:$0x3]  ;;  %v6740_v47 = vrot.slane %v6576_v55, %v6602_v26  ;;  %v572_v26 = vld [vmem:[%s6487_s6 + $0x28] sm:$0x1] }
  0x2b   : > { %v5615_v29 = vadd.f32 %v6598_v22, %v5411_v2  ;;  %v3424_v60 = vsel %vm1650_vm1, %v3422_v0, %v10189_v49  ;;  %v4996_v14 = vmul.f32 %v6294_v31, %v6718_v45  ;;  %v6734_v6 = vmul.f32 %v6700_v15, %v6718_v45  ;;  %v5941_v2 = vld [vmem:[%s6487_s6 + $0x50] sm:$0x1]  ;;  %v6200_v49 = vld [vmem:[%s6487_s6 + $0x80] sm:$0x1] }
  0x2c   : > { %v2927_v52 = vadd.f32 %v2707_v61, %v2210_v44  ;;  %v940_v0 = vsel %vm932_vm0, %v934_v35, %v939_v59  ;;  %v10398_v8 = vrot.slane %v6524_v25, 2  ;;  %v6297_v61 = vld [vmem:[%s6487_s6 + $0x80] sm:$0x3]  ;;  %v2147_v55 = vmul.f32 %v6533_v30, %v6507_v18 }
  0x2d   : > { %v5679_v24 = vmax.f32 %v5615_v29, 0.0  ;;  %v5190_v31 = vrot.slane %v4996_v14, 2  ;;  %v5191_v7 = vrot.slane %v6734_v6, 2  ;;  %v1159_v36 = vadd.f32 %v940_v0, %v6611_v38  ;;  %v574_v6 = vld [vmem:[%s6487_s6 + $0x38] sm:$0xfe] }
  0x2e   : > { %v1658_v3 = vsel %vm1650_vm1, %v10398_v8, %v1657_v10  ;;  %v3644_v29 = vadd.f32 %v3424_v60, %v2927_v52  ;;  %v2514_v23 = vmul.f32 %v5941_v2, %v6510_v19  ;;  %v3231_v35 = vmul.f32 %v6038_v39, %v6513_v20 }
  0x2f   : > { %5743 = vst [vmem:[%s6726_s15] sm:$0xff] %v5679_v24  ;;  %v10399_v44 = vrot.slane %v6710_v62, 1  ;;  %v5192_v25 = vsel %vm1650_vm1, %v5190_v31, %v5191_v7  ;;  %v1877_v59 = vadd.f32 %v1658_v3, %v1159_v36  ;;  %v4282_v52 = vmul.f32 %v6200_v49, %v6528_v27  ;;  %v1290_v24 = vld [vmem:[%s6487_s6 + $0x28] sm:$0x3] }
  0x30   : > { %v3978_v60 = vadd.f32 %v3914_v42, %v3644_v29  ;;  %v2708_v14 = vrot.slane %v2514_v23, 1  ;;  %v3425_v10 = vrot.slane %v3231_v35, 2  ;;  %v4999_v2 = vmul.f32 %v6297_v61, %v6538_v33  ;;  %v6039_v29 = vld [vmem:[%s6487_s6 + $0x58] sm:$0x3] }
  0x31   : > { %v4475_v38 = vsel %vm932_vm0, %v4473_v28, %v10399_v44  ;;  %v2211_v39 = vadd.f32 %v2147_v55, %v1877_v59  ;;  %v4476_v0 = vrot.slane %v4282_v52, 1  ;;  %v378_v8 = vmul.f32 %v6607_v32, %v6621_v4  ;;  %v5942_v44 = vld [vmem:[%s6487_s6 + $0x58] sm:$0x1] }
  0x32   : > { %v745_v28 = vmul.f32 %v6625_v41, %v572_v26  ;;  %v4695_v31 = vadd.f32 %v4475_v38, %v3978_v60  ;;  %v10400_v36 = vrot.slane %v6544_v37, 1  ;;  %v10401_v3 = vrot.slane %v6553_v43, 2  ;;  %v6201_v60 = vld [vmem:[%s6487_s6 + $0x88] sm:$0x1] }
  0x33   : > { %v5193_v61 = vrot.slane %v4999_v2, 2  ;;  %v3915_v32 = vmul.f32 %v6571_v54, %v6516_v21  ;;  %v1463_v35 = vmul.f32 %v6629_v17, %v1290_v24  ;;  %v10402_v38 = vrot.slane %v6582_v57, 1  ;;  %v6298_v57 = vld [vmem:[%s6487_s6 + $0x88] sm:$0x3] }
  0x34   : > { %v2709_v49 = vsel %vm932_vm0, %v10400_v36, %v2708_v14  ;;  %v3426_v42 = vsel %vm1650_vm1, %v10401_v3, %v3425_v10  ;;  %v941_v23 = vrot.slane %v745_v28, 1  ;;  %v5412_v26 = vadd.f32 %v5192_v25, %v4695_v31  ;;  %v573_v3 = vld [vmem:[%s6487_s6 + $0x30] sm:$0xfe] }
  0x35   : > { %v2928_v55 = vadd.f32 %v2709_v49, %v2211_v39  ;;  %v4477_v37 = vsel %vm932_vm0, %v10402_v38, %v4476_v0  ;;  %v10403_v59 = vrot.slane %v6593_v63, 2  ;;  %v2515_v52 = vmul.f32 %v5942_v44, %v6641_v1 }
  0x36   : > { %v10404_v10 = vrot.slane %v6647_v48, 1  ;;  %v1659_v39 = vrot.slane %v1463_v35, 2  ;;  %v3232_v25 = vmul.f32 %v6039_v29, %v6672_v34  ;;  %v5616_v24 = vadd.f32 %v6740_v47, %v5412_v26 }
  0x37   : > { %v5194_v43 = vsel %vm1650_vm1, %v10403_v59, %v5193_v61  ;;  %v3645_v14 = vadd.f32 %v3426_v42, %v2928_v55  ;;  %v2148_v63 = vmul.f32 %v6660_v58, %v6637_v46  ;;  %v2710_v28 = vrot.slane %v2515_v52, 1  ;;  %v1291_v55 = vld [vmem:[%s6487_s6 + $0x30] sm:$0xfc] }
  0x38   : > { %v942_v2 = vsel %vm932_vm0, %v10404_v10, %v941_v23  ;;  %v10405_v31 = vrot.slane %v6655_v51, 2  ;;  %v3427_v36 = vrot.slane %v3232_v25, 2  ;;  %v4283_v49 = vmul.f32 %v6201_v60, %v6686_v5 }
  0x39   : > { %v1160_v0 = vadd.f32 %v942_v2, %v378_v8  ;;  %v3979_v44 = vadd.f32 %v3915_v32, %v3645_v14  ;;  %v5680_v42 = vmax.f32 %v5616_v24, 0.0  ;;  %v3916_v29 = vmul.f32 %v6700_v15, %v6682_v56  ;;  %v5943_v2 = vld [vmem:[%s6487_s6 + $0x60] sm:$0xfe] }
  0x3a   : > { %v1660_v48 = vsel %vm1650_vm1, %v10405_v31, %v1659_v39  ;;  %v5000_v8 = vmul.f32 %v6298_v57, %v6718_v45  ;;  %v10406_v32 = vrot.slane %v6666_v16, 1  ;;  %v10407_v35 = vrot.slane %v6697_v9, 2 }
  0x3b   : > { %v1878_v61 = vadd.f32 %v1660_v48, %v1160_v0  ;;  %v4696_v23 = vadd.f32 %v4477_v37, %v3979_v44  ;;  %v4478_v38 = vrot.slane %v4283_v49, 1  ;;  %5744 = vst [vmem:[%s6726_s15 + $0x8] sm:$0xff] %v5680_v42  ;;  %v379_v52 = vmul.f32 %v6548_v40, %v6490_v11  ;;  %v6040_v0 = vld [vmem:[%s6487_s6 + $0x60] sm:$0xfc]  ;;  %v6202_v49 = vld [vmem:[%s6487_s6 + $0x90] sm:$0xfe] }
  0x3c   : > { %v2711_v51 = vsel %vm932_vm0, %v10406_v32, %v2710_v28  ;;  %v3428_v26 = vsel %vm1650_vm1, %v10407_v35, %v3427_v36  ;;  %v746_v60 = vmul.f32 %v6493_v12, %v573_v3  ;;  %v6818_v37 = vmul.f32 %v6533_v30, %v6493_v12  ;;  %v6299_v35 = vld [vmem:[%s6487_s6 + $0x90] sm:$0xfc] }
  0x3d   : > { %v2212_v59 = vadd.f32 %v2148_v63, %v1878_v61  ;;  %v5413_v16 = vadd.f32 %v5194_v43, %v4696_v23  ;;  %v5195_v14 = vrot.slane %v5000_v8, 2  ;;  %v1464_v10 = vmul.f32 %v6496_v13, %v1291_v55 }
  0x3e   : > { %v6823_v9 = vmul.f32 %v6533_v30, %v6496_v13  ;;  %v10408_v25 = vrot.slane %v6710_v62, 1  ;;  %v943_v57 = vrot.slane %v746_v60, 1  ;;  %v10201_v24 = vrot.slane %v6818_v37, 1 }
  0x3f   : > { %v2929_v39 = vadd.f32 %v2711_v51, %v2212_v59  ;;  %v5617_v43 = vadd.f32 %v6598_v22, %v5413_v16  ;;  %v1661_v63 = vrot.slane %v1464_v10, 2  ;;  %v2149_v44 = vmul.f32 %v6568_v53, %v6507_v18 }
  0x40   : > { %v4479_v40 = vsel %vm932_vm0, %v10408_v25, %v4478_v38  ;;  %v10200_v28 = vrot.slane %v6823_v9, 2  ;;  %v945_v62 = vsel %vm932_vm0, %v943_v57, %v10201_v24  ;;  %v2516_v48 = vmul.f32 %v5943_v2, %v6510_v19  ;;  %v1292_v57 = vld [vmem:[%s6487_s6 + $0x38] sm:$0xfc]  ;;  %v6206_v24 = vld [vmem:[%s6487_s6 + $0xb0] sm:$0x1] }
  0x41   : > { %v3646_v31 = vadd.f32 %v3428_v26, %v2929_v39  ;;  %v6841_v36 = vmul.f32 %v6571_v54, %v6510_v19  ;;  %v5681_v3 = vmax.f32 %v5617_v43, 0.0  ;;  %v1161_v42 = vadd.f32 %v945_v62, %v379_v52  ;;  %v6859_v52 = vld [vmem:[%s6487_s6 + $0xa0] sm:$0xff] }
  0x42   : > { %v1663_v61 = vsel %vm1650_vm1, %v1661_v63, %v10200_v28  ;;  %v3233_v8 = vmul.f32 %v6040_v0, %v6513_v20  ;;  %v2712_v23 = vrot.slane %v2516_v48, 1  ;;  %v6851_v51 = vmul.f32 %v6571_v54, %v6513_v20  ;;  %v6044_v28 = vld [vmem:[%s6487_s6 + $0x80] sm:$0x3] }
  0x43   : > { %v3980_v55 = vadd.f32 %v3916_v29, %v3646_v31  ;;  %v10197_v32 = vrot.slane %v6841_v36, 1  ;;  %5745 = vst [vmem:[%s6726_s15 + $0x10] sm:$0xff] %v5681_v3  ;;  %v5196_v26 = vsel %vm1650_vm1, %v5191_v7, %v5195_v14  ;;  %v1879_v38 = vadd.f32 %v1663_v61, %v1161_v42  ;;  %v6872_v7 = vld [vmem:[%s6487_s6 + $0x90] sm:$0xff] }
  0x44   : > { %v3429_v59 = vrot.slane %v3233_v8, 2  ;;  %v4284_v29 = vmul.f32 %v6202_v49, %v6528_v27  ;;  %v10196_v10 = vrot.slane %v6851_v51, 2  ;;  %v6868_v2 = vmul.f32 %v6859_v52, %v6528_v27 }
  0x45   : > { %v4697_v60 = vadd.f32 %v4479_v40, %v3980_v55  ;;  %v2714_v16 = vsel %vm932_vm0, %v2712_v23, %v10197_v32  ;;  %v2213_v39 = vadd.f32 %v2149_v44, %v1879_v38  ;;  %v5001_v25 = vmul.f32 %v6299_v35, %v6538_v33  ;;  %v5944_v55 = vld [vmem:[%s6487_s6 + $0x68] sm:$0xfe]  ;;  %v6938_v32 = vld [vmem:[%s6487_s6 + $0x98] sm:$0xff] }
  0x46   : > { %v4480_v14 = vrot.slane %v4284_v29, 1  ;;  %v6877_v40 = vmul.f32 %v6859_v52, %v6538_v33  ;;  %v3431_v43 = vsel %vm1650_vm1, %v3429_v59, %v10196_v10  ;;  %v3917_v63 = vmul.f32 %v6872_v7, %v6516_v21  ;;  %10410 = vst [vmem:[#allocation5_spill] sm:$0xff] %v6938_v32 }
  0x47   : > { %v5414_v0 = vadd.f32 %v5196_v26, %v4697_v60  ;;  %v10195_v44 = vrot.slane %v6868_v2, 1  ;;  %v2930_v31 = vadd.f32 %v2714_v16, %v2213_v39  ;;  %v5197_v62 = vrot.slane %v5001_v25, 2 }
  0x48   : > { %v10194_v48 = vrot.slane %v6877_v40, 2  ;;  %v747_v49 = vmul.f32 %v6625_v41, %v574_v6  ;;  %v380_v42 = vmul.f32 %v6651_v50, %v6621_v4  ;;  %v6893_v61 = vmul.f32 %v6660_v58, %v6625_v41  ;;  %v6041_v50 = vld [vmem:[%s6487_s6 + $0x68] sm:$0xfc] }
  0x49   : > { %v5618_v3 = vadd.f32 %v6740_v47, %v5414_v0  ;;  %v1465_v8 = vmul.f32 %v6629_v17, %v1292_v57  ;;  %v3647_v23 = vadd.f32 %v3431_v43, %v2930_v31  ;;  %v4482_v35 = vsel %vm932_vm0, %v4480_v14, %v10195_v44  ;;  %v6203_v57 = vld [vmem:[%s6487_s6 + $0x98] sm:$0xfe]  ;;  %v10409_v43 = vld [vmem:[#allocation4_spill] sm:$0xff] }
  0x4a   : > { %v946_v26 = vrot.slane %v747_v49, 1  ;;  %v6902_v38 = vmul.f32 %v6660_v58, %v6629_v17  ;;  %v5199_v29 = vsel %vm1650_vm1, %v5197_v62, %v10194_v48  ;;  %v10193_v60 = vrot.slane %v6893_v61, 1  ;;  %v6300_v49 = vld [vmem:[%s6487_s6 + $0x98] sm:$0xfc] }
  0x4b   : > { %v5682_v59 = vmax.f32 %v5618_v3, 0.0  ;;  %v1664_v16 = vrot.slane %v1465_v8, 2  ;;  %v3981_v6 = vadd.f32 %v3917_v63, %v3647_v23  ;;  %v2517_v14 = vmul.f32 %v5944_v55, %v6641_v1 }
  0x4c   : > { %v10199_v39 = vrot.slane %v6902_v38, 2  ;;  %v6913_v25 = vmul.f32 %v6700_v15, %v6641_v1  ;;  %v948_v0 = vsel %vm932_vm0, %v946_v26, %v10193_v60  ;;  %v2150_v31 = vmul.f32 %v10409_v43, %v6637_v46  ;;  %v1296_v43 = vld [vmem:[%s6487_s6 + $0x58] sm:$0x3] }
  0x4d   : > { %5746 = vst [vmem:[%s6726_s15 + $0x18] sm:$0xff] %v5682_v59  ;;  %v3234_v63 = vmul.f32 %v6041_v50, %v6672_v34  ;;  %v6925_v62 = vmul.f32 %v6700_v15, %v6672_v34  ;;  %v4698_v3 = vadd.f32 %v4482_v35, %v3981_v6  ;;  %v1162_v8 = vadd.f32 %v948_v0, %v380_v42  ;;  %v6934_v50 = vld [vmem:[%s6487_s6 + $0xa8] sm:$0xff]  ;;  %v1295_v6 = vld [vmem:[%s6487_s6 + $0x50] sm:$0x3] }
  0x4e   : > { %v1666_v55 = vsel %vm1650_vm1, %v1664_v16, %v10199_v39  ;;  %v2715_v23 = vrot.slane %v2517_v14, 1  ;;  %v10198_v26 = vrot.slane %v6913_v25, 1  ;;  %v4285_v48 = vmul.f32 %v6203_v57, %v6686_v5  ;;  %v577_v16 = vld [vmem:[%s6487_s6 + $0x50] sm:$0x1] }
  0x4f   : > { %v3432_v59 = vrot.slane %v3234_v63, 2  ;;  %v10204_v60 = vrot.slane %v6925_v62, 2  ;;  %v5415_v44 = vadd.f32 %v5199_v29, %v4698_v3  ;;  %v1880_v10 = vadd.f32 %v1666_v55, %v1162_v8  ;;  %v5947_v55 = vld [vmem:[%s6487_s6 + $0x80] sm:$0x1] }
  0x50   : > { %v6942_v42 = vmul.f32 %v6934_v50, %v6686_v5  ;;  %v5002_v35 = vmul.f32 %v6300_v49, %v6718_v45  ;;  %v2717_v14 = vsel %vm932_vm0, %v2715_v23, %v10198_v26  ;;  %v3918_v29 = vmul.f32 %v6938_v32, %v6682_v56  ;;  %v6303_v32 = vld [vmem:[%s6487_s6 + $0xb0] sm:$0x3] }
  0x51   : > { %v4483_v57 = vrot.slane %v4285_v48, 1  ;;  %v6954_v0 = vmul.f32 %v6934_v50, %v6718_v45  ;;  %v5619_v63 = vadd.f32 %v6598_v22, %v5415_v44  ;;  %v2214_v49 = vadd.f32 %v2150_v31, %v1880_v10 }
  0x52   : > { %v10205_v3 = vrot.slane %v6942_v42, 1  ;;  %v5200_v8 = vrot.slane %v5002_v35, 2  ;;  %v3434_v23 = vsel %vm1650_vm1, %v3432_v59, %v10204_v60  ;;  %v750_v48 = vmul.f32 %v6493_v12, %v577_v16 }
  0x53   : > { %v1468_v39 = vmul.f32 %v6496_v13, %v1295_v6  ;;  %v5683_v44 = vmax.f32 %v5619_v63, 0.0  ;;  %v2931_v10 = vadd.f32 %v2717_v14, %v2214_v49  ;;  %v381_v35 = vmul.f32 %v6533_v30, %v6490_v11  ;;  %v578_v49 = vld [vmem:[%s6487_s6 + $0x58] sm:$0x1] }
  0x54   : > { %v4485_v31 = vsel %vm932_vm0, %v4483_v57, %v10205_v3  ;;  %v949_v59 = vrot.slane %v750_v48, 1  ;;  %v2151_v16 = vmul.f32 %v6571_v54, %v6507_v18  ;;  %v2520_v6 = vmul.f32 %v5947_v55, %v6510_v19 }
  0x55   : > { %v1667_v60 = vrot.slane %v1468_v39, 2  ;;  %5747 = vst [vmem:[%s6726_s15 + $0x20] sm:$0xff] %v5683_v44  ;;  %v3648_v26 = vadd.f32 %v3434_v23, %v2931_v10  ;;  %v10411_v14 = vrot.slane %v6954_v0, 2  ;;  %v3237_v57 = vmul.f32 %v6044_v28, %v6513_v20 }
  0x56   : > { %v4288_v30 = vmul.f32 %v6206_v24, %v6528_v27  ;;  %v10412_v39 = vrot.slane %v6818_v37, 1  ;;  %v10413_v3 = vrot.slane %v6823_v9, 2  ;;  %v2718_v23 = vrot.slane %v2520_v6, 1 }
  0x57   : > { %v5202_v63 = vsel %vm1650_vm1, %v5200_v8, %v10411_v14  ;;  %v5005_v44 = vmul.f32 %v6303_v32, %v6538_v33  ;;  %v3982_v8 = vadd.f32 %v3918_v29, %v3648_v26  ;;  %v3435_v28 = vrot.slane %v3237_v57, 2 }
  0x58   : > { %v950_v48 = vsel %vm932_vm0, %v10412_v39, %v949_v59  ;;  %v1668_v55 = vsel %vm1650_vm1, %v10413_v3, %v1667_v60  ;;  %v4486_v14 = vrot.slane %v4288_v30, 1  ;;  %v10414_v24 = vrot.slane %v6841_v36, 1  ;;  %v5948_v60 = vld [vmem:[%s6487_s6 + $0x88] sm:$0x1] }
  0x59   : > { %v1163_v10 = vadd.f32 %v950_v48, %v381_v35  ;;  %v3919_v37 = vmul.f32 %v6859_v52, %v6516_v21  ;;  %v5203_v59 = vrot.slane %v5005_v44, 2  ;;  %v751_v9 = vmul.f32 %v6625_v41, %v578_v49  ;;  %v6045_v3 = vld [vmem:[%s6487_s6 + $0x88] sm:$0x3]  ;;  %v6207_v35 = vld [vmem:[%s6487_s6 + $0xb8] sm:$0x1] }
  0x5a   : > { %v2719_v27 = vsel %vm932_vm0, %v10414_v24, %v2718_v23  ;;  %v4699_v32 = vadd.f32 %v4485_v31, %v3982_v8  ;;  %v10415_v26 = vrot.slane %v6851_v51, 2  ;;  %v382_v36 = vmul.f32 %v6660_v58, %v6621_v4  ;;  %v6304_v58 = vld [vmem:[%s6487_s6 + $0xb8] sm:$0x3] }
  0x5b   : > { %v1881_v6 = vadd.f32 %v1668_v55, %v1163_v10  ;;  %v10416_v57 = vrot.slane %v6868_v2, 1  ;;  %v10417_v39 = vrot.slane %v6877_v40, 2  ;;  %v951_v48 = vrot.slane %v751_v9, 1 }
  0x5c   : > { %v3436_v29 = vsel %vm1650_vm1, %v10415_v26, %v3435_v28  ;;  %v1469_v31 = vmul.f32 %v6629_v17, %v1296_v43  ;;  %v5416_v55 = vadd.f32 %v5202_v63, %v4699_v32  ;;  %v2521_v51 = vmul.f32 %v5948_v60, %v6641_v1 }
  0x5d   : > { %v4487_v30 = vsel %vm932_vm0, %v10416_v57, %v4486_v14  ;;  %v5204_v49 = vsel %vm1650_vm1, %v10417_v39, %v5203_v59  ;;  %v2215_v23 = vadd.f32 %v2151_v16, %v1881_v6  ;;  %v3238_v44 = vmul.f32 %v6045_v3, %v6672_v34  ;;  %v579_v3 = vld [vmem:[%s6487_s6 + $0x60] sm:$0xfe] }
  0x5e   : > { %v10418_v8 = vrot.slane %v6893_v61, 1  ;;  %v1669_v10 = vrot.slane %v1469_v31, 2  ;;  %v2152_v40 = vmul.f32 %v6700_v15, %v6637_v46  ;;  %v4289_v28 = vmul.f32 %v6207_v35, %v6686_v5 }
  0x5f   : > { %v5620_v43 = vadd.f32 %v6740_v47, %v5416_v55  ;;  %v2932_v16 = vadd.f32 %v2719_v27, %v2215_v23  ;;  %v2720_v14 = vrot.slane %v2521_v51, 1  ;;  %v10419_v24 = vrot.slane %v6902_v38, 2  ;;  %v1297_v27 = vld [vmem:[%s6487_s6 + $0x60] sm:$0xfc] }
  0x60   : > { %v952_v2 = vsel %vm932_vm0, %v10418_v8, %v951_v48  ;;  %v3437_v61 = vrot.slane %v3238_v44, 2  ;;  %v4488_v9 = vrot.slane %v4289_v28, 1  ;;  %v5006_v60 = vmul.f32 %v6304_v58, %v6718_v45  ;;  %v6046_v8 = vld [vmem:[%s6487_s6 + $0x90] sm:$0xfc] }
  0x61   : > { %v1164_v63 = vadd.f32 %v952_v2, %v382_v36  ;;  %v1670_v59 = vsel %vm1650_vm1, %v10419_v24, %v1669_v10  ;;  %v5684_v32 = vmax.f32 %v5620_v43, 0.0  ;;  %v3649_v6 = vadd.f32 %v3436_v29, %v2932_v16 }
  0x62   : > { %v3920_v35 = vmul.f32 %v6934_v50, %v6682_v56  ;;  %v10420_v36 = vrot.slane %v6913_v25, 1  ;;  %v10421_v57 = vrot.slane %v6925_v62, 2  ;;  %v10422_v48 = vrot.slane %v6942_v42, 1  ;;  %v5949_v25 = vld [vmem:[%s6487_s6 + $0x90] sm:$0xfe] }
  0x63   : > { %v1882_v26 = vadd.f32 %v1670_v59, %v1164_v63  ;;  %v5205_v55 = vrot.slane %v5006_v60, 2  ;;  %5748 = vst [vmem:[%s6726_s15 + $0x28] sm:$0xff] %v5684_v32  ;;  %v3983_v29 = vadd.f32 %v3919_v37, %v3649_v6  ;;  %v752_v51 = vmul.f32 %v6493_v12, %v579_v3 }
  0x64   : > { %v2721_v38 = vsel %vm932_vm0, %v10420_v36, %v2720_v14  ;;  %v3438_v39 = vsel %vm1650_vm1, %v10421_v57, %v3437_v61  ;;  %v4489_v31 = vsel %vm932_vm0, %v10422_v48, %v4488_v9  ;;  %v7043_v44 = vmul.f32 %v6571_v54, %v6493_v12  ;;  %v6208_v61 = vld [vmem:[%s6487_s6 + $0xc0] sm:$0xfe] }
  0x65   : > { %v2216_v23 = vadd.f32 %v2152_v40, %v1882_v26  ;;  %v383_v62 = vmul.f32 %v6568_v53, %v6490_v11  ;;  %v1470_v58 = vmul.f32 %v6496_v13, %v1297_v27  ;;  %v7051_v42 = vmul.f32 %v6571_v54, %v6496_v13  ;;  %v6305_v36 = vld [vmem:[%s6487_s6 + $0xc0] sm:$0xfc] }
  0x66   : > { %v2153_v37 = vmul.f32 %v6872_v7, %v6507_v18  ;;  %v4700_v2 = vadd.f32 %v4487_v30, %v3983_v29  ;;  %v953_v40 = vrot.slane %v752_v51, 1  ;;  %v10216_v28 = vrot.slane %v7043_v44, 1  ;;  %v7085_v29 = vld [vmem:[%s6487_s6 + $0xd0] sm:$0xff] }
  0x67   : > { %v2933_v10 = vadd.f32 %v2721_v38, %v2216_v23  ;;  %v1671_v43 = vrot.slane %v1470_v58, 2  ;;  %v10215_v16 = vrot.slane %v7051_v42, 2  ;;  %v2522_v53 = vmul.f32 %v5949_v25, %v6510_v19  ;;  %v580_v58 = vld [vmem:[%s6487_s6 + $0x68] sm:$0xfe] }
  0x68   : > { %v7061_v63 = vmul.f32 %v6859_v52, %v6510_v19  ;;  %v5417_v14 = vadd.f32 %v5204_v49, %v4700_v2  ;;  %v955_v30 = vsel %vm932_vm0, %v953_v40, %v10216_v28  ;;  %v3239_v59 = vmul.f32 %v6046_v8, %v6513_v20  ;;  %v7095_v8 = vld [vmem:[%s6487_s6 + $0xc0] sm:$0xff] }
  0x69   : > { %v3650_v24 = vadd.f32 %v3438_v39, %v2933_v10  ;;  %v1165_v9 = vadd.f32 %v955_v30, %v383_v62  ;;  %v1673_v60 = vsel %vm1650_vm1, %v1671_v43, %v10215_v16  ;;  %v2722_v3 = vrot.slane %v2522_v53, 1  ;;  %v1298_v43 = vld [vmem:[%s6487_s6 + $0x68] sm:$0xfc]  ;;  %v6050_v16 = vld [vmem:[%s6487_s6 + $0xb0] sm:$0x3] }
  0x6a   : > { %v10212_v32 = vrot.slane %v7061_v63, 1  ;;  %v5621_v49 = vadd.f32 %v6598_v22, %v5417_v14  ;;  %v7075_v26 = vmul.f32 %v6859_v52, %v6513_v20  ;;  %v3439_v27 = vrot.slane %v3239_v59, 2  ;;  %v6212_v28 = vld [vmem:[%s6487_s6 + $0xe0] sm:$0x1] }
  0x6b   : > { %v3984_v6 = vadd.f32 %v3920_v35, %v3650_v24  ;;  %v10423_v38 = vrot.slane %v6954_v0, 2  ;;  %v1883_v39 = vadd.f32 %v1673_v60, %v1165_v9  ;;  %v10424_v35 = vld [vmem:[#allocation3_spill] sm:$0xff]  ;;  %v5007_v10 = vmul.f32 %v6305_v36, %v6538_v33  ;;  %v10425_v60 = vld [vmem:[#allocation4_spill] sm:$0xff] }
  0x6c   : > { %v2724_v48 = vsel %vm932_vm0, %v2722_v3, %v10212_v32  ;;  %v4290_v23 = vmul.f32 %v6208_v61, %v10424_v35  ;;  %v5685_v51 = vmax.f32 %v5621_v49, 0.0  ;;  %v10211_v62 = vrot.slane %v7075_v26, 2  ;;  %v7162_v32 = vld [vmem:[%s6487_s6 + $0xc8] sm:$0xff] }
  0x6d   : > { %v5206_v57 = vsel %vm1650_vm1, %v10423_v38, %v5205_v55  ;;  %v4701_v25 = vadd.f32 %v4489_v31, %v3984_v6  ;;  %v7091_v0 = vmul.f32 %v7085_v29, %v10424_v35  ;;  %v2217_v55 = vadd.f32 %v2153_v37, %v1883_v39  ;;  %10427 = vst [vmem:[#allocation4_spill] sm:$0xff] %v7162_v32 }
  0x6e   : > { %v4490_v2 = vrot.slane %v4290_v23, 1  ;;  %v7100_v40 = vmul.f32 %v7085_v29, %v6538_v33  ;;  %5749 = vst [vmem:[%s6726_s15 + $0x30] sm:$0xff] %v5685_v51  ;;  %v3441_v53 = vsel %vm1650_vm1, %v3439_v27, %v10211_v62  ;;  %v3921_v37 = vmul.f32 %v7095_v8, %v6516_v21  ;;  %v5950_v27 = vld [vmem:[%s6487_s6 + $0x98] sm:$0xfe] }
  0x6f   : > { %v5418_v31 = vadd.f32 %v5206_v57, %v4701_v25  ;;  %v10210_v14 = vrot.slane %v7091_v0, 1  ;;  %v2934_v24 = vadd.f32 %v2724_v48, %v2217_v55  ;;  %v5207_v30 = vrot.slane %v5007_v10, 2  ;;  %v6047_v48 = vld [vmem:[%s6487_s6 + $0x98] sm:$0xfc] }
  0x70   : > { %v10209_v59 = vrot.slane %v7100_v40, 2  ;;  %v753_v61 = vmul.f32 %v6625_v41, %v580_v58  ;;  %v384_v3 = vmul.f32 %v10425_v60, %v6621_v4  ;;  %v7117_v49 = vmul.f32 %v6700_v15, %v6625_v41 }
  0x71   : > { %v5622_v9 = vadd.f32 %v6740_v47, %v5418_v31  ;;  %v1471_v6 = vmul.f32 %v6629_v17, %v1298_v43  ;;  %v3651_v36 = vadd.f32 %v3441_v53, %v2934_v24  ;;  %v4492_v38 = vsel %vm932_vm0, %v4490_v2, %v10210_v14  ;;  %v6209_v31 = vld [vmem:[%s6487_s6 + $0xc8] sm:$0xfe]  ;;  %v10426_v24 = vld [vmem:[#allocation5_spill] sm:$0xff] }
  0x72   : > { %v956_v57 = vrot.slane %v753_v61, 1  ;;  %v7126_v39 = vmul.f32 %v6700_v15, %v6629_v17  ;;  %v5209_v51 = vsel %vm1650_vm1, %v5207_v30, %v10209_v59  ;;  %v10208_v25 = vrot.slane %v7117_v49, 1 }
  0x73   : > { %v5686_v23 = vmax.f32 %v5622_v9, 0.0  ;;  %v1674_v58 = vrot.slane %v1471_v6, 2  ;;  %v3985_v55 = vadd.f32 %v3921_v37, %v3651_v36  ;;  %v2523_v2 = vmul.f32 %v5950_v27, %v6641_v1  ;;  %v6306_v9 = vld [vmem:[%s6487_s6 + $0xc8] sm:$0xfc] }
  0x74   : > { %v10214_v10 = vrot.slane %v7126_v39, 2  ;;  %v7137_v43 = vmul.f32 %v6934_v50, %v6641_v1  ;;  %v958_v53 = vsel %vm932_vm0, %v956_v57, %v10208_v25  ;;  %v2154_v30 = vmul.f32 %v10426_v24, %v6637_v46  ;;  %v1302_v24 = vld [vmem:[%s6487_s6 + $0x88] sm:$0x3] }
  0x75   : > { %5750 = vst [vmem:[%s6726_s15 + $0x38] sm:$0xff] %v5686_v23  ;;  %v3240_v37 = vmul.f32 %v6047_v48, %v6672_v34  ;;  %v7149_v61 = vmul.f32 %v6934_v50, %v6672_v34  ;;  %v4702_v60 = vadd.f32 %v4492_v38, %v3985_v55  ;;  %v1166_v6 = vadd.f32 %v958_v53, %v384_v3  ;;  %v7158_v48 = vld [vmem:[%s6487_s6 + $0xd8] sm:$0xff]  ;;  %v1301_v55 = vld [vmem:[%s6487_s6 + $0x80] sm:$0x3] }
  0x76   : > { %v1676_v27 = vsel %vm1650_vm1, %v1674_v58, %v10214_v10  ;;  %v2725_v36 = vrot.slane %v2523_v2, 1  ;;  %v10213_v57 = vrot.slane %v7137_v43, 1  ;;  %v4291_v59 = vmul.f32 %v6209_v31, %v6686_v5  ;;  %v583_v58 = vld [vmem:[%s6487_s6 + $0x80] sm:$0x1] }
  0x77   : > { %v3442_v23 = vrot.slane %v3240_v37, 2  ;;  %v10219_v25 = vrot.slane %v7149_v61, 2  ;;  %v5419_v14 = vadd.f32 %v5209_v51, %v4702_v60  ;;  %v1884_v62 = vadd.f32 %v1676_v27, %v1166_v6  ;;  %v5953_v27 = vld [vmem:[%s6487_s6 + $0xb0] sm:$0x1] }
  0x78   : > { %v7166_v3 = vmul.f32 %v7158_v48, %v6686_v5  ;;  %v5008_v38 = vmul.f32 %v6306_v9, %v6718_v45  ;;  %v2727_v2 = vsel %vm932_vm0, %v2725_v36, %v10213_v57  ;;  %v3922_v51 = vmul.f32 %v7162_v32, %v6682_v56  ;;  %v6309_v32 = vld [vmem:[%s6487_s6 + $0xe0] sm:$0x3] }
  0x79   : > { %v4493_v31 = vrot.slane %v4291_v59, 1  ;;  %v7178_v53 = vmul.f32 %v7158_v48, %v6718_v45  ;;  %v5623_v37 = vadd.f32 %v6598_v22, %v5419_v14  ;;  %v2218_v9 = vadd.f32 %v2154_v30, %v1884_v62 }
  0x7a   : > { %v10220_v60 = vrot.slane %v7166_v3, 1  ;;  %v5210_v6 = vrot.slane %v5008_v38, 2  ;;  %v3444_v36 = vsel %vm1650_vm1, %v3442_v23, %v10219_v25  ;;  %v756_v59 = vmul.f32 %v6493_v12, %v583_v58 }
  0x7b   : > { %v1474_v10 = vmul.f32 %v6496_v13, %v1301_v55  ;;  %v5687_v14 = vmax.f32 %v5623_v37, 0.0  ;;  %v2935_v62 = vadd.f32 %v2727_v2, %v2218_v9  ;;  %v385_v38 = vmul.f32 %v6571_v54, %v6490_v11  ;;  %v584_v9 = vld [vmem:[%s6487_s6 + $0x88] sm:$0x1] }
  0x7c   : > { %v4495_v30 = vsel %vm932_vm0, %v4493_v31, %v10220_v60  ;;  %v959_v23 = vrot.slane %v756_v59, 1  ;;  %v2155_v58 = vmul.f32 %v6859_v52, %v6507_v18  ;;  %v2526_v55 = vmul.f32 %v5953_v27, %v6510_v19 }
  0x7d   : > { %v1677_v25 = vrot.slane %v1474_v10, 2  ;;  %5751 = vst [vmem:[%s6726_s15 + $0x40] sm:$0xff] %v5687_v14  ;;  %v3652_v57 = vadd.f32 %v3444_v36, %v2935_v62  ;;  %v10428_v2 = vrot.slane %v7178_v53, 2  ;;  %v3243_v31 = vmul.f32 %v6050_v16, %v6513_v20 }
  0x7e   : > { %v4294_v54 = vmul.f32 %v6212_v28, %v10424_v35  ;;  %v10429_v10 = vrot.slane %v7043_v44, 1  ;;  %v10430_v60 = vrot.slane %v7051_v42, 2  ;;  %v2728_v36 = vrot.slane %v2526_v55, 1 }
  0x7f   : > { %v5212_v37 = vsel %vm1650_vm1, %v5210_v6, %v10428_v2  ;;  %v5011_v14 = vmul.f32 %v6309_v32, %v6538_v33  ;;  %v3986_v6 = vadd.f32 %v3922_v51, %v3652_v57  ;;  %v3445_v16 = vrot.slane %v3243_v31, 2 }
  0x80   : > { %v960_v59 = vsel %vm932_vm0, %v10429_v10, %v959_v23  ;;  %v1678_v27 = vsel %vm1650_vm1, %v10430_v60, %v1677_v25  ;;  %v4496_v2 = vrot.slane %v4294_v54, 1  ;;  %v10431_v28 = vrot.slane %v7061_v63, 1  ;;  %v5954_v25 = vld [vmem:[%s6487_s6 + $0xb8] sm:$0x1] }
  0x81   : > { %v1167_v62 = vadd.f32 %v960_v59, %v385_v38  ;;  %v3923_v44 = vmul.f32 %v7085_v29, %v6516_v21  ;;  %v5213_v23 = vrot.slane %v5011_v14, 2  ;;  %v757_v42 = vmul.f32 %v6625_v41, %v584_v9  ;;  %v6051_v60 = vld [vmem:[%s6487_s6 + $0xb8] sm:$0x3]  ;;  %v6213_v38 = vld [vmem:[%s6487_s6 + $0xe8] sm:$0x1] }
  0x82   : > { %v2729_v35 = vsel %vm932_vm0, %v10431_v28, %v2728_v36  ;;  %v4703_v32 = vadd.f32 %v4495_v30, %v3986_v6  ;;  %v10432_v57 = vrot.slane %v7075_v26, 2  ;;  %v386_v63 = vmul.f32 %v6700_v15, %v6621_v4  ;;  %v6310_v15 = vld [vmem:[%s6487_s6 + $0xe8] sm:$0x3] }
  0x83   : > { %v1885_v55 = vadd.f32 %v1678_v27, %v1167_v62  ;;  %v10433_v31 = vrot.slane %v7091_v0, 1  ;;  %v10434_v10 = vrot.slane %v7100_v40, 2  ;;  %v961_v59 = vrot.slane %v757_v42, 1 }
  0x84   : > { %v3446_v51 = vsel %vm1650_vm1, %v10432_v57, %v3445_v16  ;;  %v1475_v30 = vmul.f32 %v6629_v17, %v1302_v24  ;;  %v5420_v27 = vadd.f32 %v5212_v37, %v4703_v32  ;;  %v2527_v26 = vmul.f32 %v5954_v25, %v6641_v1 }
  0x85   : > { %v4497_v54 = vsel %vm932_vm0, %v10433_v31, %v4496_v2  ;;  %v5214_v9 = vsel %vm1650_vm1, %v10434_v10, %v5213_v23  ;;  %v2219_v36 = vadd.f32 %v2155_v58, %v1885_v55  ;;  %v3244_v14 = vmul.f32 %v6051_v60, %v6672_v34  ;;  %v585_v60 = vld [vmem:[%s6487_s6 + $0x90] sm:$0xfe] }
  0x86   : > { %v10435_v6 = vrot.slane %v7117_v49, 1  ;;  %v1679_v62 = vrot.slane %v1475_v30, 2  ;;  %v2156_v40 = vmul.f32 %v6934_v50, %v6637_v46  ;;  %v4295_v16 = vmul.f32 %v6213_v38, %v6686_v5 }
  0x87   : > { %v5624_v24 = vadd.f32 %v6740_v47, %v5420_v27  ;;  %v2936_v58 = vadd.f32 %v2729_v35, %v2219_v36  ;;  %v2730_v2 = vrot.slane %v2527_v26, 1  ;;  %v10436_v28 = vrot.slane %v7126_v39, 2  ;;  %v1303_v35 = vld [vmem:[%s6487_s6 + $0x90] sm:$0xfc] }
  0x88   : > { %v962_v0 = vsel %vm932_vm0, %v10435_v6, %v961_v59  ;;  %v3447_v49 = vrot.slane %v3244_v14, 2  ;;  %v4498_v42 = vrot.slane %v4295_v16, 1  ;;  %v5012_v25 = vmul.f32 %v6310_v15, %v6718_v45  ;;  %v6052_v6 = vld [vmem:[%s6487_s6 + $0xc0] sm:$0xfc] }
  0x89   : > { %v1168_v37 = vadd.f32 %v962_v0, %v386_v63  ;;  %v1680_v23 = vsel %vm1650_vm1, %v10436_v28, %v1679_v62  ;;  %v5688_v32 = vmax.f32 %v5624_v24, 0.0  ;;  %v3653_v55 = vadd.f32 %v3446_v51, %v2936_v58 }
  0x8a   : > { %v3924_v38 = vmul.f32 %v7158_v48, %v6682_v56  ;;  %v10437_v63 = vrot.slane %v7137_v43, 1  ;;  %v10438_v31 = vrot.slane %v7149_v61, 2  ;;  %v10439_v59 = vrot.slane %v7166_v3, 1  ;;  %v5955_v43 = vld [vmem:[%s6487_s6 + $0xc0] sm:$0xfe] }
  0x8b   : > { %v1886_v57 = vadd.f32 %v1680_v23, %v1168_v37  ;;  %v5215_v27 = vrot.slane %v5012_v25, 2  ;;  %5752 = vst [vmem:[%s6726_s15 + $0x48] sm:$0xff] %v5688_v32  ;;  %v3987_v51 = vadd.f32 %v3923_v44, %v3653_v55  ;;  %v758_v26 = vmul.f32 %v6493_v12, %v585_v60 }
  0x8c   : > { %v2731_v39 = vsel %vm932_vm0, %v10437_v63, %v2730_v2  ;;  %v3448_v10 = vsel %vm1650_vm1, %v10438_v31, %v3447_v49  ;;  %v4499_v30 = vsel %vm932_vm0, %v10439_v59, %v4498_v42  ;;  %v7267_v14 = vmul.f32 %v6859_v52, %v6493_v12  ;;  %v6214_v49 = vld [vmem:[%s6487_s6 + $0xf0] sm:$0xfe] }
  0x8d   : > { %v2220_v36 = vadd.f32 %v2156_v40, %v1886_v57  ;;  %v387_v61 = vmul.f32 %v6872_v7, %v6490_v11  ;;  %v1476_v15 = vmul.f32 %v6496_v13, %v1303_v35  ;;  %v7275_v3 = vmul.f32 %v6859_v52, %v6496_v13  ;;  %v6311_v63 = vld [vmem:[%s6487_s6 + $0xf0] sm:$0xfc] }
  0x8e   : > { %v2157_v44 = vmul.f32 %v7095_v8, %v6507_v18  ;;  %v4704_v0 = vadd.f32 %v4497_v54, %v3987_v51  ;;  %v963_v40 = vrot.slane %v758_v26, 1  ;;  %v10230_v16 = vrot.slane %v7267_v14, 1  ;;  %v7309_v51 = vld [vmem:[%s6487_s6 + $0x100] sm:$0xff] }
  0x8f   : > { %v2937_v62 = vadd.f32 %v2731_v39, %v2220_v36  ;;  %v1681_v24 = vrot.slane %v1476_v15, 2  ;;  %v10229_v58 = vrot.slane %v7275_v3, 2  ;;  %v2528_v7 = vmul.f32 %v5955_v43, %v6510_v19  ;;  %v586_v15 = vld [vmem:[%s6487_s6 + $0x98] sm:$0xfe] }
  0x90   : > { %v7285_v37 = vmul.f32 %v7085_v29, %v6510_v19  ;;  %v5421_v2 = vadd.f32 %v5214_v9, %v4704_v0  ;;  %v965_v54 = vsel %vm932_vm0, %v963_v40, %v10230_v16  ;;  %v3245_v23 = vmul.f32 %v6052_v6, %v6513_v20  ;;  %v7319_v6 = vld [vmem:[%s6487_s6 + $0xf0] sm:$0xff] }
  0x91   : > { %v3654_v28 = vadd.f32 %v3448_v10, %v2937_v62  ;;  %v1169_v42 = vadd.f32 %v965_v54, %v387_v61  ;;  %v1683_v25 = vsel %vm1650_vm1, %v1681_v24, %v10229_v58  ;;  %v2732_v60 = vrot.slane %v2528_v7, 1  ;;  %v1304_v24 = vld [vmem:[%s6487_s6 + $0x98] sm:$0xfc]  ;;  %v6056_v58 = vld [vmem:[%s6487_s6 + $0xe0] sm:$0x3] }
  0x92   : > { %v10226_v32 = vrot.slane %v7285_v37, 1  ;;  %v5625_v9 = vadd.f32 %v6598_v22, %v5421_v2  ;;  %v7299_v57 = vmul.f32 %v7085_v29, %v6513_v20  ;;  %v3449_v35 = vrot.slane %v3245_v23, 2  ;;  %v6218_v16 = vld [vmem:[%s6487_s6 + $0x110] sm:$0x1] }
  0x93   : > { %v3988_v55 = vadd.f32 %v3924_v38, %v3654_v28  ;;  %v10440_v39 = vrot.slane %v7178_v53, 2  ;;  %v1887_v10 = vadd.f32 %v1683_v25, %v1169_v42  ;;  %v10441_v38 = vld [vmem:[#allocation3_spill] sm:$0xff]  ;;  %v5013_v62 = vmul.f32 %v6311_v63, %v6538_v33  ;;  %v10442_v25 = vld [vmem:[#allocation5_spill] sm:$0xff] }
  0x94   : > { %v2734_v59 = vsel %vm932_vm0, %v2732_v60, %v10226_v32  ;;  %v4296_v36 = vmul.f32 %v6214_v49, %v10441_v38  ;;  %v5689_v26 = vmax.f32 %v5625_v9, 0.0  ;;  %v10225_v61 = vrot.slane %v7299_v57, 2  ;;  %v7386_v32 = vld [vmem:[%s6487_s6 + $0xf8] sm:$0xff] }
  0x95   : > { %v5216_v31 = vsel %vm1650_vm1, %v10440_v39, %v5215_v27  ;;  %v4705_v43 = vadd.f32 %v4499_v30, %v3988_v55  ;;  %v7315_v53 = vmul.f32 %v7309_v51, %v10441_v38  ;;  %v2221_v27 = vadd.f32 %v2157_v44, %v1887_v10  ;;  %10444 = vst [vmem:[#allocation5_spill] sm:$0xff] %v7386_v32 }
  0x96   : > { %v4500_v0 = vrot.slane %v4296_v36, 1  ;;  %v7324_v40 = vmul.f32 %v7309_v51, %v6538_v33  ;;  %5753 = vst [vmem:[%s6726_s15 + $0x50] sm:$0xff] %v5689_v26  ;;  %v3451_v7 = vsel %vm1650_vm1, %v3449_v35, %v10225_v61  ;;  %v3925_v44 = vmul.f32 %v7319_v6, %v6516_v21  ;;  %v5956_v35 = vld [vmem:[%s6487_s6 + $0xc8] sm:$0xfe] }
  0x97   : > { %v5422_v30 = vadd.f32 %v5216_v31, %v4705_v43  ;;  %v10224_v2 = vrot.slane %v7315_v53, 1  ;;  %v2938_v28 = vadd.f32 %v2734_v59, %v2221_v27  ;;  %v5217_v54 = vrot.slane %v5013_v62, 2  ;;  %v6053_v59 = vld [vmem:[%s6487_s6 + $0xc8] sm:$0xfc] }
  0x98   : > { %v10223_v23 = vrot.slane %v7324_v40, 2  ;;  %v759_v49 = vmul.f32 %v6625_v41, %v586_v15  ;;  %v388_v60 = vmul.f32 %v10442_v25, %v6621_v4  ;;  %v7341_v9 = vmul.f32 %v6934_v50, %v6625_v41 }
  0x99   : > { %v5626_v42 = vadd.f32 %v6740_v47, %v5422_v30  ;;  %v1477_v55 = vmul.f32 %v6629_v17, %v1304_v24  ;;  %v3655_v63 = vadd.f32 %v3451_v7, %v2938_v28  ;;  %v4502_v39 = vsel %vm932_vm0, %v4500_v0, %v10224_v2  ;;  %v6215_v30 = vld [vmem:[%s6487_s6 + $0xf8] sm:$0xfe]  ;;  %v10443_v28 = vld [vmem:[#allocation4_spill] sm:$0xff] }
  0x9a   : > { %v966_v31 = vrot.slane %v759_v49, 1  ;;  %v7350_v10 = vmul.f32 %v6934_v50, %v6629_v17  ;;  %v5219_v26 = vsel %vm1650_vm1, %v5217_v54, %v10223_v23  ;;  %v10222_v43 = vrot.slane %v7341_v9, 1 }
  0x9b   : > { %v5690_v36 = vmax.f32 %v5626_v42, 0.0  ;;  %v1684_v15 = vrot.slane %v1477_v55, 2  ;;  %v3989_v27 = vadd.f32 %v3925_v44, %v3655_v63  ;;  %v2529_v0 = vmul.f32 %v5956_v35, %v6641_v1  ;;  %v6312_v42 = vld [vmem:[%s6487_s6 + $0xf8] sm:$0xfc] }
  0x9c   : > { %v10228_v62 = vrot.slane %v7350_v10, 2  ;;  %v7361_v24 = vmul.f32 %v7158_v48, %v6641_v1  ;;  %v968_v7 = vsel %vm932_vm0, %v966_v31, %v10222_v43  ;;  %v2158_v54 = vmul.f32 %v10443_v28, %v6637_v46  ;;  %v1308_v28 = vld [vmem:[%s6487_s6 + $0xb8] sm:$0x3] }
  0x9d   : > { %5754 = vst [vmem:[%s6726_s15 + $0x58] sm:$0xff] %v5690_v36  ;;  %v3246_v44 = vmul.f32 %v6053_v59, %v6672_v34  ;;  %v7373_v49 = vmul.f32 %v7158_v48, %v6672_v34  ;;  %v4706_v25 = vadd.f32 %v4502_v39, %v3989_v27  ;;  %v1170_v55 = vadd.f32 %v968_v7, %v388_v60  ;;  %v7382_v59 = vld [vmem:[%s6487_s6 + $0x108] sm:$0xff]  ;;  %v1307_v27 = vld [vmem:[%s6487_s6 + $0xb0] sm:$0x3] }
  0x9e   : > { %v1686_v35 = vsel %vm1650_vm1, %v1684_v15, %v10228_v62  ;;  %v2735_v63 = vrot.slane %v2529_v0, 1  ;;  %v10227_v31 = vrot.slane %v7361_v24, 1  ;;  %v4297_v23 = vmul.f32 %v6215_v30, %v6686_v5  ;;  %v589_v15 = vld [vmem:[%s6487_s6 + $0xb0] sm:$0x1] }
  0x9f   : > { %v3452_v36 = vrot.slane %v3246_v44, 2  ;;  %v10233_v43 = vrot.slane %v7373_v49, 2  ;;  %v5423_v2 = vadd.f32 %v5219_v26, %v4706_v25  ;;  %v1888_v61 = vadd.f32 %v1686_v35, %v1170_v55  ;;  %v5959_v35 = vld [vmem:[%s6487_s6 + $0xe0] sm:$0x1] }
  0xa0   : > { %v7390_v60 = vmul.f32 %v7382_v59, %v6686_v5  ;;  %v5014_v39 = vmul.f32 %v6312_v42, %v6718_v45  ;;  %v2737_v0 = vsel %vm932_vm0, %v2735_v63, %v10227_v31  ;;  %v3926_v26 = vmul.f32 %v7386_v32, %v6682_v56  ;;  %v6315_v32 = vld [vmem:[%s6487_s6 + $0x110] sm:$0x3] }
  0xa1   : > { %v4503_v30 = vrot.slane %v4297_v23, 1  ;;  %v7402_v7 = vmul.f32 %v7382_v59, %v6718_v45  ;;  %v5627_v44 = vadd.f32 %v6598_v22, %v5423_v2  ;;  %v2222_v42 = vadd.f32 %v2158_v54, %v1888_v61 }
  0xa2   : > { %v10234_v25 = vrot.slane %v7390_v60, 1  ;;  %v5220_v55 = vrot.slane %v5014_v39, 2  ;;  %v3454_v63 = vsel %vm1650_vm1, %v3452_v36, %v10233_v43  ;;  %v762_v23 = vmul.f32 %v6493_v12, %v589_v15 }
  0xa3   : > { %v1480_v62 = vmul.f32 %v6496_v13, %v1307_v27  ;;  %v5691_v2 = vmax.f32 %v5627_v44, 0.0  ;;  %v2939_v61 = vadd.f32 %v2737_v0, %v2222_v42  ;;  %v389_v39 = vmul.f32 %v6859_v52, %v6490_v11  ;;  %v590_v42 = vld [vmem:[%s6487_s6 + $0xb8] sm:$0x1] }
  0xa4   : > { %v4505_v54 = vsel %vm932_vm0, %v4503_v30, %v10234_v25  ;;  %v969_v36 = vrot.slane %v762_v23, 1  ;;  %v2159_v15 = vmul.f32 %v7085_v29, %v6507_v18  ;;  %v2532_v27 = vmul.f32 %v5959_v35, %v6510_v19 }
  0xa5   : > { %v1687_v43 = vrot.slane %v1480_v62, 2  ;;  %5755 = vst [vmem:[%s6726_s15 + $0x60] sm:$0xff] %v5691_v2  ;;  %v3656_v31 = vadd.f32 %v3454_v63, %v2939_v61  ;;  %v10445_v0 = vrot.slane %v7402_v7, 2  ;;  %v3249_v30 = vmul.f32 %v6056_v58, %v6513_v20 }
  0xa6   : > { %v4300_v52 = vmul.f32 %v6218_v16, %v10441_v38  ;;  %v10446_v62 = vrot.slane %v7267_v14, 1  ;;  %v10447_v25 = vrot.slane %v7275_v3, 2  ;;  %v2738_v63 = vrot.slane %v2532_v27, 1 }
  0xa7   : > { %v5222_v44 = vsel %vm1650_vm1, %v5220_v55, %v10445_v0  ;;  %v5017_v2 = vmul.f32 %v6315_v32, %v6538_v33  ;;  %v3990_v55 = vadd.f32 %v3926_v26, %v3656_v31  ;;  %v3455_v58 = vrot.slane %v3249_v30, 2 }
  0xa8   : > { %v970_v23 = vsel %vm932_vm0, %v10446_v62, %v969_v36  ;;  %v1688_v35 = vsel %vm1650_vm1, %v10447_v25, %v1687_v43  ;;  %v4506_v0 = vrot.slane %v4300_v52, 1  ;;  %v10448_v16 = vrot.slane %v7285_v37, 1  ;;  %v5960_v43 = vld [vmem:[%s6487_s6 + $0xe8] sm:$0x1] }
  0xa9   : > { %v1171_v61 = vadd.f32 %v970_v23, %v389_v39  ;;  %v3927_v14 = vmul.f32 %v7309_v51, %v6516_v21  ;;  %v5223_v36 = vrot.slane %v5017_v2, 2  ;;  %v763_v3 = vmul.f32 %v6625_v41, %v590_v42  ;;  %v6057_v25 = vld [vmem:[%s6487_s6 + $0xe8] sm:$0x3]  ;;  %v6219_v39 = vld [vmem:[%s6487_s6 + $0x118] sm:$0x1] }
  0xaa   : > { %v2739_v38 = vsel %vm932_vm0, %v10448_v16, %v2738_v63  ;;  %v4707_v32 = vadd.f32 %v4505_v54, %v3990_v55  ;;  %v10449_v31 = vrot.slane %v7299_v57, 2  ;;  %v390_v37 = vmul.f32 %v6934_v50, %v6621_v4  ;;  %v6316_v50 = vld [vmem:[%s6487_s6 + $0x118] sm:$0x3] }
  0xab   : > { %v1889_v27 = vadd.f32 %v1688_v35, %v1171_v61  ;;  %v10450_v30 = vrot.slane %v7315_v53, 1  ;;  %v10451_v62 = vrot.slane %v7324_v40, 2  ;;  %v971_v23 = vrot.slane %v763_v3, 1 }
  0xac   : > { %v3456_v26 = vsel %vm1650_vm1, %v10449_v31, %v3455_v58  ;;  %v1481_v54 = vmul.f32 %v6629_v17, %v1308_v28  ;;  %v5424_v35 = vadd.f32 %v5222_v44, %v4707_v32  ;;  %v2533_v57 = vmul.f32 %v5960_v43, %v6641_v1 }
  0xad   : > { %v4507_v52 = vsel %vm932_vm0, %v10450_v30, %v4506_v0  ;;  %v5224_v42 = vsel %vm1650_vm1, %v10451_v62, %v5223_v36  ;;  %v2223_v63 = vadd.f32 %v2159_v15, %v1889_v27  ;;  %v3250_v2 = vmul.f32 %v6057_v25, %v6672_v34  ;;  %v591_v25 = vld [vmem:[%s6487_s6 + $0xc0] sm:$0xfe] }
  0xae   : > { %v10452_v55 = vrot.slane %v7341_v9, 1  ;;  %v1689_v61 = vrot.slane %v1481_v54, 2  ;;  %v2160_v40 = vmul.f32 %v7158_v48, %v6637_v46  ;;  %v4301_v58 = vmul.f32 %v6219_v39, %v6686_v5 }
  0xaf   : > { %v5628_v28 = vadd.f32 %v6740_v47, %v5424_v35  ;;  %v2940_v15 = vadd.f32 %v2739_v38, %v2223_v63  ;;  %v2740_v0 = vrot.slane %v2533_v57, 1  ;;  %v10453_v16 = vrot.slane %v7350_v10, 2  ;;  %v1309_v38 = vld [vmem:[%s6487_s6 + $0xc0] sm:$0xfc] }
  0xb0   : > { %v972_v53 = vsel %vm932_vm0, %v10452_v55, %v971_v23  ;;  %v3457_v9 = vrot.slane %v3250_v2, 2  ;;  %v4508_v3 = vrot.slane %v4301_v58, 1  ;;  %v5018_v43 = vmul.f32 %v6316_v50, %v6718_v45  ;;  %v6058_v55 = vld [vmem:[%s6487_s6 + $0xf0] sm:$0xfc] }
  0xb1   : > { %v1172_v44 = vadd.f32 %v972_v53, %v390_v37  ;;  %v1690_v36 = vsel %vm1650_vm1, %v10453_v16, %v1689_v61  ;;  %v5692_v32 = vmax.f32 %v5628_v28, 0.0  ;;  %v3657_v27 = vadd.f32 %v3456_v26, %v2940_v15 }
  0xb2   : > { %v3928_v39 = vmul.f32 %v7382_v59, %v6682_v56  ;;  %v10454_v37 = vrot.slane %v7361_v24, 1  ;;  %v10455_v30 = vrot.slane %v7373_v49, 2  ;;  %v10456_v23 = vrot.slane %v7390_v60, 1  ;;  %v5961_v24 = vld [vmem:[%s6487_s6 + $0xf0] sm:$0xfe] }
  0xb3   : > { %v1890_v31 = vadd.f32 %v1690_v36, %v1172_v44  ;;  %v5225_v35 = vrot.slane %v5018_v43, 2  ;;  %5756 = vst [vmem:[%s6726_s15 + $0x68] sm:$0xff] %v5692_v32  ;;  %v3991_v26 = vadd.f32 %v3927_v14, %v3657_v27  ;;  %v764_v57 = vmul.f32 %v6493_v12, %v591_v25 }
  0xb4   : > { %v2741_v10 = vsel %vm932_vm0, %v10454_v37, %v2740_v0  ;;  %v3458_v62 = vsel %vm1650_vm1, %v10455_v30, %v3457_v9  ;;  %v4509_v54 = vsel %vm932_vm0, %v10456_v23, %v4508_v3  ;;  %v7491_v2 = vmul.f32 %v7085_v29, %v6493_v12  ;;  %v6220_v9 = vld [vmem:[%s6487_s6 + $0x120] sm:$0xfe] }
  0xb5   : > { %v2224_v63 = vadd.f32 %v2160_v40, %v1890_v31  ;;  %v391_v49 = vmul.f32 %v7095_v8, %v6490_v11  ;;  %v1482_v50 = vmul.f32 %v6496_v13, %v1309_v38  ;;  %v7499_v60 = vmul.f32 %v7085_v29, %v6496_v13  ;;  %v6317_v37 = vld [vmem:[%s6487_s6 + $0x120] sm:$0xfc] }
  0xb6   : > { %v2161_v14 = vmul.f32 %v7319_v6, %v6507_v18  ;;  %v4708_v53 = vadd.f32 %v4507_v52, %v3991_v26  ;;  %v973_v40 = vrot.slane %v764_v57, 1  ;;  %v10244_v58 = vrot.slane %v7491_v2, 1  ;;  %v7533_v26 = vld [vmem:[%s6487_s6 + $0x130] sm:$0xff] }
  0xb7   : > { %v2941_v61 = vadd.f32 %v2741_v10, %v2224_v63  ;;  %v1691_v28 = vrot.slane %v1482_v50, 2  ;;  %v10243_v15 = vrot.slane %v7499_v60, 2  ;;  %v2534_v8 = vmul.f32 %v5961_v24, %v6510_v19  ;;  %v592_v50 = vld [vmem:[%s6487_s6 + $0xc8] sm:$0xfe] }
  0xb8   : > { %v7509_v44 = vmul.f32 %v7309_v51, %v6510_v19  ;;  %v5425_v0 = vadd.f32 %v5224_v42, %v4708_v53  ;;  %v975_v52 = vsel %vm932_vm0, %v973_v40, %v10244_v58  ;;  %v3251_v36 = vmul.f32 %v6058_v55, %v6513_v20  ;;  %v7543_v55 = vld [vmem:[%s6487_s6 + $0x120] sm:$0xff] }
  0xb9   : > { %v3658_v16 = vadd.f32 %v3458_v62, %v2941_v61  ;;  %v1173_v3 = vadd.f32 %v975_v52, %v391_v49  ;;  %v1693_v43 = vsel %vm1650_vm1, %v1691_v28, %v10243_v15  ;;  %v2742_v25 = vrot.slane %v2534_v8, 1  ;;  %v1310_v28 = vld [vmem:[%s6487_s6 + $0xc8] sm:$0xfc]  ;;  %v6062_v15 = vld [vmem:[%s6487_s6 + $0x110] sm:$0x3] }
  0xba   : > { %v10240_v32 = vrot.slane %v7509_v44, 1  ;;  %v5629_v42 = vadd.f32 %v6598_v22, %v5425_v0  ;;  %v7523_v31 = vmul.f32 %v7309_v51, %v6513_v20  ;;  %v3459_v38 = vrot.slane %v3251_v36, 2  ;;  %v6224_v58 = vld [vmem:[%s6487_s6 + $0x140] sm:$0x1] }
  0xbb   : > { %v3992_v27 = vadd.f32 %v3928_v39, %v3658_v16  ;;  %v10457_v10 = vrot.slane %v7402_v7, 2  ;;  %v1891_v62 = vadd.f32 %v1693_v43, %v1173_v3  ;;  %v10458_v39 = vld [vmem:[#allocation3_spill] sm:$0xff]  ;;  %v5019_v61 = vmul.f32 %v6317_v37, %v6538_v33  ;;  %v10459_v43 = vld [vmem:[#allocation4_spill] sm:$0xff] }
  0xbc   : > { %v2744_v23 = vsel %vm932_vm0, %v2742_v25, %v10240_v32  ;;  %v4302_v63 = vmul.f32 %v6220_v9, %v10458_v39  ;;  %v5693_v57 = vmax.f32 %v5629_v42, 0.0  ;;  %v10239_v49 = vrot.slane %v7523_v31, 2  ;;  %v7610_v32 = vld [vmem:[%s6487_s6 + $0x128] sm:$0xff] }
  0xbd   : > { %v5226_v30 = vsel %vm1650_vm1, %v10457_v10, %v5225_v35  ;;  %v4709_v24 = vadd.f32 %v4509_v54, %v3992_v27  ;;  %v7539_v7 = vmul.f32 %v7533_v26, %v10458_v39  ;;  %v2225_v35 = vadd.f32 %v2161_v14, %v1891_v62  ;;  %10461 = vst [vmem:[#allocation4_spill] sm:$0xff] %v7610_v32 }
  0xbe   : > { %v4510_v53 = vrot.slane %v4302_v63, 1  ;;  %v7548_v40 = vmul.f32 %v7533_v26, %v6538_v33  ;;  %5757 = vst [vmem:[%s6726_s15 + $0x70] sm:$0xff] %v5693_v57  ;;  %v3461_v8 = vsel %vm1650_vm1, %v3459_v38, %v10239_v49  ;;  %v3929_v14 = vmul.f32 %v7543_v55, %v6516_v21  ;;  %v5962_v38 = vld [vmem:[%s6487_s6 + $0xf8] sm:$0xfe] }
  0xbf   : > { %v5426_v54 = vadd.f32 %v5226_v30, %v4709_v24  ;;  %v10238_v0 = vrot.slane %v7539_v7, 1  ;;  %v2942_v16 = vadd.f32 %v2744_v23, %v2225_v35  ;;  %v5227_v52 = vrot.slane %v5019_v61, 2  ;;  %v6059_v23 = vld [vmem:[%s6487_s6 + $0xf8] sm:$0xfc] }
  0xc0   : > { %v10237_v36 = vrot.slane %v7548_v40, 2  ;;  %v765_v9 = vmul.f32 %v6625_v41, %v592_v50  ;;  %v392_v25 = vmul.f32 %v10459_v43, %v6621_v4  ;;  %v7565_v42 = vmul.f32 %v7158_v48, %v6625_v41 }
  0xc1   : > { %v5630_v3 = vadd.f32 %v6740_v47, %v5426_v54  ;;  %v1483_v27 = vmul.f32 %v6629_v17, %v1310_v28  ;;  %v3659_v37 = vadd.f32 %v3461_v8, %v2942_v16  ;;  %v4512_v10 = vsel %vm932_vm0, %v4510_v53, %v10238_v0  ;;  %v6221_v54 = vld [vmem:[%s6487_s6 + $0x128] sm:$0xfe]  ;;  %v10460_v16 = vld [vmem:[#allocation5_spill] sm:$0xff] }
  0xc2   : > { %v976_v30 = vrot.slane %v765_v9, 1  ;;  %v7574_v62 = vmul.f32 %v7158_v48, %v6629_v17  ;;  %v5229_v57 = vsel %vm1650_vm1, %v5227_v52, %v10237_v36  ;;  %v10236_v24 = vrot.slane %v7565_v42, 1 }
  0xc3   : > { %v5694_v63 = vmax.f32 %v5630_v3, 0.0  ;;  %v1694_v50 = vrot.slane %v1483_v27, 2  ;;  %v3993_v35 = vadd.f32 %v3929_v14, %v3659_v37  ;;  %v2535_v53 = vmul.f32 %v5962_v38, %v6641_v1  ;;  %v6318_v3 = vld [vmem:[%s6487_s6 + $0x128] sm:$0xfc] }
  0xc4   : > { %v10242_v61 = vrot.slane %v7574_v62, 2  ;;  %v7585_v28 = vmul.f32 %v7382_v59, %v6641_v1  ;;  %v978_v8 = vsel %vm932_vm0, %v976_v30, %v10236_v24  ;;  %v2162_v52 = vmul.f32 %v10460_v16, %v6637_v46  ;;  %v1314_v16 = vld [vmem:[%s6487_s6 + $0xe8] sm:$0x3] }
  0xc5   : > { %5758 = vst [vmem:[%s6726_s15 + $0x78] sm:$0xff] %v5694_v63  ;;  %v3252_v14 = vmul.f32 %v6059_v23, %v6672_v34  ;;  %v7597_v9 = vmul.f32 %v7382_v59, %v6672_v34  ;;  %v4710_v43 = vadd.f32 %v4512_v10, %v3993_v35  ;;  %v1174_v27 = vadd.f32 %v978_v8, %v392_v25  ;;  %v7606_v23 = vld [vmem:[%s6487_s6 + $0x138] sm:$0xff]  ;;  %v1313_v35 = vld [vmem:[%s6487_s6 + $0xe0] sm:$0x3] }
  0xc6   : > { %v1696_v38 = vsel %vm1650_vm1, %v1694_v50, %v10242_v61  ;;  %v2745_v37 = vrot.slane %v2535_v53, 1  ;;  %v10241_v30 = vrot.slane %v7585_v28, 1  ;;  %v4303_v36 = vmul.f32 %v6221_v54, %v6686_v5  ;;  %v595_v50 = vld [vmem:[%s6487_s6 + $0xe0] sm:$0x1] }
  0xc7   : > { %v3462_v63 = vrot.slane %v3252_v14, 2  ;;  %v10247_v24 = vrot.slane %v7597_v9, 2  ;;  %v5427_v0 = vadd.f32 %v5229_v57, %v4710_v43  ;;  %v1892_v49 = vadd.f32 %v1696_v38, %v1174_v27  ;;  %v5965_v38 = vld [vmem:[%s6487_s6 + $0x110] sm:$0x1] }
  0xc8   : > { %v7614_v25 = vmul.f32 %v7606_v23, %v6686_v5  ;;  %v5020_v10 = vmul.f32 %v6318_v3, %v6718_v45  ;;  %v2747_v53 = vsel %vm932_vm0, %v2745_v37, %v10241_v30  ;;  %v3930_v57 = vmul.f32 %v7610_v32, %v6682_v56  ;;  %v6321_v32 = vld [vmem:[%s6487_s6 + $0x140] sm:$0x3] }
  0xc9   : > { %v4513_v54 = vrot.slane %v4303_v36, 1  ;;  %v7626_v8 = vmul.f32 %v7606_v23, %v6718_v45  ;;  %v5631_v14 = vadd.f32 %v6598_v22, %v5427_v0  ;;  %v2226_v3 = vadd.f32 %v2162_v52, %v1892_v49 }
  0xca   : > { %v10248_v43 = vrot.slane %v7614_v25, 1  ;;  %v5230_v27 = vrot.slane %v5020_v10, 2  ;;  %v3464_v37 = vsel %vm1650_vm1, %v3462_v63, %v10247_v24  ;;  %v768_v36 = vmul.f32 %v6493_v12, %v595_v50 }
  0xcb   : > { %v1486_v61 = vmul.f32 %v6496_v13, %v1313_v35  ;;  %v5695_v0 = vmax.f32 %v5631_v14, 0.0  ;;  %v2943_v49 = vadd.f32 %v2747_v53, %v2226_v3  ;;  %v393_v10 = vmul.f32 %v7085_v29, %v6490_v11  ;;  %v596_v3 = vld [vmem:[%s6487_s6 + $0xe8] sm:$0x1] }
  0xcc   : > { %v4515_v52 = vsel %vm932_vm0, %v4513_v54, %v10248_v43  ;;  %v979_v63 = vrot.slane %v768_v36, 1  ;;  %v2163_v50 = vmul.f32 %v7309_v51, %v6507_v18  ;;  %v2538_v35 = vmul.f32 %v5965_v38, %v6510_v19 }
  0xcd   : > { %v1697_v24 = vrot.slane %v1486_v61, 2  ;;  %5759 = vst [vmem:[%s6726_s15 + $0x80] sm:$0xff] %v5695_v0  ;;  %v3660_v30 = vadd.f32 %v3464_v37, %v2943_v49  ;;  %v10462_v53 = vrot.slane %v7626_v8, 2  ;;  %v3255_v54 = vmul.f32 %v6062_v15, %v6513_v20 }
  0xce   : > { %v4306_v29 = vmul.f32 %v6224_v58, %v10458_v39  ;;  %v10463_v61 = vrot.slane %v7491_v2, 1  ;;  %v10464_v43 = vrot.slane %v7499_v60, 2  ;;  %v2748_v37 = vrot.slane %v2538_v35, 1 }
  0xcf   : > { %v5232_v14 = vsel %vm1650_vm1, %v5230_v27, %v10462_v53  ;;  %v5023_v0 = vmul.f32 %v6321_v32, %v6538_v33  ;;  %v3994_v27 = vadd.f32 %v3930_v57, %v3660_v30  ;;  %v3465_v15 = vrot.slane %v3255_v54, 2 }
  0xd0   : > { %v980_v36 = vsel %vm932_vm0, %v10463_v61, %v979_v63  ;;  %v1698_v38 = vsel %vm1650_vm1, %v10464_v43, %v1697_v24  ;;  %v4516_v53 = vrot.slane %v4306_v29, 1  ;;  %v10465_v58 = vrot.slane %v7509_v44, 1  ;;  %v5966_v24 = vld [vmem:[%s6487_s6 + $0x118] sm:$0x1] }
  0xd1   : > { %v1175_v49 = vadd.f32 %v980_v36, %v393_v10  ;;  %v3931_v2 = vmul.f32 %v7533_v26, %v6516_v21  ;;  %v5233_v63 = vrot.slane %v5023_v0, 2  ;;  %v769_v60 = vmul.f32 %v6625_v41, %v596_v3  ;;  %v6063_v43 = vld [vmem:[%s6487_s6 + $0x118] sm:$0x3]  ;;  %v6225_v10 = vld [vmem:[%s6487_s6 + $0x148] sm:$0x1] }
  0xd2   : > { %v2749_v39 = vsel %vm932_vm0, %v10465_v58, %v2748_v37  ;;  %v4711_v32 = vadd.f32 %v4515_v52, %v3994_v27  ;;  %v10466_v30 = vrot.slane %v7523_v31, 2  ;;  %v394_v44 = vmul.f32 %v7158_v48, %v6621_v4  ;;  %v6322_v48 = vld [vmem:[%s6487_s6 + $0x148] sm:$0x3] }
  0xd3   : > { %v1893_v35 = vadd.f32 %v1698_v38, %v1175_v49  ;;  %v10467_v54 = vrot.slane %v7539_v7, 1  ;;  %v10468_v61 = vrot.slane %v7548_v40, 2  ;;  %v981_v36 = vrot.slane %v769_v60, 1 }
  0xd4   : > { %v3466_v57 = vsel %vm1650_vm1, %v10466_v30, %v3465_v15  ;;  %v1487_v52 = vmul.f32 %v6629_v17, %v1314_v16  ;;  %v5428_v38 = vadd.f32 %v5232_v14, %v4711_v32  ;;  %v2539_v31 = vmul.f32 %v5966_v24, %v6641_v1 }
  0xd5   : > { %v4517_v29 = vsel %vm932_vm0, %v10467_v54, %v4516_v53  ;;  %v5234_v3 = vsel %vm1650_vm1, %v10468_v61, %v5233_v63  ;;  %v2227_v37 = vadd.f32 %v2163_v50, %v1893_v35  ;;  %v3256_v0 = vmul.f32 %v6063_v43, %v6672_v34  ;;  %v597_v43 = vld [vmem:[%s6487_s6 + $0xf0] sm:$0xfe] }
  0xd6   : > { %v10469_v27 = vrot.slane %v7565_v42, 1  ;;  %v1699_v49 = vrot.slane %v1487_v52, 2  ;;  %v2164_v40 = vmul.f32 %v7382_v59, %v6637_v46  ;;  %v4307_v15 = vmul.f32 %v6225_v10, %v6686_v5 }
  0xd7   : > { %v5632_v16 = vadd.f32 %v6740_v47, %v5428_v38  ;;  %v2944_v50 = vadd.f32 %v2749_v39, %v2227_v37  ;;  %v2750_v53 = vrot.slane %v2539_v31, 1  ;;  %v10470_v58 = vrot.slane %v7574_v62, 2  ;;  %v1315_v39 = vld [vmem:[%s6487_s6 + $0xf0] sm:$0xfc] }
  0xd8   : > { %v982_v7 = vsel %vm932_vm0, %v10469_v27, %v981_v36  ;;  %v3467_v42 = vrot.slane %v3256_v0, 2  ;;  %v4518_v60 = vrot.slane %v4307_v15, 1  ;;  %v5024_v24 = vmul.f32 %v6322_v48, %v6718_v45  ;;  %v6064_v27 = vld [vmem:[%s6487_s6 + $0x120] sm:$0xfc] }
  0xd9   : > { %v1176_v14 = vadd.f32 %v982_v7, %v394_v44  ;;  %v1700_v63 = vsel %vm1650_vm1, %v10470_v58, %v1699_v49  ;;  %v5696_v32 = vmax.f32 %v5632_v16, 0.0  ;;  %v3661_v35 = vadd.f32 %v3466_v57, %v2944_v50 }
  0xda   : > { %v3932_v10 = vmul.f32 %v7606_v23, %v6682_v56  ;;  %v10471_v44 = vrot.slane %v7585_v28, 1  ;;  %v10472_v54 = vrot.slane %v7597_v9, 2  ;;  %v10473_v36 = vrot.slane %v7614_v25, 1  ;;  %v5967_v28 = vld [vmem:[%s6487_s6 + $0x120] sm:$0xfe] }
  0xdb   : > { %v1894_v30 = vadd.f32 %v1700_v63, %v1176_v14  ;;  %v5235_v38 = vrot.slane %v5024_v24, 2  ;;  %5760 = vst [vmem:[%s6726_s15 + $0x88] sm:$0xff] %v5696_v32  ;;  %v3995_v57 = vadd.f32 %v3931_v2, %v3661_v35  ;;  %v770_v31 = vmul.f32 %v6493_v12, %v597_v43 }
  0xdc   : > { %v2751_v62 = vsel %vm932_vm0, %v10471_v44, %v2750_v53  ;;  %v3468_v61 = vsel %vm1650_vm1, %v10472_v54, %v3467_v42  ;;  %v4519_v52 = vsel %vm932_vm0, %v10473_v36, %v4518_v60  ;;  %v7715_v0 = vmul.f32 %v7309_v51, %v6493_v12  ;;  %v6226_v42 = vld [vmem:[%s6487_s6 + $0x150] sm:$0xfe] }
  0xdd   : > { %v2228_v37 = vadd.f32 %v2164_v40, %v1894_v30  ;;  %v395_v9 = vmul.f32 %v7319_v6, %v6490_v11  ;;  %v1488_v48 = vmul.f32 %v6496_v13, %v1315_v39  ;;  %v7723_v25 = vmul.f32 %v7309_v51, %v6496_v13  ;;  %v6323_v44 = vld [vmem:[%s6487_s6 + $0x150] sm:$0xfc] }
  0xde   : > { %v2165_v2 = vmul.f32 %v7543_v55, %v6507_v18  ;;  %v4712_v7 = vadd.f32 %v4517_v29, %v3995_v57  ;;  %v983_v40 = vrot.slane %v770_v31, 1  ;;  %v10258_v15 = vrot.slane %v7715_v0, 1  ;;  %v7757_v57 = vld [vmem:[%s6487_s6 + $0x160] sm:$0xff] }
  0xdf   : > { %v2945_v49 = vadd.f32 %v2751_v62, %v2228_v37  ;;  %v1701_v16 = vrot.slane %v1488_v48, 2  ;;  %v10257_v50 = vrot.slane %v7723_v25, 2  ;;  %v2540_v6 = vmul.f32 %v5967_v28, %v6510_v19  ;;  %v598_v48 = vld [vmem:[%s6487_s6 + $0xf8] sm:$0xfe] }
  0xe0   : > { %v7733_v14 = vmul.f32 %v7533_v26, %v6510_v19  ;;  %v5429_v53 = vadd.f32 %v5234_v3, %v4712_v7  ;;  %v985_v29 = vsel %vm932_vm0, %v983_v40, %v10258_v15  ;;  %v3257_v63 = vmul.f32 %v6064_v27, %v6513_v20  ;;  %v7767_v27 = vld [vmem:[%s6487_s6 + $0x150] sm:$0xff] }
  0xe1   : > { %v3662_v58 = vadd.f32 %v3468_v61, %v2945_v49  ;;  %v1177_v60 = vadd.f32 %v985_v29, %v395_v9  ;;  %v1703_v24 = vsel %vm1650_vm1, %v1701_v16, %v10257_v50  ;;  %v2752_v43 = vrot.slane %v2540_v6, 1  ;;  %v1316_v16 = vld [vmem:[%s6487_s6 + $0xf8] sm:$0xfc]  ;;  %v6068_v50 = vld [vmem:[%s6487_s6 + $0x140] sm:$0x3] }
  0xe2   : > { %v10254_v32 = vrot.slane %v7733_v14, 1  ;;  %v5633_v3 = vadd.f32 %v6598_v22, %v5429_v53  ;;  %v7747_v30 = vmul.f32 %v7533_v26, %v6513_v20  ;;  %v3469_v39 = vrot.slane %v3257_v63, 2  ;;  %v6230_v15 = vld [vmem:[%s6487_s6 + $0x170] sm:$0x1] }
  0xe3   : > { %v3996_v35 = vadd.f32 %v3932_v10, %v3662_v58  ;;  %v10474_v62 = vrot.slane %v7626_v8, 2  ;;  %v1895_v61 = vadd.f32 %v1703_v24, %v1177_v60  ;;  %v10475_v10 = vld [vmem:[#allocation3_spill] sm:$0xff]  ;;  %v5025_v49 = vmul.f32 %v6323_v44, %v6538_v33  ;;  %v10476_v24 = vld [vmem:[#allocation5_spill] sm:$0xff] }
  0xe4   : > { %v2754_v36 = vsel %vm932_vm0, %v2752_v43, %v10254_v32  ;;  %v4308_v37 = vmul.f32 %v6226_v42, %v10475_v10  ;;  %v5697_v31 = vmax.f32 %v5633_v3, 0.0  ;;  %v10253_v9 = vrot.slane %v7747_v30, 2  ;;  %v7834_v32 = vld [vmem:[%s6487_s6 + $0x158] sm:$0xff] }
  0xe5   : > { %v5236_v54 = vsel %vm1650_vm1, %v10474_v62, %v5235_v38  ;;  %v4713_v28 = vadd.f32 %v4519_v52, %v3996_v35  ;;  %v7763_v8 = vmul.f32 %v7757_v57, %v10475_v10  ;;  %v2229_v38 = vadd.f32 %v2165_v2, %v1895_v61  ;;  %10478 = vst [vmem:[#allocation5_spill] sm:$0xff] %v7834_v32 }
  0xe6   : > { %v4520_v7 = vrot.slane %v4308_v37, 1  ;;  %v7772_v40 = vmul.f32 %v7757_v57, %v6538_v33  ;;  %5761 = vst [vmem:[%s6726_s15 + $0x90] sm:$0xff] %v5697_v31  ;;  %v3471_v6 = vsel %vm1650_vm1, %v3469_v39, %v10253_v9  ;;  %v3933_v2 = vmul.f32 %v7767_v27, %v6516_v21  ;;  %v5968_v39 = vld [vmem:[%s6487_s6 + $0x128] sm:$0xfe] }
  0xe7   : > { %v5430_v52 = vadd.f32 %v5236_v54, %v4713_v28  ;;  %v10252_v53 = vrot.slane %v7763_v8, 1  ;;  %v2946_v58 = vadd.f32 %v2754_v36, %v2229_v38  ;;  %v5237_v29 = vrot.slane %v5025_v49, 2  ;;  %v6065_v36 = vld [vmem:[%s6487_s6 + $0x128] sm:$0xfc] }
  0xe8   : > { %v10251_v63 = vrot.slane %v7772_v40, 2  ;;  %v771_v42 = vmul.f32 %v6625_v41, %v598_v48  ;;  %v396_v43 = vmul.f32 %v10476_v24, %v6621_v4  ;;  %v7789_v3 = vmul.f32 %v7382_v59, %v6625_v41 }
  0xe9   : > { %v5634_v60 = vadd.f32 %v6740_v47, %v5430_v52  ;;  %v1489_v35 = vmul.f32 %v6629_v17, %v1316_v16  ;;  %v3663_v44 = vadd.f32 %v3471_v6, %v2946_v58  ;;  %v4522_v62 = vsel %vm932_vm0, %v4520_v7, %v10252_v53  ;;  %v6227_v52 = vld [vmem:[%s6487_s6 + $0x158] sm:$0xfe]  ;;  %v10477_v58 = vld [vmem:[#allocation4_spill] sm:$0xff] }
  0xea   : > { %v986_v54 = vrot.slane %v771_v42, 1  ;;  %v7798_v61 = vmul.f32 %v7382_v59, %v6629_v17  ;;  %v5239_v31 = vsel %vm1650_vm1, %v5237_v29, %v10251_v63  ;;  %v10250_v28 = vrot.slane %v7789_v3, 1 }
  0xeb   : > { %v5698_v37 = vmax.f32 %v5634_v60, 0.0  ;;  %v1704_v48 = vrot.slane %v1489_v35, 2  ;;  %v3997_v38 = vadd.f32 %v3933_v2, %v3663_v44  ;;  %v2541_v7 = vmul.f32 %v5968_v39, %v6641_v1  ;;  %v6324_v60 = vld [vmem:[%s6487_s6 + $0x158] sm:$0xfc] }
  0xec   : > { %v10256_v49 = vrot.slane %v7798_v61, 2  ;;  %v7809_v16 = vmul.f32 %v7606_v23, %v6641_v1  ;;  %v988_v6 = vsel %vm932_vm0, %v986_v54, %v10250_v28  ;;  %v2166_v29 = vmul.f32 %v10477_v58, %v6637_v46  ;;  %v1320_v58 = vld [vmem:[%s6487_s6 + $0x118] sm:$0x3] }
  0xed   : > { %5762 = vst [vmem:[%s6726_s15 + $0x98] sm:$0xff] %v5698_v37  ;;  %v3258_v2 = vmul.f32 %v6065_v36, %v6672_v34  ;;  %v7821_v42 = vmul.f32 %v7606_v23, %v6672_v34  ;;  %v4714_v24 = vadd.f32 %v4522_v62, %v3997_v38  ;;  %v1178_v35 = vadd.f32 %v988_v6, %v396_v43  ;;  %v7830_v36 = vld [vmem:[%s6487_s6 + $0x168] sm:$0xff]  ;;  %v1319_v38 = vld [vmem:[%s6487_s6 + $0x110] sm:$0x3] }
  0xee   : > { %v1706_v39 = vsel %vm1650_vm1, %v1704_v48, %v10256_v49  ;;  %v2755_v44 = vrot.slane %v2541_v7, 1  ;;  %v10255_v54 = vrot.slane %v7809_v16, 1  ;;  %v4309_v63 = vmul.f32 %v6227_v52, %v6686_v5  ;;  %v601_v48 = vld [vmem:[%s6487_s6 + $0x110] sm:$0x1] }
  0xef   : > { %v3472_v37 = vrot.slane %v3258_v2, 2  ;;  %v10261_v28 = vrot.slane %v7821_v42, 2  ;;  %v5431_v53 = vadd.f32 %v5239_v31, %v4714_v24  ;;  %v1896_v9 = vadd.f32 %v1706_v39, %v1178_v35  ;;  %v5971_v39 = vld [vmem:[%s6487_s6 + $0x140] sm:$0x1] }
  0xf0   : > { %v7838_v43 = vmul.f32 %v7830_v36, %v6686_v5  ;;  %v5026_v62 = vmul.f32 %v6324_v60, %v6718_v45  ;;  %v2757_v7 = vsel %vm932_vm0, %v2755_v44, %v10255_v54  ;;  %v3934_v31 = vmul.f32 %v7834_v32, %v6682_v56  ;;  %v6327_v32 = vld [vmem:[%s6487_s6 + $0x170] sm:$0x3] }
  0xf1   : > { %v4523_v52 = vrot.slane %v4309_v63, 1  ;;  %v7850_v6 = vmul.f32 %v7830_v36, %v6718_v45  ;;  %v5635_v2 = vadd.f32 %v6598_v22, %v5431_v53  ;;  %v2230_v60 = vadd.f32 %v2166_v29, %v1896_v9 }
  0xf2   : > { %v10262_v24 = vrot.slane %v7838_v43, 1  ;;  %v5240_v35 = vrot.slane %v5026_v62, 2  ;;  %v3474_v44 = vsel %vm1650_vm1, %v3472_v37, %v10261_v28  ;;  %v774_v63 = vmul.f32 %v6493_v12, %v601_v48 }
  0xf3   : > { %v1492_v49 = vmul.f32 %v6496_v13, %v1319_v38  ;;  %v5699_v53 = vmax.f32 %v5635_v2, 0.0  ;;  %v2947_v9 = vadd.f32 %v2757_v7, %v2230_v60  ;;  %v397_v62 = vmul.f32 %v7309_v51, %v6490_v11  ;;  %v602_v60 = vld [vmem:[%s6487_s6 + $0x118] sm:$0x1] }
  0xf4   : > { %v4525_v29 = vsel %vm932_vm0, %v4523_v52, %v10262_v24  ;;  %v989_v37 = vrot.slane %v774_v63, 1  ;;  %v2167_v48 = vmul.f32 %v7533_v26, %v6507_v18  ;;  %v2544_v38 = vmul.f32 %v5971_v39, %v6510_v19 }
  0xf5   : > { %v1707_v28 = vrot.slane %v1492_v49, 2  ;;  %5763 = vst [vmem:[%s6726_s15 + $0xa0] sm:$0xff] %v5699_v53  ;;  %v3664_v54 = vadd.f32 %v3474_v44, %v2947_v9  ;;  %v10479_v7 = vrot.slane %v7850_v6, 2  ;;  %v3261_v52 = vmul.f32 %v6068_v50, %v6513_v20 }
  0xf6   : > { %v4312_v51 = vmul.f32 %v6230_v15, %v10475_v10  ;;  %v10480_v49 = vrot.slane %v7715_v0, 1  ;;  %v10481_v24 = vrot.slane %v7723_v25, 2  ;;  %v2758_v44 = vrot.slane %v2544_v38, 1 }
  0xf7   : > { %v5242_v2 = vsel %vm1650_vm1, %v5240_v35, %v10479_v7  ;;  %v5029_v53 = vmul.f32 %v6327_v32, %v6538_v33  ;;  %v3998_v35 = vadd.f32 %v3934_v31, %v3664_v54  ;;  %v3475_v50 = vrot.slane %v3261_v52, 2 }
  0xf8   : > { %v990_v63 = vsel %vm932_vm0, %v10480_v49, %v989_v37  ;;  %v1708_v39 = vsel %vm1650_vm1, %v10481_v24, %v1707_v28  ;;  %v4526_v7 = vrot.slane %v4312_v51, 1  ;;  %v10482_v15 = vrot.slane %v7733_v14, 1  ;;  %v5972_v28 = vld [vmem:[%s6487_s6 + $0x148] sm:$0x1] }
  0xf9   : > { %v1179_v9 = vadd.f32 %v990_v63, %v397_v62  ;;  %v3935_v0 = vmul.f32 %v7757_v57, %v6516_v21  ;;  %v5243_v37 = vrot.slane %v5029_v53, 2  ;;  %v775_v25 = vmul.f32 %v6625_v41, %v602_v60  ;;  %v6069_v24 = vld [vmem:[%s6487_s6 + $0x148] sm:$0x3]  ;;  %v6231_v62 = vld [vmem:[%s6487_s6 + $0x178] sm:$0x1] }
  0xfa   : > { %v2759_v10 = vsel %vm932_vm0, %v10482_v15, %v2758_v44  ;;  %v4715_v32 = vadd.f32 %v4525_v29, %v3998_v35  ;;  %v10483_v54 = vrot.slane %v7747_v30, 2  ;;  %v398_v14 = vmul.f32 %v7382_v59, %v6621_v4  ;;  %v6328_v59 = vld [vmem:[%s6487_s6 + $0x178] sm:$0x3] }
  0xfb   : > { %v1897_v38 = vadd.f32 %v1708_v39, %v1179_v9  ;;  %v10484_v52 = vrot.slane %v7763_v8, 1  ;;  %v10485_v49 = vrot.slane %v7772_v40, 2  ;;  %v991_v63 = vrot.slane %v775_v25, 1 }
  0xfc   : > { %v3476_v31 = vsel %vm1650_vm1, %v10483_v54, %v3475_v50  ;;  %v1493_v29 = vmul.f32 %v6629_v17, %v1320_v58  ;;  %v5432_v39 = vadd.f32 %v5242_v2, %v4715_v32  ;;  %v2545_v30 = vmul.f32 %v5972_v28, %v6641_v1 }
  0xfd   : > { %v4527_v51 = vsel %vm932_vm0, %v10484_v52, %v4526_v7  ;;  %v5244_v60 = vsel %vm1650_vm1, %v10485_v49, %v5243_v37  ;;  %v2231_v44 = vadd.f32 %v2167_v48, %v1897_v38  ;;  %v3262_v53 = vmul.f32 %v6069_v24, %v6672_v34  ;;  %v603_v24 = vld [vmem:[%s6487_s6 + $0x120] sm:$0xfe] }
  0xfe   : > { %v10486_v35 = vrot.slane %v7789_v3, 1  ;;  %v1709_v9 = vrot.slane %v1493_v29, 2  ;;  %v2168_v40 = vmul.f32 %v7606_v23, %v6637_v46  ;;  %v4313_v50 = vmul.f32 %v6231_v62, %v6686_v5 }
  0xff   : > { %v5636_v58 = vadd.f32 %v6740_v47, %v5432_v39  ;;  %v2948_v48 = vadd.f32 %v2759_v10, %v2231_v44  ;;  %v2760_v7 = vrot.slane %v2545_v30, 1  ;;  %v10487_v15 = vrot.slane %v7798_v61, 2  ;;  %v1321_v10 = vld [vmem:[%s6487_s6 + $0x120] sm:$0xfc] }
 0x100   : > { %v992_v8 = vsel %vm932_vm0, %v10486_v35, %v991_v63  ;;  %v3477_v3 = vrot.slane %v3262_v53, 2  ;;  %v4528_v25 = vrot.slane %v4313_v50, 1  ;;  %v5030_v28 = vmul.f32 %v6328_v59, %v6718_v45  ;;  %v6070_v35 = vld [vmem:[%s6487_s6 + $0x150] sm:$0xfc] }
 0x101   : > { %v1180_v2 = vadd.f32 %v992_v8, %v398_v14  ;;  %v1710_v37 = vsel %vm1650_vm1, %v10487_v15, %v1709_v9  ;;  %v5700_v32 = vmax.f32 %v5636_v58, 0.0  ;;  %v3665_v38 = vadd.f32 %v3476_v31, %v2948_v48 }
 0x102   : > { %v3936_v62 = vmul.f32 %v7830_v36, %v6682_v56  ;;  %v10488_v14 = vrot.slane %v7809_v16, 1  ;;  %v10489_v52 = vrot.slane %v7821_v42, 2  ;;  %v10490_v63 = vrot.slane %v7838_v43, 1  ;;  %v5973_v16 = vld [vmem:[%s6487_s6 + $0x150] sm:$0xfe] }
 0x103   : > { %v1898_v54 = vadd.f32 %v1710_v37, %v1180_v2  ;;  %v5245_v39 = vrot.slane %v5030_v28, 2  ;;  %5764 = vst [vmem:[%s6726_s15 + $0xa8] sm:$0xff] %v5700_v32  ;;  %v3999_v31 = vadd.f32 %v3935_v0, %v3665_v38  ;;  %v776_v30 = vmul.f32 %v6493_v12, %v603_v24 }
 0x104   : > { %v2761_v61 = vsel %vm932_vm0, %v10488_v14, %v2760_v7  ;;  %v3478_v49 = vsel %vm1650_vm1, %v10489_v52, %v3477_v3  ;;  %v4529_v29 = vsel %vm932_vm0, %v10490_v63, %v4528_v25  ;;  %v7939_v53 = vmul.f32 %v7533_v26, %v6493_v12  ;;  %v6232_v3 = vld [vmem:[%s6487_s6 + $0x180] sm:$0xfe] }
 0x105   : > { %v2232_v44 = vadd.f32 %v2168_v40, %v1898_v54  ;;  %v399_v42 = vmul.f32 %v7543_v55, %v6490_v11  ;;  %v1494_v59 = vmul.f32 %v6496_v13, %v1321_v10  ;;  %v7947_v43 = vmul.f32 %v7533_v26, %v6496_v13  ;;  %v6329_v14 = vld [vmem:[%s6487_s6 + $0x180] sm:$0xfc] }
 0x106   : > { %v2169_v0 = vmul.f32 %v7767_v27, %v6507_v18  ;;  %v4716_v8 = vadd.f32 %v4527_v51, %v3999_v31  ;;  %v993_v40 = vrot.slane %v776_v30, 1  ;;  %v10272_v50 = vrot.slane %v7939_v53, 1  ;;  %v7981_v31 = vld [vmem:[%s6487_s6 + $0x190] sm:$0xff] }
 0x107   : > { %v2949_v9 = vadd.f32 %v2761_v61, %v2232_v44  ;;  %v1711_v58 = vrot.slane %v1494_v59, 2  ;;  %v10271_v48 = vrot.slane %v7947_v43, 2  ;;  %v2546_v55 = vmul.f32 %v5973_v16, %v6510_v19  ;;  %v604_v59 = vld [vmem:[%s6487_s6 + $0x128] sm:$0xfe] }
 0x108   : > { %v7957_v2 = vmul.f32 %v7757_v57, %v6510_v19  ;;  %v5433_v7 = vadd.f32 %v5244_v60, %v4716_v8  ;;  %v995_v51 = vsel %vm932_vm0, %v993_v40, %v10272_v50  ;;  %v3263_v37 = vmul.f32 %v6070_v35, %v6513_v20  ;;  %v7991_v35 = vld [vmem:[%s6487_s6 + $0x180] sm:$0xff] }
 0x109   : > { %v3666_v15 = vadd.f32 %v3478_v49, %v2949_v9  ;;  %v1181_v25 = vadd.f32 %v995_v51, %v399_v42  ;;  %v1713_v28 = vsel %vm1650_vm1, %v1711_v58, %v10271_v48  ;;  %v2762_v24 = vrot.slane %v2546_v55, 1  ;;  %v1322_v58 = vld [vmem:[%s6487_s6 + $0x128] sm:$0xfc]  ;;  %v6074_v48 = vld [vmem:[%s6487_s6 + $0x170] sm:$0x3] }
 0x10a   : > { %v10268_v32 = vrot.slane %v7957_v2, 1  ;;  %v5637_v60 = vadd.f32 %v6598_v22, %v5433_v7  ;;  %v7971_v54 = vmul.f32 %v7757_v57, %v6513_v20  ;;  %v3479_v10 = vrot.slane %v3263_v37, 2  ;;  %v6236_v50 = vld [vmem:[%s6487_s6 + $0x1a0] sm:$0x1] }
 0x10b   : > { %v4000_v38 = vadd.f32 %v3936_v62, %v3666_v15  ;;  %v10491_v61 = vrot.slane %v7850_v6, 2  ;;  %v1899_v49 = vadd.f32 %v1713_v28, %v1181_v25  ;;  %v10492_v62 = vld [vmem:[#allocation3_spill] sm:$0xff]  ;;  %v5031_v9 = vmul.f32 %v6329_v14, %v6538_v33  ;;  %v10493_v28 = vld [vmem:[#allocation4_spill] sm:$0xff] }
 0x10c   : > { %v2764_v63 = vsel %vm932_vm0, %v2762_v24, %v10268_v32  ;;  %v4314_v44 = vmul.f32 %v6232_v3, %v10492_v62  ;;  %v5701_v30 = vmax.f32 %v5637_v60, 0.0  ;;  %v10267_v42 = vrot.slane %v7971_v54, 2  ;;  %v8058_v32 = vld [vmem:[%s6487_s6 + $0x188] sm:$0xff] }
 0x10d   : > { %v5246_v52 = vsel %vm1650_vm1, %v10491_v61, %v5245_v39  ;;  %v4717_v16 = vadd.f32 %v4529_v29, %v4000_v38  ;;  %v7987_v6 = vmul.f32 %v7981_v31, %v10492_v62  ;;  %v2233_v39 = vadd.f32 %v2169_v0, %v1899_v49  ;;  %10495 = vst [vmem:[#allocation4_spill] sm:$0xff] %v8058_v32 }
 0x10e   : > { %v4530_v8 = vrot.slane %v4314_v44, 1  ;;  %v7996_v40 = vmul.f32 %v7981_v31, %v6538_v33  ;;  %5765 = vst [vmem:[%s6726_s15 + $0xb0] sm:$0xff] %v5701_v30  ;;  %v3481_v55 = vsel %vm1650_vm1, %v3479_v10, %v10267_v42  ;;  %v3937_v0 = vmul.f32 %v7991_v35, %v6516_v21  ;;  %v5974_v10 = vld [vmem:[%s6487_s6 + $0x158] sm:$0xfe] }
 0x10f   : > { %v5434_v29 = vadd.f32 %v5246_v52, %v4717_v16  ;;  %v10266_v7 = vrot.slane %v7987_v6, 1  ;;  %v2950_v15 = vadd.f32 %v2764_v63, %v2233_v39  ;;  %v5247_v51 = vrot.slane %v5031_v9, 2  ;;  %v6071_v63 = vld [vmem:[%s6487_s6 + $0x158] sm:$0xfc] }
 0x110   : > { %v10265_v37 = vrot.slane %v7996_v40, 2  ;;  %v777_v3 = vmul.f32 %v6625_v41, %v604_v59  ;;  %v400_v24 = vmul.f32 %v10493_v28, %v6621_v4  ;;  %v8013_v60 = vmul.f32 %v7606_v23, %v6625_v41 }
 0x111   : > { %v5638_v25 = vadd.f32 %v6740_v47, %v5434_v29  ;;  %v1495_v38 = vmul.f32 %v6629_v17, %v1322_v58  ;;  %v3667_v14 = vadd.f32 %v3481_v55, %v2950_v15  ;;  %v4532_v61 = vsel %vm932_vm0, %v4530_v8, %v10266_v7  ;;  %v6233_v29 = vld [vmem:[%s6487_s6 + $0x188] sm:$0xfe]  ;;  %v10494_v15 = vld [vmem:[#allocation5_spill] sm:$0xff] }
 0x112   : > { %v996_v52 = vrot.slane %v777_v3, 1  ;;  %v8022_v49 = vmul.f32 %v7606_v23, %v6629_v17  ;;  %v5249_v30 = vsel %vm1650_vm1, %v5247_v51, %v10265_v37  ;;  %v10264_v16 = vrot.slane %v8013_v60, 1 }
 0x113   : > { %v5702_v44 = vmax.f32 %v5638_v25, 0.0  ;;  %v1714_v59 = vrot.slane %v1495_v38, 2  ;;  %v4001_v39 = vadd.f32 %v3937_v0, %v3667_v14  ;;  %v2547_v8 = vmul.f32 %v5974_v10, %v6641_v1  ;;  %v6330_v25 = vld [vmem:[%s6487_s6 + $0x188] sm:$0xfc] }
 0x114   : > { %v10270_v9 = vrot.slane %v8022_v49, 2  ;;  %v8033_v58 = vmul.f32 %v7830_v36, %v6641_v1  ;;  %v998_v55 = vsel %vm932_vm0, %v996_v52, %v10264_v16  ;;  %v2170_v51 = vmul.f32 %v10494_v15, %v6637_v46  ;;  %v1326_v15 = vld [vmem:[%s6487_s6 + $0x148] sm:$0x3] }
 0x115   : > { %5766 = vst [vmem:[%s6726_s15 + $0xb8] sm:$0xff] %v5702_v44  ;;  %v3264_v0 = vmul.f32 %v6071_v63, %v6672_v34  ;;  %v8045_v3 = vmul.f32 %v7830_v36, %v6672_v34  ;;  %v4718_v28 = vadd.f32 %v4532_v61, %v4001_v39  ;;  %v1182_v38 = vadd.f32 %v998_v55, %v400_v24  ;;  %v8054_v63 = vld [vmem:[%s6487_s6 + $0x198] sm:$0xff]  ;;  %v1325_v39 = vld [vmem:[%s6487_s6 + $0x140] sm:$0x3] }
 0x116   : > { %v1716_v10 = vsel %vm1650_vm1, %v1714_v59, %v10270_v9  ;;  %v2765_v14 = vrot.slane %v2547_v8, 1  ;;  %v10269_v52 = vrot.slane %v8033_v58, 1  ;;  %v4315_v37 = vmul.f32 %v6233_v29, %v6686_v5  ;;  %v607_v59 = vld [vmem:[%s6487_s6 + $0x140] sm:$0x1] }
 0x117   : > { %v3482_v44 = vrot.slane %v3264_v0, 2  ;;  %v10275_v16 = vrot.slane %v8045_v3, 2  ;;  %v5435_v7 = vadd.f32 %v5249_v30, %v4718_v28  ;;  %v1900_v42 = vadd.f32 %v1716_v10, %v1182_v38  ;;  %v5977_v10 = vld [vmem:[%s6487_s6 + $0x170] sm:$0x1] }
 0x118   : > { %v8062_v24 = vmul.f32 %v8054_v63, %v6686_v5  ;;  %v5032_v61 = vmul.f32 %v6330_v25, %v6718_v45  ;;  %v2767_v8 = vsel %vm932_vm0, %v2765_v14, %v10269_v52  ;;  %v3938_v30 = vmul.f32 %v8058_v32, %v6682_v56  ;;  %v6333_v32 = vld [vmem:[%s6487_s6 + $0x1a0] sm:$0x3] }
 0x119   : > { %v4533_v29 = vrot.slane %v4315_v37, 1  ;;  %v8074_v55 = vmul.f32 %v8054_v63, %v6718_v45  ;;  %v5639_v0 = vadd.f32 %v6598_v22, %v5435_v7  ;;  %v2234_v25 = vadd.f32 %v2170_v51, %v1900_v42 }
 0x11a   : > { %v10276_v28 = vrot.slane %v8062_v24, 1  ;;  %v5250_v38 = vrot.slane %v5032_v61, 2  ;;  %v3484_v14 = vsel %vm1650_vm1, %v3482_v44, %v10275_v16  ;;  %v780_v37 = vmul.f32 %v6493_v12, %v607_v59 }
 0x11b   : > { %v1498_v9 = vmul.f32 %v6496_v13, %v1325_v39  ;;  %v5703_v7 = vmax.f32 %v5639_v0, 0.0  ;;  %v2951_v42 = vadd.f32 %v2767_v8, %v2234_v25  ;;  %v401_v61 = vmul.f32 %v7533_v26, %v6490_v11  ;;  %v608_v25 = vld [vmem:[%s6487_s6 + $0x148] sm:$0x1] }
 0x11c   : > { %v4535_v51 = vsel %vm932_vm0, %v4533_v29, %v10276_v28  ;;  %v999_v44 = vrot.slane %v780_v37, 1  ;;  %v2171_v59 = vmul.f32 %v7757_v57, %v6507_v18  ;;  %v2550_v39 = vmul.f32 %v5977_v10, %v6510_v19 }
 0x11d   : > { %v1717_v16 = vrot.slane %v1498_v9, 2  ;;  %5767 = vst [vmem:[%s6726_s15 + $0xc0] sm:$0xff] %v5703_v7  ;;  %v3668_v52 = vadd.f32 %v3484_v14, %v2951_v42  ;;  %v10496_v8 = vrot.slane %v8074_v55, 2  ;;  %v3267_v29 = vmul.f32 %v6074_v48, %v6513_v20 }
 0x11e   : > { %v4318_v26 = vmul.f32 %v6236_v50, %v10492_v62  ;;  %v10497_v9 = vrot.slane %v7939_v53, 1  ;;  %v10498_v28 = vrot.slane %v7947_v43, 2  ;;  %v2768_v14 = vrot.slane %v2550_v39, 1 }
 0x11f   : > { %v5252_v0 = vsel %vm1650_vm1, %v5250_v38, %v10496_v8  ;;  %v5035_v7 = vmul.f32 %v6333_v32, %v6538_v33  ;;  %v4002_v38 = vadd.f32 %v3938_v30, %v3668_v52  ;;  %v3485_v48 = vrot.slane %v3267_v29, 2 }
 0x120   : > { %v1000_v37 = vsel %vm932_vm0, %v10497_v9, %v999_v44  ;;  %v1718_v10 = vsel %vm1650_vm1, %v10498_v28, %v1717_v16  ;;  %v4536_v8 = vrot.slane %v4318_v26, 1  ;;  %v10499_v50 = vrot.slane %v7957_v2, 1  ;;  %v5978_v16 = vld [vmem:[%s6487_s6 + $0x178] sm:$0x1] }
 0x121   : > { %v1183_v42 = vadd.f32 %v1000_v37, %v401_v61  ;;  %v3939_v53 = vmul.f32 %v7981_v31, %v6516_v21  ;;  %v5253_v44 = vrot.slane %v5035_v7, 2  ;;  %v781_v43 = vmul.f32 %v6625_v41, %v608_v25  ;;  %v6075_v28 = vld [vmem:[%s6487_s6 + $0x178] sm:$0x3]  ;;  %v6237_v61 = vld [vmem:[%s6487_s6 + $0x1a8] sm:$0x1] }
 0x122   : > { %v2769_v62 = vsel %vm932_vm0, %v10499_v50, %v2768_v14  ;;  %v4719_v32 = vadd.f32 %v4535_v51, %v4002_v38  ;;  %v10500_v52 = vrot.slane %v7971_v54, 2  ;;  %v402_v2 = vmul.f32 %v7606_v23, %v6621_v4  ;;  %v6334_v23 = vld [vmem:[%s6487_s6 + $0x1a8] sm:$0x3] }
 0x123   : > { %v1901_v39 = vadd.f32 %v1718_v10, %v1183_v42  ;;  %v10501_v29 = vrot.slane %v7987_v6, 1  ;;  %v10502_v9 = vrot.slane %v7996_v40, 2  ;;  %v1001_v37 = vrot.slane %v781_v43, 1 }
 0x124   : > { %v3486_v30 = vsel %vm1650_vm1, %v10500_v52, %v3485_v48  ;;  %v1499_v51 = vmul.f32 %v6629_v17, %v1326_v15  ;;  %v5436_v10 = vadd.f32 %v5252_v0, %v4719_v32  ;;  %v2551_v54 = vmul.f32 %v5978_v16, %v6641_v1 }
 0x125   : > { %v4537_v26 = vsel %vm932_vm0, %v10501_v29, %v4536_v8  ;;  %v5254_v25 = vsel %vm1650_vm1, %v10502_v9, %v5253_v44  ;;  %v2235_v14 = vadd.f32 %v2171_v59, %v1901_v39  ;;  %v3268_v7 = vmul.f32 %v6075_v28, %v6672_v34  ;;  %v609_v28 = vld [vmem:[%s6487_s6 + $0x150] sm:$0xfe] }
 0x126   : > { %v10503_v38 = vrot.slane %v8013_v60, 1  ;;  %v1719_v42 = vrot.slane %v1499_v51, 2  ;;  %v2172_v40 = vmul.f32 %v7830_v36, %v6637_v46  ;;  %v4319_v48 = vmul.f32 %v6237_v61, %v6686_v5 }
 0x127   : > { %v5640_v15 = vadd.f32 %v6740_v47, %v5436_v10  ;;  %v2952_v59 = vadd.f32 %v2769_v62, %v2235_v14  ;;  %v2770_v8 = vrot.slane %v2551_v54, 1  ;;  %v10504_v50 = vrot.slane %v8022_v49, 2  ;;  %v1327_v62 = vld [vmem:[%s6487_s6 + $0x150] sm:$0xfc] }
 0x128   : > { %v1002_v6 = vsel %vm932_vm0, %v10503_v38, %v1001_v37  ;;  %v3487_v60 = vrot.slane %v3268_v7, 2  ;;  %v4538_v43 = vrot.slane %v4319_v48, 1  ;;  %v5036_v16 = vmul.f32 %v6334_v23, %v6718_v45  ;;  %v6076_v38 = vld [vmem:[%s6487_s6 + $0x180] sm:$0xfc] }
 0x129   : > { %v1184_v0 = vadd.f32 %v1002_v6, %v402_v2  ;;  %v1720_v44 = vsel %vm1650_vm1, %v10504_v50, %v1719_v42  ;;  %v5704_v32 = vmax.f32 %v5640_v15, 0.0  ;;  %v3669_v39 = vadd.f32 %v3486_v30, %v2952_v59 }
 0x12a   : > { %v3940_v61 = vmul.f32 %v8054_v63, %v6682_v56  ;;  %v10505_v2 = vrot.slane %v8033_v58, 1  ;;  %v10506_v29 = vrot.slane %v8045_v3, 2  ;;  %v10507_v37 = vrot.slane %v8062_v24, 1  ;;  %v5979_v58 = vld [vmem:[%s6487_s6 + $0x180] sm:$0xfe] }
 0x12b   : > { %v1902_v52 = vadd.f32 %v1720_v44, %v1184_v0  ;;  %v5255_v10 = vrot.slane %v5036_v16, 2  ;;  %5768 = vst [vmem:[%s6726_s15 + $0xc8] sm:$0xff] %v5704_v32  ;;  %v4003_v30 = vadd.f32 %v3939_v53, %v3669_v39  ;;  %v782_v54 = vmul.f32 %v6493_v12, %v609_v28 }
 0x12c   : > { %v2771_v49 = vsel %vm932_vm0, %v10505_v2, %v2770_v8  ;;  %v3488_v9 = vsel %vm1650_vm1, %v10506_v29, %v3487_v60  ;;  %v4539_v51 = vsel %vm932_vm0, %v10507_v37, %v4538_v43  ;;  %v8163_v7 = vmul.f32 %v7757_v57, %v6493_v12  ;;  %v6238_v60 = vld [vmem:[%s6487_s6 + $0x1b0] sm:$0xfe] }
 0x12d   : > { %v2236_v14 = vadd.f32 %v2172_v40, %v1902_v52  ;;  %v403_v3 = vmul.f32 %v7767_v27, %v6490_v11  ;;  %v1500_v23 = vmul.f32 %v6496_v13, %v1327_v62  ;;  %v8171_v24 = vmul.f32 %v7757_v57, %v6496_v13  ;;  %v6335_v2 = vld [vmem:[%s6487_s6 + $0x1b0] sm:$0xfc] }
 0x12e   : > { %v2173_v53 = vmul.f32 %v7991_v35, %v6507_v18  ;;  %v4720_v6 = vadd.f32 %v4537_v26, %v4003_v30  ;;  %v1003_v40 = vrot.slane %v782_v54, 1  ;;  %v10286_v48 = vrot.slane %v8163_v7, 1  ;;  %v8205_v30 = vld [vmem:[%s6487_s6 + $0x1c0] sm:$0xff] }
 0x12f   : > { %v2953_v42 = vadd.f32 %v2771_v49, %v2236_v14  ;;  %v1721_v15 = vrot.slane %v1500_v23, 2  ;;  %v10285_v59 = vrot.slane %v8171_v24, 2  ;;  %v2552_v27 = vmul.f32 %v5979_v58, %v6510_v19  ;;  %v610_v23 = vld [vmem:[%s6487_s6 + $0x158] sm:$0xfe] }
 0x130   : > { %v8181_v0 = vmul.f32 %v7981_v31, %v6510_v19  ;;  %v5437_v8 = vadd.f32 %v5254_v25, %v4720_v6  ;;  %v1005_v26 = vsel %vm932_vm0, %v1003_v40, %v10286_v48  ;;  %v3269_v44 = vmul.f32 %v6076_v38, %v6513_v20  ;;  %v8215_v38 = vld [vmem:[%s6487_s6 + $0x1b0] sm:$0xff] }
 0x131   : > { %v3670_v50 = vadd.f32 %v3488_v9, %v2953_v42  ;;  %v1185_v43 = vadd.f32 %v1005_v26, %v403_v3  ;;  %v1723_v16 = vsel %vm1650_vm1, %v1721_v15, %v10285_v59  ;;  %v2772_v28 = vrot.slane %v2552_v27, 1  ;;  %v1328_v15 = vld [vmem:[%s6487_s6 + $0x158] sm:$0xfc]  ;;  %v6080_v59 = vld [vmem:[%s6487_s6 + $0x1a0] sm:$0x3] }
 0x132   : > { %v10282_v32 = vrot.slane %v8181_v0, 1  ;;  %v5641_v25 = vadd.f32 %v6598_v22, %v5437_v8  ;;  %v8195_v52 = vmul.f32 %v7981_v31, %v6513_v20  ;;  %v3489_v62 = vrot.slane %v3269_v44, 2  ;;  %v6242_v48 = vld [vmem:[%s6487_s6 + $0x1d0] sm:$0x1] }
 0x133   : > { %v4004_v39 = vadd.f32 %v3940_v61, %v3670_v50  ;;  %v10508_v49 = vrot.slane %v8074_v55, 2  ;;  %v1903_v9 = vadd.f32 %v1723_v16, %v1185_v43  ;;  %v10509_v61 = vld [vmem:[#allocation3_spill] sm:$0xff]  ;;  %v5037_v42 = vmul.f32 %v6335_v2, %v6538_v33  ;;  %v10510_v16 = vld [vmem:[#allocation5_spill] sm:$0xff] }
 0x134   : > { %v2774_v37 = vsel %vm932_vm0, %v2772_v28, %v10282_v32  ;;  %v4320_v14 = vmul.f32 %v6238_v60, %v10509_v61  ;;  %v5705_v54 = vmax.f32 %v5641_v25, 0.0  ;;  %v10281_v3 = vrot.slane %v8195_v52, 2  ;;  %v8282_v32 = vld [vmem:[%s6487_s6 + $0x1b8] sm:$0xff] }
 0x135   : > { %v5256_v29 = vsel %vm1650_vm1, %v10508_v49, %v5255_v10  ;;  %v4721_v58 = vadd.f32 %v4539_v51, %v4004_v39  ;;  %v8211_v55 = vmul.f32 %v8205_v30, %v10509_v61  ;;  %v2237_v10 = vadd.f32 %v2173_v53, %v1903_v9  ;;  %10512 = vst [vmem:[#allocation5_spill] sm:$0xff] %v8282_v32 }
 0x136   : > { %v4540_v6 = vrot.slane %v4320_v14, 1  ;;  %v8220_v40 = vmul.f32 %v8205_v30, %v6538_v33  ;;  %5769 = vst [vmem:[%s6726_s15 + $0xd0] sm:$0xff] %v5705_v54  ;;  %v3491_v27 = vsel %vm1650_vm1, %v3489_v62, %v10281_v3  ;;  %v3941_v53 = vmul.f32 %v8215_v38, %v6516_v21  ;;  %v5980_v62 = vld [vmem:[%s6487_s6 + $0x188] sm:$0xfe] }
 0x137   : > { %v5438_v51 = vadd.f32 %v5256_v29, %v4721_v58  ;;  %v10280_v8 = vrot.slane %v8211_v55, 1  ;;  %v2954_v50 = vadd.f32 %v2774_v37, %v2237_v10  ;;  %v5257_v26 = vrot.slane %v5037_v42, 2  ;;  %v6077_v37 = vld [vmem:[%s6487_s6 + $0x188] sm:$0xfc] }
 0x138   : > { %v10279_v44 = vrot.slane %v8220_v40, 2  ;;  %v783_v60 = vmul.f32 %v6625_v41, %v610_v23  ;;  %v404_v28 = vmul.f32 %v10510_v16, %v6621_v4  ;;  %v8237_v25 = vmul.f32 %v7830_v36, %v6625_v41 }
 0x139   : > { %v5642_v43 = vadd.f32 %v6740_v47, %v5438_v51  ;;  %v1501_v39 = vmul.f32 %v6629_v17, %v1328_v15  ;;  %v3671_v2 = vadd.f32 %v3491_v27, %v2954_v50  ;;  %v4542_v49 = vsel %vm932_vm0, %v4540_v6, %v10280_v8  ;;  %v6239_v51 = vld [vmem:[%s6487_s6 + $0x1b8] sm:$0xfe]  ;;  %v10511_v50 = vld [vmem:[#allocation4_spill] sm:$0xff] }
 0x13a   : > { %v1006_v29 = vrot.slane %v783_v60, 1  ;;  %v8246_v9 = vmul.f32 %v7830_v36, %v6629_v17  ;;  %v5259_v54 = vsel %vm1650_vm1, %v5257_v26, %v10279_v44  ;;  %v10278_v58 = vrot.slane %v8237_v25, 1 }
 0x13b   : > { %v5706_v14 = vmax.f32 %v5642_v43, 0.0  ;;  %v1724_v23 = vrot.slane %v1501_v39, 2  ;;  %v4005_v10 = vadd.f32 %v3941_v53, %v3671_v2  ;;  %v2553_v6 = vmul.f32 %v5980_v62, %v6641_v1  ;;  %v6336_v43 = vld [vmem:[%s6487_s6 + $0x1b8] sm:$0xfc] }
 0x13c   : > { %v10284_v42 = vrot.slane %v8246_v9, 2  ;;  %v8257_v15 = vmul.f32 %v8054_v63, %v6641_v1  ;;  %v1008_v27 = vsel %vm932_vm0, %v1006_v29, %v10278_v58  ;;  %v2174_v26 = vmul.f32 %v10511_v50, %v6637_v46  ;;  %v1332_v50 = vld [vmem:[%s6487_s6 + $0x178] sm:$0x3] }
 0x13d   : > { %5770 = vst [vmem:[%s6726_s15 + $0xd8] sm:$0xff] %v5706_v14  ;;  %v3270_v53 = vmul.f32 %v6077_v37, %v6672_v34  ;;  %v8269_v60 = vmul.f32 %v8054_v63, %v6672_v34  ;;  %v4722_v16 = vadd.f32 %v4542_v49, %v4005_v10  ;;  %v1186_v39 = vadd.f32 %v1008_v27, %v404_v28  ;;  %v8278_v37 = vld [vmem:[%s6487_s6 + $0x1c8] sm:$0xff]  ;;  %v1331_v10 = vld [vmem:[%s6487_s6 + $0x170] sm:$0x3] }
 0x13e   : > { %v1726_v62 = vsel %vm1650_vm1, %v1724_v23, %v10284_v42  ;;  %v2775_v2 = vrot.slane %v2553_v6, 1  ;;  %v10283_v29 = vrot.slane %v8257_v15, 1  ;;  %v4321_v44 = vmul.f32 %v6239_v51, %v6686_v5  ;;  %v613_v23 = vld [vmem:[%s6487_s6 + $0x170] sm:$0x1] }
 0x13f   : > { %v3492_v14 = vrot.slane %v3270_v53, 2  ;;  %v10289_v58 = vrot.slane %v8269_v60, 2  ;;  %v5439_v8 = vadd.f32 %v5259_v54, %v4722_v16  ;;  %v1904_v3 = vadd.f32 %v1726_v62, %v1186_v39  ;;  %v5983_v62 = vld [vmem:[%s6487_s6 + $0x1a0] sm:$0x1] }
 0x140   : > { %v8286_v28 = vmul.f32 %v8278_v37, %v6686_v5  ;;  %v5038_v49 = vmul.f32 %v6336_v43, %v6718_v45  ;;  %v2777_v6 = vsel %vm932_vm0, %v2775_v2, %v10283_v29  ;;  %v3942_v54 = vmul.f32 %v8282_v32, %v6682_v56  ;;  %v6339_v32 = vld [vmem:[%s6487_s6 + $0x1d0] sm:$0x3] }
 0x141   : > { %v4543_v51 = vrot.slane %v4321_v44, 1  ;;  %v8298_v27 = vmul.f32 %v8278_v37, %v6718_v45  ;;  %v5643_v53 = vadd.f32 %v6598_v22, %v5439_v8  ;;  %v2238_v43 = vadd.f32 %v2174_v26, %v1904_v3 }
 0x142   : > { %v10290_v16 = vrot.slane %v8286_v28, 1  ;;  %v5260_v39 = vrot.slane %v5038_v49, 2  ;;  %v3494_v2 = vsel %vm1650_vm1, %v3492_v14, %v10289_v58  ;;  %v786_v44 = vmul.f32 %v6493_v12, %v613_v23 }
 0x143   : > { %v1504_v42 = vmul.f32 %v6496_v13, %v1331_v10  ;;  %v5707_v8 = vmax.f32 %v5643_v53, 0.0  ;;  %v2955_v3 = vadd.f32 %v2777_v6, %v2238_v43  ;;  %v405_v49 = vmul.f32 %v7757_v57, %v6490_v11  ;;  %v614_v43 = vld [vmem:[%s6487_s6 + $0x178] sm:$0x1] }
 0x144   : > { %v4545_v26 = vsel %vm932_vm0, %v4543_v51, %v10290_v16  ;;  %v1009_v14 = vrot.slane %v786_v44, 1  ;;  %v2175_v23 = vmul.f32 %v7981_v31, %v6507_v18  ;;  %v2556_v10 = vmul.f32 %v5983_v62, %v6510_v19 }
 0x145   : > { %v1727_v58 = vrot.slane %v1504_v42, 2  ;;  %5771 = vst [vmem:[%s6726_s15 + $0xe0] sm:$0xff] %v5707_v8  ;;  %v3672_v29 = vadd.f32 %v3494_v2, %v2955_v3  ;;  %v10513_v6 = vrot.slane %v8298_v27, 2  ;;  %v3273_v51 = vmul.f32 %v6080_v59, %v6513_v20 }
 0x146   : > { %v4324_v57 = vmul.f32 %v6242_v48, %v10509_v61  ;;  %v10514_v42 = vrot.slane %v8163_v7, 1  ;;  %v10515_v16 = vrot.slane %v8171_v24, 2  ;;  %v2778_v2 = vrot.slane %v2556_v10, 1 }
 0x147   : > { %v5262_v53 = vsel %vm1650_vm1, %v5260_v39, %v10513_v6  ;;  %v5041_v8 = vmul.f32 %v6339_v32, %v6538_v33  ;;  %v4006_v39 = vadd.f32 %v3942_v54, %v3672_v29  ;;  %v3495_v59 = vrot.slane %v3273_v51, 2 }
 0x148   : > { %v1010_v44 = vsel %vm932_vm0, %v10514_v42, %v1009_v14  ;;  %v1728_v62 = vsel %vm1650_vm1, %v10515_v16, %v1727_v58  ;;  %v4546_v6 = vrot.slane %v4324_v57, 1  ;;  %v10516_v48 = vrot.slane %v8181_v0, 1  ;;  %v5984_v58 = vld [vmem:[%s6487_s6 + $0x1a8] sm:$0x1] }
 0x149   : > { %v1187_v3 = vadd.f32 %v1010_v44, %v405_v49  ;;  %v3943_v7 = vmul.f32 %v8205_v30, %v6516_v21  ;;  %v5263_v14 = vrot.slane %v5041_v8, 2  ;;  %v787_v24 = vmul.f32 %v6625_v41, %v614_v43  ;;  %v6081_v16 = vld [vmem:[%s6487_s6 + $0x1a8] sm:$0x3]  ;;  %v6243_v49 = vld [vmem:[%s6487_s6 + $0x1d8] sm:$0x1] }
 0x14a   : > { %v2779_v61 = vsel %vm932_vm0, %v10516_v48, %v2778_v2  ;;  %v4723_v32 = vadd.f32 %v4545_v26, %v4006_v39  ;;  %v10517_v29 = vrot.slane %v8195_v52, 2  ;;  %v406_v0 = vmul.f32 %v7830_v36, %v6621_v4  ;;  %v6340_v36 = vld [vmem:[%s6487_s6 + $0x1d8] sm:$0x3] }
 0x14b   : > { %v1905_v10 = vadd.f32 %v1728_v62, %v1187_v3  ;;  %v10518_v51 = vrot.slane %v8211_v55, 1  ;;  %v10519_v42 = vrot.slane %v8220_v40, 2  ;;  %v1011_v44 = vrot.slane %v787_v24, 1 }
 0x14c   : > { %v3496_v54 = vsel %vm1650_vm1, %v10517_v29, %v3495_v59  ;;  %v1505_v26 = vmul.f32 %v6629_v17, %v1332_v50  ;;  %v5440_v62 = vadd.f32 %v5262_v53, %v4723_v32  ;;  %v2557_v52 = vmul.f32 %v5984_v58, %v6641_v1 }
 0x14d   : > { %v4547_v57 = vsel %vm932_vm0, %v10518_v51, %v4546_v6  ;;  %v5264_v43 = vsel %vm1650_vm1, %v10519_v42, %v5263_v14  ;;  %v2239_v2 = vadd.f32 %v2175_v23, %v1905_v10  ;;  %v3274_v8 = vmul.f32 %v6081_v16, %v6672_v34  ;;  %v615_v16 = vld [vmem:[%s6487_s6 + $0x180] sm:$0xfe] }
 0x14e   : > { %v10520_v39 = vrot.slane %v8237_v25, 1  ;;  %v1729_v3 = vrot.slane %v1505_v26, 2  ;;  %v2176_v40 = vmul.f32 %v8054_v63, %v6637_v46  ;;  %v4325_v59 = vmul.f32 %v6243_v49, %v6686_v5 }
 0x14f   : > { %v5644_v50 = vadd.f32 %v6740_v47, %v5440_v62  ;;  %v2956_v23 = vadd.f32 %v2779_v61, %v2239_v2  ;;  %v2780_v6 = vrot.slane %v2557_v52, 1  ;;  %v10521_v48 = vrot.slane %v8246_v9, 2  ;;  %v1333_v61 = vld [vmem:[%s6487_s6 + $0x180] sm:$0xfc] }
 0x150   : > { %v1012_v55 = vsel %vm932_vm0, %v10520_v39, %v1011_v44  ;;  %v3497_v25 = vrot.slane %v3274_v8, 2  ;;  %v4548_v24 = vrot.slane %v4325_v59, 1  ;;  %v5042_v58 = vmul.f32 %v6340_v36, %v6718_v45  ;;  %v6082_v39 = vld [vmem:[%s6487_s6 + $0x1b0] sm:$0xfc] }
 0x151   : > { %v1188_v53 = vadd.f32 %v1012_v55, %v406_v0  ;;  %v1730_v14 = vsel %vm1650_vm1, %v10521_v48, %v1729_v3  ;;  %v5708_v32 = vmax.f32 %v5644_v50, 0.0  ;;  %v3673_v10 = vadd.f32 %v3496_v54, %v2956_v23 }
 0x152   : > { %v3944_v49 = vmul.f32 %v8278_v37, %v6682_v56  ;;  %v10522_v0 = vrot.slane %v8257_v15, 1  ;;  %v10523_v51 = vrot.slane %v8269_v60, 2  ;;  %v10524_v44 = vrot.slane %v8286_v28, 1  ;;  %v5985_v15 = vld [vmem:[%s6487_s6 + $0x1b0] sm:$0xfe] }
 0x153   : > { %v1906_v29 = vadd.f32 %v1730_v14, %v1188_v53  ;;  %v5265_v62 = vrot.slane %v5042_v58, 2  ;;  %5772 = vst [vmem:[%s6726_s15 + $0xe8] sm:$0xff] %v5708_v32  ;;  %v4007_v54 = vadd.f32 %v3943_v7, %v3673_v10  ;;  %v788_v52 = vmul.f32 %v6493_v12, %v615_v16 }
 0x154   : > { %v2781_v9 = vsel %vm932_vm0, %v10522_v0, %v2780_v6  ;;  %v3498_v42 = vsel %vm1650_vm1, %v10523_v51, %v3497_v25  ;;  %v4549_v26 = vsel %vm932_vm0, %v10524_v44, %v4548_v24  ;;  %v8387_v8 = vmul.f32 %v7981_v31, %v6493_v12  ;;  %v6244_v25 = vld [vmem:[%s6487_s6 + $0x1e0] sm:$0xfe] }
 0x155   : > { %v2240_v2 = vadd.f32 %v2176_v40, %v1906_v29  ;;  %v407_v60 = vmul.f32 %v7991_v35, %v6490_v11  ;;  %v1506_v36 = vmul.f32 %v6496_v13, %v1333_v61  ;;  %v8395_v28 = vmul.f32 %v7981_v31, %v6496_v13  ;;  %v6341_v0 = vld [vmem:[%s6487_s6 + $0x1e0] sm:$0xfc] }
 0x156   : > { %v2177_v7 = vmul.f32 %v8215_v38, %v6507_v18  ;;  %v4724_v55 = vadd.f32 %v4547_v57, %v4007_v54  ;;  %v1013_v40 = vrot.slane %v788_v52, 1  ;;  %v10300_v59 = vrot.slane %v8387_v8, 1  ;;  %v8429_v54 = vld [vmem:[%s6487_s6 + $0x1f0] sm:$0xff] }
 0x157   : > { %v2957_v3 = vadd.f32 %v2781_v9, %v2240_v2  ;;  %v1731_v50 = vrot.slane %v1506_v36, 2  ;;  %v10299_v23 = vrot.slane %v8395_v28, 2  ;;  %v2558_v35 = vmul.f32 %v5985_v15, %v6510_v19  ;;  %v616_v36 = vld [vmem:[%s6487_s6 + $0x188] sm:$0xfe] }
 0x158   : > { %v8405_v53 = vmul.f32 %v8205_v30, %v6510_v19  ;;  %v5441_v6 = vadd.f32 %v5264_v43, %v4724_v55  ;;  %v1015_v57 = vsel %vm932_vm0, %v1013_v40, %v10300_v59  ;;  %v3275_v14 = vmul.f32 %v6082_v39, %v6513_v20  ;;  %v8439_v39 = vld [vmem:[%s6487_s6 + $0x1e0] sm:$0xff] }
 0x159   : > { %v3674_v48 = vadd.f32 %v3498_v42, %v2957_v3  ;;  %v1189_v24 = vadd.f32 %v1015_v57, %v407_v60  ;;  %v1733_v58 = vsel %vm1650_vm1, %v1731_v50, %v10299_v23  ;;  %v2782_v16 = vrot.slane %v2558_v35, 1  ;;  %v1334_v50 = vld [vmem:[%s6487_s6 + $0x188] sm:$0xfc]  ;;  %v6086_v23 = vld [vmem:[%s6487_s6 + $0x1d0] sm:$0x3] }
 0x15a   : > { %v10296_v32 = vrot.slane %v8405_v53, 1  ;;  %v5645_v43 = vadd.f32 %v6598_v22, %v5441_v6  ;;  %v8419_v29 = vmul.f32 %v8205_v30, %v6513_v20  ;;  %v3499_v61 = vrot.slane %v3275_v14, 2  ;;  %v6248_v59 = vld [vmem:[%s6487_s6 + $0x200] sm:$0x1] }
 0x15b   : > { %v4008_v10 = vadd.f32 %v3944_v49, %v3674_v48  ;;  %v10525_v9 = vrot.slane %v8298_v27, 2  ;;  %v1907_v42 = vadd.f32 %v1733_v58, %v1189_v24  ;;  %v10526_v49 = vld [vmem:[#allocation3_spill] sm:$0xff]  ;;  %v5043_v3 = vmul.f32 %v6341_v0, %v6538_v33  ;;  %v10527_v58 = vld [vmem:[#allocation4_spill] sm:$0xff] }
 0x15c   : > { %v2784_v44 = vsel %vm932_vm0, %v2782_v16, %v10296_v32  ;;  %v4326_v2 = vmul.f32 %v6244_v25, %v10526_v49  ;;  %v5709_v52 = vmax.f32 %v5645_v43, 0.0  ;;  %v10295_v60 = vrot.slane %v8419_v29, 2  ;;  %v8506_v32 = vld [vmem:[%s6487_s6 + $0x1e8] sm:$0xff] }
 0x15d   : > { %v5266_v51 = vsel %vm1650_vm1, %v10525_v9, %v5265_v62  ;;  %v4725_v15 = vadd.f32 %v4549_v26, %v4008_v10  ;;  %v8435_v27 = vmul.f32 %v8429_v54, %v10526_v49  ;;  %v2241_v62 = vadd.f32 %v2177_v7, %v1907_v42  ;;  %10529 = vst [vmem:[#allocation4_spill] sm:$0xff] %v8506_v32 }
 0x15e   : > { %v4550_v55 = vrot.slane %v4326_v2, 1  ;;  %v8444_v40 = vmul.f32 %v8429_v54, %v6538_v33  ;;  %5773 = vst [vmem:[%s6726_s15 + $0xf0] sm:$0xff] %v5709_v52  ;;  %v3501_v35 = vsel %vm1650_vm1, %v3499_v61, %v10295_v60  ;;  %v3945_v7 = vmul.f32 %v8439_v39, %v6516_v21  ;;  %v5986_v61 = vld [vmem:[%s6487_s6 + $0x1b8] sm:$0xfe] }
 0x15f   : > { %v5442_v26 = vadd.f32 %v5266_v51, %v4725_v15  ;;  %v10294_v6 = vrot.slane %v8435_v27, 1  ;;  %v2958_v48 = vadd.f32 %v2784_v44, %v2241_v62  ;;  %v5267_v57 = vrot.slane %v5043_v3, 2  ;;  %v6083_v44 = vld [vmem:[%s6487_s6 + $0x1b8] sm:$0xfc] }
 0x160   : > { %v10293_v14 = vrot.slane %v8444_v40, 2  ;;  %v789_v25 = vmul.f32 %v6625_v41, %v616_v36  ;;  %v408_v16 = vmul.f32 %v10527_v58, %v6621_v4  ;;  %v8461_v43 = vmul.f32 %v8054_v63, %v6625_v41 }
 0x161   : > { %v5646_v24 = vadd.f32 %v6740_v47, %v5442_v26  ;;  %v1507_v10 = vmul.f32 %v6629_v17, %v1334_v50  ;;  %v3675_v0 = vadd.f32 %v3501_v35, %v2958_v48  ;;  %v4552_v9 = vsel %vm932_vm0, %v4550_v55, %v10294_v6  ;;  %v6245_v26 = vld [vmem:[%s6487_s6 + $0x1e8] sm:$0xfe]  ;;  %v10528_v48 = vld [vmem:[#allocation5_spill] sm:$0xff] }
 0x162   : > { %v1016_v51 = vrot.slane %v789_v25, 1  ;;  %v8470_v42 = vmul.f32 %v8054_v63, %v6629_v17  ;;  %v5269_v52 = vsel %vm1650_vm1, %v5267_v57, %v10293_v14  ;;  %v10292_v15 = vrot.slane %v8461_v43, 1 }
 0x163   : > { %v5710_v2 = vmax.f32 %v5646_v24, 0.0  ;;  %v1734_v36 = vrot.slane %v1507_v10, 2  ;;  %v4009_v62 = vadd.f32 %v3945_v7, %v3675_v0  ;;  %v2559_v55 = vmul.f32 %v5986_v61, %v6641_v1  ;;  %v6342_v24 = vld [vmem:[%s6487_s6 + $0x1e8] sm:$0xfc] }
 0x164   : > { %v10298_v3 = vrot.slane %v8470_v42, 2  ;;  %v8481_v50 = vmul.f32 %v8278_v37, %v6641_v1  ;;  %v1018_v35 = vsel %vm932_vm0, %v1016_v51, %v10292_v15  ;;  %v2178_v57 = vmul.f32 %v10528_v48, %v6637_v46  ;;  %v1338_v48 = vld [vmem:[%s6487_s6 + $0x1a8] sm:$0x3] }
 0x165   : > { %5774 = vst [vmem:[%s6726_s15 + $0xf8] sm:$0xff] %v5710_v2  ;;  %v3276_v7 = vmul.f32 %v6083_v44, %v6672_v34  ;;  %v8493_v25 = vmul.f32 %v8278_v37, %v6672_v34  ;;  %v4726_v58 = vadd.f32 %v4552_v9, %v4009_v62  ;;  %v1190_v10 = vadd.f32 %v1018_v35, %v408_v16  ;;  %v8502_v44 = vld [vmem:[%s6487_s6 + $0x1f8] sm:$0xff]  ;;  %v1337_v62 = vld [vmem:[%s6487_s6 + $0x1a0] sm:$0x3] }
 0x166   : > { %v1736_v61 = vsel %vm1650_vm1, %v1734_v36, %v10298_v3  ;;  %v2785_v0 = vrot.slane %v2559_v55, 1  ;;  %v10297_v51 = vrot.slane %v8481_v50, 1  ;;  %v4327_v14 = vmul.f32 %v6245_v26, %v6686_v5  ;;  %v619_v36 = vld [vmem:[%s6487_s6 + $0x1a0] sm:$0x1] }
 0x167   : > { %v3502_v2 = vrot.slane %v3276_v7, 2  ;;  %v10303_v15 = vrot.slane %v8493_v25, 2  ;;  %v5443_v6 = vadd.f32 %v5269_v52, %v4726_v58  ;;  %v1908_v60 = vadd.f32 %v1736_v61, %v1190_v10  ;;  %v5989_v61 = vld [vmem:[%s6487_s6 + $0x1d0] sm:$0x1] }
 0x168   : > { %v8510_v16 = vmul.f32 %v8502_v44, %v6686_v5  ;;  %v5044_v9 = vmul.f32 %v6342_v24, %v6718_v45  ;;  %v2787_v55 = vsel %vm932_vm0, %v2785_v0, %v10297_v51  ;;  %v3946_v52 = vmul.f32 %v8506_v32, %v6682_v56  ;;  %v6345_v32 = vld [vmem:[%s6487_s6 + $0x200] sm:$0x3] }
 0x169   : > { %v4553_v26 = vrot.slane %v4327_v14, 1  ;;  %v8522_v35 = vmul.f32 %v8502_v44, %v6718_v45  ;;  %v5647_v7 = vadd.f32 %v6598_v22, %v5443_v6  ;;  %v2242_v24 = vadd.f32 %v2178_v57, %v1908_v60 }
 0x16a   : > { %v10304_v58 = vrot.slane %v8510_v16, 1  ;;  %v5270_v10 = vrot.slane %v5044_v9, 2  ;;  %v3504_v0 = vsel %vm1650_vm1, %v3502_v2, %v10303_v15  ;;  %v792_v14 = vmul.f32 %v6493_v12, %v619_v36 }
 0x16b   : > { %v1510_v3 = vmul.f32 %v6496_v13, %v1337_v62  ;;  %v5711_v6 = vmax.f32 %v5647_v7, 0.0  ;;  %v2959_v60 = vadd.f32 %v2787_v55, %v2242_v24  ;;  %v409_v9 = vmul.f32 %v7981_v31, %v6490_v11  ;;  %v620_v24 = vld [vmem:[%s6487_s6 + $0x1a8] sm:$0x1] }
 0x16c   : > { %v4555_v57 = vsel %vm932_vm0, %v4553_v26, %v10304_v58  ;;  %v1019_v2 = vrot.slane %v792_v14, 1  ;;  %v2179_v36 = vmul.f32 %v8205_v30, %v6507_v18  ;;  %v2562_v62 = vmul.f32 %v5989_v61, %v6510_v19 }
 0x16d   : > { %v1737_v15 = vrot.slane %v1510_v3, 2  ;;  %5775 = vst [vmem:[%s6726_s15 + $0x100] sm:$0xff] %v5711_v6  ;;  %v3676_v51 = vadd.f32 %v3504_v0, %v2959_v60  ;;  %v10530_v55 = vrot.slane %v8522_v35, 2  ;;  %v3279_v26 = vmul.f32 %v6086_v23, %v6513_v20 }
 0x16e   : > { %v4330_v31 = vmul.f32 %v6248_v59, %v10526_v49  ;;  %v10531_v3 = vrot.slane %v8387_v8, 1  ;;  %v10532_v58 = vrot.slane %v8395_v28, 2  ;;  %v2788_v0 = vrot.slane %v2562_v62, 1 }
 0x16f   : > { %v5272_v7 = vsel %vm1650_vm1, %v5270_v10, %v10530_v55  ;;  %v5047_v6 = vmul.f32 %v6345_v32, %v6538_v33  ;;  %v4010_v10 = vadd.f32 %v3946_v52, %v3676_v51  ;;  %v3505_v23 = vrot.slane %v3279_v26, 2 }
 0x170   : > { %v1020_v14 = vsel %vm932_vm0, %v10531_v3, %v1019_v2  ;;  %v1738_v61 = vsel %vm1650_vm1, %v10532_v58, %v1737_v15  ;;  %v4556_v55 = vrot.slane %v4330_v31, 1  ;;  %v10533_v59 = vrot.slane %v8405_v53, 1  ;;  %v5990_v15 = vld [vmem:[%s6487_s6 + $0x1d8] sm:$0x1] }
 0x171   : > { %v1191_v60 = vadd.f32 %v1020_v14, %v409_v9  ;;  %v3947_v8 = vmul.f32 %v8429_v54, %v6516_v21  ;;  %v5273_v2 = vrot.slane %v5047_v6, 2  ;;  %v793_v28 = vmul.f32 %v6625_v41, %v620_v24  ;;  %v6087_v58 = vld [vmem:[%s6487_s6 + $0x1d8] sm:$0x3]  ;;  %v6249_v9 = vld [vmem:[%s6487_s6 + $0x208] sm:$0x1] }
 0x172   : > { %v2789_v49 = vsel %vm932_vm0, %v10533_v59, %v2788_v0  ;;  %v4727_v32 = vadd.f32 %v4555_v57, %v4010_v10  ;;  %v10534_v51 = vrot.slane %v8419_v29, 2  ;;  %v410_v53 = vmul.f32 %v8054_v63, %v6621_v4  ;;  %v6346_v63 = vld [vmem:[%s6487_s6 + $0x208] sm:$0x3] }
 0x173   : > { %v1909_v62 = vadd.f32 %v1738_v61, %v1191_v60  ;;  %v10535_v26 = vrot.slane %v8435_v27, 1  ;;  %v10536_v3 = vrot.slane %v8444_v40, 2  ;;  %v1021_v14 = vrot.slane %v793_v28, 1 }
 0x174   : > { %v3506_v52 = vsel %vm1650_vm1, %v10534_v51, %v3505_v23  ;;  %v1511_v57 = vmul.f32 %v6629_v17, %v1338_v48  ;;  %v5444_v61 = vadd.f32 %v5272_v7, %v4727_v32  ;;  %v2563_v29 = vmul.f32 %v5990_v15, %v6641_v1 }
 0x175   : > { %v4557_v31 = vsel %vm932_vm0, %v10535_v26, %v4556_v55  ;;  %v5274_v24 = vsel %vm1650_vm1, %v10536_v3, %v5273_v2  ;;  %v2243_v0 = vadd.f32 %v2179_v36, %v1909_v62  ;;  %v3280_v6 = vmul.f32 %v6087_v58, %v6672_v34  ;;  %v621_v58 = vld [vmem:[%s6487_s6 + $0x1b0] sm:$0xfe] }
 0x176   : > { %v10537_v10 = vrot.slane %v8461_v43, 1  ;;  %v1739_v60 = vrot.slane %v1511_v57, 2  ;;  %v2180_v40 = vmul.f32 %v8278_v37, %v6637_v46  ;;  %v4331_v23 = vmul.f32 %v6249_v9, %v6686_v5 }
 0x177   : > { %v5648_v48 = vadd.f32 %v6740_v47, %v5444_v61  ;;  %v2960_v36 = vadd.f32 %v2789_v49, %v2243_v0  ;;  %v2790_v55 = vrot.slane %v2563_v29, 1  ;;  %v10538_v59 = vrot.slane %v8470_v42, 2  ;;  %v1339_v49 = vld [vmem:[%s6487_s6 + $0x1b0] sm:$0xfc] }
 0x178   : > { %v1022_v27 = vsel %vm932_vm0, %v10537_v10, %v1021_v14  ;;  %v3507_v43 = vrot.slane %v3280_v6, 2  ;;  %v4558_v28 = vrot.slane %v4331_v23, 1  ;;  %v5048_v15 = vmul.f32 %v6346_v63, %v6718_v45  ;;  %v6088_v10 = vld [vmem:[%s6487_s6 + $0x1e0] sm:$0xfc] }
 0x179   : > { %v1192_v7 = vadd.f32 %v1022_v27, %v410_v53  ;;  %v1740_v2 = vsel %vm1650_vm1, %v10538_v59, %v1739_v60  ;;  %v5712_v32 = vmax.f32 %v5648_v48, 0.0  ;;  %v3677_v62 = vadd.f32 %v3506_v52, %v2960_v36 }
 0x17a   : > { %v3948_v9 = vmul.f32 %v8502_v44, %v6682_v56  ;;  %v10539_v53 = vrot.slane %v8481_v50, 1  ;;  %v10540_v26 = vrot.slane %v8493_v25, 2  ;;  %v10541_v14 = vrot.slane %v8510_v16, 1  ;;  %v5991_v50 = vld [vmem:[%s6487_s6 + $0x1e0] sm:$0xfe] }
 0x17b   : > { %v1910_v51 = vadd.f32 %v1740_v2, %v1192_v7  ;;  %v5275_v61 = vrot.slane %v5048_v15, 2  ;;  %5776 = vst [vmem:[%s6726_s15 + $0x108] sm:$0xff] %v5712_v32  ;;  %v4011_v52 = vadd.f32 %v3947_v8, %v3677_v62  ;;  %v794_v29 = vmul.f32 %v6493_v12, %v621_v58 }
 0x17c   : > { %v2791_v42 = vsel %vm932_vm0, %v10539_v53, %v2790_v55  ;;  %v3508_v3 = vsel %vm1650_vm1, %v10540_v26, %v3507_v43  ;;  %v4559_v57 = vsel %vm932_vm0, %v10541_v14, %v4558_v28  ;;  %v8611_v6 = vmul.f32 %v8205_v30, %v6493_v12  ;;  %v6250_v43 = vld [vmem:[%s6487_s6 + $0x210] sm:$0xfe] }
 0x17d   : > { %v2244_v0 = vadd.f32 %v2180_v40, %v1910_v51  ;;  %v411_v25 = vmul.f32 %v8215_v38, %v6490_v11  ;;  %v1512_v63 = vmul.f32 %v6496_v13, %v1339_v49  ;;  %v8619_v16 = vmul.f32 %v8205_v30, %v6496_v13  ;;  %v6347_v53 = vld [vmem:[%s6487_s6 + $0x210] sm:$0xfc] }
 0x17e   : > { %v2181_v8 = vmul.f32 %v8439_v39, %v6507_v18  ;;  %v4728_v27 = vadd.f32 %v4557_v31, %v4011_v52  ;;  %v1023_v40 = vrot.slane %v794_v29, 1  ;;  %v10314_v23 = vrot.slane %v8611_v6, 1  ;;  %v8653_v52 = vld [vmem:[%s6487_s6 + $0x220] sm:$0xff] }
 0x17f   : > { %v2961_v60 = vadd.f32 %v2791_v42, %v2244_v0  ;;  %v1741_v48 = vrot.slane %v1512_v63, 2  ;;  %v10313_v36 = vrot.slane %v8619_v16, 2  ;;  %v2564_v38 = vmul.f32 %v5991_v50, %v6510_v19  ;;  %v622_v63 = vld [vmem:[%s6487_s6 + $0x1b8] sm:$0xfe] }
 0x180   : > { %v8629_v7 = vmul.f32 %v8429_v54, %v6510_v19  ;;  %v5445_v55 = vadd.f32 %v5274_v24, %v4728_v27  ;;  %v1025_v31 = vsel %vm932_vm0, %v1023_v40, %v10314_v23  ;;  %v3281_v2 = vmul.f32 %v6088_v10, %v6513_v20  ;;  %v8663_v10 = vld [vmem:[%s6487_s6 + $0x210] sm:$0xff] }
 0x181   : > { %v3678_v59 = vadd.f32 %v3508_v3, %v2961_v60  ;;  %v1193_v28 = vadd.f32 %v1025_v31, %v411_v25  ;;  %v1743_v15 = vsel %vm1650_vm1, %v1741_v48, %v10313_v36  ;;  %v2792_v58 = vrot.slane %v2564_v38, 1  ;;  %v1340_v48 = vld [vmem:[%s6487_s6 + $0x1b8] sm:$0xfc]  ;;  %v6092_v36 = vld [vmem:[%s6487_s6 + $0x200] sm:$0x3] }
 0x182   : > { %v10310_v32 = vrot.slane %v8629_v7, 1  ;;  %v5649_v24 = vadd.f32 %v6598_v22, %v5445_v55  ;;  %v8643_v51 = vmul.f32 %v8429_v54, %v6513_v20  ;;  %v3509_v49 = vrot.slane %v3281_v2, 2  ;;  %v6254_v23 = vld [vmem:[%s6487_s6 + $0x230] sm:$0x1] }
 0x183   : > { %v4012_v62 = vadd.f32 %v3948_v9, %v3678_v59  ;;  %v10542_v42 = vrot.slane %v8522_v35, 2  ;;  %v1911_v3 = vadd.f32 %v1743_v15, %v1193_v28  ;;  %v10543_v9 = vld [vmem:[#allocation3_spill] sm:$0xff]  ;;  %v5049_v60 = vmul.f32 %v6347_v53, %v6538_v33  ;;  %v10544_v15 = vld [vmem:[#allocation5_spill] sm:$0xff] }
 0x184   : > { %v2794_v14 = vsel %vm932_vm0, %v2792_v58, %v10310_v32  ;;  %v4332_v0 = vmul.f32 %v6250_v43, %v10543_v9  ;;  %v5713_v29 = vmax.f32 %v5649_v24, 0.0  ;;  %v10309_v25 = vrot.slane %v8643_v51, 2  ;;  %v8730_v32 = vld [vmem:[%s6487_s6 + $0x218] sm:$0xff] }
 0x185   : > { %v5276_v26 = vsel %vm1650_vm1, %v10542_v42, %v5275_v61  ;;  %v4729_v50 = vadd.f32 %v4559_v57, %v4012_v62  ;;  %v8659_v35 = vmul.f32 %v8653_v52, %v10543_v9  ;;  %v2245_v61 = vadd.f32 %v2181_v8, %v1911_v3  ;;  %10546 = vst [vmem:[#allocation5_spill] sm:$0xff] %v8730_v32 }
 0x186   : > { %v4560_v27 = vrot.slane %v4332_v0, 1  ;;  %v8668_v40 = vmul.f32 %v8653_v52, %v6538_v33  ;;  %5777 = vst [vmem:[%s6726_s15 + $0x110] sm:$0xff] %v5713_v29  ;;  %v3511_v38 = vsel %vm1650_vm1, %v3509_v49, %v10309_v25  ;;  %v3949_v8 = vmul.f32 %v8663_v10, %v6516_v21  ;;  %v5992_v49 = vld [vmem:[%s6487_s6 + $0x1e8] sm:$0xfe] }
 0x187   : > { %v5446_v57 = vadd.f32 %v5276_v26, %v4729_v50  ;;  %v10308_v55 = vrot.slane %v8659_v35, 1  ;;  %v2962_v59 = vadd.f32 %v2794_v14, %v2245_v61  ;;  %v5277_v31 = vrot.slane %v5049_v60, 2  ;;  %v6089_v14 = vld [vmem:[%s6487_s6 + $0x1e8] sm:$0xfc] }
 0x188   : > { %v10307_v2 = vrot.slane %v8668_v40, 2  ;;  %v795_v43 = vmul.f32 %v6625_v41, %v622_v63  ;;  %v412_v58 = vmul.f32 %v10544_v15, %v6621_v4  ;;  %v8685_v24 = vmul.f32 %v8278_v37, %v6625_v41 }
 0x189   : > { %v5650_v28 = vadd.f32 %v6740_v47, %v5446_v57  ;;  %v1513_v62 = vmul.f32 %v6629_v17, %v1340_v48  ;;  %v3679_v53 = vadd.f32 %v3511_v38, %v2962_v59  ;;  %v4562_v42 = vsel %vm932_vm0, %v4560_v27, %v10308_v55  ;;  %v6251_v57 = vld [vmem:[%s6487_s6 + $0x218] sm:$0xfe]  ;;  %v10545_v59 = vld [vmem:[#allocation4_spill] sm:$0xff] }
 0x18a   : > { %v1026_v26 = vrot.slane %v795_v43, 1  ;;  %v8694_v3 = vmul.f32 %v8278_v37, %v6629_v17  ;;  %v5279_v29 = vsel %vm1650_vm1, %v5277_v31, %v10307_v2  ;;  %v10306_v50 = vrot.slane %v8685_v24, 1 }
 0x18b   : > { %v5714_v0 = vmax.f32 %v5650_v28, 0.0  ;;  %v1744_v63 = vrot.slane %v1513_v62, 2  ;;  %v4013_v61 = vadd.f32 %v3949_v8, %v3679_v53  ;;  %v2565_v27 = vmul.f32 %v5992_v49, %v6641_v1  ;;  %v6348_v28 = vld [vmem:[%s6487_s6 + $0x218] sm:$0xfc] }
 0x18c   : > { %v10312_v60 = vrot.slane %v8694_v3, 2  ;;  %v8705_v48 = vmul.f32 %v8502_v44, %v6641_v1  ;;  %v1028_v38 = vsel %vm932_vm0, %v1026_v26, %v10306_v50  ;;  %v2182_v31 = vmul.f32 %v10545_v59, %v6637_v46  ;;  %v1344_v59 = vld [vmem:[%s6487_s6 + $0x1d8] sm:$0x3] }
 0x18d   : > { %5778 = vst [vmem:[%s6726_s15 + $0x118] sm:$0xff] %v5714_v0  ;;  %v3282_v8 = vmul.f32 %v6089_v14, %v6672_v34  ;;  %v8717_v43 = vmul.f32 %v8502_v44, %v6672_v34  ;;  %v4730_v15 = vadd.f32 %v4562_v42, %v4013_v61  ;;  %v1194_v62 = vadd.f32 %v1028_v38, %v412_v58  ;;  %v8726_v14 = vld [vmem:[%s6487_s6 + $0x228] sm:$0xff]  ;;  %v1343_v61 = vld [vmem:[%s6487_s6 + $0x1d0] sm:$0x3] }
 0x18e   : > { %v1746_v49 = vsel %vm1650_vm1, %v1744_v63, %v10312_v60  ;;  %v2795_v53 = vrot.slane %v2565_v27, 1  ;;  %v10311_v26 = vrot.slane %v8705_v48, 1  ;;  %v4333_v2 = vmul.f32 %v6251_v57, %v6686_v5  ;;  %v625_v63 = vld [vmem:[%s6487_s6 + $0x1d0] sm:$0x1] }
 0x18f   : > { %v3512_v0 = vrot.slane %v3282_v8, 2  ;;  %v10317_v50 = vrot.slane %v8717_v43, 2  ;;  %v5447_v55 = vadd.f32 %v5279_v29, %v4730_v15  ;;  %v1912_v25 = vadd.f32 %v1746_v49, %v1194_v62  ;;  %v5995_v49 = vld [vmem:[%s6487_s6 + $0x200] sm:$0x1] }
 0x190   : > { %v8734_v58 = vmul.f32 %v8726_v14, %v6686_v5  ;;  %v5050_v42 = vmul.f32 %v6348_v28, %v6718_v45  ;;  %v2797_v27 = vsel %vm932_vm0, %v2795_v53, %v10311_v26  ;;  %v3950_v29 = vmul.f32 %v8730_v32, %v6682_v56  ;;  %v6351_v32 = vld [vmem:[%s6487_s6 + $0x230] sm:$0x3] }
 0x191   : > { %v4563_v57 = vrot.slane %v4333_v2, 1  ;;  %v8746_v38 = vmul.f32 %v8726_v14, %v6718_v45  ;;  %v5651_v8 = vadd.f32 %v6598_v22, %v5447_v55  ;;  %v2246_v28 = vadd.f32 %v2182_v31, %v1912_v25 }
 0x192   : > { %v10318_v15 = vrot.slane %v8734_v58, 1  ;;  %v5280_v62 = vrot.slane %v5050_v42, 2  ;;  %v3514_v53 = vsel %vm1650_vm1, %v3512_v0, %v10317_v50  ;;  %v798_v2 = vmul.f32 %v6493_v12, %v625_v63 }
 0x193   : > { %v1516_v60 = vmul.f32 %v6496_v13, %v1343_v61  ;;  %v5715_v55 = vmax.f32 %v5651_v8, 0.0  ;;  %v2963_v25 = vadd.f32 %v2797_v27, %v2246_v28  ;;  %v413_v42 = vmul.f32 %v8205_v30, %v6490_v11  ;;  %v626_v28 = vld [vmem:[%s6487_s6 + $0x1d8] sm:$0x1] }
 0x194   : > { %v4565_v31 = vsel %vm932_vm0, %v4563_v57, %v10318_v15  ;;  %v1029_v0 = vrot.slane %v798_v2, 1  ;;  %v2183_v63 = vmul.f32 %v8429_v54, %v6507_v18  ;;  %v2568_v61 = vmul.f32 %v5995_v49, %v6510_v19 }
 0x195   : > { %v1747_v50 = vrot.slane %v1516_v60, 2  ;;  %5779 = vst [vmem:[%s6726_s15 + $0x120] sm:$0xff] %v5715_v55  ;;  %v3680_v26 = vadd.f32 %v3514_v53, %v2963_v25  ;;  %v10547_v27 = vrot.slane %v8746_v38, 2  ;;  %v3285_v57 = vmul.f32 %v6092_v36, %v6513_v20 }
 0x196   : > { %v4336_v30 = vmul.f32 %v6254_v23, %v10543_v9  ;;  %v10548_v60 = vrot.slane %v8611_v6, 1  ;;  %v10549_v15 = vrot.slane %v8619_v16, 2  ;;  %v2798_v53 = vrot.slane %v2568_v61, 1 }
 0x197   : > { %v5282_v8 = vsel %vm1650_vm1, %v5280_v62, %v10547_v27  ;;  %v5053_v55 = vmul.f32 %v6351_v32, %v6538_v33  ;;  %v4014_v62 = vadd.f32 %v3950_v29, %v3680_v26  ;;  %v3515_v36 = vrot.slane %v3285_v57, 2 }
 0x198   : > { %v1030_v2 = vsel %vm932_vm0, %v10548_v60, %v1029_v0  ;;  %v1748_v49 = vsel %vm1650_vm1, %v10549_v15, %v1747_v50  ;;  %v4566_v27 = vrot.slane %v4336_v30, 1  ;;  %v10550_v23 = vrot.slane %v8629_v7, 1  ;;  %v5996_v50 = vld [vmem:[%s6487_s6 + $0x208] sm:$0x1] }
 0x199   : > { %v1195_v25 = vadd.f32 %v1030_v2, %v413_v42  ;;  %v3951_v6 = vmul.f32 %v8653_v52, %v6516_v21  ;;  %v5283_v0 = vrot.slane %v5053_v55, 2  ;;  %v799_v16 = vmul.f32 %v6625_v41, %v626_v28  ;;  %v6093_v15 = vld [vmem:[%s6487_s6 + $0x208] sm:$0x3]  ;;  %v6255_v42 = vld [vmem:[%s6487_s6 + $0x238] sm:$0x1] }
 0x19a   : > { %v2799_v9 = vsel %vm932_vm0, %v10550_v23, %v2798_v53  ;;  %v4731_v32 = vadd.f32 %v4565_v31, %v4014_v62  ;;  %v10551_v26 = vrot.slane %v8643_v51, 2  ;;  %v414_v7 = vmul.f32 %v8278_v37, %v6621_v4  ;;  %v6352_v37 = vld [vmem:[%s6487_s6 + $0x238] sm:$0x3] }
 0x19b   : > { %v1913_v61 = vadd.f32 %v1748_v49, %v1195_v25  ;;  %v10552_v57 = vrot.slane %v8659_v35, 1  ;;  %v10553_v60 = vrot.slane %v8668_v40, 2  ;;  %v1031_v2 = vrot.slane %v799_v16, 1 }
 0x19c   : > { %v3516_v29 = vsel %vm1650_vm1, %v10551_v26, %v3515_v36  ;;  %v1517_v31 = vmul.f32 %v6629_v17, %v1344_v59  ;;  %v5448_v49 = vadd.f32 %v5282_v8, %v4731_v32  ;;  %v2569_v51 = vmul.f32 %v5996_v50, %v6641_v1 }
 0x19d   : > { %v4567_v30 = vsel %vm932_vm0, %v10552_v57, %v4566_v27  ;;  %v5284_v28 = vsel %vm1650_vm1, %v10553_v60, %v5283_v0  ;;  %v2247_v53 = vadd.f32 %v2183_v63, %v1913_v61  ;;  %v3286_v55 = vmul.f32 %v6093_v15, %v6672_v34  ;;  %v627_v15 = vld [vmem:[%s6487_s6 + $0x1e0] sm:$0xfe] }
 0x19e   : > { %v10554_v62 = vrot.slane %v8685_v24, 1  ;;  %v1749_v25 = vrot.slane %v1517_v31, 2  ;;  %v2184_v40 = vmul.f32 %v8502_v44, %v6637_v46  ;;  %v4337_v36 = vmul.f32 %v6255_v42, %v6686_v5 }
 0x19f   : > { %v5652_v59 = vadd.f32 %v6740_v47, %v5448_v49  ;;  %v2964_v63 = vadd.f32 %v2799_v9, %v2247_v53  ;;  %v2800_v27 = vrot.slane %v2569_v51, 1  ;;  %v10555_v23 = vrot.slane %v8694_v3, 2  ;;  %v1345_v9 = vld [vmem:[%s6487_s6 + $0x1e0] sm:$0xfc] }
 0x1a0   : > { %v1032_v35 = vsel %vm932_vm0, %v10554_v62, %v1031_v2  ;;  %v3517_v24 = vrot.slane %v3286_v55, 2  ;;  %v4568_v16 = vrot.slane %v4337_v36, 1  ;;  %v5054_v50 = vmul.f32 %v6352_v37, %v6718_v45  ;;  %v6094_v62 = vld [vmem:[%s6487_s6 + $0x210] sm:$0xfc] }
 0x1a1   : > { %v1196_v8 = vadd.f32 %v1032_v35, %v414_v7  ;;  %v1750_v0 = vsel %vm1650_vm1, %v10555_v23, %v1749_v25  ;;  %v5716_v32 = vmax.f32 %v5652_v59, 0.0  ;;  %v3681_v61 = vadd.f32 %v3516_v29, %v2964_v63 }
 0x1a2   : > { %v3952_v42 = vmul.f32 %v8726_v14, %v6682_v56  ;;  %v10556_v7 = vrot.slane %v8705_v48, 1  ;;  %v10557_v57 = vrot.slane %v8717_v43, 2  ;;  %v10558_v2 = vrot.slane %v8734_v58, 1  ;;  %v5997_v48 = vld [vmem:[%s6487_s6 + $0x210] sm:$0xfe] }
 0x1a3   : > { %v1914_v26 = vadd.f32 %v1750_v0, %v1196_v8  ;;  %v5285_v49 = vrot.slane %v5054_v50, 2  ;;  %5780 = vst [vmem:[%s6726_s15 + $0x128] sm:$0xff] %v5716_v32  ;;  %v4015_v29 = vadd.f32 %v3951_v6, %v3681_v61  ;;  %v800_v51 = vmul.f32 %v6493_v12, %v627_v15 }
 0x1a4   : > { %v2801_v3 = vsel %vm932_vm0, %v10556_v7, %v2800_v27  ;;  %v3518_v60 = vsel %vm1650_vm1, %v10557_v57, %v3517_v24  ;;  %v4569_v31 = vsel %vm932_vm0, %v10558_v2, %v4568_v16  ;;  %v8835_v55 = vmul.f32 %v8429_v54, %v6493_v12  ;;  %v6256_v24 = vld [vmem:[%s6487_s6 + $0x240] sm:$0xfe] }
 0x1a5   : > { %v2248_v53 = vadd.f32 %v2184_v40, %v1914_v26  ;;  %v415_v43 = vmul.f32 %v8439_v39, %v6490_v11  ;;  %v1518_v37 = vmul.f32 %v6496_v13, %v1345_v9  ;;  %v8843_v58 = vmul.f32 %v8429_v54, %v6496_v13  ;;  %v6353_v7 = vld [vmem:[%s6487_s6 + $0x240] sm:$0xfc] }
 0x1a6   : > { %v2185_v6 = vmul.f32 %v8663_v10, %v6507_v18  ;;  %v4732_v35 = vadd.f32 %v4567_v30, %v4015_v29  ;;  %v1033_v40 = vrot.slane %v800_v51, 1  ;;  %v10328_v36 = vrot.slane %v8835_v55, 1  ;;  %v8877_v29 = vld [vmem:[%s6487_s6 + $0x250] sm:$0xff] }
 0x1a7   : > { %v2965_v25 = vadd.f32 %v2801_v3, %v2248_v53  ;;  %v1751_v59 = vrot.slane %v1518_v37, 2  ;;  %v10327_v63 = vrot.slane %v8843_v58, 2  ;;  %v2570_v39 = vmul.f32 %v5997_v48, %v6510_v19  ;;  %v628_v37 = vld [vmem:[%s6487_s6 + $0x1e8] sm:$0xfe] }
 0x1a8   : > { %v8853_v8 = vmul.f32 %v8653_v52, %v6510_v19  ;;  %v5449_v27 = vadd.f32 %v5284_v28, %v4732_v35  ;;  %v1035_v30 = vsel %vm932_vm0, %v1033_v40, %v10328_v36  ;;  %v3287_v0 = vmul.f32 %v6094_v62, %v6513_v20  ;;  %v8887_v62 = vld [vmem:[%s6487_s6 + $0x240] sm:$0xff] }
 0x1a9   : > { %v3682_v23 = vadd.f32 %v3518_v60, %v2965_v25  ;;  %v1197_v16 = vadd.f32 %v1035_v30, %v415_v43  ;;  %v1753_v50 = vsel %vm1650_vm1, %v1751_v59, %v10327_v63  ;;  %v2802_v15 = vrot.slane %v2570_v39, 1  ;;  %v1346_v59 = vld [vmem:[%s6487_s6 + $0x1e8] sm:$0xfc]  ;;  %v6098_v63 = vld [vmem:[%s6487_s6 + $0x230] sm:$0x3] }
 0x1aa   : > { %v10324_v32 = vrot.slane %v8853_v8, 1  ;;  %v5653_v28 = vadd.f32 %v6598_v22, %v5449_v27  ;;  %v8867_v26 = vmul.f32 %v8653_v52, %v6513_v20  ;;  %v3519_v9 = vrot.slane %v3287_v0, 2  ;;  %v6260_v36 = vld [vmem:[%s6487_s6 + $0x260] sm:$0x1] }
 0x1ab   : > { %v4016_v61 = vadd.f32 %v3952_v42, %v3682_v23  ;;  %v10559_v3 = vrot.slane %v8746_v38, 2  ;;  %v1915_v60 = vadd.f32 %v1753_v50, %v1197_v16  ;;  %v10560_v42 = vld [vmem:[#allocation3_spill] sm:$0xff]  ;;  %v5055_v25 = vmul.f32 %v6353_v7, %v6538_v33  ;;  %v10561_v50 = vld [vmem:[#allocation4_spill] sm:$0xff] }
 0x1ac   : > { %v2804_v2 = vsel %vm932_vm0, %v2802_v15, %v10324_v32  ;;  %v4338_v53 = vmul.f32 %v6256_v24, %v10560_v42  ;;  %v5717_v51 = vmax.f32 %v5653_v28, 0.0  ;;  %v10323_v43 = vrot.slane %v8867_v26, 2  ;;  %v8954_v32 = vld [vmem:[%s6487_s6 + $0x248] sm:$0xff] }
 0x1ad   : > { %v5286_v57 = vsel %vm1650_vm1, %v10559_v3, %v5285_v49  ;;  %v4733_v48 = vadd.f32 %v4569_v31, %v4016_v61  ;;  %v8883_v38 = vmul.f32 %v8877_v29, %v10560_v42  ;;  %v2249_v49 = vadd.f32 %v2185_v6, %v1915_v60  ;;  %10563 = vst [vmem:[#allocation4_spill] sm:$0xff] %v8954_v32 }
 0x1ae   : > { %v4570_v35 = vrot.slane %v4338_v53, 1  ;;  %v8892_v40 = vmul.f32 %v8877_v29, %v6538_v33  ;;  %5781 = vst [vmem:[%s6726_s15 + $0x130] sm:$0xff] %v5717_v51  ;;  %v3521_v39 = vsel %vm1650_vm1, %v3519_v9, %v10323_v43  ;;  %v3953_v6 = vmul.f32 %v8887_v62, %v6516_v21  ;;  %v5998_v9 = vld [vmem:[%s6487_s6 + $0x218] sm:$0xfe] }
 0x1af   : > { %v5450_v31 = vadd.f32 %v5286_v57, %v4733_v48  ;;  %v10322_v27 = vrot.slane %v8883_v38, 1  ;;  %v2966_v23 = vadd.f32 %v2804_v2, %v2249_v49  ;;  %v5287_v30 = vrot.slane %v5055_v25, 2  ;;  %v6095_v2 = vld [vmem:[%s6487_s6 + $0x218] sm:$0xfc] }
 0x1b0   : > { %v10321_v0 = vrot.slane %v8892_v40, 2  ;;  %v801_v24 = vmul.f32 %v6625_v41, %v628_v37  ;;  %v416_v15 = vmul.f32 %v10561_v50, %v6621_v4  ;;  %v8909_v28 = vmul.f32 %v8502_v44, %v6625_v41 }
 0x1b1   : > { %v5654_v16 = vadd.f32 %v6740_v47, %v5450_v31  ;;  %v1519_v61 = vmul.f32 %v6629_v17, %v1346_v59  ;;  %v3683_v7 = vadd.f32 %v3521_v39, %v2966_v23  ;;  %v4572_v3 = vsel %vm932_vm0, %v4570_v35, %v10322_v27  ;;  %v6257_v31 = vld [vmem:[%s6487_s6 + $0x248] sm:$0xfe]  ;;  %v10562_v23 = vld [vmem:[#allocation5_spill] sm:$0xff] }
 0x1b2   : > { %v1036_v57 = vrot.slane %v801_v24, 1  ;;  %v8918_v60 = vmul.f32 %v8502_v44, %v6629_v17  ;;  %v5289_v51 = vsel %vm1650_vm1, %v5287_v30, %v10321_v0  ;;  %v10320_v48 = vrot.slane %v8909_v28, 1 }
 0x1b3   : > { %v5718_v53 = vmax.f32 %v5654_v16, 0.0  ;;  %v1754_v37 = vrot.slane %v1519_v61, 2  ;;  %v4017_v49 = vadd.f32 %v3953_v6, %v3683_v7  ;;  %v2571_v35 = vmul.f32 %v5998_v9, %v6641_v1  ;;  %v6354_v16 = vld [vmem:[%s6487_s6 + $0x248] sm:$0xfc] }
 0x1b4   : > { %v10326_v25 = vrot.slane %v8918_v60, 2  ;;  %v8929_v59 = vmul.f32 %v8726_v14, %v6641_v1  ;;  %v1038_v39 = vsel %vm932_vm0, %v1036_v57, %v10320_v48  ;;  %v2186_v30 = vmul.f32 %v10562_v23, %v6637_v46  ;;  %v1350_v23 = vld [vmem:[%s6487_s6 + $0x208] sm:$0x3] }
 0x1b5   : > { %5782 = vst [vmem:[%s6726_s15 + $0x138] sm:$0xff] %v5718_v53  ;;  %v3288_v6 = vmul.f32 %v6095_v2, %v6672_v34  ;;  %v8941_v24 = vmul.f32 %v8726_v14, %v6672_v34  ;;  %v4734_v50 = vadd.f32 %v4572_v3, %v4017_v49  ;;  %v1198_v61 = vadd.f32 %v1038_v39, %v416_v15  ;;  %v8950_v2 = vld [vmem:[%s6487_s6 + $0x258] sm:$0xff]  ;;  %v1349_v49 = vld [vmem:[%s6487_s6 + $0x200] sm:$0x3] }
 0x1b6   : > { %v1756_v9 = vsel %vm1650_vm1, %v1754_v37, %v10326_v25  ;;  %v2805_v7 = vrot.slane %v2571_v35, 1  ;;  %v10325_v57 = vrot.slane %v8929_v59, 1  ;;  %v4339_v0 = vmul.f32 %v6257_v31, %v6686_v5  ;;  %v631_v37 = vld [vmem:[%s6487_s6 + $0x200] sm:$0x1] }
 0x1b7   : > { %v3522_v53 = vrot.slane %v3288_v6, 2  ;;  %v10331_v48 = vrot.slane %v8941_v24, 2  ;;  %v5451_v27 = vadd.f32 %v5289_v51, %v4734_v50  ;;  %v1916_v43 = vadd.f32 %v1756_v9, %v1198_v61  ;;  %v6001_v9 = vld [vmem:[%s6487_s6 + $0x230] sm:$0x1] }
 0x1b8   : > { %v8958_v15 = vmul.f32 %v8950_v2, %v6686_v5  ;;  %v5056_v3 = vmul.f32 %v6354_v16, %v6718_v45  ;;  %v2807_v35 = vsel %vm932_vm0, %v2805_v7, %v10325_v57  ;;  %v3954_v51 = vmul.f32 %v8954_v32, %v6682_v56  ;;  %v6357_v32 = vld [vmem:[%s6487_s6 + $0x260] sm:$0x3] }
 0x1b9   : > { %v4573_v31 = vrot.slane %v4339_v0, 1  ;;  %v8970_v39 = vmul.f32 %v8950_v2, %v6718_v45  ;;  %v5655_v6 = vadd.f32 %v6598_v22, %v5451_v27  ;;  %v2250_v16 = vadd.f32 %v2186_v30, %v1916_v43 }
 0x1ba   : > { %v10332_v50 = vrot.slane %v8958_v15, 1  ;;  %v5290_v61 = vrot.slane %v5056_v3, 2  ;;  %v3524_v7 = vsel %vm1650_vm1, %v3522_v53, %v10331_v48  ;;  %v804_v0 = vmul.f32 %v6493_v12, %v631_v37 }
 0x1bb   : > { %v1522_v25 = vmul.f32 %v6496_v13, %v1349_v49  ;;  %v5719_v27 = vmax.f32 %v5655_v6, 0.0  ;;  %v2967_v43 = vadd.f32 %v2807_v35, %v2250_v16  ;;  %v417_v3 = vmul.f32 %v8429_v54, %v6490_v11  ;;  %v632_v16 = vld [vmem:[%s6487_s6 + $0x208] sm:$0x1] }
 0x1bc   : > { %v4575_v30 = vsel %vm932_vm0, %v4573_v31, %v10332_v50  ;;  %v1039_v53 = vrot.slane %v804_v0, 1  ;;  %v2187_v37 = vmul.f32 %v8653_v52, %v6507_v18  ;;  %v2574_v49 = vmul.f32 %v6001_v9, %v6510_v19 }
 0x1bd   : > { %v1757_v48 = vrot.slane %v1522_v25, 2  ;;  %5783 = vst [vmem:[%s6726_s15 + $0x140] sm:$0xff] %v5719_v27  ;;  %v3684_v57 = vadd.f32 %v3524_v7, %v2967_v43  ;;  %v10564_v35 = vrot.slane %v8970_v39, 2  ;;  %v3291_v31 = vmul.f32 %v6098_v63, %v6513_v20 }
 0x1be   : > { %v4342_v54 = vmul.f32 %v6260_v36, %v10560_v42  ;;  %v10565_v25 = vrot.slane %v8835_v55, 1  ;;  %v10566_v50 = vrot.slane %v8843_v58, 2  ;;  %v2808_v7 = vrot.slane %v2574_v49, 1 }
 0x1bf   : > { %v5292_v6 = vsel %vm1650_vm1, %v5290_v61, %v10564_v35  ;;  %v5059_v27 = vmul.f32 %v6357_v32, %v6538_v33  ;;  %v4018_v61 = vadd.f32 %v3954_v51, %v3684_v57  ;;  %v3525_v63 = vrot.slane %v3291_v31, 2 }
 0x1c0   : > { %v1040_v0 = vsel %vm932_vm0, %v10565_v25, %v1039_v53  ;;  %v1758_v9 = vsel %vm1650_vm1, %v10566_v50, %v1757_v48  ;;  %v4576_v35 = vrot.slane %v4342_v54, 1  ;;  %v10567_v36 = vrot.slane %v8853_v8, 1  ;;  %v6002_v48 = vld [vmem:[%s6487_s6 + $0x238] sm:$0x1] }
 0x1c1   : > { %v1199_v43 = vadd.f32 %v1040_v0, %v417_v3  ;;  %v3955_v55 = vmul.f32 %v8877_v29, %v6516_v21  ;;  %v5293_v53 = vrot.slane %v5059_v27, 2  ;;  %v805_v58 = vmul.f32 %v6625_v41, %v632_v16  ;;  %v6099_v50 = vld [vmem:[%s6487_s6 + $0x238] sm:$0x3]  ;;  %v6261_v3 = vld [vmem:[%s6487_s6 + $0x268] sm:$0x1] }
 0x1c2   : > { %v2809_v42 = vsel %vm932_vm0, %v10567_v36, %v2808_v7  ;;  %v4735_v32 = vadd.f32 %v4575_v30, %v4018_v61  ;;  %v10568_v57 = vrot.slane %v8867_v26, 2  ;;  %v418_v8 = vmul.f32 %v8502_v44, %v6621_v4  ;;  %v6358_v44 = vld [vmem:[%s6487_s6 + $0x268] sm:$0x3] }
 0x1c3   : > { %v1917_v49 = vadd.f32 %v1758_v9, %v1199_v43  ;;  %v10569_v31 = vrot.slane %v8883_v38, 1  ;;  %v10570_v25 = vrot.slane %v8892_v40, 2  ;;  %v1041_v0 = vrot.slane %v805_v58, 1 }
 0x1c4   : > { %v3526_v51 = vsel %vm1650_vm1, %v10568_v57, %v3525_v63  ;;  %v1523_v30 = vmul.f32 %v6629_v17, %v1350_v23  ;;  %v5452_v9 = vadd.f32 %v5292_v6, %v4735_v32  ;;  %v2575_v26 = vmul.f32 %v6002_v48, %v6641_v1 }
 0x1c5   : > { %v4577_v54 = vsel %vm932_vm0, %v10569_v31, %v4576_v35  ;;  %v5294_v16 = vsel %vm1650_vm1, %v10570_v25, %v5293_v53  ;;  %v2251_v7 = vadd.f32 %v2187_v37, %v1917_v49  ;;  %v3292_v27 = vmul.f32 %v6099_v50, %v6672_v34  ;;  %v633_v50 = vld [vmem:[%s6487_s6 + $0x210] sm:$0xfe] }
 0x1c6   : > { %v10571_v61 = vrot.slane %v8909_v28, 1  ;;  %v1759_v43 = vrot.slane %v1523_v30, 2  ;;  %v2188_v40 = vmul.f32 %v8726_v14, %v6637_v46  ;;  %v4343_v63 = vmul.f32 %v6261_v3, %v6686_v5 }
 0x1c7   : > { %v5656_v23 = vadd.f32 %v6740_v47, %v5452_v9  ;;  %v2968_v37 = vadd.f32 %v2809_v42, %v2251_v7  ;;  %v2810_v35 = vrot.slane %v2575_v26, 1  ;;  %v10572_v36 = vrot.slane %v8918_v60, 2  ;;  %v1351_v42 = vld [vmem:[%s6487_s6 + $0x210] sm:$0xfc] }
 0x1c8   : > { %v1042_v38 = vsel %vm932_vm0, %v10571_v61, %v1041_v0  ;;  %v3527_v28 = vrot.slane %v3292_v27, 2  ;;  %v4578_v58 = vrot.slane %v4343_v63, 1  ;;  %v5060_v48 = vmul.f32 %v6358_v44, %v6718_v45  ;;  %v6100_v61 = vld [vmem:[%s6487_s6 + $0x240] sm:$0xfc] }
 0x1c9   : > { %v1200_v6 = vadd.f32 %v1042_v38, %v418_v8  ;;  %v1760_v53 = vsel %vm1650_vm1, %v10572_v36, %v1759_v43  ;;  %v5720_v32 = vmax.f32 %v5656_v23, 0.0  ;;  %v3685_v49 = vadd.f32 %v3526_v51, %v2968_v37 }
 0x1ca   : > { %v3956_v3 = vmul.f32 %v8950_v2, %v6682_v56  ;;  %v10573_v8 = vrot.slane %v8929_v59, 1  ;;  %v10574_v31 = vrot.slane %v8941_v24, 2  ;;  %v10575_v0 = vrot.slane %v8958_v15, 1  ;;  %v6003_v59 = vld [vmem:[%s6487_s6 + $0x240] sm:$0xfe] }
 0x1cb   : > { %v1918_v57 = vadd.f32 %v1760_v53, %v1200_v6  ;;  %v5295_v9 = vrot.slane %v5060_v48, 2  ;;  %5784 = vst [vmem:[%s6726_s15 + $0x148] sm:$0xff] %v5720_v32  ;;  %v4019_v51 = vadd.f32 %v3955_v55, %v3685_v49  ;;  %v806_v26 = vmul.f32 %v6493_v12, %v633_v50 }
 0x1cc   : > { %v2811_v60 = vsel %vm932_vm0, %v10573_v8, %v2810_v35  ;;  %v3528_v25 = vsel %vm1650_vm1, %v10574_v31, %v3527_v28  ;;  %v4579_v30 = vsel %vm932_vm0, %v10575_v0, %v4578_v58  ;;  %v9059_v27 = vmul.f32 %v8653_v52, %v6493_v12  ;;  %v6262_v28 = vld [vmem:[%s6487_s6 + $0x270] sm:$0xfe] }
 0x1cd   : > { %v2252_v7 = vadd.f32 %v2188_v40, %v1918_v57  ;;  %v419_v24 = vmul.f32 %v8663_v10, %v6490_v11  ;;  %v1524_v44 = vmul.f32 %v6496_v13, %v1351_v42  ;;  %v9067_v15 = vmul.f32 %v8653_v52, %v6496_v13  ;;  %v6359_v8 = vld [vmem:[%s6487_s6 + $0x270] sm:$0xfc] }
 0x1ce   : > { %v2189_v55 = vmul.f32 %v8887_v62, %v6507_v18  ;;  %v4736_v38 = vadd.f32 %v4577_v54, %v4019_v51  ;;  %v1043_v40 = vrot.slane %v806_v26, 1  ;;  %v10342_v63 = vrot.slane %v9059_v27, 1  ;;  %v9101_v51 = vld [vmem:[%s6487_s6 + $0x280] sm:$0xff] }
 0x1cf   : > { %v2969_v43 = vadd.f32 %v2811_v60, %v2252_v7  ;;  %v1761_v23 = vrot.slane %v1524_v44, 2  ;;  %v10341_v37 = vrot.slane %v9067_v15, 2  ;;  %v2576_v10 = vmul.f32 %v6003_v59, %v6510_v19  ;;  %v634_v44 = vld [vmem:[%s6487_s6 + $0x218] sm:$0xfe] }
 0x1d0   : > { %v9077_v6 = vmul.f32 %v8877_v29, %v6510_v19  ;;  %v5453_v35 = vadd.f32 %v5294_v16, %v4736_v38  ;;  %v1045_v54 = vsel %vm932_vm0, %v1043_v40, %v10342_v63  ;;  %v3293_v53 = vmul.f32 %v6100_v61, %v6513_v20  ;;  %v9111_v61 = vld [vmem:[%s6487_s6 + $0x270] sm:$0xff] }
 0x1d1   : > { %v3686_v36 = vadd.f32 %v3528_v25, %v2969_v43  ;;  %v1201_v58 = vadd.f32 %v1045_v54, %v419_v24  ;;  %v1763_v48 = vsel %vm1650_vm1, %v1761_v23, %v10341_v37  ;;  %v2812_v50 = vrot.slane %v2576_v10, 1  ;;  %v1352_v23 = vld [vmem:[%s6487_s6 + $0x218] sm:$0xfc]  ;;  %v6104_v37 = vld [vmem:[%s6487_s6 + $0x260] sm:$0x3] }
 0x1d2   : > { %v10338_v32 = vrot.slane %v9077_v6, 1  ;;  %v5657_v16 = vadd.f32 %v6598_v22, %v5453_v35  ;;  %v9091_v57 = vmul.f32 %v8877_v29, %v6513_v20  ;;  %v3529_v42 = vrot.slane %v3293_v53, 2  ;;  %v6266_v63 = vld [vmem:[%s6487_s6 + $0x290] sm:$0x1] }
 0x1d3   : > { %v4020_v49 = vadd.f32 %v3956_v3, %v3686_v36  ;;  %v10576_v60 = vrot.slane %v8970_v39, 2  ;;  %v1919_v25 = vadd.f32 %v1763_v48, %v1201_v58  ;;  %v10577_v3 = vld [vmem:[#allocation3_spill] sm:$0xff]  ;;  %v5061_v43 = vmul.f32 %v6359_v8, %v6538_v33  ;;  %v10578_v48 = vld [vmem:[#allocation5_spill] sm:$0xff] }
 0x1d4   : > { %v2814_v0 = vsel %vm932_vm0, %v2812_v50, %v10338_v32  ;;  %v4344_v7 = vmul.f32 %v6262_v28, %v10577_v3  ;;  %v5721_v26 = vmax.f32 %v5657_v16, 0.0  ;;  %v10337_v24 = vrot.slane %v9091_v57, 2  ;;  %v9178_v32 = vld [vmem:[%s6487_s6 + $0x278] sm:$0xff] }
 0x1d5   : > { %v5296_v31 = vsel %vm1650_vm1, %v10576_v60, %v5295_v9  ;;  %v4737_v59 = vadd.f32 %v4579_v30, %v4020_v49  ;;  %v9107_v39 = vmul.f32 %v9101_v51, %v10577_v3  ;;  %v2253_v9 = vadd.f32 %v2189_v55, %v1919_v25  ;;  %10580 = vst [vmem:[#allocation5_spill] sm:$0xff] %v9178_v32 }
 0x1d6   : > { %v4580_v38 = vrot.slane %v4344_v7, 1  ;;  %v9116_v40 = vmul.f32 %v9101_v51, %v6538_v33  ;;  %5785 = vst [vmem:[%s6726_s15 + $0x150] sm:$0xff] %v5721_v26  ;;  %v3531_v10 = vsel %vm1650_vm1, %v3529_v42, %v10337_v24  ;;  %v3957_v55 = vmul.f32 %v9111_v61, %v6516_v21  ;;  %v6004_v42 = vld [vmem:[%s6487_s6 + $0x248] sm:$0xfe] }
 0x1d7   : > { %v5454_v30 = vadd.f32 %v5296_v31, %v4737_v59  ;;  %v10336_v35 = vrot.slane %v9107_v39, 1  ;;  %v2970_v36 = vadd.f32 %v2814_v0, %v2253_v9  ;;  %v5297_v54 = vrot.slane %v5061_v43, 2  ;;  %v6101_v0 = vld [vmem:[%s6487_s6 + $0x248] sm:$0xfc] }
 0x1d8   : > { %v10335_v53 = vrot.slane %v9116_v40, 2  ;;  %v807_v28 = vmul.f32 %v6625_v41, %v634_v44  ;;  %v420_v50 = vmul.f32 %v10578_v48, %v6621_v4  ;;  %v9133_v16 = vmul.f32 %v8726_v14, %v6625_v41 }
 0x1d9   : > { %v5658_v58 = vadd.f32 %v6740_v47, %v5454_v30  ;;  %v1525_v49 = vmul.f32 %v6629_v17, %v1352_v23  ;;  %v3687_v8 = vadd.f32 %v3531_v10, %v2970_v36  ;;  %v4582_v60 = vsel %vm932_vm0, %v4580_v38, %v10336_v35  ;;  %v6263_v30 = vld [vmem:[%s6487_s6 + $0x278] sm:$0xfe]  ;;  %v10579_v36 = vld [vmem:[#allocation4_spill] sm:$0xff] }
 0x1da   : > { %v1046_v31 = vrot.slane %v807_v28, 1  ;;  %v9142_v25 = vmul.f32 %v8726_v14, %v6629_v17  ;;  %v5299_v26 = vsel %vm1650_vm1, %v5297_v54, %v10335_v53  ;;  %v10334_v59 = vrot.slane %v9133_v16, 1 }
 0x1db   : > { %v5722_v7 = vmax.f32 %v5658_v58, 0.0  ;;  %v1764_v44 = vrot.slane %v1525_v49, 2  ;;  %v4021_v9 = vadd.f32 %v3957_v55, %v3687_v8  ;;  %v2577_v38 = vmul.f32 %v6004_v42, %v6641_v1  ;;  %v6360_v58 = vld [vmem:[%s6487_s6 + $0x278] sm:$0xfc] }
 0x1dc   : > { %v10340_v43 = vrot.slane %v9142_v25, 2  ;;  %v9153_v23 = vmul.f32 %v8950_v2, %v6641_v1  ;;  %v1048_v10 = vsel %vm932_vm0, %v1046_v31, %v10334_v59  ;;  %v2190_v54 = vmul.f32 %v10579_v36, %v6637_v46  ;;  %v1356_v36 = vld [vmem:[%s6487_s6 + $0x238] sm:$0x3] }
 0x1dd   : > { %5786 = vst [vmem:[%s6726_s15 + $0x158] sm:$0xff] %v5722_v7  ;;  %v3294_v55 = vmul.f32 %v6101_v0, %v6672_v34  ;;  %v9165_v28 = vmul.f32 %v8950_v2, %v6672_v34  ;;  %v4738_v48 = vadd.f32 %v4582_v60, %v4021_v9  ;;  %v1202_v49 = vadd.f32 %v1048_v10, %v420_v50  ;;  %v9174_v0 = vld [vmem:[%s6487_s6 + $0x288] sm:$0xff]  ;;  %v1355_v9 = vld [vmem:[%s6487_s6 + $0x230] sm:$0x3] }
 0x1de   : > { %v1766_v42 = vsel %vm1650_vm1, %v1764_v44, %v10340_v43  ;;  %v2815_v8 = vrot.slane %v2577_v38, 1  ;;  %v10339_v31 = vrot.slane %v9153_v23, 1  ;;  %v4345_v53 = vmul.f32 %v6263_v30, %v6686_v5  ;;  %v637_v44 = vld [vmem:[%s6487_s6 + $0x230] sm:$0x1] }
 0x1df   : > { %v3532_v7 = vrot.slane %v3294_v55, 2  ;;  %v10345_v59 = vrot.slane %v9165_v28, 2  ;;  %v5455_v35 = vadd.f32 %v5299_v26, %v4738_v48  ;;  %v1920_v24 = vadd.f32 %v1766_v42, %v1202_v49  ;;  %v6007_v42 = vld [vmem:[%s6487_s6 + $0x260] sm:$0x1] }
 0x1e0   : > { %v9182_v50 = vmul.f32 %v9174_v0, %v6686_v5  ;;  %v5062_v60 = vmul.f32 %v6360_v58, %v6718_v45  ;;  %v2817_v38 = vsel %vm932_vm0, %v2815_v8, %v10339_v31  ;;  %v3958_v26 = vmul.f32 %v9178_v32, %v6682_v56  ;;  %v6363_v32 = vld [vmem:[%s6487_s6 + $0x290] sm:$0x3] }
 0x1e1   : > { %v4583_v30 = vrot.slane %v4345_v53, 1  ;;  %v9194_v10 = vmul.f32 %v9174_v0, %v6718_v45  ;;  %v5659_v55 = vadd.f32 %v6598_v22, %v5455_v35  ;;  %v2254_v58 = vadd.f32 %v2190_v54, %v1920_v24 }
 0x1e2   : > { %v10346_v48 = vrot.slane %v9182_v50, 1  ;;  %v5300_v49 = vrot.slane %v5062_v60, 2  ;;  %v3534_v8 = vsel %vm1650_vm1, %v3532_v7, %v10345_v59  ;;  %v810_v53 = vmul.f32 %v6493_v12, %v637_v44 }
 0x1e3   : > { %v1528_v43 = vmul.f32 %v6496_v13, %v1355_v9  ;;  %v5723_v35 = vmax.f32 %v5659_v55, 0.0  ;;  %v2971_v24 = vadd.f32 %v2817_v38, %v2254_v58  ;;  %v421_v60 = vmul.f32 %v8653_v52, %v6490_v11  ;;  %v638_v58 = vld [vmem:[%s6487_s6 + $0x238] sm:$0x1] }
 0x1e4   : > { %v4585_v54 = vsel %vm932_vm0, %v4583_v30, %v10346_v48  ;;  %v1049_v7 = vrot.slane %v810_v53, 1  ;;  %v2191_v44 = vmul.f32 %v8877_v29, %v6507_v18  ;;  %v2580_v9 = vmul.f32 %v6007_v42, %v6510_v19 }
 0x1e5   : > { %v1767_v59 = vrot.slane %v1528_v43, 2  ;;  %5787 = vst [vmem:[%s6726_s15 + $0x160] sm:$0xff] %v5723_v35  ;;  %v3688_v31 = vadd.f32 %v3534_v8, %v2971_v24  ;;  %v10581_v38 = vrot.slane %v9194_v10, 2  ;;  %v3297_v30 = vmul.f32 %v6104_v37, %v6513_v20 }
 0x1e6   : > { %v4348_v52 = vmul.f32 %v6266_v63, %v10577_v3  ;;  %v10582_v43 = vrot.slane %v9059_v27, 1  ;;  %v10583_v48 = vrot.slane %v9067_v15, 2  ;;  %v2818_v8 = vrot.slane %v2580_v9, 1 }
 0x1e7   : > { %v5302_v55 = vsel %vm1650_vm1, %v5300_v49, %v10581_v38  ;;  %v5065_v35 = vmul.f32 %v6363_v32, %v6538_v33  ;;  %v4022_v49 = vadd.f32 %v3958_v26, %v3688_v31  ;;  %v3535_v37 = vrot.slane %v3297_v30, 2 }
 0x1e8   : > { %v1050_v53 = vsel %vm932_vm0, %v10582_v43, %v1049_v7  ;;  %v1768_v42 = vsel %vm1650_vm1, %v10583_v48, %v1767_v59  ;;  %v4586_v38 = vrot.slane %v4348_v52, 1  ;;  %v10584_v63 = vrot.slane %v9077_v6, 1  ;;  %v6008_v59 = vld [vmem:[%s6487_s6 + $0x268] sm:$0x1] }
 0x1e9   : > { %v1203_v24 = vadd.f32 %v1050_v53, %v421_v60  ;;  %v3959_v27 = vmul.f32 %v9101_v51, %v6516_v21  ;;  %v5303_v7 = vrot.slane %v5065_v35, 2  ;;  %v811_v15 = vmul.f32 %v6625_v41, %v638_v58  ;;  %v6105_v48 = vld [vmem:[%s6487_s6 + $0x268] sm:$0x3]  ;;  %v6267_v60 = vld [vmem:[%s6487_s6 + $0x298] sm:$0x1] }
 0x1ea   : > { %v2819_v3 = vsel %vm932_vm0, %v10584_v63, %v2818_v8  ;;  %v4739_v32 = vadd.f32 %v4585_v54, %v4022_v49  ;;  %v10585_v31 = vrot.slane %v9091_v57, 2  ;;  %v422_v6 = vmul.f32 %v8726_v14, %v6621_v4  ;;  %v6364_v14 = vld [vmem:[%s6487_s6 + $0x298] sm:$0x3] }
 0x1eb   : > { %v1921_v9 = vadd.f32 %v1768_v42, %v1203_v24  ;;  %v10586_v30 = vrot.slane %v9107_v39, 1  ;;  %v10587_v43 = vrot.slane %v9116_v40, 2  ;;  %v1051_v53 = vrot.slane %v811_v15, 1 }
 0x1ec   : > { %v3536_v26 = vsel %vm1650_vm1, %v10585_v31, %v3535_v37  ;;  %v1529_v54 = vmul.f32 %v6629_v17, %v1356_v36  ;;  %v5456_v42 = vadd.f32 %v5302_v55, %v4739_v32  ;;  %v2581_v57 = vmul.f32 %v6008_v59, %v6641_v1 }
 0x1ed   : > { %v4587_v52 = vsel %vm932_vm0, %v10586_v30, %v4586_v38  ;;  %v5304_v58 = vsel %vm1650_vm1, %v10587_v43, %v5303_v7  ;;  %v2255_v8 = vadd.f32 %v2191_v44, %v1921_v9  ;;  %v3298_v35 = vmul.f32 %v6105_v48, %v6672_v34  ;;  %v639_v48 = vld [vmem:[%s6487_s6 + $0x240] sm:$0xfe] }
 0x1ee   : > { %v10588_v49 = vrot.slane %v9133_v16, 1  ;;  %v1769_v24 = vrot.slane %v1529_v54, 2  ;;  %v2192_v40 = vmul.f32 %v8950_v2, %v6637_v46  ;;  %v4349_v37 = vmul.f32 %v6267_v60, %v6686_v5 }
 0x1ef   : > { %v5660_v36 = vadd.f32 %v6740_v47, %v5456_v42  ;;  %v2972_v44 = vadd.f32 %v2819_v3, %v2255_v8  ;;  %v2820_v38 = vrot.slane %v2581_v57, 1  ;;  %v10589_v63 = vrot.slane %v9142_v25, 2  ;;  %v1357_v3 = vld [vmem:[%s6487_s6 + $0x240] sm:$0xfc] }
 0x1f0   : > { %v1052_v39 = vsel %vm932_vm0, %v10588_v49, %v1051_v53  ;;  %v3537_v16 = vrot.slane %v3298_v35, 2  ;;  %v4588_v15 = vrot.slane %v4349_v37, 1  ;;  %v5066_v59 = vmul.f32 %v6364_v14, %v6718_v45  ;;  %v6106_v49 = vld [vmem:[%s6487_s6 + $0x270] sm:$0xfc] }
 0x1f1   : > { %v1204_v55 = vadd.f32 %v1052_v39, %v422_v6  ;;  %v1770_v7 = vsel %vm1650_vm1, %v10589_v63, %v1769_v24  ;;  %v5724_v32 = vmax.f32 %v5660_v36, 0.0  ;;  %v3689_v9 = vadd.f32 %v3536_v26, %v2972_v44 }
 0x1f2   : > { %v3960_v60 = vmul.f32 %v9174_v0, %v6682_v56  ;;  %v10590_v6 = vrot.slane %v9153_v23, 1  ;;  %v10591_v30 = vrot.slane %v9165_v28, 2  ;;  %v10592_v53 = vrot.slane %v9182_v50, 1  ;;  %v6009_v23 = vld [vmem:[%s6487_s6 + $0x270] sm:$0xfe] }
 0x1f3   : > { %v1922_v31 = vadd.f32 %v1770_v7, %v1204_v55  ;;  %v5305_v42 = vrot.slane %v5066_v59, 2  ;;  %5788 = vst [vmem:[%s6726_s15 + $0x168] sm:$0xff] %v5724_v32  ;;  %v4023_v26 = vadd.f32 %v3959_v27, %v3689_v9  ;;  %v812_v57 = vmul.f32 %v6493_v12, %v639_v48 }
 0x1f4   : > { %v2821_v25 = vsel %vm932_vm0, %v10590_v6, %v2820_v38  ;;  %v3538_v43 = vsel %vm1650_vm1, %v10591_v30, %v3537_v16  ;;  %v4589_v54 = vsel %vm932_vm0, %v10592_v53, %v4588_v15  ;;  %v9283_v35 = vmul.f32 %v8877_v29, %v6493_v12  ;;  %v6268_v16 = vld [vmem:[%s6487_s6 + $0x2a0] sm:$0xfe] }
 0x1f5   : > { %v2256_v8 = vadd.f32 %v2192_v40, %v1922_v31  ;;  %v423_v28 = vmul.f32 %v8887_v62, %v6490_v11  ;;  %v1530_v14 = vmul.f32 %v6496_v13, %v1357_v3  ;;  %v9291_v50 = vmul.f32 %v8877_v29, %v6496_v13  ;;  %v6365_v6 = vld [vmem:[%s6487_s6 + $0x2a0] sm:$0xfc] }
 0x1f6   : > { %v2193_v27 = vmul.f32 %v9111_v61, %v6507_v18  ;;  %v4740_v39 = vadd.f32 %v4587_v52, %v4023_v26  ;;  %v1053_v40 = vrot.slane %v812_v57, 1  ;;  %v10356_v37 = vrot.slane %v9283_v35, 1  ;;  %v9325_v26 = vld [vmem:[%s6487_s6 + $0x2b0] sm:$0xff] }
 0x1f7   : > { %v2973_v24 = vadd.f32 %v2821_v25, %v2256_v8  ;;  %v1771_v36 = vrot.slane %v1530_v14, 2  ;;  %v10355_v44 = vrot.slane %v9291_v50, 2  ;;  %v2582_v62 = vmul.f32 %v6009_v23, %v6510_v19  ;;  %v640_v14 = vld [vmem:[%s6487_s6 + $0x248] sm:$0xfe] }
 0x1f8   : > { %v9301_v55 = vmul.f32 %v9101_v51, %v6510_v19  ;;  %v5457_v38 = vadd.f32 %v5304_v58, %v4740_v39  ;;  %v1055_v52 = vsel %vm932_vm0, %v1053_v40, %v10356_v37  ;;  %v3299_v7 = vmul.f32 %v6106_v49, %v6513_v20  ;;  %v9335_v49 = vld [vmem:[%s6487_s6 + $0x2a0] sm:$0xff] }
 0x1f9   : > { %v3690_v63 = vadd.f32 %v3538_v43, %v2973_v24  ;;  %v1205_v15 = vadd.f32 %v1055_v52, %v423_v28  ;;  %v1773_v59 = vsel %vm1650_vm1, %v1771_v36, %v10355_v44  ;;  %v2822_v48 = vrot.slane %v2582_v62, 1  ;;  %v1358_v36 = vld [vmem:[%s6487_s6 + $0x248] sm:$0xfc]  ;;  %v6110_v44 = vld [vmem:[%s6487_s6 + $0x290] sm:$0x3] }
 0x1fa   : > { %v10352_v32 = vrot.slane %v9301_v55, 1  ;;  %v5661_v58 = vadd.f32 %v6598_v22, %v5457_v38  ;;  %v9315_v31 = vmul.f32 %v9101_v51, %v6513_v20  ;;  %v3539_v3 = vrot.slane %v3299_v7, 2  ;;  %v6272_v37 = vld [vmem:[%s6487_s6 + $0x2c0] sm:$0x1] }
 0x1fb   : > { %v4024_v9 = vadd.f32 %v3960_v60, %v3690_v63  ;;  %v10593_v25 = vrot.slane %v9194_v10, 2  ;;  %v1923_v43 = vadd.f32 %v1773_v59, %v1205_v15  ;;  %v10594_v60 = vld [vmem:[#allocation3_spill] sm:$0xff]  ;;  %v5067_v24 = vmul.f32 %v6365_v6, %v6538_v33  ;;  %v10595_v59 = vld [vmem:[#allocation4_spill] sm:$0xff] }
 0x1fc   : > { %v2824_v53 = vsel %vm932_vm0, %v2822_v48, %v10352_v32  ;;  %v4350_v8 = vmul.f32 %v6268_v16, %v10594_v60  ;;  %v5725_v57 = vmax.f32 %v5661_v58, 0.0  ;;  %v10351_v28 = vrot.slane %v9315_v31, 2  ;;  %v9402_v32 = vld [vmem:[%s6487_s6 + $0x2a8] sm:$0xff] }
 0x1fd   : > { %v5306_v30 = vsel %vm1650_vm1, %v10593_v25, %v5305_v42  ;;  %v4741_v23 = vadd.f32 %v4589_v54, %v4024_v9  ;;  %v9331_v10 = vmul.f32 %v9325_v26, %v10594_v60  ;;  %v2257_v42 = vadd.f32 %v2193_v27, %v1923_v43  ;;  %10597 = vst [vmem:[#allocation4_spill] sm:$0xff] %v9402_v32 }
 0x1fe   : > { %v4590_v39 = vrot.slane %v4350_v8, 1  ;;  %v9340_v40 = vmul.f32 %v9325_v26, %v6538_v33  ;;  %5789 = vst [vmem:[%s6726_s15 + $0x170] sm:$0xff] %v5725_v57  ;;  %v3541_v62 = vsel %vm1650_vm1, %v3539_v3, %v10351_v28  ;;  %v3961_v27 = vmul.f32 %v9335_v49, %v6516_v21  ;;  %v6010_v3 = vld [vmem:[%s6487_s6 + $0x278] sm:$0xfe] }
 0x1ff   : > { %v5458_v54 = vadd.f32 %v5306_v30, %v4741_v23  ;;  %v10350_v38 = vrot.slane %v9331_v10, 1  ;;  %v2974_v63 = vadd.f32 %v2824_v53, %v2257_v42  ;;  %v5307_v52 = vrot.slane %v5067_v24, 2  ;;  %v6107_v53 = vld [vmem:[%s6487_s6 + $0x278] sm:$0xfc] }
 0x200   : > { %v10349_v7 = vrot.slane %v9340_v40, 2  ;;  %v813_v16 = vmul.f32 %v6625_v41, %v640_v14  ;;  %v424_v48 = vmul.f32 %v10595_v59, %v6621_v4  ;;  %v9357_v58 = vmul.f32 %v8950_v2, %v6625_v41 }
 0x201   : > { %v5662_v15 = vadd.f32 %v6740_v47, %v5458_v54  ;;  %v1531_v9 = vmul.f32 %v6629_v17, %v1358_v36  ;;  %v3691_v6 = vadd.f32 %v3541_v62, %v2974_v63  ;;  %v4592_v25 = vsel %vm932_vm0, %v4590_v39, %v10350_v38  ;;  %v6269_v54 = vld [vmem:[%s6487_s6 + $0x2a8] sm:$0xfe]  ;;  %v10596_v63 = vld [vmem:[#allocation5_spill] sm:$0xff] }
 0x202   : > { %v1056_v30 = vrot.slane %v813_v16, 1  ;;  %v9366_v43 = vmul.f32 %v8950_v2, %v6629_v17  ;;  %v5309_v57 = vsel %vm1650_vm1, %v5307_v52, %v10349_v7  ;;  %v10348_v23 = vrot.slane %v9357_v58, 1 }
 0x203   : > { %v5726_v8 = vmax.f32 %v5662_v15, 0.0  ;;  %v1774_v14 = vrot.slane %v1531_v9, 2  ;;  %v4025_v42 = vadd.f32 %v3961_v27, %v3691_v6  ;;  %v2583_v39 = vmul.f32 %v6010_v3, %v6641_v1  ;;  %v6366_v15 = vld [vmem:[%s6487_s6 + $0x2a8] sm:$0xfc] }
 0x204   : > { %v10354_v24 = vrot.slane %v9366_v43, 2  ;;  %v9377_v36 = vmul.f32 %v9174_v0, %v6641_v1  ;;  %v1058_v62 = vsel %vm932_vm0, %v1056_v30, %v10348_v23  ;;  %v2194_v52 = vmul.f32 %v10596_v63, %v6637_v46  ;;  %v1362_v63 = vld [vmem:[%s6487_s6 + $0x268] sm:$0x3] }
 0x205   : > { %5790 = vst [vmem:[%s6726_s15 + $0x178] sm:$0xff] %v5726_v8  ;;  %v3300_v27 = vmul.f32 %v6107_v53, %v6672_v34  ;;  %v9389_v16 = vmul.f32 %v9174_v0, %v6672_v34  ;;  %v4742_v59 = vadd.f32 %v4592_v25, %v4025_v42  ;;  %v1206_v9 = vadd.f32 %v1058_v62, %v424_v48  ;;  %v9398_v53 = vld [vmem:[%s6487_s6 + $0x2b8] sm:$0xff]  ;;  %v1361_v42 = vld [vmem:[%s6487_s6 + $0x260] sm:$0x3] }
 0x206   : > { %v1776_v3 = vsel %vm1650_vm1, %v1774_v14, %v10354_v24  ;;  %v2825_v6 = vrot.slane %v2583_v39, 1  ;;  %v10353_v30 = vrot.slane %v9377_v36, 1  ;;  %v4351_v7 = vmul.f32 %v6269_v54, %v6686_v5  ;;  %v643_v14 = vld [vmem:[%s6487_s6 + $0x260] sm:$0x1] }
 0x207   : > { %v3542_v8 = vrot.slane %v3300_v27, 2  ;;  %v10359_v23 = vrot.slane %v9389_v16, 2  ;;  %v5459_v38 = vadd.f32 %v5309_v57, %v4742_v59  ;;  %v1924_v28 = vadd.f32 %v1776_v3, %v1206_v9  ;;  %v6013_v3 = vld [vmem:[%s6487_s6 + $0x290] sm:$0x1] }
 0x208   : > { %v9406_v48 = vmul.f32 %v9398_v53, %v6686_v5  ;;  %v5068_v25 = vmul.f32 %v6366_v15, %v6718_v45  ;;  %v2827_v39 = vsel %vm932_vm0, %v2825_v6, %v10353_v30  ;;  %v3962_v57 = vmul.f32 %v9402_v32, %v6682_v56  ;;  %v6369_v32 = vld [vmem:[%s6487_s6 + $0x2c0] sm:$0x3] }
 0x209   : > { %v4593_v54 = vrot.slane %v4351_v7, 1  ;;  %v9418_v62 = vmul.f32 %v9398_v53, %v6718_v45  ;;  %v5663_v27 = vadd.f32 %v6598_v22, %v5459_v38  ;;  %v2258_v15 = vadd.f32 %v2194_v52, %v1924_v28 }
 0x20a   : > { %v10360_v59 = vrot.slane %v9406_v48, 1  ;;  %v5310_v9 = vrot.slane %v5068_v25, 2  ;;  %v3544_v6 = vsel %vm1650_vm1, %v3542_v8, %v10359_v23  ;;  %v816_v7 = vmul.f32 %v6493_v12, %v643_v14 }
 0x20b   : > { %v1534_v24 = vmul.f32 %v6496_v13, %v1361_v42  ;;  %v5727_v38 = vmax.f32 %v5663_v27, 0.0  ;;  %v2975_v28 = vadd.f32 %v2827_v39, %v2258_v15  ;;  %v425_v25 = vmul.f32 %v8877_v29, %v6490_v11  ;;  %v644_v15 = vld [vmem:[%s6487_s6 + $0x268] sm:$0x1] }
 0x20c   : > { %v4595_v52 = vsel %vm932_vm0, %v4593_v54, %v10360_v59  ;;  %v1059_v8 = vrot.slane %v816_v7, 1  ;;  %v2195_v14 = vmul.f32 %v9101_v51, %v6507_v18  ;;  %v2586_v42 = vmul.f32 %v6013_v3, %v6510_v19 }
 0x20d   : > { %v1777_v23 = vrot.slane %v1534_v24, 2  ;;  %5791 = vst [vmem:[%s6726_s15 + $0x180] sm:$0xff] %v5727_v38  ;;  %v3692_v30 = vadd.f32 %v3544_v6, %v2975_v28  ;;  %v10598_v39 = vrot.slane %v9418_v62, 2  ;;  %v3303_v54 = vmul.f32 %v6110_v44, %v6513_v20 }
 0x20e   : > { %v4354_v29 = vmul.f32 %v6272_v37, %v10594_v60  ;;  %v10599_v24 = vrot.slane %v9283_v35, 1  ;;  %v10600_v59 = vrot.slane %v9291_v50, 2  ;;  %v2828_v6 = vrot.slane %v2586_v42, 1 }
 0x20f   : > { %v5312_v27 = vsel %vm1650_vm1, %v5310_v9, %v10598_v39  ;;  %v5071_v38 = vmul.f32 %v6369_v32, %v6538_v33  ;;  %v4026_v9 = vadd.f32 %v3962_v57, %v3692_v30  ;;  %v3545_v44 = vrot.slane %v3303_v54, 2 }
 0x210   : > { %v1060_v7 = vsel %vm932_vm0, %v10599_v24, %v1059_v8  ;;  %v1778_v3 = vsel %vm1650_vm1, %v10600_v59, %v1777_v23  ;;  %v4596_v39 = vrot.slane %v4354_v29, 1  ;;  %v10601_v37 = vrot.slane %v9301_v55, 1  ;;  %v6014_v23 = vld [vmem:[%s6487_s6 + $0x298] sm:$0x1] }
 0x211   : > { %v1207_v28 = vadd.f32 %v1060_v7, %v425_v25  ;;  %v3963_v35 = vmul.f32 %v9325_v26, %v6516_v21  ;;  %v5313_v8 = vrot.slane %v5071_v38, 2  ;;  %v817_v50 = vmul.f32 %v6625_v41, %v644_v15  ;;  %v6111_v59 = vld [vmem:[%s6487_s6 + $0x298] sm:$0x3]  ;;  %v6273_v25 = vld [vmem:[%s6487_s6 + $0x2c8] sm:$0x1] }
 0x212   : > { %v2829_v60 = vsel %vm932_vm0, %v10601_v37, %v2828_v6  ;;  %v4743_v32 = vadd.f32 %v4595_v52, %v4026_v9  ;;  %v10602_v30 = vrot.slane %v9315_v31, 2  ;;  %v426_v55 = vmul.f32 %v8950_v2, %v6621_v4  ;;  %v6370_v2 = vld [vmem:[%s6487_s6 + $0x2c8] sm:$0x3] }
 0x213   : > { %v1925_v42 = vadd.f32 %v1778_v3, %v1207_v28  ;;  %v10603_v54 = vrot.slane %v9331_v10, 1  ;;  %v10604_v24 = vrot.slane %v9340_v40, 2  ;;  %v1061_v7 = vrot.slane %v817_v50, 1 }
 0x214   : > { %v3546_v57 = vsel %vm1650_vm1, %v10602_v30, %v3545_v44  ;;  %v1535_v52 = vmul.f32 %v6629_v17, %v1362_v63  ;;  %v5460_v3 = vadd.f32 %v5312_v27, %v4743_v32  ;;  %v2587_v31 = vmul.f32 %v6014_v23, %v6641_v1 }
 0x215   : > { %v4597_v29 = vsel %vm932_vm0, %v10603_v54, %v4596_v39  ;;  %v5314_v15 = vsel %vm1650_vm1, %v10604_v24, %v5313_v8  ;;  %v2259_v6 = vadd.f32 %v2195_v14, %v1925_v42  ;;  %v3304_v38 = vmul.f32 %v6111_v59, %v6672_v34  ;;  %v645_v59 = vld [vmem:[%s6487_s6 + $0x270] sm:$0xfe] }
 0x216   : > { %v10605_v9 = vrot.slane %v9357_v58, 1  ;;  %v1779_v28 = vrot.slane %v1535_v52, 2  ;;  %v2196_v40 = vmul.f32 %v9174_v0, %v6637_v46  ;;  %v4355_v44 = vmul.f32 %v6273_v25, %v6686_v5 }
 0x217   : > { %v5664_v63 = vadd.f32 %v6740_v47, %v5460_v3  ;;  %v2976_v14 = vadd.f32 %v2829_v60, %v2259_v6  ;;  %v2830_v39 = vrot.slane %v2587_v31, 1  ;;  %v10606_v37 = vrot.slane %v9366_v43, 2  ;;  %v1363_v60 = vld [vmem:[%s6487_s6 + $0x270] sm:$0xfc] }
 0x218   : > { %v1062_v10 = vsel %vm932_vm0, %v10605_v9, %v1061_v7  ;;  %v3547_v58 = vrot.slane %v3304_v38, 2  ;;  %v4598_v50 = vrot.slane %v4355_v44, 1  ;;  %v5072_v23 = vmul.f32 %v6370_v2, %v6718_v45  ;;  %v6112_v9 = vld [vmem:[%s6487_s6 + $0x2a0] sm:$0xfc] }
 0x219   : > { %v1208_v27 = vadd.f32 %v1062_v10, %v426_v55  ;;  %v1780_v8 = vsel %vm1650_vm1, %v10606_v37, %v1779_v28  ;;  %v5728_v32 = vmax.f32 %v5664_v63, 0.0  ;;  %v3693_v42 = vadd.f32 %v3546_v57, %v2976_v14 }
 0x21a   : > { %v3964_v25 = vmul.f32 %v9398_v53, %v6682_v56  ;;  %v10607_v55 = vrot.slane %v9377_v36, 1  ;;  %v10608_v54 = vrot.slane %v9389_v16, 2  ;;  %v10609_v7 = vrot.slane %v9406_v48, 1  ;;  %v6015_v36 = vld [vmem:[%s6487_s6 + $0x2a0] sm:$0xfe] }
 0x21b   : > { %v1926_v30 = vadd.f32 %v1780_v8, %v1208_v27  ;;  %v5315_v3 = vrot.slane %v5072_v23, 2  ;;  %5792 = vst [vmem:[%s6726_s15 + $0x188] sm:$0xff] %v5728_v32  ;;  %v4027_v57 = vadd.f32 %v3963_v35, %v3693_v42  ;;  %v818_v31 = vmul.f32 %v6493_v12, %v645_v59 }
 0x21c   : > { %v2831_v43 = vsel %vm932_vm0, %v10607_v55, %v2830_v39  ;;  %v3548_v24 = vsel %vm1650_vm1, %v10608_v54, %v3547_v58  ;;  %v4599_v52 = vsel %vm932_vm0, %v10609_v7, %v4598_v50  ;;  %v9507_v38 = vmul.f32 %v9101_v51, %v6493_v12  ;;  %v6274_v58 = vld [vmem:[%s6487_s6 + $0x2d0] sm:$0xfe] }
 0x21d   : > { %v2260_v6 = vadd.f32 %v2196_v40, %v1926_v30  ;;  %v427_v16 = vmul.f32 %v9111_v61, %v6490_v11  ;;  %v1536_v2 = vmul.f32 %v6496_v13, %v1363_v60  ;;  %v9515_v48 = vmul.f32 %v9101_v51, %v6496_v13  ;;  %v6371_v55 = vld [vmem:[%s6487_s6 + $0x2d0] sm:$0xfc] }
 0x21e   : > { %v2197_v35 = vmul.f32 %v9335_v49, %v6507_v18  ;;  %v4744_v10 = vadd.f32 %v4597_v29, %v4027_v57  ;;  %v1063_v40 = vrot.slane %v818_v31, 1  ;;  %v10370_v44 = vrot.slane %v9507_v38, 1  ;;  %v9549_v57 = vld [vmem:[%s6487_s6 + $0x2e0] sm:$0xff] }
 0x21f   : > { %v2977_v28 = vadd.f32 %v2831_v43, %v2260_v6  ;;  %v1781_v63 = vrot.slane %v1536_v2, 2  ;;  %v10369_v14 = vrot.slane %v9515_v48, 2  ;;  %v2588_v61 = vmul.f32 %v6015_v36, %v6510_v19  ;;  %v646_v2 = vld [vmem:[%s6487_s6 + $0x278] sm:$0xfe] }
 0x220   : > { %v9525_v27 = vmul.f32 %v9325_v26, %v6510_v19  ;;  %v5461_v39 = vadd.f32 %v5314_v15, %v4744_v10  ;;  %v1065_v29 = vsel %vm932_vm0, %v1063_v40, %v10370_v44  ;;  %v3305_v8 = vmul.f32 %v6112_v9, %v6513_v20  ;;  %v9559_v9 = vld [vmem:[%s6487_s6 + $0x2d0] sm:$0xff] }
 0x221   : > { %v3694_v37 = vadd.f32 %v3548_v24, %v2977_v28  ;;  %v1209_v50 = vadd.f32 %v1065_v29, %v427_v16  ;;  %v1783_v23 = vsel %vm1650_vm1, %v1781_v63, %v10369_v14  ;;  %v2832_v59 = vrot.slane %v2588_v61, 1  ;;  %v1364_v63 = vld [vmem:[%s6487_s6 + $0x278] sm:$0xfc]  ;;  %v6116_v14 = vld [vmem:[%s6487_s6 + $0x2c0] sm:$0x3] }
 0x222   : > { %v10366_v32 = vrot.slane %v9525_v27, 1  ;;  %v5665_v15 = vadd.f32 %v6598_v22, %v5461_v39  ;;  %v9539_v30 = vmul.f32 %v9325_v26, %v6513_v20  ;;  %v3549_v60 = vrot.slane %v3305_v8, 2  ;;  %v6278_v44 = vld [vmem:[%s6487_s6 + $0x2f0] sm:$0x1] }
 0x223   : > { %v4028_v42 = vadd.f32 %v3964_v25, %v3694_v37  ;;  %v10610_v43 = vrot.slane %v9418_v62, 2  ;;  %v1927_v24 = vadd.f32 %v1783_v23, %v1209_v50  ;;  %v10611_v25 = vld [vmem:[#allocation3_spill] sm:$0xff]  ;;  %v5073_v28 = vmul.f32 %v6371_v55, %v6538_v33  ;;  %v10612_v23 = vld [vmem:[#allocation5_spill] sm:$0xff] }
 0x224   : > { %v2834_v7 = vsel %vm932_vm0, %v2832_v59, %v10366_v32  ;;  %v4356_v6 = vmul.f32 %v6274_v58, %v10611_v25  ;;  %v5729_v31 = vmax.f32 %v5665_v15, 0.0  ;;  %v10365_v16 = vrot.slane %v9539_v30, 2  ;;  %v9626_v32 = vld [vmem:[%s6487_s6 + $0x2d8] sm:$0xff] }
 0x225   : > { %v5316_v54 = vsel %vm1650_vm1, %v10610_v43, %v5315_v3  ;;  %v4745_v36 = vadd.f32 %v4599_v52, %v4028_v42  ;;  %v9555_v62 = vmul.f32 %v9549_v57, %v10611_v25  ;;  %v2261_v3 = vadd.f32 %v2197_v35, %v1927_v24  ;;  %10614 = vst [vmem:[#allocation5_spill] sm:$0xff] %v9626_v32 }
 0x226   : > { %v4600_v10 = vrot.slane %v4356_v6, 1  ;;  %v9564_v40 = vmul.f32 %v9549_v57, %v6538_v33  ;;  %5793 = vst [vmem:[%s6726_s15 + $0x190] sm:$0xff] %v5729_v31  ;;  %v3551_v61 = vsel %vm1650_vm1, %v3549_v60, %v10365_v16  ;;  %v3965_v35 = vmul.f32 %v9559_v9, %v6516_v21  ;;  %v6016_v60 = vld [vmem:[%s6487_s6 + $0x2a8] sm:$0xfe] }
 0x227   : > { %v5462_v52 = vadd.f32 %v5316_v54, %v4745_v36  ;;  %v10364_v39 = vrot.slane %v9555_v62, 1  ;;  %v2978_v37 = vadd.f32 %v2834_v7, %v2261_v3  ;;  %v5317_v29 = vrot.slane %v5073_v28, 2  ;;  %v6113_v7 = vld [vmem:[%s6487_s6 + $0x2a8] sm:$0xfc] }
 0x228   : > { %v10363_v8 = vrot.slane %v9564_v40, 2  ;;  %v819_v58 = vmul.f32 %v6625_v41, %v646_v2  ;;  %v428_v59 = vmul.f32 %v10612_v23, %v6621_v4  ;;  %v9581_v15 = vmul.f32 %v9174_v0, %v6625_v41 }
 0x229   : > { %v5666_v50 = vadd.f32 %v6740_v47, %v5462_v52  ;;  %v1537_v42 = vmul.f32 %v6629_v17, %v1364_v63  ;;  %v3695_v55 = vadd.f32 %v3551_v61, %v2978_v37  ;;  %v4602_v43 = vsel %vm932_vm0, %v4600_v10, %v10364_v39  ;;  %v6275_v52 = vld [vmem:[%s6487_s6 + $0x2d8] sm:$0xfe]  ;;  %v10613_v37 = vld [vmem:[#allocation4_spill] sm:$0xff] }
 0x22a   : > { %v1066_v54 = vrot.slane %v819_v58, 1  ;;  %v9590_v24 = vmul.f32 %v9174_v0, %v6629_v17  ;;  %v5319_v31 = vsel %vm1650_vm1, %v5317_v29, %v10363_v8  ;;  %v10362_v36 = vrot.slane %v9581_v15, 1 }
 0x22b   : > { %v5730_v6 = vmax.f32 %v5666_v50, 0.0  ;;  %v1784_v2 = vrot.slane %v1537_v42, 2  ;;  %v4029_v3 = vadd.f32 %v3965_v35, %v3695_v55  ;;  %v2589_v10 = vmul.f32 %v6016_v60, %v6641_v1  ;;  %v6372_v50 = vld [vmem:[%s6487_s6 + $0x2d8] sm:$0xfc] }
 0x22c   : > { %v10368_v28 = vrot.slane %v9590_v24, 2  ;;  %v9601_v63 = vmul.f32 %v9398_v53, %v6641_v1  ;;  %v1068_v61 = vsel %vm932_vm0, %v1066_v54, %v10362_v36  ;;  %v2198_v29 = vmul.f32 %v10613_v37, %v6637_v46  ;;  %v1368_v37 = vld [vmem:[%s6487_s6 + $0x298] sm:$0x3] }
 0x22d   : > { %5794 = vst [vmem:[%s6726_s15 + $0x198] sm:$0xff] %v5730_v6  ;;  %v3306_v35 = vmul.f32 %v6113_v7, %v6672_v34  ;;  %v9613_v58 = vmul.f32 %v9398_v53, %v6672_v34  ;;  %v4746_v23 = vadd.f32 %v4602_v43, %v4029_v3  ;;  %v1210_v42 = vadd.f32 %v1068_v61, %v428_v59  ;;  %v9622_v7 = vld [vmem:[%s6487_s6 + $0x2e8] sm:$0xff]  ;;  %v1367_v3 = vld [vmem:[%s6487_s6 + $0x290] sm:$0x3] }
 0x22e   : > { %v1786_v60 = vsel %vm1650_vm1, %v1784_v2, %v10368_v28  ;;  %v2835_v55 = vrot.slane %v2589_v10, 1  ;;  %v10367_v54 = vrot.slane %v9601_v63, 1  ;;  %v4357_v8 = vmul.f32 %v6275_v52, %v6686_v5  ;;  %v649_v2 = vld [vmem:[%s6487_s6 + $0x290] sm:$0x1] }
 0x22f   : > { %v3552_v6 = vrot.slane %v3306_v35, 2  ;;  %v10373_v36 = vrot.slane %v9613_v58, 2  ;;  %v5463_v39 = vadd.f32 %v5319_v31, %v4746_v23  ;;  %v1928_v16 = vadd.f32 %v1786_v60, %v1210_v42  ;;  %v6019_v60 = vld [vmem:[%s6487_s6 + $0x2c0] sm:$0x1] }
 0x230   : > { %v9630_v59 = vmul.f32 %v9622_v7, %v6686_v5  ;;  %v5074_v43 = vmul.f32 %v6372_v50, %v6718_v45  ;;  %v2837_v10 = vsel %vm932_vm0, %v2835_v55, %v10367_v54  ;;  %v3966_v31 = vmul.f32 %v9626_v32, %v6682_v56  ;;  %v6375_v32 = vld [vmem:[%s6487_s6 + $0x2f0] sm:$0x3] }
 0x231   : > { %v4603_v52 = vrot.slane %v4357_v8, 1  ;;  %v9642_v61 = vmul.f32 %v9622_v7, %v6718_v45  ;;  %v5667_v35 = vadd.f32 %v6598_v22, %v5463_v39  ;;  %v2262_v50 = vadd.f32 %v2198_v29, %v1928_v16 }
 0x232   : > { %v10374_v23 = vrot.slane %v9630_v59, 1  ;;  %v5320_v42 = vrot.slane %v5074_v43, 2  ;;  %v3554_v55 = vsel %vm1650_vm1, %v3552_v6, %v10373_v36  ;;  %v822_v8 = vmul.f32 %v6493_v12, %v649_v2 }
 0x233   : > { %v1540_v28 = vmul.f32 %v6496_v13, %v1367_v3  ;;  %v5731_v39 = vmax.f32 %v5667_v35, 0.0  ;;  %v2979_v16 = vadd.f32 %v2837_v10, %v2262_v50  ;;  %v429_v43 = vmul.f32 %v9101_v51, %v6490_v11  ;;  %v650_v50 = vld [vmem:[%s6487_s6 + $0x298] sm:$0x1] }
 0x234   : > { %v4605_v29 = vsel %vm932_vm0, %v4603_v52, %v10374_v23  ;;  %v1069_v6 = vrot.slane %v822_v8, 1  ;;  %v2199_v2 = vmul.f32 %v9325_v26, %v6507_v18  ;;  %v2592_v3 = vmul.f32 %v6019_v60, %v6510_v19 }
 0x235   : > { %v1787_v36 = vrot.slane %v1540_v28, 2  ;;  %5795 = vst [vmem:[%s6726_s15 + $0x1a0] sm:$0xff] %v5731_v39  ;;  %v3696_v54 = vadd.f32 %v3554_v55, %v2979_v16  ;;  %v10615_v10 = vrot.slane %v9642_v61, 2  ;;  %v3309_v52 = vmul.f32 %v6116_v14, %v6513_v20 }
 0x236   : > { %v4360_v51 = vmul.f32 %v6278_v44, %v10611_v25  ;;  %v10616_v28 = vrot.slane %v9507_v38, 1  ;;  %v10617_v23 = vrot.slane %v9515_v48, 2  ;;  %v2838_v55 = vrot.slane %v2592_v3, 1 }
 0x237   : > { %v5322_v35 = vsel %vm1650_vm1, %v5320_v42, %v10615_v10  ;;  %v5077_v39 = vmul.f32 %v6375_v32, %v6538_v33  ;;  %v4030_v42 = vadd.f32 %v3966_v31, %v3696_v54  ;;  %v3555_v14 = vrot.slane %v3309_v52, 2 }
 0x238   : > { %v1070_v8 = vsel %vm932_vm0, %v10616_v28, %v1069_v6  ;;  %v1788_v60 = vsel %vm1650_vm1, %v10617_v23, %v1787_v36  ;;  %v4606_v10 = vrot.slane %v4360_v51, 1  ;;  %v10618_v44 = vrot.slane %v9525_v27, 1  ;;  %v6020_v36 = vld [vmem:[%s6487_s6 + $0x2c8] sm:$0x1] }
 0x239   : > { %v1211_v16 = vadd.f32 %v1070_v8, %v429_v43  ;;  %v3967_v38 = vmul.f32 %v9549_v57, %v6516_v21  ;;  %v5323_v6 = vrot.slane %v5077_v39, 2  ;;  %v823_v48 = vmul.f32 %v6625_v41, %v650_v50  ;;  %v6117_v23 = vld [vmem:[%s6487_s6 + $0x2c8] sm:$0x3]  ;;  %v6279_v43 = vld [vmem:[%s6487_s6 + $0x2f8] sm:$0x1] }
 0x23a   : > { %v2839_v25 = vsel %vm932_vm0, %v10618_v44, %v2838_v55  ;;  %v4747_v32 = vadd.f32 %v4605_v29, %v4030_v42  ;;  %v10619_v54 = vrot.slane %v9539_v30, 2  ;;  %v430_v27 = vmul.f32 %v9174_v0, %v6621_v4  ;;  %v6376_v0 = vld [vmem:[%s6487_s6 + $0x2f8] sm:$0x3] }
 0x23b   : > { %v1929_v3 = vadd.f32 %v1788_v60, %v1211_v16  ;;  %v10620_v52 = vrot.slane %v9555_v62, 1  ;;  %v10621_v28 = vrot.slane %v9564_v40, 2  ;;  %v1071_v8 = vrot.slane %v823_v48, 1 }
 0x23c   : > { %v3556_v31 = vsel %vm1650_vm1, %v10619_v54, %v3555_v14  ;;  %v1541_v29 = vmul.f32 %v6629_v17, %v1368_v37  ;;  %v5464_v60 = vadd.f32 %v5322_v35, %v4747_v32  ;;  %v2593_v30 = vmul.f32 %v6020_v36, %v6641_v1 }
 0x23d   : > { %v4607_v51 = vsel %vm932_vm0, %v10620_v52, %v4606_v10  ;;  %v5324_v50 = vsel %vm1650_vm1, %v10621_v28, %v5323_v6  ;;  %v2263_v55 = vadd.f32 %v2199_v2, %v1929_v3  ;;  %v3310_v39 = vmul.f32 %v6117_v23, %v6672_v34  ;;  %v651_v23 = vld [vmem:[%s6487_s6 + $0x2a0] sm:$0xfe] }
 0x23e   : > { %v10622_v42 = vrot.slane %v9581_v15, 1  ;;  %v1789_v16 = vrot.slane %v1541_v29, 2  ;;  %v2200_v40 = vmul.f32 %v9398_v53, %v6637_v46  ;;  %v4361_v14 = vmul.f32 %v6279_v43, %v6686_v5 }
 0x23f   : > { %v5668_v37 = vadd.f32 %v6740_v47, %v5464_v60  ;;  %v2980_v2 = vadd.f32 %v2839_v25, %v2263_v55  ;;  %v2840_v10 = vrot.slane %v2593_v30, 1  ;;  %v10623_v44 = vrot.slane %v9590_v24, 2  ;;  %v1369_v25 = vld [vmem:[%s6487_s6 + $0x2a0] sm:$0xfc] }
 0x240   : > { %v1072_v62 = vsel %vm932_vm0, %v10622_v42, %v1071_v8  ;;  %v3557_v15 = vrot.slane %v3310_v39, 2  ;;  %v4608_v48 = vrot.slane %v4361_v14, 1  ;;  %v5078_v36 = vmul.f32 %v6376_v0, %v6718_v45  ;;  %v6118_v42 = vld [vmem:[%s6487_s6 + $0x2d0] sm:$0xfc] }
 0x241   : > { %v1212_v35 = vadd.f32 %v1072_v62, %v430_v27  ;;  %v1790_v6 = vsel %vm1650_vm1, %v10623_v44, %v1789_v16  ;;  %v5732_v32 = vmax.f32 %v5668_v37, 0.0  ;;  %v3697_v3 = vadd.f32 %v3556_v31, %v2980_v2 }
 0x242   : > { %v3968_v43 = vmul.f32 %v9622_v7, %v6682_v56  ;;  %v10624_v27 = vrot.slane %v9601_v63, 1  ;;  %v10625_v52 = vrot.slane %v9613_v58, 2  ;;  %v10626_v8 = vrot.slane %v9630_v59, 1  ;;  %v6021_v63 = vld [vmem:[%s6487_s6 + $0x2d0] sm:$0xfe] }
 0x243   : > { %v1930_v54 = vadd.f32 %v1790_v6, %v1212_v35  ;;  %v5325_v60 = vrot.slane %v5078_v36, 2  ;;  %5796 = vst [vmem:[%s6726_s15 + $0x1a8] sm:$0xff] %v5732_v32  ;;  %v4031_v31 = vadd.f32 %v3967_v38, %v3697_v3  ;;  %v824_v30 = vmul.f32 %v6493_v12, %v651_v23 }
 0x244   : > { %v2841_v24 = vsel %vm932_vm0, %v10624_v27, %v2840_v10  ;;  %v3558_v28 = vsel %vm1650_vm1, %v10625_v52, %v3557_v15  ;;  %v4609_v29 = vsel %vm932_vm0, %v10626_v8, %v4608_v48  ;;  %v9731_v39 = vmul.f32 %v9325_v26, %v6493_v12  ;;  %v6280_v15 = vld [vmem:[%s6487_s6 + $0x300] sm:$0xfe] }
 0x245   : > { %v2264_v55 = vadd.f32 %v2200_v40, %v1930_v54  ;;  %v431_v58 = vmul.f32 %v9335_v49, %v6490_v11  ;;  %v1542_v0 = vmul.f32 %v6496_v13, %v1369_v25  ;;  %v9739_v59 = vmul.f32 %v9325_v26, %v6496_v13  ;;  %v6377_v27 = vld [vmem:[%s6487_s6 + $0x300] sm:$0xfc] }
 0x246   : > { %v2201_v38 = vmul.f32 %v9559_v9, %v6507_v18  ;;  %v4748_v62 = vadd.f32 %v4607_v51, %v4031_v31  ;;  %v1073_v40 = vrot.slane %v824_v30, 1  ;;  %v10384_v14 = vrot.slane %v9731_v39, 1  ;;  %v9773_v31 = vld [vmem:[%s6487_s6 + $0x310] sm:$0xff] }
 0x247   : > { %v2981_v16 = vadd.f32 %v2841_v24, %v2264_v55  ;;  %v1791_v37 = vrot.slane %v1542_v0, 2  ;;  %v10383_v2 = vrot.slane %v9739_v59, 2  ;;  %v2594_v49 = vmul.f32 %v6021_v63, %v6510_v19  ;;  %v652_v0 = vld [vmem:[%s6487_s6 + $0x2a8] sm:$0xfe] }
 0x248   : > { %v9749_v35 = vmul.f32 %v9549_v57, %v6510_v19  ;;  %v5465_v10 = vadd.f32 %v5324_v50, %v4748_v62  ;;  %v1075_v51 = vsel %vm932_vm0, %v1073_v40, %v10384_v14  ;;  %v3311_v6 = vmul.f32 %v6118_v42, %v6513_v20  ;;  %v9783_v42 = vld [vmem:[%s6487_s6 + $0x300] sm:$0xff] }
 0x249   : > { %v3698_v44 = vadd.f32 %v3558_v28, %v2981_v16  ;;  %v1213_v48 = vadd.f32 %v1075_v51, %v431_v58  ;;  %v1793_v36 = vsel %vm1650_vm1, %v1791_v37, %v10383_v2  ;;  %v2842_v23 = vrot.slane %v2594_v49, 1  ;;  %v1370_v37 = vld [vmem:[%s6487_s6 + $0x2a8] sm:$0xfc]  ;;  %v6122_v2 = vld [vmem:[%s6487_s6 + $0x2f0] sm:$0x3] }
 0x24a   : > { %v10380_v32 = vrot.slane %v9749_v35, 1  ;;  %v5669_v50 = vadd.f32 %v6598_v22, %v5465_v10  ;;  %v9763_v54 = vmul.f32 %v9549_v57, %v6513_v20  ;;  %v3559_v25 = vrot.slane %v3311_v6, 2  ;;  %v6284_v14 = vld [vmem:[%s6487_s6 + $0x320] sm:$0x1] }
 0x24b   : > { %v4032_v3 = vadd.f32 %v3968_v43, %v3698_v44  ;;  %v10627_v24 = vrot.slane %v9642_v61, 2  ;;  %v1931_v28 = vadd.f32 %v1793_v36, %v1213_v48  ;;  %v10628_v43 = vld [vmem:[#allocation3_spill] sm:$0xff]  ;;  %v5079_v16 = vmul.f32 %v6377_v27, %v6538_v33  ;;  %v10629_v36 = vld [vmem:[#allocation4_spill] sm:$0xff] }
 0x24c   : > { %v2844_v8 = vsel %vm932_vm0, %v2842_v23, %v10380_v32  ;;  %v4362_v55 = vmul.f32 %v6280_v15, %v10628_v43  ;;  %v5733_v30 = vmax.f32 %v5669_v50, 0.0  ;;  %v10379_v58 = vrot.slane %v9763_v54, 2  ;;  %v9850_v32 = vld [vmem:[%s6487_s6 + $0x308] sm:$0xff] }
 0x24d   : > { %v5326_v52 = vsel %vm1650_vm1, %v10627_v24, %v5325_v60  ;;  %v4749_v63 = vadd.f32 %v4609_v29, %v4032_v3  ;;  %v9779_v61 = vmul.f32 %v9773_v31, %v10628_v43  ;;  %v2265_v60 = vadd.f32 %v2201_v38, %v1931_v28  ;;  %10631 = vst [vmem:[#allocation4_spill] sm:$0xff] %v9850_v32 }
 0x24e   : > { %v4610_v62 = vrot.slane %v4362_v55, 1  ;;  %v9788_v40 = vmul.f32 %v9773_v31, %v6538_v33  ;;  %5797 = vst [vmem:[%s6726_s15 + $0x1b0] sm:$0xff] %v5733_v30  ;;  %v3561_v49 = vsel %vm1650_vm1, %v3559_v25, %v10379_v58  ;;  %v3969_v38 = vmul.f32 %v9783_v42, %v6516_v21  ;;  %v6022_v25 = vld [vmem:[%s6487_s6 + $0x2d8] sm:$0xfe] }
 0x24f   : > { %v5466_v29 = vadd.f32 %v5326_v52, %v4749_v63  ;;  %v10378_v10 = vrot.slane %v9779_v61, 1  ;;  %v2982_v44 = vadd.f32 %v2844_v8, %v2265_v60  ;;  %v5327_v51 = vrot.slane %v5079_v16, 2  ;;  %v6119_v8 = vld [vmem:[%s6487_s6 + $0x2d8] sm:$0xfc] }
 0x250   : > { %v10377_v6 = vrot.slane %v9788_v40, 2  ;;  %v825_v15 = vmul.f32 %v6625_v41, %v652_v0  ;;  %v432_v23 = vmul.f32 %v10629_v36, %v6621_v4  ;;  %v9805_v50 = vmul.f32 %v9398_v53, %v6625_v41 }
 0x251   : > { %v5670_v48 = vadd.f32 %v6740_v47, %v5466_v29  ;;  %v1543_v3 = vmul.f32 %v6629_v17, %v1370_v37  ;;  %v3699_v27 = vadd.f32 %v3561_v49, %v2982_v44  ;;  %v4612_v24 = vsel %vm932_vm0, %v4610_v62, %v10378_v10  ;;  %v6281_v29 = vld [vmem:[%s6487_s6 + $0x308] sm:$0xfe]  ;;  %v10630_v44 = vld [vmem:[#allocation5_spill] sm:$0xff] }
 0x252   : > { %v1076_v52 = vrot.slane %v825_v15, 1  ;;  %v9814_v28 = vmul.f32 %v9398_v53, %v6629_v17  ;;  %v5329_v30 = vsel %vm1650_vm1, %v5327_v51, %v10377_v6  ;;  %v10376_v63 = vrot.slane %v9805_v50, 1 }
 0x253   : > { %v5734_v55 = vmax.f32 %v5670_v48, 0.0  ;;  %v1794_v0 = vrot.slane %v1543_v3, 2  ;;  %v4033_v60 = vadd.f32 %v3969_v38, %v3699_v27  ;;  %v2595_v62 = vmul.f32 %v6022_v25, %v6641_v1  ;;  %v6378_v48 = vld [vmem:[%s6487_s6 + $0x308] sm:$0xfc] }
 0x254   : > { %v10382_v16 = vrot.slane %v9814_v28, 2  ;;  %v9825_v37 = vmul.f32 %v9622_v7, %v6641_v1  ;;  %v1078_v49 = vsel %vm932_vm0, %v1076_v52, %v10376_v63  ;;  %v2202_v51 = vmul.f32 %v10630_v44, %v6637_v46  ;;  %v1374_v44 = vld [vmem:[%s6487_s6 + $0x2c8] sm:$0x3] }
 0x255   : > { %5798 = vst [vmem:[%s6726_s15 + $0x1b8] sm:$0xff] %v5734_v55  ;;  %v3312_v38 = vmul.f32 %v6119_v8, %v6672_v34  ;;  %v9837_v15 = vmul.f32 %v9622_v7, %v6672_v34  ;;  %v4750_v36 = vadd.f32 %v4612_v24, %v4033_v60  ;;  %v1214_v3 = vadd.f32 %v1078_v49, %v432_v23  ;;  %v9846_v8 = vld [vmem:[%s6487_s6 + $0x318] sm:$0xff]  ;;  %v1373_v60 = vld [vmem:[%s6487_s6 + $0x2c0] sm:$0x3] }
 0x256   : > { %v1796_v25 = vsel %vm1650_vm1, %v1794_v0, %v10382_v16  ;;  %v2845_v27 = vrot.slane %v2595_v62, 1  ;;  %v10381_v52 = vrot.slane %v9825_v37, 1  ;;  %v4363_v6 = vmul.f32 %v6281_v29, %v6686_v5  ;;  %v655_v0 = vld [vmem:[%s6487_s6 + $0x2c0] sm:$0x1] }
 0x257   : > { %v3562_v55 = vrot.slane %v3312_v38, 2  ;;  %v10386_v63 = vrot.slane %v9837_v15, 2  ;;  %v5467_v10 = vadd.f32 %v5329_v30, %v4750_v36  ;;  %v1932_v58 = vadd.f32 %v1796_v25, %v1214_v3  ;;  %v6025_v25 = vld [vmem:[%s6487_s6 + $0x2f0] sm:$0x1] }
 0x258   : > { %v9854_v23 = vmul.f32 %v9846_v8, %v6686_v5  ;;  %v5080_v24 = vmul.f32 %v6378_v48, %v6718_v45  ;;  %v2847_v62 = vsel %vm932_vm0, %v2845_v27, %v10381_v52  ;;  %v3970_v30 = vmul.f32 %v9850_v32, %v6682_v56  ;;  %v6381_v32 = vld [vmem:[%s6487_s6 + $0x320] sm:$0x3] }
 0x259   : > { %v4613_v29 = vrot.slane %v4363_v6, 1  ;;  %v9866_v49 = vmul.f32 %v9846_v8, %v6718_v45  ;;  %v5671_v38 = vadd.f32 %v6598_v22, %v5467_v10  ;;  %v2266_v48 = vadd.f32 %v2202_v51, %v1932_v58 }
 0x25a   : > { %v10387_v36 = vrot.slane %v9854_v23, 1  ;;  %v5330_v3 = vrot.slane %v5080_v24, 2  ;;  %v3564_v27 = vsel %vm1650_vm1, %v3562_v55, %v10386_v63  ;;  %v828_v6 = vmul.f32 %v6493_v12, %v655_v0 }
 0x25b   : > { %v1546_v16 = vmul.f32 %v6496_v13, %v1373_v60  ;;  %v5735_v10 = vmax.f32 %v5671_v38, 0.0  ;;  %v2983_v58 = vadd.f32 %v2847_v62, %v2266_v48  ;;  %v433_v24 = vmul.f32 %v9325_v26, %v6490_v11  ;;  %v656_v48 = vld [vmem:[%s6487_s6 + $0x2c8] sm:$0x1] }
 0x25c   : > { %v4615_v51 = vsel %vm932_vm0, %v4613_v29, %v10387_v36  ;;  %v1079_v55 = vrot.slane %v828_v6, 1  ;;  %v2203_v0 = vmul.f32 %v9549_v57, %v6507_v18  ;;  %v2598_v60 = vmul.f32 %v6025_v25, %v6510_v19 }
 0x25d   : > { %v1797_v63 = vrot.slane %v1546_v16, 2  ;;  %5799 = vst [vmem:[%s6726_s15 + $0x1c0] sm:$0xff] %v5735_v10  ;;  %v3700_v52 = vadd.f32 %v3564_v27, %v2983_v58  ;;  %v10632_v62 = vrot.slane %v9866_v49, 2  ;;  %v3315_v29 = vmul.f32 %v6122_v2, %v6513_v20 }
 0x25e   : > { %v4366_v26 = vmul.f32 %v6284_v14, %v10628_v43  ;;  %v10633_v16 = vrot.slane %v9731_v39, 1  ;;  %v10634_v36 = vrot.slane %v9739_v59, 2  ;;  %v2848_v27 = vrot.slane %v2598_v60, 1 }
 0x25f   : > { %v5332_v38 = vsel %vm1650_vm1, %v5330_v3, %v10632_v62  ;;  %v5083_v10 = vmul.f32 %v6381_v32, %v6538_v33  ;;  %v4034_v3 = vadd.f32 %v3970_v30, %v3700_v52  ;;  %v3565_v2 = vrot.slane %v3315_v29, 2 }
 0x260   : > { %v1080_v6 = vsel %vm932_vm0, %v10633_v16, %v1079_v55  ;;  %v1798_v25 = vsel %vm1650_vm1, %v10634_v36, %v1797_v63  ;;  %v4616_v62 = vrot.slane %v4366_v26, 1  ;;  %v10635_v14 = vrot.slane %v9749_v35, 1  ;;  %v6026_v63 = vld [vmem:[%s6487_s6 + $0x2f8] sm:$0x1] }
 0x261   : > { %v1215_v58 = vadd.f32 %v1080_v6, %v433_v24  ;;  %v3971_v39 = vmul.f32 %v9773_v31, %v6516_v21  ;;  %v5333_v55 = vrot.slane %v5083_v10, 2  ;;  %v829_v59 = vmul.f32 %v6625_v41, %v656_v48  ;;  %v6123_v36 = vld [vmem:[%s6487_s6 + $0x2f8] sm:$0x3]  ;;  %v6285_v24 = vld [vmem:[%s6487_s6 + $0x328] sm:$0x1] }
 0x262   : > { %v2849_v43 = vsel %vm932_vm0, %v10635_v14, %v2848_v27  ;;  %v4751_v32 = vadd.f32 %v4615_v51, %v4034_v3  ;;  %v10636_v52 = vrot.slane %v9763_v54, 2  ;;  %v434_v35 = vmul.f32 %v9398_v53, %v6621_v4  ;;  %v6382_v53 = vld [vmem:[%s6487_s6 + $0x328] sm:$0x3] }
 0x263   : > { %v1933_v60 = vadd.f32 %v1798_v25, %v1215_v58  ;;  %v10637_v29 = vrot.slane %v9779_v61, 1  ;;  %v10638_v16 = vrot.slane %v9788_v40, 2  ;;  %v1081_v6 = vrot.slane %v829_v59, 1 }
 0x264   : > { %v3566_v30 = vsel %vm1650_vm1, %v10636_v52, %v3565_v2  ;;  %v1547_v51 = vmul.f32 %v6629_v17, %v1374_v44  ;;  %v5468_v25 = vadd.f32 %v5332_v38, %v4751_v32  ;;  %v2599_v54 = vmul.f32 %v6026_v63, %v6641_v1 }
 0x265   : > { %v4617_v26 = vsel %vm932_vm0, %v10637_v29, %v4616_v62  ;;  %v5334_v48 = vsel %vm1650_vm1, %v10638_v16, %v5333_v55  ;;  %v2267_v27 = vadd.f32 %v2203_v0, %v1933_v60  ;;  %v3316_v10 = vmul.f32 %v6123_v36, %v6672_v34  ;;  %v657_v36 = vld [vmem:[%s6487_s6 + $0x2d0] sm:$0xfe] }
 0x266   : > { %v10639_v3 = vrot.slane %v9805_v50, 1  ;;  %v1799_v58 = vrot.slane %v1547_v51, 2  ;;  %v2204_v40 = vmul.f32 %v9622_v7, %v6637_v46  ;;  %v4367_v2 = vmul.f32 %v6285_v24, %v6686_v5 }
 0x267   : > { %v5672_v44 = vadd.f32 %v6740_v47, %v5468_v25  ;;  %v2984_v0 = vadd.f32 %v2849_v43, %v2267_v27  ;;  %v2850_v62 = vrot.slane %v2599_v54, 1  ;;  %v10640_v14 = vrot.slane %v9814_v28, 2  ;;  %v1375_v43 = vld [vmem:[%s6487_s6 + $0x2d0] sm:$0xfc] }
 0x268   : > { %v1082_v61 = vsel %vm932_vm0, %v10639_v3, %v1081_v6  ;;  %v3567_v50 = vrot.slane %v3316_v10, 2  ;;  %v4618_v59 = vrot.slane %v4367_v2, 1  ;;  %v5084_v63 = vmul.f32 %v6382_v53, %v6718_v45  ;;  %v6124_v3 = vld [vmem:[%s6487_s6 + $0x300] sm:$0xfc] }
 0x269   : > { %v1216_v38 = vadd.f32 %v1082_v61, %v434_v35  ;;  %v1800_v55 = vsel %vm1650_vm1, %v10640_v14, %v1799_v58  ;;  %v5736_v32 = vmax.f32 %v5672_v44, 0.0  ;;  %v3701_v60 = vadd.f32 %v3566_v30, %v2984_v0 }
 0x26a   : > { %v3972_v24 = vmul.f32 %v9846_v8, %v6682_v56  ;;  %v10641_v35 = vrot.slane %v9825_v37, 1  ;;  %v10642_v29 = vrot.slane %v9837_v15, 2  ;;  %v10643_v6 = vrot.slane %v9854_v23, 1  ;;  %v6027_v37 = vld [vmem:[%s6487_s6 + $0x300] sm:$0xfe] }
 0x26b   : > { %v1934_v52 = vadd.f32 %v1800_v55, %v1216_v38  ;;  %v5335_v25 = vrot.slane %v5084_v63, 2  ;;  %5800 = vst [vmem:[%s6726_s15 + $0x1c8] sm:$0xff] %v5736_v32  ;;  %v4035_v30 = vadd.f32 %v3971_v39, %v3701_v60  ;;  %v830_v54 = vmul.f32 %v6493_v12, %v657_v36  ;;  %v6286_v55 = vld [vmem:[%s6487_s6 + $0x330] sm:$0xfe]  ;;  %v9985_v32 = vld [vmem:[%s6487_s6 + $0x340] sm:$0xff] }
 0x26c   : > { %v2851_v28 = vsel %vm932_vm0, %v10641_v35, %v2850_v62  ;;  %v3568_v16 = vsel %vm1650_vm1, %v10642_v29, %v3567_v50  ;;  %v4619_v51 = vsel %vm932_vm0, %v10643_v6, %v4618_v59  ;;  %v9955_v10 = vmul.f32 %v9549_v57, %v6493_v12  ;;  %v6383_v35 = vld [vmem:[%s6487_s6 + $0x330] sm:$0xfc] }
 0x26d   : > { %v2268_v27 = vadd.f32 %v2204_v40, %v1934_v52  ;;  %v435_v15 = vmul.f32 %v9559_v9, %v6490_v11  ;;  %v1548_v53 = vmul.f32 %v6496_v13, %v1375_v43  ;;  %v9963_v23 = vmul.f32 %v9549_v57, %v6496_v13 }
 0x26e   : > { %v2205_v39 = vmul.f32 %v9783_v42, %v6507_v18  ;;  %v4752_v61 = vadd.f32 %v4617_v26, %v4035_v30  ;;  %v1083_v40 = vrot.slane %v830_v54, 1  ;;  %v1084_v2 = vrot.slane %v9955_v10, 1  ;;  %v6191_v30 = vld [vmem:[%s6487_s6 + $0x330] sm:$0xff] }
 0x26f   : > { %v2985_v58 = vadd.f32 %v2851_v28, %v2268_v27  ;;  %v1801_v44 = vrot.slane %v1548_v53, 2  ;;  %v1802_v9 = vrot.slane %v9963_v23, 2  ;;  %v2600_v0 = vmul.f32 %v6027_v37, %v6510_v19  ;;  %v10645_v27 = vld [vmem:[#allocation3_spill] sm:$0xff] }
 0x270   : > { %v9973_v38 = vmul.f32 %v9773_v31, %v6510_v19  ;;  %v5469_v62 = vadd.f32 %v5334_v48, %v4752_v61  ;;  %v1085_v42 = vsel %vm932_vm0, %v1083_v40, %v1084_v2  ;;  %v3317_v26 = vmul.f32 %v6124_v3, %v6513_v20  ;;  %v1376_v40 = vld [vmem:[%s6487_s6 + $0x2d8] sm:$0xfc] }
 0x271   : > { %v3702_v14 = vadd.f32 %v3568_v16, %v2985_v58  ;;  %v1217_v50 = vadd.f32 %v1085_v42, %v435_v15  ;;  %v1803_v59 = vsel %vm1650_vm1, %v1801_v44, %v1802_v9  ;;  %v2852_v63 = vrot.slane %v2600_v0, 1 }
 0x272   : > { %v10395_v36 = vrot.slane %v9973_v38, 1  ;;  %v5673_v48 = vadd.f32 %v6598_v22, %v5469_v62  ;;  %v9990_v52 = vmul.f32 %v9773_v31, %v6513_v20  ;;  %v3569_v43 = vrot.slane %v3317_v26, 2 }
 0x273   : > { %v4036_v60 = vadd.f32 %v3972_v24, %v3702_v14  ;;  %v10644_v28 = vrot.slane %v9866_v49, 2  ;;  %v1935_v16 = vadd.f32 %v1803_v59, %v1217_v50  ;;  %v4368_v24 = vmul.f32 %v6286_v55, %v10645_v27  ;;  %v658_v49 = vld [vmem:[%s6487_s6 + $0x2d8] sm:$0xfe]  ;;  %v10646_v50 = vld [vmem:[#allocation5_spill] sm:$0xff] }
 0x274   : > { %v2854_v6 = vsel %vm932_vm0, %v2852_v63, %v10395_v36  ;;  %v5737_v54 = vmax.f32 %v5673_v48, 0.0  ;;  %v10394_v15 = vrot.slane %v9990_v52, 2  ;;  %v10004_v53 = vmul.f32 %v9985_v32, %v10645_v27 }
 0x275   : > { %v5336_v29 = vsel %vm1650_vm1, %v10644_v28, %v5335_v25  ;;  %v4753_v37 = vadd.f32 %v4619_v51, %v4036_v60  ;;  %v2269_v3 = vadd.f32 %v2205_v39, %v1935_v16  ;;  %v4620_v61 = vrot.slane %v4368_v24, 1  ;;  %v6028_v60 = vld [vmem:[%s6487_s6 + $0x308] sm:$0xfe] }
 0x276   : > { %v5085_v25 = vmul.f32 %v6383_v35, %v6538_v33  ;;  %v10010_v58 = vmul.f32 %v9985_v32, %v6538_v33  ;;  %5801 = vst [vmem:[%s6726_s15 + $0x1d0] sm:$0xff] %v5737_v54  ;;  %v3571_v51 = vsel %vm1650_vm1, %v3569_v43, %v10394_v15  ;;  %v3973_v0 = vmul.f32 %v6191_v30, %v6516_v21  ;;  %v6125_v16 = vld [vmem:[%s6487_s6 + $0x308] sm:$0xfc] }
 0x277   : > { %v5470_v44 = vadd.f32 %v5336_v29, %v4753_v37  ;;  %v10390_v39 = vrot.slane %v10004_v53, 1  ;;  %v2986_v62 = vadd.f32 %v2854_v6, %v2269_v3  ;;  %v831_v26 = vmul.f32 %v6625_v41, %v658_v49 }
 0x278   : > { %v5337_v14 = vrot.slane %v5085_v25, 2  ;;  %v10389_v42 = vrot.slane %v10010_v58, 2  ;;  %v436_v59 = vmul.f32 %v10646_v50, %v6621_v4  ;;  %v10026_v63 = vmul.f32 %v9622_v7, %v6625_v41  ;;  %v6287_v25 = vld [vmem:[%s6487_s6 + $0x338] sm:$0xfe] }
 0x279   : > { %v5674_v55 = vadd.f32 %v6740_v47, %v5470_v44  ;;  %v1549_v48 = vmul.f32 %v6629_v17, %v1376_v40  ;;  %v3703_v43 = vadd.f32 %v3571_v51, %v2986_v62  ;;  %v4622_v35 = vsel %vm932_vm0, %v4620_v61, %v10390_v39  ;;  %v10647_v44 = vld [vmem:[#allocation4_spill] sm:$0xff]  ;;  %v6192_v39 = vld [vmem:[%s6487_s6 + $0x338] sm:$0xff] }
 0x27a   : > { %v1086_v28 = vrot.slane %v831_v26, 1  ;;  %v10035_v29 = vmul.f32 %v9622_v7, %v6629_v17  ;;  %v5339_v30 = vsel %vm1650_vm1, %v5337_v14, %v10389_v42  ;;  %v10393_v24 = vrot.slane %v10026_v63, 1  ;;  %v10061_v14 = vld [vmem:[%s6487_s6 + $0x348] sm:$0xff]  ;;  %v6384_v26 = vld [vmem:[%s6487_s6 + $0x338] sm:$0xfc] }
 0x27b   : > { %v5738_v6 = vmax.f32 %v5674_v55, 0.0  ;;  %v1804_v54 = vrot.slane %v1549_v48, 2  ;;  %v4037_v37 = vadd.f32 %v3973_v0, %v3703_v43  ;;  %v2601_v3 = vmul.f32 %v6028_v60, %v6641_v1 }
 0x27c   : > { %v10392_v49 = vrot.slane %v10035_v29, 2  ;;  %v10046_v61 = vmul.f32 %v9846_v8, %v6641_v1  ;;  %v1088_v40 = vsel %vm932_vm0, %v1086_v28, %v10393_v24  ;;  %v2206_v51 = vmul.f32 %v10647_v44, %v6637_v46 }
 0x27d   : > { %5802 = vst [vmem:[%s6726_s15 + $0x1d8] sm:$0xff] %v5738_v6  ;;  %v3318_v0 = vmul.f32 %v6125_v16, %v6672_v34  ;;  %v10058_v62 = vmul.f32 %v9846_v8, %v6672_v34  ;;  %v4754_v55 = vadd.f32 %v4622_v35, %v4037_v37  ;;  %v1218_v50 = vadd.f32 %v1088_v40, %v436_v59  ;;  %v1379_v37 = vld [vmem:[%s6487_s6 + $0x2f0] sm:$0x3] }
 0x27e   : > { %v1806_v48 = vsel %vm1650_vm1, %v1804_v54, %v10392_v49  ;;  %v2855_v60 = vrot.slane %v2601_v3, 1  ;;  %v10391_v43 = vrot.slane %v10046_v61, 1  ;;  %v4369_v6 = vmul.f32 %v6287_v25, %v6686_v5  ;;  %v661_v54 = vld [vmem:[%s6487_s6 + $0x2f0] sm:$0x1]  ;;  %v6128_v49 = vld [vmem:[%s6487_s6 + $0x320] sm:$0x3] }
 0x27f   : > { %v3572_v28 = vrot.slane %v3318_v0, 2  ;;  %v3573_v16 = vrot.slane %v10058_v62, 2  ;;  %v5471_v44 = vadd.f32 %v5339_v30, %v4754_v55  ;;  %v1936_v42 = vadd.f32 %v1806_v48, %v1218_v50  ;;  %v6031_v50 = vld [vmem:[%s6487_s6 + $0x320] sm:$0x1] }
 0x280   : > { %v10073_v59 = vmul.f32 %v10061_v14, %v6686_v5  ;;  %v5086_v35 = vmul.f32 %v6384_v26, %v6718_v45  ;;  %v2857_v3 = vsel %vm932_vm0, %v2855_v60, %v10391_v43  ;;  %v10083_v25 = vmul.f32 %v10061_v14, %v6718_v45 }
 0x281   : > { %v5675_v30 = vadd.f32 %v6598_v22, %v5471_v44  ;;  %v2270_v40 = vadd.f32 %v2206_v51, %v1936_v42  ;;  %v4623_v0 = vrot.slane %v4369_v6, 1  ;;  %v3574_v26 = vsel %vm1650_vm1, %v3572_v28, %v3573_v16  ;;  %v6290_v6 = vld [vmem:[%s6487_s6 + $0x350] sm:$0x1] }
 0x282   : > { %v4624_v55 = vrot.slane %v10073_v59, 1  ;;  %v3974_v48 = vmul.f32 %v6192_v39, %v6682_v56  ;;  %v834_v60 = vmul.f32 %v6493_v12, %v661_v54  ;;  %v1552_v43 = vmul.f32 %v6496_v13, %v1379_v37  ;;  %v662_v54 = vld [vmem:[%s6487_s6 + $0x2f8] sm:$0x1] }
 0x283   : > { %v5739_v24 = vmax.f32 %v5675_v30, 0.0  ;;  %v2987_v44 = vadd.f32 %v2857_v3, %v2270_v40  ;;  %v5340_v42 = vrot.slane %v5086_v35, 2  ;;  %v437_v51 = vmul.f32 %v9549_v57, %v6490_v11 }
 0x284   : > { %v5341_v15 = vrot.slane %v10083_v25, 2  ;;  %v1089_v36 = vrot.slane %v834_v60, 1  ;;  %v1807_v28 = vrot.slane %v1552_v43, 2  ;;  %v2604_v39 = vmul.f32 %v6031_v50, %v6510_v19  ;;  %v6387_v43 = vld [vmem:[%s6487_s6 + $0x350] sm:$0x3] }
 0x285   : > { %5803 = vst [vmem:[%s6726_s15 + $0x1e0] sm:$0xff] %v5739_v24  ;;  %v3704_v12 = vadd.f32 %v3574_v26, %v2987_v44  ;;  %v4625_v13 = vsel %vm932_vm0, %v4623_v0, %v4624_v55  ;;  %v3321_v35 = vmul.f32 %v6128_v49, %v6513_v20  ;;  %v4372_v24 = vmul.f32 %v6290_v6, %v10645_v27  ;;  %v1380_v20 = vld [vmem:[%s6487_s6 + $0x2f8] sm:$0x3] }
 0x286   : > { %v1090_v11 = vsel %vm932_vm0, %v1084_v2, %v1089_v36  ;;  %v1808_v57 = vsel %vm1650_vm1, %v1802_v9, %v1807_v28  ;;  %v2858_v19 = vrot.slane %v2604_v39, 1  ;;  %v2207_v30 = vmul.f32 %v9773_v31, %v6507_v18  ;;  %v6032_v9 = vld [vmem:[%s6487_s6 + $0x328] sm:$0x1] }
 0x287   : > { %v4038_v37 = vadd.f32 %v3974_v48, %v3704_v12  ;;  %v1219_v3 = vadd.f32 %v1090_v11, %v437_v51  ;;  %v5342_v10 = vsel %vm1650_vm1, %v5340_v42, %v5341_v15  ;;  %v3575_v49 = vrot.slane %v3321_v35, 2  ;;  %v6129_v36 = vld [vmem:[%s6487_s6 + $0x328] sm:$0x3]  ;;  %v6291_v42 = vld [vmem:[%s6487_s6 + $0x358] sm:$0x1] }
 0x288   : > { %v3975_v23 = vmul.f32 %v9985_v32, %v6516_v21  ;;  %v835_v2 = vmul.f32 %v6625_v41, %v662_v54  ;;  %v5089_v0 = vmul.f32 %v6387_v43, %v6538_v33  ;;  %v438_v18 = vmul.f32 %v9622_v7, %v6621_v4 }
 0x289   : > { %v4755_v27 = vadd.f32 %v4625_v13, %v4038_v37  ;;  %v1937_v40 = vadd.f32 %v1808_v57, %v1219_v3  ;;  %v10648_v31 = vrot.slane %v9973_v38, 1  ;;  %v4626_v26 = vrot.slane %v4372_v24, 1 }
 0x28a   : > { %v1091_v48 = vrot.slane %v835_v2, 1  ;;  %v1553_v21 = vmul.f32 %v6629_v17, %v1380_v20  ;;  %v2605_v60 = vmul.f32 %v6032_v9, %v6641_v1  ;;  %v3322_v44 = vmul.f32 %v6129_v36, %v6672_v34  ;;  %v6388_v34 = vld [vmem:[%s6487_s6 + $0x358] sm:$0x3] }
 0x28b   : > { %v2859_v50 = vsel %vm932_vm0, %v10648_v31, %v2858_v19  ;;  %v5472_v32 = vadd.f32 %v5342_v10, %v4755_v27  ;;  %v2271_v41 = vadd.f32 %v2207_v30, %v1937_v40  ;;  %v10649_v33 = vrot.slane %v9990_v52, 2 }
 0x28c   : > { %v10650_v7 = vrot.slane %v10026_v63, 1  ;;  %v1809_v51 = vrot.slane %v1553_v21, 2  ;;  %v2208_v6 = vmul.f32 %v9846_v8, %v6637_v46  ;;  %v2860_v39 = vrot.slane %v2605_v60, 1 }
 0x28d   : > { %v3576_v4 = vsel %vm1650_vm1, %v10649_v33, %v3575_v49  ;;  %v5676_v17 = vadd.f32 %v6740_v47, %v5472_v32  ;;  %v2988_v28 = vadd.f32 %v2859_v50, %v2271_v41  ;;  %v5343_v12 = vrot.slane %v5089_v0, 2 }
 0x28e   : > { %v1092_v38 = vsel %vm932_vm0, %v10650_v7, %v1091_v48  ;;  %v10651_v52 = vrot.slane %v10035_v29, 2  ;;  %v3577_v35 = vrot.slane %v3322_v44, 2  ;;  %v4373_v63 = vmul.f32 %v6291_v42, %v6686_v5 }
 0x28f   : > { %v1220_v1 = vadd.f32 %v1092_v38, %v438_v18  ;;  %v5740_v54 = vmax.f32 %v5676_v17, 0.0  ;;  %v3705_v11 = vadd.f32 %v3576_v4, %v2988_v28  ;;  %v10652_v46 = vrot.slane %v10004_v53, 1 }
 0x290   : > { %v1810_v13 = vsel %vm1650_vm1, %v10651_v52, %v1809_v51  ;;  %v10653_v19 = vrot.slane %v10046_v61, 1  ;;  %v5090_v43 = vmul.f32 %v6388_v34, %v6718_v45  ;;  %v10654_v3 = vrot.slane %v10010_v58, 2 }
 0x291   : > { %v1938_v57 = vadd.f32 %v1810_v13, %v1220_v1  ;;  %v4627_v8 = vsel %vm932_vm0, %v10652_v46, %v4626_v26  ;;  %5804 = vst [vmem:[%s6726_s15 + $0x1e8] sm:$0xff] %v5740_v54  ;;  %v4039_v29 = vadd.f32 %v3975_v23, %v3705_v11  ;;  %v3578_v53 = vsel %vm1650_vm1, %v3573_v16, %v3577_v35 }
 0x292   : > { %v2861_v24 = vsel %vm932_vm0, %v10653_v19, %v2860_v39  ;;  %v5344_v5 = vsel %vm1650_vm1, %v10654_v3, %v5343_v12  ;;  %v4628_v30 = vrot.slane %v4373_v63, 1  ;;  %v3976_v10 = vmul.f32 %v10061_v14, %v6682_v56 }
 0x293   : > { %v2272_v37 = vadd.f32 %v2208_v6, %v1938_v57  ;;  %v4756_v20 = vadd.f32 %v4627_v8, %v4039_v29  ;;  %v5345_v45 = vrot.slane %v5090_v43, 2 }
 0x294   : > { %v4629_v58 = vsel %vm932_vm0, %v4624_v55, %v4628_v30 }
 0x295   : > { %v2989_v61 = vadd.f32 %v2861_v24, %v2272_v37  ;;  %v5473_v49 = vadd.f32 %v5344_v5, %v4756_v20  ;;  %v5346_v62 = vsel %vm1650_vm1, %v5341_v15, %v5345_v45 }
 0x297   : > { %v3706_v23 = vadd.f32 %v3578_v53, %v2989_v61  ;;  %v5677_v2 = vadd.f32 %v6598_v22, %v5473_v49 }
 0x299   : > { %v4040_v9 = vadd.f32 %v3976_v10, %v3706_v23  ;;  %v5741_v16 = vmax.f32 %v5677_v2, 0.0 }
 0x29b   : > { %v4757_v36 = vadd.f32 %v4629_v58, %v4040_v9  ;;  %5805 = vst [vmem:[%s6726_s15 + $0x1f0] sm:$0xff] %v5741_v16 }
 0x29d   : > { %v5474_v27 = vadd.f32 %v5346_v62, %v4757_v36 }
 0x29f   : > { %v5678_v56 = vadd.f32 %v6740_v47, %v5474_v27 }
 0x2a1   : > { %v5742_v14 = vmax.f32 %v5678_v56, 0.0 }
 0x2a3   : > { %5806 = vst [vmem:[%s6726_s15 + $0x1f8] sm:$0xff] %v5742_v14 }
 0x2a4 PF: > { %s13_s12 = sadd.s32 1, %s6408_s12  }
 0x2a5   : > { %p10_p4 = scmp.ge.s32.totalorder %s13_s12, 4  }
 0x2a7   :  { %12 = sbr.rel (!%p10_p4) target bundleno = 1 (0x1), region = 72 }

</bundles_post_ra>
